<compile_context>
chip_gen: v5e
topology: v5e:2x2
jax: 0.10.0
libtpu: 0.0.40
codegen_flags: <defaults>
</compile_context>

<pallas_src>
import functools

import jax
import jax.numpy as jnp
from jax.experimental import pallas as pl
from jax.experimental.pallas import tpu as pltpu


# ----------------------------------------------------------------------------
# Kernel 1: fused conv (single stacked im2col matmul) + 2x2 max-pool + bias
#           + ReLU, gridded over pooled-row blocks.
# ----------------------------------------------------------------------------
def _conv_relu_pool_kernel(p_ref, w_ref, b_ref, o_ref, *, tm):
    # p_ref: (1, 4*tm, K) -- the four 2x2-pool-phase patch matrices stacked
    # along rows.  One MXU dot covers all four phases; the elementwise max of
    # the four row slices is the 2x2 max-pool.  Bias + ReLU are applied once
    # after the max (max(a+b, c+b) == max(a, c)+b, ReLU monotonic).
    y = jnp.dot(p_ref[0], w_ref[...], preferred_element_type=jnp.float32)
    y = jnp.maximum(jnp.maximum(y[0 * tm:1 * tm], y[1 * tm:2 * tm]),
                    jnp.maximum(y[2 * tm:3 * tm], y[3 * tm:4 * tm]))
    o_ref[...] = jnp.maximum(y + b_ref[...], 0.0).astype(o_ref.dtype)


def _block_rows(M, K, vmem_block_bytes):
    """Largest row tile (multiple of 8, divides M) whose stacked 4-phase block
    (4*tm, K) stays under vmem_block_bytes per pipeline buffer."""
    if M % 8:
        return M
    kp = ((K + 127) // 128) * 128              # lane padding in VMEM
    tm = vmem_block_bytes // (4 * kp * 4)      # 4 phases, f32
    tm = min(M, max(8, (tm // 8) * 8))
    while M % tm:
        tm -= 8
    return tm


def _im2col_pool_phase(x, kh, kw, di, dj):
    """Patches for conv output positions (2*ph+di, 2*pw+dj).
    K flattening order is ci*kh*kw + i*kw + j, matching the (Cin,KH,KW,Cout)
    weight flattening used below."""
    N, H, W, C = x.shape
    OH, OW = H - kh + 1, W - kw + 1
    PH, PW = OH // 2, OW // 2
    cols = jnp.stack(
        [x[:, di + i: di + i + 2 * PH: 2, dj + j: dj + j + 2 * PW: 2, :]
         for i in range(kh) for j in range(kw)],
        axis=3)                                    # (N, PH, PW, kh*kw, C)
    cols = jnp.transpose(cols, (0, 1, 2, 4, 3))    # (N, PH, PW, C, kh*kw)
    return cols.reshape(N * PH * PW, C * kh * kw)


def conv_relu_pool_pallas(x_nhwc, w, b, *, kh, kw, vmem_block_bytes=2 << 20):
    """Fused valid conv (kh x kw) + bias + ReLU + 2x2 max-pool.

    x_nhwc: (N, H, W, Cin).  Returns (N*PH*PW, Cout) with rows in (n, ph, pw)
    row-major order, so a reshape to (N, PH, PW, Cout) is free."""
    N, H, W, Cin = x_nhwc.shape
    OH, OW = H - kh + 1, W - kw + 1
    PH, PW = OH // 2, OW // 2
    M = N * PH * PW
    K = Cin * kh * kw
    Cout = w.shape[1]

    tm = _block_rows(M, K, vmem_block_bytes)
    nb = M // tm

    # Host-side im2col (pure data rearrangement, fused by XLA), pre-arranged
    # into per-grid-step blocks: (nb, 4*tm, K).  Phase order inside a block
    # matches the kernel's row-slice max.
    phases = [_im2col_pool_phase(x_nhwc, kh, kw, di, dj)
              for di in (0, 1) for dj in (0, 1)]
    p = jnp.stack([q.reshape(nb, tm, K) for q in phases], axis=1)
    p = p.reshape(nb, 4 * tm, K)

    kernel = functools.partial(_conv_relu_pool_kernel, tm=tm)
    return pl.pallas_call(
        kernel,
        out_shape=jax.ShapeDtypeStruct((M, Cout), jnp.float32),
        grid=(nb,),
        in_specs=[
            pl.BlockSpec((1, 4 * tm, K), lambda i: (i, 0, 0)),  # phase patches
            pl.BlockSpec((K, Cout), lambda i: (0, 0)),          # weight (resident)
            pl.BlockSpec((1, Cout), lambda i: (0, 0)),          # bias (resident)
        ],
        out_specs=pl.BlockSpec((tm, Cout), lambda i: (i, 0)),
        compiler_params=pltpu.CompilerParams(
            dimension_semantics=("parallel",)),                 # megacore on v7x
    )(p, w, b.reshape(1, Cout))


# ----------------------------------------------------------------------------
# Kernel 2: fused fc1 (+bias+ReLU) and output head, gridded over hidden tiles.
#           bf16 weight streaming, f32 accumulation directly in the resident
#           output block.
# ----------------------------------------------------------------------------
def _mlp_head_kernel(x_ref, wf_ref, bf_ref, wo_ref, bo_ref, o_ref):
    j = pl.program_id(0)

    @pl.when(j == 0)
    def _():
        o_ref[...] = jnp.zeros_like(o_ref)

    h = jnp.dot(x_ref[...], wf_ref[...], preferred_element_type=jnp.float32)
    h = jnp.maximum(h + bf_ref[...], 0.0)
    o_ref[...] += jnp.dot(h.astype(wo_ref.dtype), wo_ref[...],
                          preferred_element_type=jnp.float32)

    @pl.when(j == pl.num_programs(0) - 1)
    def _():
        o_ref[...] += bo_ref[...]


def mlp_head_pallas(x, wf1, bf1, wo_pad, bo_pad, *, tn=1024):
    M, K = x.shape          # (N, 1024), bf16
    K2, Hd = wf1.shape      # (1024, 2048), bf16
    H2, NP = wo_pad.shape   # (2048, 128), bf16 -- lane-dense padded head
    assert K == K2 and Hd == H2, (K, K2, Hd, H2)
    if Hd % tn != 0:
        tn = Hd
    grid = (Hd // tn,)

    return pl.pallas_call(
        _mlp_head_kernel,
        out_shape=jax.ShapeDtypeStruct((M, NP), jnp.float32),
        grid=grid,
        in_specs=[
            pl.BlockSpec((M, K), lambda j: (0, 0)),    # activations (resident)
            pl.BlockSpec((K, tn), lambda j: (0, j)),   # fc1 weight column tile
            pl.BlockSpec((1, tn), lambda j: (0, j)),   # fc1 bias tile
            pl.BlockSpec((tn, NP), lambda j: (j, 0)),  # head weight row tile
            pl.BlockSpec((1, NP), lambda j: (0, 0)),   # head bias (resident)
        ],
        out_specs=pl.BlockSpec((M, NP), lambda j: (0, 0)),  # resident accumulator
        compiler_params=pltpu.CompilerParams(
            dimension_semantics=("arbitrary",)),       # reduction over hidden tiles
    )(x, wf1, bf1.reshape(1, Hd), wo_pad, bo_pad.reshape(1, NP))


# ----------------------------------------------------------------------------
# Parameters (deterministic synthetic init, shapes match the torch module).
# ----------------------------------------------------------------------------
def init_params(key, num_classes):
    ks = jax.random.split(key, 8)
    conv1_w = jax.random.normal(ks[0], (32, 1, 5, 5), jnp.float32) * 0.10
    conv1_b = jax.random.normal(ks[1], (32,), jnp.float32) * 0.10
    conv2_w = jax.random.normal(ks[2], (64, 32, 5, 5), jnp.float32) * 0.05
    conv2_b = jax.random.normal(ks[3], (64,), jnp.float32) * 0.05
    fc1_w = jax.random.normal(ks[4], (2048, 64 * 4 * 4), jnp.float32) * 0.02
    fc1_b = jax.random.normal(ks[5], (2048,), jnp.float32) * 0.02
    out_w = jax.random.normal(ks[6], (num_classes, 2048), jnp.float32) * 0.02
    out_b = jax.random.normal(ks[7], (num_classes,), jnp.float32) * 0.02

    # Lane-dense padding of the classifier head (62 -> 128 columns, zeros).
    np_pad = ((num_classes + 127) // 128) * 128
    wo_pad = jnp.zeros((2048, np_pad), jnp.float32).at[:, :num_classes].set(out_w.T)
    bo_pad = jnp.zeros((np_pad,), jnp.float32).at[:num_classes].set(out_b)

    # fc1 weight with the NCHW->NHWC flatten permutation baked into its rows so
    # the runtime flatten of the conv2 kernel output is a free reshape.
    wf1_nhwc = (fc1_w.reshape(2048, 64, 4, 4)       # (H, c, ph, pw)
                .transpose(0, 2, 3, 1)              # (H, ph, pw, c)
                .reshape(2048, 64 * 4 * 4).T)       # (1024, 2048)

    params = {
        # conv weights flattened to (Cin*KH*KW, Cout) for im2col matmul
        "w1": jnp.transpose(conv1_w, (1, 2, 3, 0)).reshape(1 * 5 * 5, 32),
        "b1": conv1_b,
        "w2": jnp.transpose(conv2_w, (1, 2, 3, 0)).reshape(32 * 5 * 5, 64),
        "b2": conv2_b,
        "wf1": wf1_nhwc.astype(jnp.bfloat16),   # bf16 weight streaming
        "bf1": fc1_b,
        "wo_pad": wo_pad.astype(jnp.bfloat16),  # (2048, 128) bf16
        "bo_pad": bo_pad,                       # (128,) f32
    }
    raw = {  # PyTorch-layout copies, used only by the pure-JAX reference check
        "conv1_w": conv1_w, "conv1_b": conv1_b,
        "conv2_w": conv2_w, "conv2_b": conv2_b,
        "fc1_w": fc1_w, "fc1_b": fc1_b,
        "out_w": out_w, "out_b": out_b,
    }
    return params, raw


# ----------------------------------------------------------------------------
# Forward pass (matches AdaptedLeafCNN1.forward)
# ----------------------------------------------------------------------------
def leaf_cnn1_forward(x_nchw, params, *, num_classes):
    x = jnp.transpose(x_nchw.astype(jnp.float32), (0, 2, 3, 1))   # NCHW -> NHWC
    N, H, W = x.shape[0], x.shape[1], x.shape[2]

    # conv1 (1->32, 5x5, valid) + ReLU + 2x2 maxpool, fused.
    ph1, pw1 = (H - 4) // 2, (W - 4) // 2
    h1 = conv_relu_pool_pallas(x, params["w1"], params["b1"], kh=5, kw=5)
    h1 = h1.reshape(N, ph1, pw1, 32)                               # (N,12,12,32)

    # conv2 (32->64, 5x5, valid) + ReLU + 2x2 maxpool, fused.
    ph2, pw2 = (ph1 - 4) // 2, (pw1 - 4) // 2
    h2 = conv_relu_pool_pallas(h1, params["w2"], params["b2"], kh=5, kw=5)
    # flatten: contiguous reshape (permutation baked into wf1), cast to bf16
    flat = h2.reshape(N, ph2 * pw2 * 64).astype(jnp.bfloat16)      # (N, 1024)

    # fused fc1 (1024->2048) + ReLU + output head (2048->128 padded)
    logits_pad = mlp_head_pallas(flat, params["wf1"], params["bf1"],
                                 params["wo_pad"], params["bo_pad"], tn=1024)
    return logits_pad[:, :num_classes]


# ----------------------------------------------------------------------------
# Pure-JAX reference (XLA conv/matmul, f32 HIGHEST) for a numerical sanity check.
# ----------------------------------------------------------------------------
def reference_forward(x_nchw, raw):
    hp = jax.lax.Precision.HIGHEST
    x = jnp.transpose(x_nchw.astype(jnp.float32), (0, 2, 3, 1))

    def conv(h, w_oihw, b):
        rhs = jnp.transpose(w_oihw, (2, 3, 1, 0))                  # HWIO
        y = jax.lax.conv_general_dilated(
            h, rhs, window_strides=(1, 1), padding="VALID",
            dimension_numbers=("NHWC", "HWIO", "NHWC"), precision=hp)
        return jax.nn.relu(y + b)

    def pool(y):
        n, hh, ww, c = y.shape
        return y.reshape(n, hh // 2, 2, ww // 2, 2, c).max(axis=(2, 4))

    h = pool(conv(x, raw["conv1_w"], raw["conv1_b"]))
    h = pool(conv(h, raw["conv2_w"], raw["conv2_b"]))
    n = h.shape[0]
    flat = jnp.transpose(h, (0, 3, 1, 2)).reshape(n, -1)
    h3 = jax.nn.relu(jnp.dot(flat, raw["fc1_w"].T, precision=hp) + raw["fc1_b"])
    return jnp.dot(h3, raw["out_w"].T, precision=hp) + raw["out_b"]


# ----------------------------------------------------------------------------
if __name__ == "__main__":
    num_classes = 62              # FEMNIST
    batch = 2

    key = jax.random.PRNGKey(0)
    k_params, k_x = jax.random.split(key)
    params, raw = init_params(k_params, num_classes)

    # 28x28 single-channel input is implied by the 64*4*4 flatten in the module.
    x = jax.random.normal(k_x, (batch, 1, 28, 28), jnp.float32)

    fwd = jax.jit(functools.partial(leaf_cnn1_forward, num_classes=num_classes))
    out = fwd(x, params)
    jax.block_until_ready(out)
    assert out.shape == (batch, num_classes), out.shape
    assert out.dtype == jnp.float32

    ref = jax.jit(reference_forward)(x, raw)
    jax.block_until_ready(ref)
    # bf16 fc1/head weights -> slightly looser tolerance than a pure-f32 run.
    assert jnp.allclose(out, ref, atol=5e-2, rtol=5e-2), \
        float(jnp.max(jnp.abs(out - ref)))

    print("KERNEL_OK")
</pallas_src>

<mosaic_0001>
module attributes {stable_mosaic.version = 11 : i64} {
  func.func @_conv_relu_pool_kernel(%arg0: i32, %arg1: memref<1x1152x25xf32, #tpu.memory_space<vmem>>, %arg2: memref<25x32xf32, #tpu.memory_space<vmem>>, %arg3: memref<1x32xf32, #tpu.memory_space<vmem>>, %arg4: memref<288x32xf32, #tpu.memory_space<vmem>>) attributes {dimension_semantics = [#tpu.dimension_semantics<parallel>], iteration_bounds = array<i64: 1>, scalar_prefetch = 0 : i64, scratch_operands = 0 : i64, tpu.core_type = #tpu.core_type<tc>, window_params = [{transform_indices = @transform_0, window_bounds = array<i64: 1, 1152, 25>}, {pipeline_mode = #tpu.pipeline_mode<synchronous>, transform_indices = @transform_1, window_bounds = array<i64: 25, 32>}, {pipeline_mode = #tpu.pipeline_mode<synchronous>, transform_indices = @transform_2, window_bounds = array<i64: 1, 32>}, {transform_indices = @transform_3, window_bounds = array<i64: 288, 32>}]} {
    %c0 = arith.constant 0 : index
    %c0_0 = arith.constant 0 : index
    %c0_1 = arith.constant 0 : index
    %0 = vector.load %arg1[%c0, %c0_0, %c0_1] : memref<1x1152x25xf32, #tpu.memory_space<vmem>>, vector<1x1152x25xf32>
    %1 = vector.shape_cast %0 : vector<1x1152x25xf32> to vector<1152x25xf32>
    %c0_2 = arith.constant 0 : index
    %c0_3 = arith.constant 0 : index
    %2 = vector.load %arg2[%c0_2, %c0_3] : memref<25x32xf32, #tpu.memory_space<vmem>>, vector<25x32xf32>
    %cst = arith.constant dense<0.000000e+00> : vector<1152x32xf32>
    %3 = tpu.matmul %1, %2, %cst {dimension_numbers = #tpu.dot_dimension_numbers<[1], [0], [0], [1], [0, 0, 1, 1], [], []>} : vector<1152x25xf32>, vector<25x32xf32>, vector<1152x32xf32> -> vector<1152x32xf32>
    %4 = vector.extract_strided_slice %3 {offsets = [0, 0], sizes = [288, 32], strides = [1, 1]} : vector<1152x32xf32> to vector<288x32xf32>
    %5 = vector.extract_strided_slice %3 {offsets = [288, 0], sizes = [288, 32], strides = [1, 1]} : vector<1152x32xf32> to vector<288x32xf32>
    %6 = arith.maximumf %4, %5 : vector<288x32xf32>
    %7 = vector.extract_strided_slice %3 {offsets = [576, 0], sizes = [288, 32], strides = [1, 1]} : vector<1152x32xf32> to vector<288x32xf32>
    %8 = vector.extract_strided_slice %3 {offsets = [864, 0], sizes = [288, 32], strides = [1, 1]} : vector<1152x32xf32> to vector<288x32xf32>
    %9 = arith.maximumf %7, %8 : vector<288x32xf32>
    %10 = arith.maximumf %6, %9 : vector<288x32xf32>
    %c0_4 = arith.constant 0 : index
    %c0_5 = arith.constant 0 : index
    %11 = vector.load %arg3[%c0_4, %c0_5] : memref<1x32xf32, #tpu.memory_space<vmem>>, vector<1x32xf32>
    %12 = vector.broadcast %11 : vector<1x32xf32> to vector<288x32xf32>
    %13 = arith.addf %10, %12 : vector<288x32xf32>
    %cst_6 = arith.constant 0.000000e+00 : f32
    %14 = vector.broadcast %cst_6 : f32 to vector<288x32xf32>
    %15 = arith.maximumf %13, %14 : vector<288x32xf32>
    %c0_7 = arith.constant 0 : index
    %c0_8 = arith.constant 0 : index
    %16 = vector.load %arg4[%c0_7, %c0_8] : memref<288x32xf32, #tpu.memory_space<vmem>>, vector<288x32xf32>
    tpu.vector_store %arg4[%c0_7, %c0_8], %15 {strides = array<i32>} : memref<288x32xf32, #tpu.memory_space<vmem>>, vector<288x32xf32>,
    return
  }
  func.func @transform_0(%arg0: i32) -> (i32, i32, i32) {
    %c0_i32 = arith.constant 0 : i32
    %c0_i32_0 = arith.constant 0 : i32
    %c0_i32_1 = arith.constant 0 : i32
    return %arg0, %c0_i32, %c0_i32_0 : i32, i32, i32
  }
  func.func @transform_1(%arg0: i32) -> (i32, i32) {
    %c0_i32 = arith.constant 0 : i32
    %c0_i32_0 = arith.constant 0 : i32
    %c0_i32_1 = arith.constant 0 : i32
    return %c0_i32, %c0_i32_0 : i32, i32
  }
  func.func @transform_2(%arg0: i32) -> (i32, i32) {
    %c0_i32 = arith.constant 0 : i32
    %c0_i32_0 = arith.constant 0 : i32
    %c0_i32_1 = arith.constant 0 : i32
    return %c0_i32, %c0_i32_0 : i32, i32
  }
  func.func @transform_3(%arg0: i32) -> (i32, i32) {
    %c0_i32 = arith.constant 0 : i32
    %c0_i32_0 = arith.constant 0 : i32
    return %arg0, %c0_i32 : i32, i32
  }
}

module attributes {stable_mosaic.version = 11 : i64} {
  func.func @_conv_relu_pool_kernel(%arg0: i32, %arg1: memref<1x128x800xf32, #tpu.memory_space<vmem>>, %arg2: memref<800x64xf32, #tpu.memory_space<vmem>>, %arg3: memref<1x64xf32, #tpu.memory_space<vmem>>, %arg4: memref<32x64xf32, #tpu.memory_space<vmem>>) attributes {dimension_semantics = [#tpu.dimension_semantics<parallel>], iteration_bounds = array<i64: 1>, scalar_prefetch = 0 : i64, scratch_operands = 0 : i64, tpu.core_type = #tpu.core_type<tc>, window_params = [{transform_indices = @transform_0, window_bounds = array<i64: 1, 128, 800>}, {pipeline_mode = #tpu.pipeline_mode<synchronous>, transform_indices = @transform_1, window_bounds = array<i64: 800, 64>}, {pipeline_mode = #tpu.pipeline_mode<synchronous>, transform_indices = @transform_2, window_bounds = array<i64: 1, 64>}, {transform_indices = @transform_3, window_bounds = array<i64: 32, 64>}]} {
    %c0 = arith.constant 0 : index
    %c0_0 = arith.constant 0 : index
    %c0_1 = arith.constant 0 : index
    %0 = vector.load %arg1[%c0, %c0_0, %c0_1] : memref<1x128x800xf32, #tpu.memory_space<vmem>>, vector<1x128x800xf32>
    %1 = vector.shape_cast %0 : vector<1x128x800xf32> to vector<128x800xf32>
    %c0_2 = arith.constant 0 : index
    %c0_3 = arith.constant 0 : index
    %2 = vector.load %arg2[%c0_2, %c0_3] : memref<800x64xf32, #tpu.memory_space<vmem>>, vector<800x64xf32>
    %cst = arith.constant dense<0.000000e+00> : vector<128x64xf32>
    %3 = tpu.matmul %1, %2, %cst {dimension_numbers = #tpu.dot_dimension_numbers<[1], [0], [0], [1], [0, 0, 1, 1], [], []>} : vector<128x800xf32>, vector<800x64xf32>, vector<128x64xf32> -> vector<128x64xf32>
    %4 = vector.extract_strided_slice %3 {offsets = [0, 0], sizes = [32, 64], strides = [1, 1]} : vector<128x64xf32> to vector<32x64xf32>
    %5 = vector.extract_strided_slice %3 {offsets = [32, 0], sizes = [32, 64], strides = [1, 1]} : vector<128x64xf32> to vector<32x64xf32>
    %6 = arith.maximumf %4, %5 : vector<32x64xf32>
    %7 = vector.extract_strided_slice %3 {offsets = [64, 0], sizes = [32, 64], strides = [1, 1]} : vector<128x64xf32> to vector<32x64xf32>
    %8 = vector.extract_strided_slice %3 {offsets = [96, 0], sizes = [32, 64], strides = [1, 1]} : vector<128x64xf32> to vector<32x64xf32>
    %9 = arith.maximumf %7, %8 : vector<32x64xf32>
    %10 = arith.maximumf %6, %9 : vector<32x64xf32>
    %c0_4 = arith.constant 0 : index
    %c0_5 = arith.constant 0 : index
    %11 = vector.load %arg3[%c0_4, %c0_5] : memref<1x64xf32, #tpu.memory_space<vmem>>, vector<1x64xf32>
    %12 = vector.broadcast %11 : vector<1x64xf32> to vector<32x64xf32>
    %13 = arith.addf %10, %12 : vector<32x64xf32>
    %cst_6 = arith.constant 0.000000e+00 : f32
    %14 = vector.broadcast %cst_6 : f32 to vector<32x64xf32>
    %15 = arith.maximumf %13, %14 : vector<32x64xf32>
    %c0_7 = arith.constant 0 : index
    %c0_8 = arith.constant 0 : index
    %16 = vector.load %arg4[%c0_7, %c0_8] : memref<32x64xf32, #tpu.memory_space<vmem>>, vector<32x64xf32>
    tpu.vector_store %arg4[%c0_7, %c0_8], %15 {strides = array<i32>} : memref<32x64xf32, #tpu.memory_space<vmem>>, vector<32x64xf32>,
    return
  }
  func.func @transform_0(%arg0: i32) -> (i32, i32, i32) {
    %c0_i32 = arith.constant 0 : i32
    %c0_i32_0 = arith.constant 0 : i32
    %c0_i32_1 = arith.constant 0 : i32
    return %arg0, %c0_i32, %c0_i32_0 : i32, i32, i32
  }
  func.func @transform_1(%arg0: i32) -> (i32, i32) {
    %c0_i32 = arith.constant 0 : i32
    %c0_i32_0 = arith.constant 0 : i32
    %c0_i32_1 = arith.constant 0 : i32
    return %c0_i32, %c0_i32_0 : i32, i32
  }
  func.func @transform_2(%arg0: i32) -> (i32, i32) {
    %c0_i32 = arith.constant 0 : i32
    %c0_i32_0 = arith.constant 0 : i32
    %c0_i32_1 = arith.constant 0 : i32
    return %c0_i32, %c0_i32_0 : i32, i32
  }
  func.func @transform_3(%arg0: i32) -> (i32, i32) {
    %c0_i32 = arith.constant 0 : i32
    %c0_i32_0 = arith.constant 0 : i32
    return %arg0, %c0_i32 : i32, i32
  }
}

module attributes {stable_mosaic.version = 11 : i64} {
  func.func @_mlp_head_kernel(%arg0: i32, %arg1: memref<2x1024xbf16, #tpu.memory_space<vmem>>, %arg2: memref<1024x1024xbf16, #tpu.memory_space<vmem>>, %arg3: memref<1x1024xf32, #tpu.memory_space<vmem>>, %arg4: memref<1024x128xbf16, #tpu.memory_space<vmem>>, %arg5: memref<1x128xf32, #tpu.memory_space<vmem>>, %arg6: memref<2x128xf32, #tpu.memory_space<vmem>>) attributes {dimension_semantics = [#tpu.dimension_semantics<arbitrary>], iteration_bounds = array<i64: 2>, scalar_prefetch = 0 : i64, scratch_operands = 0 : i64, tpu.core_type = #tpu.core_type<tc>, window_params = [{pipeline_mode = #tpu.pipeline_mode<synchronous>, transform_indices = @transform_0, window_bounds = array<i64: 2, 1024>}, {transform_indices = @transform_1, window_bounds = array<i64: 1024, 1024>}, {transform_indices = @transform_2, window_bounds = array<i64: 1, 1024>}, {transform_indices = @transform_3, window_bounds = array<i64: 1024, 128>}, {pipeline_mode = #tpu.pipeline_mode<synchronous>, transform_indices = @transform_4, window_bounds = array<i64: 1, 128>}, {pipeline_mode = #tpu.pipeline_mode<synchronous>, transform_indices = @transform_5, window_bounds = array<i64: 2, 128>}]} {
    %c0_i32 = arith.constant 0 : i32
    %0 = arith.cmpi eq, %arg0, %c0_i32 : i32
    %1 = arith.extui %0 : i1 to i32
    %c0_i32_0 = arith.constant 0 : i32
    %2 = arith.cmpi ne, %1, %c0_i32_0 : i32
    scf.if %2 {
      %cst_15 = arith.constant 0.000000e+00 : f32
      %20 = vector.broadcast %cst_15 : f32 to vector<2x128xf32>
      %c0_16 = arith.constant 0 : index
      %c0_17 = arith.constant 0 : index
      %21 = vector.load %arg6[%c0_16, %c0_17] : memref<2x128xf32, #tpu.memory_space<vmem>>, vector<2x128xf32>
      tpu.vector_store %arg6[%c0_16, %c0_17], %20 {strides = array<i32>} : memref<2x128xf32, #tpu.memory_space<vmem>>, vector<2x128xf32>,
    } else {
    }
    %c0 = arith.constant 0 : index
    %c0_1 = arith.constant 0 : index
    %3 = vector.load %arg1[%c0, %c0_1] : memref<2x1024xbf16, #tpu.memory_space<vmem>>, vector<2x1024xbf16>
    %c0_2 = arith.constant 0 : index
    %c0_3 = arith.constant 0 : index
    %4 = vector.load %arg2[%c0_2, %c0_3] : memref<1024x1024xbf16, #tpu.memory_space<vmem>>, vector<1024x1024xbf16>
    %cst = arith.constant dense<0.000000e+00> : vector<2x1024xf32>
    %5 = tpu.matmul %3, %4, %cst {dimension_numbers = #tpu.dot_dimension_numbers<[1], [0], [0], [1], [0, 0, 1, 1], [], []>} : vector<2x1024xbf16>, vector<1024x1024xbf16>, vector<2x1024xf32> -> vector<2x1024xf32>
    %c0_4 = arith.constant 0 : index
    %c0_5 = arith.constant 0 : index
    %6 = vector.load %arg3[%c0_4, %c0_5] : memref<1x1024xf32, #tpu.memory_space<vmem>>, vector<1x1024xf32>
    %7 = vector.broadcast %6 : vector<1x1024xf32> to vector<2x1024xf32>
    %8 = arith.addf %5, %7 : vector<2x1024xf32>
    %cst_6 = arith.constant 0.000000e+00 : f32
    %9 = vector.broadcast %cst_6 : f32 to vector<2x1024xf32>
    %10 = arith.maximumf %8, %9 : vector<2x1024xf32>
    %c0_7 = arith.constant 0 : index
    %c0_8 = arith.constant 0 : index
    %11 = vector.load %arg6[%c0_7, %c0_8] : memref<2x128xf32, #tpu.memory_space<vmem>>, vector<2x128xf32>
    %12 = arith.truncf %10 : vector<2x1024xf32> to vector<2x1024xbf16>
    %c0_9 = arith.constant 0 : index
    %c0_10 = arith.constant 0 : index
    %13 = vector.load %arg4[%c0_9, %c0_10] : memref<1024x128xbf16, #tpu.memory_space<vmem>>, vector<1024x128xbf16>
    %cst_11 = arith.constant dense<0.000000e+00> : vector<2x128xf32>
    %14 = tpu.matmul %12, %13, %cst_11 {dimension_numbers = #tpu.dot_dimension_numbers<[1], [0], [0], [1], [0, 0, 1, 1], [], []>} : vector<2x1024xbf16>, vector<1024x128xbf16>, vector<2x128xf32> -> vector<2x128xf32>
    %15 = arith.addf %11, %14 : vector<2x128xf32>
    %c0_12 = arith.constant 0 : index
    %c0_13 = arith.constant 0 : index
    %16 = vector.load %arg6[%c0_12, %c0_13] : memref<2x128xf32, #tpu.memory_space<vmem>>, vector<2x128xf32>
    tpu.vector_store %arg6[%c0_12, %c0_13], %15 {strides = array<i32>} : memref<2x128xf32, #tpu.memory_space<vmem>>, vector<2x128xf32>,
    %c1_i32 = arith.constant 1 : i32
    %17 = arith.cmpi eq, %arg0, %c1_i32 : i32
    %18 = arith.extui %17 : i1 to i32
    %c0_i32_14 = arith.constant 0 : i32
    %19 = arith.cmpi ne, %18, %c0_i32_14 : i32
    scf.if %19 {
      %c0_15 = arith.constant 0 : index
      %c0_16 = arith.constant 0 : index
      %20 = vector.load %arg6[%c0_15, %c0_16] : memref<2x128xf32, #tpu.memory_space<vmem>>, vector<2x128xf32>
      %c0_17 = arith.constant 0 : index
      %c0_18 = arith.constant 0 : index
      %21 = vector.load %arg5[%c0_17, %c0_18] : memref<1x128xf32, #tpu.memory_space<vmem>>, vector<1x128xf32>
      %22 = vector.broadcast %21 : vector<1x128xf32> to vector<2x128xf32>
      %23 = arith.addf %20, %22 : vector<2x128xf32>
      %c0_19 = arith.constant 0 : index
      %c0_20 = arith.constant 0 : index
      %24 = vector.load %arg6[%c0_19, %c0_20] : memref<2x128xf32, #tpu.memory_space<vmem>>, vector<2x128xf32>
      tpu.vector_store %arg6[%c0_19, %c0_20], %23 {strides = array<i32>} : memref<2x128xf32, #tpu.memory_space<vmem>>, vector<2x128xf32>,
    } else {
    }
    return
  }
  func.func @transform_0(%arg0: i32) -> (i32, i32) {
    %c0_i32 = arith.constant 0 : i32
    %c0_i32_0 = arith.constant 0 : i32
    %c0_i32_1 = arith.constant 0 : i32
    return %c0_i32, %c0_i32_0 : i32, i32
  }
  func.func @transform_1(%arg0: i32) -> (i32, i32) {
    %c0_i32 = arith.constant 0 : i32
    %c0_i32_0 = arith.constant 0 : i32
    return %c0_i32, %arg0 : i32, i32
  }
  func.func @transform_2(%arg0: i32) -> (i32, i32) {
    %c0_i32 = arith.constant 0 : i32
    %c0_i32_0 = arith.constant 0 : i32
    return %c0_i32, %arg0 : i32, i32
  }
  func.func @transform_3(%arg0: i32) -> (i32, i32) {
    %c0_i32 = arith.constant 0 : i32
    %c0_i32_0 = arith.constant 0 : i32
    return %arg0, %c0_i32 : i32, i32
  }
  func.func @transform_4(%arg0: i32) -> (i32, i32) {
    %c0_i32 = arith.constant 0 : i32
    %c0_i32_0 = arith.constant 0 : i32
    %c0_i32_1 = arith.constant 0 : i32
    return %c0_i32, %c0_i32_0 : i32, i32
  }
  func.func @transform_5(%arg0: i32) -> (i32, i32) {
    %c0_i32 = arith.constant 0 : i32
    %c0_i32_0 = arith.constant 0 : i32
    %c0_i32_1 = arith.constant 0 : i32
    return %c0_i32, %c0_i32_0 : i32, i32
  }
}

</mosaic_0001>

<bundles_post_ra>
// kernel: leaf_cnn1_forward.3
= control target key start
LH: loop header
LB: loop body
LE: loop exit
PB: predicated region body
PF: predicated region fallthrough
CT: control target
= control target key end

     0   :  { %8 = vsyncpa [#allocation3], 0  ;;  %s2307_s0 = inlined_call_operand.vmem [shape: f32[1,1152,25], index: 0, kind: input, shape index: {}]   ;;  %s2308_s1 = inlined_call_operand.hbm [shape: f32[25,32], index: 1, kind: input, shape index: {}]   ;;  %s2309_s2 = inlined_call_operand.hbm [shape: f32[1,32], index: 2, kind: input, shape index: {}]   ;;  %s2310_s3 = inlined_call_operand.vmem [shape: f32[288,32], index: 3, kind: output, shape index: {}]  }
   0x1   :  { %s16_s14 = sshll.u32 %s2308_s1, 4  ;;  %s17_s14 = int_to_ptr.hbm [resolvable:$true] %s16_s14 }
   0x2   :  { %9 = vsyncpa [#allocation5], 0  ;;  %s1519_s15 = smov [#allocation2]   ;;  %s30_s19 = sshll.u32 %s2309_s2, 4  ;;  %s31_s19 = int_to_ptr.hbm [resolvable:$true] %s30_s19 }
   0x3   :  { %s18_s16 = sshll.u32 %s1519_s15, 4  ;;  %s1520_s20 = smov 128   ;;  %s19_s16 = int_to_ptr.vmem [resolvable:$true] %s18_s16 }
   0x4   :  { %s1521_s21 = smov 8   ;;  %s1522_s22 = smov [#allocation4]  }
   0x5   :  { %24 = dma.hbm_to_vmem [thread:$0]  %s17_s14, 512, %s19_s16, [#allocation3], %s1520_s20, %s1520_s20, %s1521_s21  }
   0x6   :  { %s32_s23 = sshll.u32 %s1522_s22, 4  ;;  %s33_s23 = int_to_ptr.vmem [resolvable:$true] %s32_s23 }
   0x7   :  { %35 = dma.hbm_to_vmem [thread:$0]  %s31_s19, 16, %s33_s23, [#allocation5]  }
   0x8   :  { %1515 = dma.done.wait [#allocation3], 512  }
   0x9   :  { %1516 = vsyncadd [#allocation3], 4294966784 }
   0xa   :  { %1517 = dma.done.wait [#allocation5], 16  }
   0xb   :  { %1518 = vsyncadd [#allocation5], 4294967280  ;;  %vm625_vm0 = vcmask 1040384   ;;  %v191_v0 = vld [vmem:[#allocation2 + $0x18] sm:$0x1]  ;;  %v190_v1 = vld [vmem:[#allocation2 + $0x10] sm:$0xff] }
   0xc   :  { %1451 = vmatpush.msk.msra.mxu2 %vm625_vm0, %v191_v0  ;;  %1452 = vmatpush.msk.msra.mxu3 %vm625_vm0, %v191_v0  ;;  %v189_v2 = vld [vmem:[#allocation2 + $0x8] sm:$0xff]  ;;  %v188_v3 = vld [vmem:[#allocation2] sm:$0xff]  ;;  %vm192_vm1 = vcmask 203776   ;;  %v118_v12 = vld [vmem:[%s2307_s0 + $0x250] sm:$0xff]  ;;  %vm1262_vm2 = vcmask 261120  }
   0xd   :  { %1305 = vmatpush.msk.msra.mxu0 %vm625_vm0, %v191_v0  ;;  %1450 = vmatpush.msk.msra.mxu1 %vm625_vm0, %v191_v0  ;;  %v116_v4 = vld [vmem:[%s2307_s0 + $0x240] sm:$0xff]  ;;  %v117_v8 = vld [vmem:[%s2307_s0 + $0x248] sm:$0xff]  ;;  %v154_v13 = vld [vmem:[%s2307_s0 + $0x370] sm:$0xff] }
   0xe   :  { %1454 = vmatpush.msra.mxu2 %v190_v1  ;;  %1455 = vmatpush.msra.mxu3 %v190_v1  ;;  %v152_v5 = vld [vmem:[%s2307_s0 + $0x360] sm:$0xff]  ;;  %v153_v9 = vld [vmem:[%s2307_s0 + $0x368] sm:$0xff]  ;;  %v46_v14 = vld [vmem:[%s2307_s0 + $0x10] sm:$0xff] }
   0xf   :  { %642 = vmatpush.msra.mxu0 %v190_v1  ;;  %1453 = vmatpush.msra.mxu1 %v190_v1  ;;  %v44_v6 = vld [vmem:[%s2307_s0] sm:$0xff]  ;;  %v45_v10 = vld [vmem:[%s2307_s0 + $0x8] sm:$0xff]  ;;  %v82_v15 = vld [vmem:[%s2307_s0 + $0x130] sm:$0xff] }
  0x10   :  { %1457 = vmatpush.msra.mxu2 %v189_v2  ;;  %1458 = vmatpush.msra.mxu3 %v189_v2  ;;  %v80_v7 = vld [vmem:[%s2307_s0 + $0x120] sm:$0xff]  ;;  %v81_v11 = vld [vmem:[%s2307_s0 + $0x128] sm:$0xff]  ;;  %v119_v16 = vld [vmem:[%s2307_s0 + $0x258] sm:$0xff] }
  0x11   :  { %643 = vmatpush.msra.mxu0 %v189_v2  ;;  %1456 = vmatpush.msra.mxu1 %v189_v2  ;;  %v155_v17 = vld [vmem:[%s2307_s0 + $0x378] sm:$0xff]  ;;  %v120_v20 = vld [vmem:[%s2307_s0 + $0x260] sm:$0xff]  ;;  %v121_v24 = vld [vmem:[%s2307_s0 + $0x268] sm:$0xff] }
  0x12   :  { %1460 = vmatpush.msra.mxu2 %v188_v3  ;;  %1461 = vmatpush.msra.mxu3 %v188_v3  ;;  %v47_v18 = vld [vmem:[%s2307_s0 + $0x18] sm:$0xff]  ;;  %v156_v21 = vld [vmem:[%s2307_s0 + $0x380] sm:$0xff]  ;;  %v157_v25 = vld [vmem:[%s2307_s0 + $0x388] sm:$0xff] }
  0x13   :  { %1378 = vmatmul.msk.f32.vlgmr.msra.gmra.mxu2 %vm192_vm1, %v116_v4  ;;  %1414 = vmatmul.msk.f32.vlgmr.msra.gmra.mxu3 %vm192_vm1, %v152_v5  ;;  %v83_v19 = vld [vmem:[%s2307_s0 + $0x138] sm:$0xff]  ;;  %v48_v22 = vld [vmem:[%s2307_s0 + $0x20] sm:$0xff]  ;;  %v49_v26 = vld [vmem:[%s2307_s0 + $0x28] sm:$0xff] }
  0x14   :  { %644 = vmatpush.msra.mxu0 %v188_v3  ;;  %1459 = vmatpush.msra.mxu1 %v188_v3  ;;  %v84_v23 = vld [vmem:[%s2307_s0 + $0x140] sm:$0xff]  ;;  %v85_v27 = vld [vmem:[%s2307_s0 + $0x148] sm:$0xff]  ;;  %v122_v28 = vld [vmem:[%s2307_s0 + $0x270] sm:$0xff] }
  0x15   :  { %1306 = vmatmul.msk.f32.vlgmr.msra.gmra.mxu0 %vm192_vm1, %v44_v6  ;;  %1342 = vmatmul.msk.f32.vlgmr.msra.gmra.mxu1 %vm192_vm1, %v80_v7  ;;  %v158_v29 = vld [vmem:[%s2307_s0 + $0x390] sm:$0xff]  ;;  %v123_v32 = vld [vmem:[%s2307_s0 + $0x278] sm:$0xff]  ;;  %v124_v36 = vld [vmem:[%s2307_s0 + $0x280] sm:$0xff] }
  0x16   :  { %v50_v30 = vld [vmem:[%s2307_s0 + $0x30] sm:$0xff]  ;;  %v159_v33 = vld [vmem:[%s2307_s0 + $0x398] sm:$0xff]  ;;  %v160_v37 = vld [vmem:[%s2307_s0 + $0x3a0] sm:$0xff] }
  0x17   :  { %v86_v31 = vld [vmem:[%s2307_s0 + $0x150] sm:$0xff]  ;;  %v51_v34 = vld [vmem:[%s2307_s0 + $0x38] sm:$0xff]  ;;  %v52_v38 = vld [vmem:[%s2307_s0 + $0x40] sm:$0xff] }
  0x18   :  { %v87_v35 = vld [vmem:[%s2307_s0 + $0x158] sm:$0xff]  ;;  %v88_v39 = vld [vmem:[%s2307_s0 + $0x160] sm:$0xff]  ;;  %v125_v40 = vld [vmem:[%s2307_s0 + $0x288] sm:$0xff] }
  0x19   :  { %v161_v41 = vld [vmem:[%s2307_s0 + $0x3a8] sm:$0xff]  ;;  %v126_v44 = vld [vmem:[%s2307_s0 + $0x290] sm:$0xff]  ;;  %v127_v48 = vld [vmem:[%s2307_s0 + $0x298] sm:$0xff] }
  0x1a   :  { %v53_v42 = vld [vmem:[%s2307_s0 + $0x48] sm:$0xff]  ;;  %v162_v45 = vld [vmem:[%s2307_s0 + $0x3b0] sm:$0xff]  ;;  %v163_v49 = vld [vmem:[%s2307_s0 + $0x3b8] sm:$0xff] }
  0x1b   :  { %1379 = vmatmul.msk.f32.gmra.mxu2 %vm192_vm1, %v117_v8  ;;  %1415 = vmatmul.msk.f32.gmra.mxu3 %vm192_vm1, %v153_v9  ;;  %v89_v43 = vld [vmem:[%s2307_s0 + $0x168] sm:$0xff]  ;;  %v54_v46 = vld [vmem:[%s2307_s0 + $0x50] sm:$0xff]  ;;  %v55_v50 = vld [vmem:[%s2307_s0 + $0x58] sm:$0xff] }
  0x1c   :  { %v90_v47 = vld [vmem:[%s2307_s0 + $0x170] sm:$0xff]  ;;  %v91_v51 = vld [vmem:[%s2307_s0 + $0x178] sm:$0xff]  ;;  %v128_v52 = vld [vmem:[%s2307_s0 + $0x2a0] sm:$0xff] }
  0x1d   :  { %1307 = vmatmul.msk.f32.gmra.mxu0 %vm192_vm1, %v45_v10  ;;  %1343 = vmatmul.msk.f32.gmra.mxu1 %vm192_vm1, %v81_v11  ;;  %v164_v53 = vld [vmem:[%s2307_s0 + $0x3c0] sm:$0xff]  ;;  %v129_v56 = vld [vmem:[%s2307_s0 + $0x2a8] sm:$0xff]  ;;  %v130_v60 = vld [vmem:[%s2307_s0 + $0x2b0] sm:$0xff] }
  0x1e   :  { %v56_v54 = vld [vmem:[%s2307_s0 + $0x60] sm:$0xff]  ;;  %v165_v57 = vld [vmem:[%s2307_s0 + $0x3c8] sm:$0xff]  ;;  %v166_v61 = vld [vmem:[%s2307_s0 + $0x3d0] sm:$0xff] }
  0x1f   :  { %v92_v55 = vld [vmem:[%s2307_s0 + $0x180] sm:$0xff]  ;;  %v57_v58 = vld [vmem:[%s2307_s0 + $0x68] sm:$0xff]  ;;  %v58_v62 = vld [vmem:[%s2307_s0 + $0x70] sm:$0xff] }
  0x20   :  { %v93_v59 = vld [vmem:[%s2307_s0 + $0x188] sm:$0xff]  ;;  %v94_v63 = vld [vmem:[%s2307_s0 + $0x190] sm:$0xff]  ;;  %v131_v0 = vld [vmem:[%s2307_s0 + $0x2b8] sm:$0xff] }
  0x21   :  { %v167_v1 = vld [vmem:[%s2307_s0 + $0x3d8] sm:$0xff]  ;;  %v132_v4 = vld [vmem:[%s2307_s0 + $0x2c0] sm:$0xff] }
  0x22   :  { %v59_v2 = vld [vmem:[%s2307_s0 + $0x78] sm:$0xff]  ;;  %v168_v5 = vld [vmem:[%s2307_s0 + $0x3e0] sm:$0xff] }
  0x23   :  { %1380 = vmatmul.msk.f32.gmra.mxu2 %vm192_vm1, %v118_v12  ;;  %1416 = vmatmul.msk.f32.gmra.mxu3 %vm192_vm1, %v154_v13  ;;  %v95_v3 = vld [vmem:[%s2307_s0 + $0x198] sm:$0xff]  ;;  %v60_v8 = vld [vmem:[%s2307_s0 + $0x80] sm:$0xff] }
  0x24   :  { %v96_v9 = vld [vmem:[%s2307_s0 + $0x1a0] sm:$0xff] }
  0x25   :  { %1308 = vmatmul.msk.f32.gmra.mxu0 %vm192_vm1, %v46_v14  ;;  %1344 = vmatmul.msk.f32.gmra.mxu1 %vm192_vm1, %v82_v15  ;;  %v1821_v14 = vld [vmem:[#allocation4] ss:$0 sm:$0xff]  ;;  %v133_v15 = vld [vmem:[%s2307_s0 + $0x2c8] sm:$0xff] }
  0x2b   :  { %1381 = vmatmul.msk.f32.gmra.mxu2 %vm192_vm1, %v119_v16  ;;  %1417 = vmatmul.msk.f32.gmra.mxu3 %vm192_vm1, %v155_v17  ;;  %v169_v16 = vld [vmem:[%s2307_s0 + $0x3e8] sm:$0xff] }
  0x2d   :  { %1309 = vmatmul.msk.f32.gmra.mxu0 %vm192_vm1, %v47_v18  ;;  %1345 = vmatmul.msk.f32.gmra.mxu1 %vm192_vm1, %v83_v19 }
  0x33   :  { %1382 = vmatmul.msk.f32.gmra.mxu2 %vm192_vm1, %v120_v20  ;;  %1418 = vmatmul.msk.f32.gmra.mxu3 %vm192_vm1, %v156_v21  ;;  %v61_v20 = vld [vmem:[%s2307_s0 + $0x88] sm:$0xff] }
  0x34   :  { %v97_v21 = vld [vmem:[%s2307_s0 + $0x1a8] sm:$0xff] }
  0x35   :  { %1310 = vmatmul.msk.f32.gmra.mxu0 %vm192_vm1, %v48_v22  ;;  %1346 = vmatmul.msk.f32.gmra.mxu1 %vm192_vm1, %v84_v23 }
  0x3b   :  { %1383 = vmatmul.msk.f32.gmra.mxu2 %vm192_vm1, %v121_v24  ;;  %1419 = vmatmul.msk.f32.gmra.mxu3 %vm192_vm1, %v157_v25 }
  0x3d   :  { %1311 = vmatmul.msk.f32.gmra.mxu0 %vm192_vm1, %v49_v26  ;;  %1347 = vmatmul.msk.f32.gmra.mxu1 %vm192_vm1, %v85_v27 }
  0x43   :  { %1384 = vmatmul.msk.f32.gmra.mxu2 %vm192_vm1, %v122_v28  ;;  %1420 = vmatmul.msk.f32.gmra.mxu3 %vm192_vm1, %v158_v29  ;;  %v134_v28 = vld [vmem:[%s2307_s0 + $0x2d0] sm:$0xff] }
  0x44   :  { %v170_v29 = vld [vmem:[%s2307_s0 + $0x3f0] sm:$0xff] }
  0x45   :  { %1312 = vmatmul.msk.f32.gmra.mxu0 %vm192_vm1, %v50_v30  ;;  %1348 = vmatmul.msk.f32.gmra.mxu1 %vm192_vm1, %v86_v31 }
  0x4b   :  { %1385 = vmatmul.msk.f32.gmra.mxu2 %vm192_vm1, %v123_v32  ;;  %1421 = vmatmul.msk.f32.gmra.mxu3 %vm192_vm1, %v159_v33  ;;  %v62_v33 = vld [vmem:[%s2307_s0 + $0x90] sm:$0xff] }
  0x4d   :  { %1313 = vmatmul.msk.f32.gmra.mxu0 %vm192_vm1, %v51_v34  ;;  %1349 = vmatmul.msk.f32.gmra.mxu1 %vm192_vm1, %v87_v35  ;;  %v98_v34 = vld [vmem:[%s2307_s0 + $0x1b0] sm:$0xff] }
  0x53   :  { %1386 = vmatmul.msk.f32.gmra.mxu2 %vm192_vm1, %v124_v36  ;;  %1422 = vmatmul.msk.f32.gmra.mxu3 %vm192_vm1, %v160_v37 }
  0x55   :  { %1314 = vmatmul.msk.f32.gmra.mxu0 %vm192_vm1, %v52_v38  ;;  %1350 = vmatmul.msk.f32.gmra.mxu1 %vm192_vm1, %v88_v39 }
  0x5b   :  { %1387 = vmatmul.msk.f32.gmra.mxu2 %vm192_vm1, %v125_v40  ;;  %1423 = vmatmul.msk.f32.gmra.mxu3 %vm192_vm1, %v161_v41  ;;  %v135_v41 = vld [vmem:[%s2307_s0 + $0x2d8] sm:$0xff] }
  0x5d   :  { %1315 = vmatmul.msk.f32.gmra.mxu0 %vm192_vm1, %v53_v42  ;;  %1351 = vmatmul.msk.f32.gmra.mxu1 %vm192_vm1, %v89_v43  ;;  %v171_v42 = vld [vmem:[%s2307_s0 + $0x3f8] sm:$0xff] }
  0x63   :  { %1388 = vmatmul.msk.f32.gmra.mxu2 %vm192_vm1, %v126_v44  ;;  %1424 = vmatmul.msk.f32.gmra.mxu3 %vm192_vm1, %v162_v45 }
  0x65   :  { %1316 = vmatmul.msk.f32.gmra.mxu0 %vm192_vm1, %v54_v46  ;;  %1352 = vmatmul.msk.f32.gmra.mxu1 %vm192_vm1, %v90_v47  ;;  %v63_v46 = vld [vmem:[%s2307_s0 + $0x98] sm:$0xff] }
  0x66   :  { %v99_v47 = vld [vmem:[%s2307_s0 + $0x1b8] sm:$0xff] }
  0x6b   :  { %1389 = vmatmul.msk.f32.gmra.mxu2 %vm192_vm1, %v127_v48  ;;  %1425 = vmatmul.msk.f32.gmra.mxu3 %vm192_vm1, %v163_v49 }
  0x6d   :  { %1317 = vmatmul.msk.f32.gmra.mxu0 %vm192_vm1, %v55_v50  ;;  %1353 = vmatmul.msk.f32.gmra.mxu1 %vm192_vm1, %v91_v51 }
  0x73   :  { %1390 = vmatmul.msk.f32.gmra.mxu2 %vm192_vm1, %v128_v52  ;;  %1426 = vmatmul.msk.f32.gmra.mxu3 %vm192_vm1, %v164_v53 }
  0x75   :  { %1318 = vmatmul.msk.f32.gmra.mxu0 %vm192_vm1, %v56_v54  ;;  %1354 = vmatmul.msk.f32.gmra.mxu1 %vm192_vm1, %v92_v55  ;;  %v136_v54 = vld [vmem:[%s2307_s0 + $0x2e0] sm:$0xff] }
  0x76   :  { %v172_v55 = vld [vmem:[%s2307_s0 + $0x400] sm:$0xff] }
  0x7b   :  { %1391 = vmatmul.msk.f32.gmra.mxu2 %vm192_vm1, %v129_v56  ;;  %1427 = vmatmul.msk.f32.gmra.mxu3 %vm192_vm1, %v165_v57 }
  0x7d   :  { %1319 = vmatmul.msk.f32.gmra.mxu0 %vm192_vm1, %v57_v58  ;;  %1355 = vmatmul.msk.f32.gmra.mxu1 %vm192_vm1, %v93_v59  ;;  %v64_v59 = vld [vmem:[%s2307_s0 + $0xa0] sm:$0xff] }
  0x83   :  { %1392 = vmatmul.msk.f32.gmra.mxu2 %vm192_vm1, %v130_v60  ;;  %1428 = vmatmul.msk.f32.gmra.mxu3 %vm192_vm1, %v166_v61  ;;  %v100_v60 = vld [vmem:[%s2307_s0 + $0x1c0] sm:$0xff] }
  0x85   :  { %1320 = vmatmul.msk.f32.gmra.mxu0 %vm192_vm1, %v58_v62  ;;  %1356 = vmatmul.msk.f32.gmra.mxu1 %vm192_vm1, %v94_v63 }
  0x8b   :  { %1393 = vmatmul.msk.f32.gmra.mxu2 %vm192_vm1, %v131_v0  ;;  %1429 = vmatmul.msk.f32.gmra.mxu3 %vm192_vm1, %v167_v1 }
  0x8d   :  { %1321 = vmatmul.msk.f32.gmra.mxu0 %vm192_vm1, %v59_v2  ;;  %1357 = vmatmul.msk.f32.gmra.mxu1 %vm192_vm1, %v95_v3  ;;  %v137_v3 = vld [vmem:[%s2307_s0 + $0x2e8] sm:$0xff] }
  0x92   :  { %v646_v6 = vpop.f32.mrf.mxu0  ;;  %v754_v7 = vpop.f32.mrf.mxu1 }
  0x93   :  { %1394 = vmatmul.msk.f32.gmra.mxu2 %vm192_vm1, %v132_v4  ;;  %1430 = vmatmul.msk.f32.gmra.mxu3 %vm192_vm1, %v168_v5  ;;  %v1078_v10 = vmax.f32 %v646_v6, %v754_v7  ;;  %v173_v4 = vld [vmem:[%s2307_s0 + $0x408] sm:$0xff] }
  0x95   :  { %1322 = vmatmul.msk.f32.gmra.mxu0 %vm192_vm1, %v60_v8  ;;  %1358 = vmatmul.msk.f32.gmra.mxu1 %vm192_vm1, %v96_v9  ;;  %v65_v8 = vld [vmem:[%s2307_s0 + $0xa8] sm:$0xff] }
  0x96   :  { %v862_v11 = vpop.f32.mrf.mxu2  ;;  %v970_v12 = vpop.f32.mrf.mxu3  ;;  %v101_v9 = vld [vmem:[%s2307_s0 + $0x1c8] sm:$0xff] }
  0x97   :  { %v1114_v13 = vmax.f32 %v862_v11, %v970_v12 }
  0x99   :  { %v1150_v17 = vmax.f32 %v1078_v10, %v1114_v13 }
  0x9a   :  { %v649_v18 = vpop.f32.mrf.mxu0  ;;  %v757_v19 = vpop.f32.mrf.mxu1 }
  0x9b   :  { %v1190_v22 = vadd.f32 %v1821_v14, %v1150_v17  ;;  %1395 = vmatmul.msk.f32.gmra.mxu2 %vm192_vm1, %v133_v15  ;;  %1431 = vmatmul.msk.f32.gmra.mxu3 %vm192_vm1, %v169_v16  ;;  %v1079_v24 = vmax.f32 %v649_v18, %v757_v19  ;;  %v138_v17 = vld [vmem:[%s2307_s0 + $0x2f0] sm:$0xff] }
  0x9c   :  { %v174_v18 = vld [vmem:[%s2307_s0 + $0x410] sm:$0xff] }
  0x9d   :  { %v1226_v23 = vmax.f32 %v1190_v22, 0.0  ;;  %1323 = vmatmul.msk.f32.gmra.mxu0 %vm192_vm1, %v61_v20  ;;  %1359 = vmatmul.msk.f32.gmra.mxu1 %vm192_vm1, %v97_v21  ;;  %v66_v22 = vld [vmem:[%s2307_s0 + $0xb0] sm:$0xff] }
  0x9e   :  { %v865_v25 = vpop.f32.mrf.mxu2  ;;  %v973_v26 = vpop.f32.mrf.mxu3 }
  0x9f   :  { %1263 = vst.msk [vmem:[%s2310_s3] sm:$0xff] %vm1262_vm2, %v1226_v23  ;;  %v1115_v27 = vmax.f32 %v865_v25, %v973_v26  ;;  %v102_v23 = vld [vmem:[%s2307_s0 + $0x1d0] sm:$0xff] }
  0xa1   :  { %v1151_v30 = vmax.f32 %v1079_v24, %v1115_v27 }
  0xa2   :  { %v652_v31 = vpop.f32.mrf.mxu0  ;;  %v760_v32 = vpop.f32.mrf.mxu1 }
  0xa3   :  { %v1191_v35 = vadd.f32 %v1821_v14, %v1151_v30  ;;  %1396 = vmatmul.msk.f32.gmra.mxu2 %vm192_vm1, %v134_v28  ;;  %1432 = vmatmul.msk.f32.gmra.mxu3 %vm192_vm1, %v170_v29  ;;  %v1080_v37 = vmax.f32 %v652_v31, %v760_v32  ;;  %v139_v30 = vld [vmem:[%s2307_s0 + $0x2f8] sm:$0xff] }
  0xa4   :  { %v175_v31 = vld [vmem:[%s2307_s0 + $0x418] sm:$0xff] }
  0xa5   :  { %v1227_v36 = vmax.f32 %v1191_v35, 0.0  ;;  %1324 = vmatmul.msk.f32.gmra.mxu0 %vm192_vm1, %v62_v33  ;;  %1360 = vmatmul.msk.f32.gmra.mxu1 %vm192_vm1, %v98_v34  ;;  %v67_v35 = vld [vmem:[%s2307_s0 + $0xb8] sm:$0xff] }
  0xa6   :  { %v868_v38 = vpop.f32.mrf.mxu2  ;;  %v976_v39 = vpop.f32.mrf.mxu3 }
  0xa7   :  { %1264 = vst.msk [vmem:[%s2310_s3 + $0x8] sm:$0xff] %vm1262_vm2, %v1227_v36  ;;  %v1116_v40 = vmax.f32 %v868_v38, %v976_v39  ;;  %v103_v36 = vld [vmem:[%s2307_s0 + $0x1d8] sm:$0xff] }
  0xa9   :  { %v1152_v43 = vmax.f32 %v1080_v37, %v1116_v40 }
  0xaa   :  { %v655_v44 = vpop.f32.mrf.mxu0  ;;  %v763_v45 = vpop.f32.mrf.mxu1 }
  0xab   :  { %v1192_v48 = vadd.f32 %v1821_v14, %v1152_v43  ;;  %1397 = vmatmul.msk.f32.gmra.mxu2 %vm192_vm1, %v135_v41  ;;  %1433 = vmatmul.msk.f32.gmra.mxu3 %vm192_vm1, %v171_v42  ;;  %v1081_v50 = vmax.f32 %v655_v44, %v763_v45  ;;  %v140_v43 = vld [vmem:[%s2307_s0 + $0x300] sm:$0xff] }
  0xac   :  { %v176_v44 = vld [vmem:[%s2307_s0 + $0x420] sm:$0xff] }
  0xad   :  { %v1228_v49 = vmax.f32 %v1192_v48, 0.0  ;;  %1325 = vmatmul.msk.f32.gmra.mxu0 %vm192_vm1, %v63_v46  ;;  %1361 = vmatmul.msk.f32.gmra.mxu1 %vm192_vm1, %v99_v47  ;;  %v68_v48 = vld [vmem:[%s2307_s0 + $0xc0] sm:$0xff] }
  0xae   :  { %v871_v51 = vpop.f32.mrf.mxu2  ;;  %v979_v52 = vpop.f32.mrf.mxu3 }
  0xaf   :  { %1265 = vst.msk [vmem:[%s2310_s3 + $0x10] sm:$0xff] %vm1262_vm2, %v1228_v49  ;;  %v1117_v53 = vmax.f32 %v871_v51, %v979_v52  ;;  %v104_v49 = vld [vmem:[%s2307_s0 + $0x1e0] sm:$0xff] }
  0xb1   :  { %v1153_v56 = vmax.f32 %v1081_v50, %v1117_v53 }
  0xb2   :  { %v658_v57 = vpop.f32.mrf.mxu0  ;;  %v766_v58 = vpop.f32.mrf.mxu1 }
  0xb3   :  { %v1193_v61 = vadd.f32 %v1821_v14, %v1153_v56  ;;  %1398 = vmatmul.msk.f32.gmra.mxu2 %vm192_vm1, %v136_v54  ;;  %1434 = vmatmul.msk.f32.gmra.mxu3 %vm192_vm1, %v172_v55  ;;  %v1082_v63 = vmax.f32 %v658_v57, %v766_v58  ;;  %v141_v56 = vld [vmem:[%s2307_s0 + $0x308] sm:$0xff] }
  0xb4   :  { %v177_v57 = vld [vmem:[%s2307_s0 + $0x428] sm:$0xff] }
  0xb5   :  { %v1229_v62 = vmax.f32 %v1193_v61, 0.0  ;;  %1326 = vmatmul.msk.f32.gmra.mxu0 %vm192_vm1, %v64_v59  ;;  %1362 = vmatmul.msk.f32.gmra.mxu1 %vm192_vm1, %v100_v60  ;;  %v69_v61 = vld [vmem:[%s2307_s0 + $0xc8] sm:$0xff] }
  0xb6   :  { %v874_v0 = vpop.f32.mrf.mxu2  ;;  %v982_v1 = vpop.f32.mrf.mxu3 }
  0xb7   :  { %1266 = vst.msk [vmem:[%s2310_s3 + $0x18] sm:$0xff] %vm1262_vm2, %v1229_v62  ;;  %v1118_v2 = vmax.f32 %v874_v0, %v982_v1  ;;  %v105_v62 = vld [vmem:[%s2307_s0 + $0x1e8] sm:$0xff] }
  0xb9   :  { %v1154_v5 = vmax.f32 %v1082_v63, %v1118_v2 }
  0xba   :  { %v661_v6 = vpop.f32.mrf.mxu0  ;;  %v769_v7 = vpop.f32.mrf.mxu1 }
  0xbb   :  { %v1194_v10 = vadd.f32 %v1821_v14, %v1154_v5  ;;  %1399 = vmatmul.msk.f32.gmra.mxu2 %vm192_vm1, %v137_v3  ;;  %1435 = vmatmul.msk.f32.gmra.mxu3 %vm192_vm1, %v173_v4  ;;  %v1083_v12 = vmax.f32 %v661_v6, %v769_v7  ;;  %v142_v5 = vld [vmem:[%s2307_s0 + $0x310] sm:$0xff] }
  0xbc   :  { %v178_v6 = vld [vmem:[%s2307_s0 + $0x430] sm:$0xff] }
  0xbd   :  { %v1230_v11 = vmax.f32 %v1194_v10, 0.0  ;;  %1327 = vmatmul.msk.f32.gmra.mxu0 %vm192_vm1, %v65_v8  ;;  %1363 = vmatmul.msk.f32.gmra.mxu1 %vm192_vm1, %v101_v9  ;;  %v70_v10 = vld [vmem:[%s2307_s0 + $0xd0] sm:$0xff] }
  0xbe   :  { %v877_v13 = vpop.f32.mrf.mxu2  ;;  %v985_v15 = vpop.f32.mrf.mxu3 }
  0xbf   :  { %1267 = vst.msk [vmem:[%s2310_s3 + $0x20] sm:$0xff] %vm1262_vm2, %v1230_v11  ;;  %v1119_v16 = vmax.f32 %v877_v13, %v985_v15  ;;  %v106_v11 = vld [vmem:[%s2307_s0 + $0x1f0] sm:$0xff] }
  0xc1   :  { %v1155_v19 = vmax.f32 %v1083_v12, %v1119_v16 }
  0xc2   :  { %v664_v20 = vpop.f32.mrf.mxu0  ;;  %v772_v21 = vpop.f32.mrf.mxu1 }
  0xc3   :  { %v1195_v24 = vadd.f32 %v1821_v14, %v1155_v19  ;;  %1400 = vmatmul.msk.f32.gmra.mxu2 %vm192_vm1, %v138_v17  ;;  %1436 = vmatmul.msk.f32.gmra.mxu3 %vm192_vm1, %v174_v18  ;;  %v1084_v26 = vmax.f32 %v664_v20, %v772_v21  ;;  %v143_v19 = vld [vmem:[%s2307_s0 + $0x318] sm:$0xff] }
  0xc4   :  { %v179_v20 = vld [vmem:[%s2307_s0 + $0x438] sm:$0xff] }
  0xc5   :  { %v1231_v25 = vmax.f32 %v1195_v24, 0.0  ;;  %1328 = vmatmul.msk.f32.gmra.mxu0 %vm192_vm1, %v66_v22  ;;  %1364 = vmatmul.msk.f32.gmra.mxu1 %vm192_vm1, %v102_v23  ;;  %v71_v24 = vld [vmem:[%s2307_s0 + $0xd8] sm:$0xff] }
  0xc6   :  { %v880_v27 = vpop.f32.mrf.mxu2  ;;  %v988_v28 = vpop.f32.mrf.mxu3 }
  0xc7   :  { %1268 = vst.msk [vmem:[%s2310_s3 + $0x28] sm:$0xff] %vm1262_vm2, %v1231_v25  ;;  %v1120_v29 = vmax.f32 %v880_v27, %v988_v28  ;;  %v107_v25 = vld [vmem:[%s2307_s0 + $0x1f8] sm:$0xff] }
  0xc9   :  { %v1156_v32 = vmax.f32 %v1084_v26, %v1120_v29 }
  0xca   :  { %v667_v33 = vpop.f32.mrf.mxu0  ;;  %v775_v34 = vpop.f32.mrf.mxu1 }
  0xcb   :  { %v1196_v37 = vadd.f32 %v1821_v14, %v1156_v32  ;;  %1401 = vmatmul.msk.f32.gmra.mxu2 %vm192_vm1, %v139_v30  ;;  %1437 = vmatmul.msk.f32.gmra.mxu3 %vm192_vm1, %v175_v31  ;;  %v1085_v39 = vmax.f32 %v667_v33, %v775_v34  ;;  %v144_v32 = vld [vmem:[%s2307_s0 + $0x320] sm:$0xff] }
  0xcc   :  { %v180_v33 = vld [vmem:[%s2307_s0 + $0x440] sm:$0xff] }
  0xcd   :  { %v1232_v38 = vmax.f32 %v1196_v37, 0.0  ;;  %1329 = vmatmul.msk.f32.gmra.mxu0 %vm192_vm1, %v67_v35  ;;  %1365 = vmatmul.msk.f32.gmra.mxu1 %vm192_vm1, %v103_v36  ;;  %v72_v37 = vld [vmem:[%s2307_s0 + $0xe0] sm:$0xff] }
  0xce   :  { %v883_v40 = vpop.f32.mrf.mxu2  ;;  %v991_v41 = vpop.f32.mrf.mxu3 }
  0xcf   :  { %1269 = vst.msk [vmem:[%s2310_s3 + $0x30] sm:$0xff] %vm1262_vm2, %v1232_v38  ;;  %v1121_v42 = vmax.f32 %v883_v40, %v991_v41  ;;  %v108_v38 = vld [vmem:[%s2307_s0 + $0x200] sm:$0xff] }
  0xd1   :  { %v1157_v45 = vmax.f32 %v1085_v39, %v1121_v42 }
  0xd2   :  { %v670_v46 = vpop.f32.mrf.mxu0  ;;  %v778_v47 = vpop.f32.mrf.mxu1 }
  0xd3   :  { %v1197_v50 = vadd.f32 %v1821_v14, %v1157_v45  ;;  %1402 = vmatmul.msk.f32.gmra.mxu2 %vm192_vm1, %v140_v43  ;;  %1438 = vmatmul.msk.f32.gmra.mxu3 %vm192_vm1, %v176_v44  ;;  %v1086_v52 = vmax.f32 %v670_v46, %v778_v47  ;;  %v145_v45 = vld [vmem:[%s2307_s0 + $0x328] sm:$0xff] }
  0xd4   :  { %v181_v46 = vld [vmem:[%s2307_s0 + $0x448] sm:$0xff] }
  0xd5   :  { %v1233_v51 = vmax.f32 %v1197_v50, 0.0  ;;  %1330 = vmatmul.msk.f32.gmra.mxu0 %vm192_vm1, %v68_v48  ;;  %1366 = vmatmul.msk.f32.gmra.mxu1 %vm192_vm1, %v104_v49  ;;  %v73_v50 = vld [vmem:[%s2307_s0 + $0xe8] sm:$0xff] }
  0xd6   :  { %v886_v53 = vpop.f32.mrf.mxu2  ;;  %v994_v54 = vpop.f32.mrf.mxu3 }
  0xd7   :  { %1270 = vst.msk [vmem:[%s2310_s3 + $0x38] sm:$0xff] %vm1262_vm2, %v1233_v51  ;;  %v1122_v55 = vmax.f32 %v886_v53, %v994_v54  ;;  %v109_v51 = vld [vmem:[%s2307_s0 + $0x208] sm:$0xff] }
  0xd9   :  { %v1158_v58 = vmax.f32 %v1086_v52, %v1122_v55 }
  0xda   :  { %v673_v59 = vpop.f32.mrf.mxu0  ;;  %v781_v60 = vpop.f32.mrf.mxu1 }
  0xdb   :  { %v1198_v63 = vadd.f32 %v1821_v14, %v1158_v58  ;;  %1403 = vmatmul.msk.f32.gmra.mxu2 %vm192_vm1, %v141_v56  ;;  %1439 = vmatmul.msk.f32.gmra.mxu3 %vm192_vm1, %v177_v57  ;;  %v1087_v1 = vmax.f32 %v673_v59, %v781_v60  ;;  %v146_v58 = vld [vmem:[%s2307_s0 + $0x330] sm:$0xff] }
  0xdc   :  { %v182_v59 = vld [vmem:[%s2307_s0 + $0x450] sm:$0xff] }
  0xdd   :  { %v1234_v0 = vmax.f32 %v1198_v63, 0.0  ;;  %1331 = vmatmul.msk.f32.gmra.mxu0 %vm192_vm1, %v69_v61  ;;  %1367 = vmatmul.msk.f32.gmra.mxu1 %vm192_vm1, %v105_v62  ;;  %v74_v63 = vld [vmem:[%s2307_s0 + $0xf0] sm:$0xff] }
  0xde   :  { %v889_v2 = vpop.f32.mrf.mxu2  ;;  %v997_v3 = vpop.f32.mrf.mxu3 }
  0xdf   :  { %1271 = vst.msk [vmem:[%s2310_s3 + $0x40] sm:$0xff] %vm1262_vm2, %v1234_v0  ;;  %v1123_v4 = vmax.f32 %v889_v2, %v997_v3  ;;  %v110_v0 = vld [vmem:[%s2307_s0 + $0x210] sm:$0xff] }
  0xe1   :  { %v1159_v7 = vmax.f32 %v1087_v1, %v1123_v4 }
  0xe2   :  { %v676_v8 = vpop.f32.mrf.mxu0  ;;  %v784_v9 = vpop.f32.mrf.mxu1 }
  0xe3   :  { %v1199_v12 = vadd.f32 %v1821_v14, %v1159_v7  ;;  %1404 = vmatmul.msk.f32.gmra.mxu2 %vm192_vm1, %v142_v5  ;;  %1440 = vmatmul.msk.f32.gmra.mxu3 %vm192_vm1, %v178_v6  ;;  %v1088_v15 = vmax.f32 %v676_v8, %v784_v9  ;;  %v147_v7 = vld [vmem:[%s2307_s0 + $0x338] sm:$0xff] }
  0xe4   :  { %v183_v8 = vld [vmem:[%s2307_s0 + $0x458] sm:$0xff] }
  0xe5   :  { %v1235_v13 = vmax.f32 %v1199_v12, 0.0  ;;  %1332 = vmatmul.msk.f32.gmra.mxu0 %vm192_vm1, %v70_v10  ;;  %1368 = vmatmul.msk.f32.gmra.mxu1 %vm192_vm1, %v106_v11  ;;  %v75_v12 = vld [vmem:[%s2307_s0 + $0xf8] sm:$0xff] }
  0xe6   :  { %v892_v16 = vpop.f32.mrf.mxu2  ;;  %v1000_v17 = vpop.f32.mrf.mxu3 }
  0xe7   :  { %1272 = vst.msk [vmem:[%s2310_s3 + $0x48] sm:$0xff] %vm1262_vm2, %v1235_v13  ;;  %v1124_v18 = vmax.f32 %v892_v16, %v1000_v17  ;;  %v111_v13 = vld [vmem:[%s2307_s0 + $0x218] sm:$0xff] }
  0xe9   :  { %v1160_v21 = vmax.f32 %v1088_v15, %v1124_v18 }
  0xea   :  { %v679_v22 = vpop.f32.mrf.mxu0  ;;  %v787_v23 = vpop.f32.mrf.mxu1 }
  0xeb   :  { %v1200_v26 = vadd.f32 %v1821_v14, %v1160_v21  ;;  %1405 = vmatmul.msk.f32.gmra.mxu2 %vm192_vm1, %v143_v19  ;;  %1441 = vmatmul.msk.f32.gmra.mxu3 %vm192_vm1, %v179_v20  ;;  %v1089_v28 = vmax.f32 %v679_v22, %v787_v23  ;;  %v148_v21 = vld [vmem:[%s2307_s0 + $0x340] sm:$0xff] }
  0xec   :  { %v184_v22 = vld [vmem:[%s2307_s0 + $0x460] sm:$0xff] }
  0xed   :  { %v1236_v27 = vmax.f32 %v1200_v26, 0.0  ;;  %1333 = vmatmul.msk.f32.gmra.mxu0 %vm192_vm1, %v71_v24  ;;  %1369 = vmatmul.msk.f32.gmra.mxu1 %vm192_vm1, %v107_v25  ;;  %v76_v26 = vld [vmem:[%s2307_s0 + $0x100] sm:$0xff] }
  0xee   :  { %v895_v29 = vpop.f32.mrf.mxu2  ;;  %v1003_v30 = vpop.f32.mrf.mxu3 }
  0xef   :  { %1273 = vst.msk [vmem:[%s2310_s3 + $0x50] sm:$0xff] %vm1262_vm2, %v1236_v27  ;;  %v1125_v31 = vmax.f32 %v895_v29, %v1003_v30  ;;  %v112_v27 = vld [vmem:[%s2307_s0 + $0x220] sm:$0xff] }
  0xf1   :  { %v1161_v34 = vmax.f32 %v1089_v28, %v1125_v31 }
  0xf2   :  { %v682_v35 = vpop.f32.mrf.mxu0  ;;  %v790_v36 = vpop.f32.mrf.mxu1 }
  0xf3   :  { %v1201_v39 = vadd.f32 %v1821_v14, %v1161_v34  ;;  %1406 = vmatmul.msk.f32.gmra.mxu2 %vm192_vm1, %v144_v32  ;;  %1442 = vmatmul.msk.f32.gmra.mxu3 %vm192_vm1, %v180_v33  ;;  %v1090_v41 = vmax.f32 %v682_v35, %v790_v36  ;;  %v149_v34 = vld [vmem:[%s2307_s0 + $0x348] sm:$0xff] }
  0xf4   :  { %v185_v35 = vld [vmem:[%s2307_s0 + $0x468] sm:$0xff] }
  0xf5   :  { %v1237_v40 = vmax.f32 %v1201_v39, 0.0  ;;  %1334 = vmatmul.msk.f32.gmra.mxu0 %vm192_vm1, %v72_v37  ;;  %1370 = vmatmul.msk.f32.gmra.mxu1 %vm192_vm1, %v108_v38  ;;  %v77_v39 = vld [vmem:[%s2307_s0 + $0x108] sm:$0xff] }
  0xf6   :  { %v898_v42 = vpop.f32.mrf.mxu2  ;;  %v1006_v43 = vpop.f32.mrf.mxu3 }
  0xf7   :  { %1274 = vst.msk [vmem:[%s2310_s3 + $0x58] sm:$0xff] %vm1262_vm2, %v1237_v40  ;;  %v1126_v44 = vmax.f32 %v898_v42, %v1006_v43  ;;  %v113_v40 = vld [vmem:[%s2307_s0 + $0x228] sm:$0xff] }
  0xf9   :  { %v1162_v47 = vmax.f32 %v1090_v41, %v1126_v44 }
  0xfa   :  { %v685_v48 = vpop.f32.mrf.mxu0  ;;  %v793_v49 = vpop.f32.mrf.mxu1 }
  0xfb   :  { %v1202_v52 = vadd.f32 %v1821_v14, %v1162_v47  ;;  %1407 = vmatmul.msk.f32.gmra.mxu2 %vm192_vm1, %v145_v45  ;;  %1443 = vmatmul.msk.f32.gmra.mxu3 %vm192_vm1, %v181_v46  ;;  %v1091_v54 = vmax.f32 %v685_v48, %v793_v49  ;;  %v150_v47 = vld [vmem:[%s2307_s0 + $0x350] sm:$0xff] }
  0xfc   :  { %v186_v48 = vld [vmem:[%s2307_s0 + $0x470] sm:$0xff] }
  0xfd   :  { %v1238_v53 = vmax.f32 %v1202_v52, 0.0  ;;  %1335 = vmatmul.msk.f32.gmra.mxu0 %vm192_vm1, %v73_v50  ;;  %1371 = vmatmul.msk.f32.gmra.mxu1 %vm192_vm1, %v109_v51  ;;  %v78_v52 = vld [vmem:[%s2307_s0 + $0x110] sm:$0xff] }
  0xfe   :  { %v901_v55 = vpop.f32.mrf.mxu2  ;;  %v1009_v56 = vpop.f32.mrf.mxu3 }
  0xff   :  { %1275 = vst.msk [vmem:[%s2310_s3 + $0x60] sm:$0xff] %vm1262_vm2, %v1238_v53  ;;  %v1127_v57 = vmax.f32 %v901_v55, %v1009_v56  ;;  %v114_v53 = vld [vmem:[%s2307_s0 + $0x230] sm:$0xff] }
 0x101   :  { %v1163_v60 = vmax.f32 %v1091_v54, %v1127_v57 }
 0x102   :  { %v688_v61 = vpop.f32.mrf.mxu0  ;;  %v796_v62 = vpop.f32.mrf.mxu1 }
 0x103   :  { %v1203_v1 = vadd.f32 %v1821_v14, %v1163_v60  ;;  %1408 = vmatmul.msk.f32.gmra.mxu2 %vm192_vm1, %v146_v58  ;;  %1444 = vmatmul.msk.f32.gmra.mxu3 %vm192_vm1, %v182_v59  ;;  %v1092_v3 = vmax.f32 %v688_v61, %v796_v62  ;;  %v151_v60 = vld [vmem:[%s2307_s0 + $0x358] sm:$0xff] }
 0x104   :  { %v187_v61 = vld [vmem:[%s2307_s0 + $0x478] sm:$0xff] }
 0x105   :  { %v1239_v2 = vmax.f32 %v1203_v1, 0.0  ;;  %1336 = vmatmul.msk.f32.gmra.mxu0 %vm192_vm1, %v74_v63  ;;  %1372 = vmatmul.msk.f32.gmra.mxu1 %vm192_vm1, %v110_v0  ;;  %v79_v1 = vld [vmem:[%s2307_s0 + $0x118] sm:$0xff] }
 0x106   :  { %v904_v4 = vpop.f32.mrf.mxu2  ;;  %v1012_v5 = vpop.f32.mrf.mxu3 }
 0x107   :  { %1276 = vst.msk [vmem:[%s2310_s3 + $0x68] sm:$0xff] %vm1262_vm2, %v1239_v2  ;;  %v1128_v6 = vmax.f32 %v904_v4, %v1012_v5  ;;  %v115_v2 = vld [vmem:[%s2307_s0 + $0x238] sm:$0xff] }
 0x109   :  { %v1164_v9 = vmax.f32 %v1092_v3, %v1128_v6 }
 0x10a   :  { %v691_v10 = vpop.f32.mrf.mxu0  ;;  %v799_v11 = vpop.f32.mrf.mxu1 }
 0x10b   :  { %v1204_v15 = vadd.f32 %v1821_v14, %v1164_v9  ;;  %1409 = vmatmul.msk.f32.gmra.mxu2 %vm192_vm1, %v147_v7  ;;  %1445 = vmatmul.msk.f32.gmra.mxu3 %vm192_vm1, %v183_v8  ;;  %v1093_v17 = vmax.f32 %v691_v10, %v799_v11 }
 0x10d   :  { %v1240_v16 = vmax.f32 %v1204_v15, 0.0  ;;  %1337 = vmatmul.msk.f32.gmra.mxu0 %vm192_vm1, %v75_v12  ;;  %1373 = vmatmul.msk.f32.gmra.mxu1 %vm192_vm1, %v111_v13 }
 0x10e   :  { %v907_v18 = vpop.f32.mrf.mxu2  ;;  %v1015_v19 = vpop.f32.mrf.mxu3 }
 0x10f   :  { %1277 = vst.msk [vmem:[%s2310_s3 + $0x70] sm:$0xff] %vm1262_vm2, %v1240_v16  ;;  %v1129_v20 = vmax.f32 %v907_v18, %v1015_v19 }
 0x111   :  { %v1165_v23 = vmax.f32 %v1093_v17, %v1129_v20 }
 0x112   :  { %v694_v24 = vpop.f32.mrf.mxu0  ;;  %v802_v25 = vpop.f32.mrf.mxu1 }
 0x113   :  { %v1205_v28 = vadd.f32 %v1821_v14, %v1165_v23  ;;  %1410 = vmatmul.msk.f32.gmra.mxu2 %vm192_vm1, %v148_v21  ;;  %1446 = vmatmul.msk.f32.gmra.mxu3 %vm192_vm1, %v184_v22  ;;  %v1094_v30 = vmax.f32 %v694_v24, %v802_v25 }
 0x115   :  { %v1241_v29 = vmax.f32 %v1205_v28, 0.0  ;;  %1338 = vmatmul.msk.f32.gmra.mxu0 %vm192_vm1, %v76_v26  ;;  %1374 = vmatmul.msk.f32.gmra.mxu1 %vm192_vm1, %v112_v27 }
 0x116   :  { %v910_v31 = vpop.f32.mrf.mxu2  ;;  %v1018_v32 = vpop.f32.mrf.mxu3 }
 0x117   :  { %1278 = vst.msk [vmem:[%s2310_s3 + $0x78] sm:$0xff] %vm1262_vm2, %v1241_v29  ;;  %v1130_v33 = vmax.f32 %v910_v31, %v1018_v32 }
 0x119   :  { %v1166_v36 = vmax.f32 %v1094_v30, %v1130_v33 }
 0x11a   :  { %v697_v37 = vpop.f32.mrf.mxu0  ;;  %v805_v38 = vpop.f32.mrf.mxu1 }
 0x11b   :  { %v1206_v41 = vadd.f32 %v1821_v14, %v1166_v36  ;;  %1411 = vmatmul.msk.f32.gmra.mxu2 %vm192_vm1, %v149_v34  ;;  %1447 = vmatmul.msk.f32.gmra.mxu3 %vm192_vm1, %v185_v35  ;;  %v1095_v43 = vmax.f32 %v697_v37, %v805_v38 }
 0x11d   :  { %v1242_v42 = vmax.f32 %v1206_v41, 0.0  ;;  %1339 = vmatmul.msk.f32.gmra.mxu0 %vm192_vm1, %v77_v39  ;;  %1375 = vmatmul.msk.f32.gmra.mxu1 %vm192_vm1, %v113_v40 }
 0x11e   :  { %v913_v44 = vpop.f32.mrf.mxu2  ;;  %v1021_v45 = vpop.f32.mrf.mxu3 }
 0x11f   :  { %1279 = vst.msk [vmem:[%s2310_s3 + $0x80] sm:$0xff] %vm1262_vm2, %v1242_v42  ;;  %v1131_v46 = vmax.f32 %v913_v44, %v1021_v45 }
 0x121   :  { %v1167_v49 = vmax.f32 %v1095_v43, %v1131_v46 }
 0x122   :  { %v700_v50 = vpop.f32.mrf.mxu0  ;;  %v808_v51 = vpop.f32.mrf.mxu1 }
 0x123   :  { %v1207_v54 = vadd.f32 %v1821_v14, %v1167_v49  ;;  %1412 = vmatmul.msk.f32.gmra.mxu2 %vm192_vm1, %v150_v47  ;;  %1448 = vmatmul.msk.f32.gmra.mxu3 %vm192_vm1, %v186_v48  ;;  %v1096_v56 = vmax.f32 %v700_v50, %v808_v51 }
 0x125   :  { %v1243_v55 = vmax.f32 %v1207_v54, 0.0  ;;  %1340 = vmatmul.msk.f32.gmra.mxu0 %vm192_vm1, %v78_v52  ;;  %1376 = vmatmul.msk.f32.gmra.mxu1 %vm192_vm1, %v114_v53 }
 0x126   :  { %v916_v57 = vpop.f32.mrf.mxu2  ;;  %v1024_v58 = vpop.f32.mrf.mxu3 }
 0x127   :  { %1280 = vst.msk [vmem:[%s2310_s3 + $0x88] sm:$0xff] %vm1262_vm2, %v1243_v55  ;;  %v1132_v59 = vmax.f32 %v916_v57, %v1024_v58 }
 0x129   :  { %v1168_v62 = vmax.f32 %v1096_v56, %v1132_v59 }
 0x12a   :  { %v703_v63 = vpop.f32.mrf.mxu0  ;;  %v811_v0 = vpop.f32.mrf.mxu1 }
 0x12b   :  { %v1208_v3 = vadd.f32 %v1821_v14, %v1168_v62  ;;  %1413 = vmatmul.msk.f32.gmra.mxu2 %vm192_vm1, %v151_v60  ;;  %1449 = vmatmul.msk.f32.gmra.mxu3 %vm192_vm1, %v187_v61  ;;  %v1097_v5 = vmax.f32 %v703_v63, %v811_v0 }
 0x12d   :  { %v1244_v4 = vmax.f32 %v1208_v3, 0.0  ;;  %1341 = vmatmul.msk.f32.gmra.mxu0 %vm192_vm1, %v79_v1  ;;  %1377 = vmatmul.msk.f32.gmra.mxu1 %vm192_vm1, %v115_v2 }
 0x12e   :  { %v919_v6 = vpop.f32.mrf.mxu2  ;;  %v1027_v7 = vpop.f32.mrf.mxu3 }
 0x12f   :  { %1281 = vst.msk [vmem:[%s2310_s3 + $0x90] sm:$0xff] %vm1262_vm2, %v1244_v4  ;;  %v1133_v8 = vmax.f32 %v919_v6, %v1027_v7 }
 0x131   :  { %v1169_v9 = vmax.f32 %v1097_v5, %v1133_v8 }
 0x132   :  { %v706_v10 = vpop.f32.mrf.mxu0  ;;  %v814_v11 = vpop.f32.mrf.mxu1 }
 0x133   :  { %v1209_v12 = vadd.f32 %v1821_v14, %v1169_v9  ;;  %v1098_v15 = vmax.f32 %v706_v10, %v814_v11 }
 0x135   :  { %v1245_v13 = vmax.f32 %v1209_v12, 0.0 }
 0x136   :  { %v922_v16 = vpop.f32.mrf.mxu2  ;;  %v1030_v17 = vpop.f32.mrf.mxu3 }
 0x137   :  { %1282 = vst.msk [vmem:[%s2310_s3 + $0x98] sm:$0xff] %vm1262_vm2, %v1245_v13  ;;  %v1134_v18 = vmax.f32 %v922_v16, %v1030_v17 }
 0x139   :  { %v1170_v19 = vmax.f32 %v1098_v15, %v1134_v18 }
 0x13a   :  { %v709_v20 = vpop.f32.mrf.mxu0  ;;  %v817_v21 = vpop.f32.mrf.mxu1 }
 0x13b   :  { %v1210_v22 = vadd.f32 %v1821_v14, %v1170_v19  ;;  %v1099_v24 = vmax.f32 %v709_v20, %v817_v21 }
 0x13d   :  { %v1246_v23 = vmax.f32 %v1210_v22, 0.0 }
 0x13e   :  { %v925_v25 = vpop.f32.mrf.mxu2  ;;  %v1033_v26 = vpop.f32.mrf.mxu3 }
 0x13f   :  { %1283 = vst.msk [vmem:[%s2310_s3 + $0xa0] sm:$0xff] %vm1262_vm2, %v1246_v23  ;;  %v1135_v27 = vmax.f32 %v925_v25, %v1033_v26 }
 0x141   :  { %v1171_v28 = vmax.f32 %v1099_v24, %v1135_v27 }
 0x142   :  { %v712_v29 = vpop.f32.mrf.mxu0  ;;  %v820_v30 = vpop.f32.mrf.mxu1 }
 0x143   :  { %v1211_v31 = vadd.f32 %v1821_v14, %v1171_v28  ;;  %v1100_v33 = vmax.f32 %v712_v29, %v820_v30 }
 0x145   :  { %v1247_v32 = vmax.f32 %v1211_v31, 0.0 }
 0x146   :  { %v928_v34 = vpop.f32.mrf.mxu2  ;;  %v1036_v35 = vpop.f32.mrf.mxu3 }
 0x147   :  { %1284 = vst.msk [vmem:[%s2310_s3 + $0xa8] sm:$0xff] %vm1262_vm2, %v1247_v32  ;;  %v1136_v36 = vmax.f32 %v928_v34, %v1036_v35 }
 0x149   :  { %v1172_v37 = vmax.f32 %v1100_v33, %v1136_v36 }
 0x14a   :  { %v715_v38 = vpop.f32.mrf.mxu0  ;;  %v823_v39 = vpop.f32.mrf.mxu1 }
 0x14b   :  { %v1212_v40 = vadd.f32 %v1821_v14, %v1172_v37  ;;  %v1101_v42 = vmax.f32 %v715_v38, %v823_v39 }
 0x14d   :  { %v1248_v41 = vmax.f32 %v1212_v40, 0.0 }
 0x14e   :  { %v931_v43 = vpop.f32.mrf.mxu2  ;;  %v1039_v44 = vpop.f32.mrf.mxu3 }
 0x14f   :  { %1285 = vst.msk [vmem:[%s2310_s3 + $0xb0] sm:$0xff] %vm1262_vm2, %v1248_v41  ;;  %v1137_v45 = vmax.f32 %v931_v43, %v1039_v44 }
 0x151   :  { %v1173_v46 = vmax.f32 %v1101_v42, %v1137_v45 }
 0x152   :  { %v718_v47 = vpop.f32.mrf.mxu0  ;;  %v826_v48 = vpop.f32.mrf.mxu1 }
 0x153   :  { %v1213_v49 = vadd.f32 %v1821_v14, %v1173_v46  ;;  %v1102_v51 = vmax.f32 %v718_v47, %v826_v48 }
 0x155   :  { %v1249_v50 = vmax.f32 %v1213_v49, 0.0 }
 0x156   :  { %v934_v52 = vpop.f32.mrf.mxu2  ;;  %v1042_v53 = vpop.f32.mrf.mxu3 }
 0x157   :  { %1286 = vst.msk [vmem:[%s2310_s3 + $0xb8] sm:$0xff] %vm1262_vm2, %v1249_v50  ;;  %v1138_v54 = vmax.f32 %v934_v52, %v1042_v53 }
 0x159   :  { %v1174_v55 = vmax.f32 %v1102_v51, %v1138_v54 }
 0x15a   :  { %v721_v56 = vpop.f32.mrf.mxu0  ;;  %v829_v57 = vpop.f32.mrf.mxu1 }
 0x15b   :  { %v1214_v58 = vadd.f32 %v1821_v14, %v1174_v55  ;;  %v1103_v60 = vmax.f32 %v721_v56, %v829_v57 }
 0x15d   :  { %v1250_v59 = vmax.f32 %v1214_v58, 0.0 }
 0x15e   :  { %v937_v61 = vpop.f32.mrf.mxu2  ;;  %v1045_v62 = vpop.f32.mrf.mxu3 }
 0x15f   :  { %1287 = vst.msk [vmem:[%s2310_s3 + $0xc0] sm:$0xff] %vm1262_vm2, %v1250_v59  ;;  %v1139_v63 = vmax.f32 %v937_v61, %v1045_v62 }
 0x161   :  { %v1175_v0 = vmax.f32 %v1103_v60, %v1139_v63 }
 0x162   :  { %v724_v1 = vpop.f32.mrf.mxu0  ;;  %v832_v2 = vpop.f32.mrf.mxu1 }
 0x163   :  { %v1215_v3 = vadd.f32 %v1821_v14, %v1175_v0  ;;  %v1104_v5 = vmax.f32 %v724_v1, %v832_v2 }
 0x165   :  { %v1251_v4 = vmax.f32 %v1215_v3, 0.0 }
 0x166   :  { %v940_v6 = vpop.f32.mrf.mxu2  ;;  %v1048_v7 = vpop.f32.mrf.mxu3 }
 0x167   :  { %1288 = vst.msk [vmem:[%s2310_s3 + $0xc8] sm:$0xff] %vm1262_vm2, %v1251_v4  ;;  %v1140_v8 = vmax.f32 %v940_v6, %v1048_v7 }
 0x169   :  { %v1176_v9 = vmax.f32 %v1104_v5, %v1140_v8 }
 0x16a   :  { %v727_v10 = vpop.f32.mrf.mxu0  ;;  %v835_v11 = vpop.f32.mrf.mxu1 }
 0x16b   :  { %v1216_v12 = vadd.f32 %v1821_v14, %v1176_v9  ;;  %v1105_v15 = vmax.f32 %v727_v10, %v835_v11 }
 0x16d   :  { %v1252_v13 = vmax.f32 %v1216_v12, 0.0 }
 0x16e   :  { %v943_v16 = vpop.f32.mrf.mxu2  ;;  %v1051_v17 = vpop.f32.mrf.mxu3 }
 0x16f   :  { %1289 = vst.msk [vmem:[%s2310_s3 + $0xd0] sm:$0xff] %vm1262_vm2, %v1252_v13  ;;  %v1141_v18 = vmax.f32 %v943_v16, %v1051_v17 }
 0x171   :  { %v1177_v19 = vmax.f32 %v1105_v15, %v1141_v18 }
 0x172   :  { %v730_v20 = vpop.f32.mrf.mxu0  ;;  %v838_v21 = vpop.f32.mrf.mxu1 }
 0x173   :  { %v1217_v22 = vadd.f32 %v1821_v14, %v1177_v19  ;;  %v1106_v24 = vmax.f32 %v730_v20, %v838_v21 }
 0x175   :  { %v1253_v23 = vmax.f32 %v1217_v22, 0.0 }
 0x176   :  { %v946_v25 = vpop.f32.mrf.mxu2  ;;  %v1054_v26 = vpop.f32.mrf.mxu3 }
 0x177   :  { %1290 = vst.msk [vmem:[%s2310_s3 + $0xd8] sm:$0xff] %vm1262_vm2, %v1253_v23  ;;  %v1142_v27 = vmax.f32 %v946_v25, %v1054_v26 }
 0x179   :  { %v1178_v28 = vmax.f32 %v1106_v24, %v1142_v27 }
 0x17a   :  { %v733_v29 = vpop.f32.mrf.mxu0  ;;  %v841_v30 = vpop.f32.mrf.mxu1 }
 0x17b   :  { %v1218_v31 = vadd.f32 %v1821_v14, %v1178_v28  ;;  %v1107_v33 = vmax.f32 %v733_v29, %v841_v30 }
 0x17d   :  { %v1254_v32 = vmax.f32 %v1218_v31, 0.0 }
 0x17e   :  { %v949_v34 = vpop.f32.mrf.mxu2  ;;  %v1057_v35 = vpop.f32.mrf.mxu3 }
 0x17f   :  { %1291 = vst.msk [vmem:[%s2310_s3 + $0xe0] sm:$0xff] %vm1262_vm2, %v1254_v32  ;;  %v1143_v36 = vmax.f32 %v949_v34, %v1057_v35 }
 0x181   :  { %v1179_v37 = vmax.f32 %v1107_v33, %v1143_v36 }
 0x182   :  { %v736_v38 = vpop.f32.mrf.mxu0  ;;  %v844_v39 = vpop.f32.mrf.mxu1 }
 0x183   :  { %v1219_v40 = vadd.f32 %v1821_v14, %v1179_v37  ;;  %v1108_v42 = vmax.f32 %v736_v38, %v844_v39 }
 0x185   :  { %v1255_v41 = vmax.f32 %v1219_v40, 0.0 }
 0x186   :  { %v952_v43 = vpop.f32.mrf.mxu2  ;;  %v1060_v44 = vpop.f32.mrf.mxu3 }
 0x187   :  { %1292 = vst.msk [vmem:[%s2310_s3 + $0xe8] sm:$0xff] %vm1262_vm2, %v1255_v41  ;;  %v1144_v45 = vmax.f32 %v952_v43, %v1060_v44 }
 0x189   :  { %v1180_v46 = vmax.f32 %v1108_v42, %v1144_v45 }
 0x18a   :  { %v739_v47 = vpop.f32.mrf.mxu0  ;;  %v847_v48 = vpop.f32.mrf.mxu1 }
 0x18b   :  { %v1220_v49 = vadd.f32 %v1821_v14, %v1180_v46  ;;  %v1109_v51 = vmax.f32 %v739_v47, %v847_v48 }
 0x18d   :  { %v1256_v50 = vmax.f32 %v1220_v49, 0.0 }
 0x18e   :  { %v955_v52 = vpop.f32.mrf.mxu2  ;;  %v1063_v53 = vpop.f32.mrf.mxu3 }
 0x18f   :  { %1293 = vst.msk [vmem:[%s2310_s3 + $0xf0] sm:$0xff] %vm1262_vm2, %v1256_v50  ;;  %v1145_v54 = vmax.f32 %v955_v52, %v1063_v53 }
 0x191   :  { %v1181_v55 = vmax.f32 %v1109_v51, %v1145_v54 }
 0x192   :  { %v742_v56 = vpop.f32.mrf.mxu0  ;;  %v850_v57 = vpop.f32.mrf.mxu1 }
 0x193   :  { %v1221_v58 = vadd.f32 %v1821_v14, %v1181_v55  ;;  %v1110_v60 = vmax.f32 %v742_v56, %v850_v57 }
 0x195   :  { %v1257_v59 = vmax.f32 %v1221_v58, 0.0 }
 0x196   :  { %v958_v61 = vpop.f32.mrf.mxu2  ;;  %v1066_v62 = vpop.f32.mrf.mxu3 }
 0x197   :  { %1294 = vst.msk [vmem:[%s2310_s3 + $0xf8] sm:$0xff] %vm1262_vm2, %v1257_v59  ;;  %v1146_v63 = vmax.f32 %v958_v61, %v1066_v62 }
 0x199   :  { %v1182_v0 = vmax.f32 %v1110_v60, %v1146_v63 }
 0x19a   :  { %v745_v1 = vpop.f32.mrf.mxu0  ;;  %v853_v2 = vpop.f32.mrf.mxu1 }
 0x19b   :  { %v1222_v3 = vadd.f32 %v1821_v14, %v1182_v0  ;;  %v1111_v5 = vmax.f32 %v745_v1, %v853_v2 }
 0x19d   :  { %v1258_v4 = vmax.f32 %v1222_v3, 0.0 }
 0x19e   :  { %v961_v6 = vpop.f32.mrf.mxu2  ;;  %v1069_v7 = vpop.f32.mrf.mxu3 }
 0x19f   :  { %1295 = vst.msk [vmem:[%s2310_s3 + $0x100] sm:$0xff] %vm1262_vm2, %v1258_v4  ;;  %v1147_v8 = vmax.f32 %v961_v6, %v1069_v7 }
 0x1a1   :  { %v1183_v9 = vmax.f32 %v1111_v5, %v1147_v8 }
 0x1a2   :  { %v748_v10 = vpop.f32.mrf.mxu0  ;;  %v856_v11 = vpop.f32.mrf.mxu1 }
 0x1a3   :  { %v1223_v12 = vadd.f32 %v1821_v14, %v1183_v9  ;;  %v1112_v15 = vmax.f32 %v748_v10, %v856_v11 }
 0x1a5   :  { %v1259_v13 = vmax.f32 %v1223_v12, 0.0 }
 0x1a6   :  { %v964_v16 = vpop.f32.mrf.mxu2  ;;  %v1072_v17 = vpop.f32.mrf.mxu3 }
 0x1a7   :  { %1296 = vst.msk [vmem:[%s2310_s3 + $0x108] sm:$0xff] %vm1262_vm2, %v1259_v13  ;;  %v1148_v18 = vmax.f32 %v964_v16, %v1072_v17 }
 0x1a9   :  { %v1184_v19 = vmax.f32 %v1112_v15, %v1148_v18 }
 0x1aa   :  { %v751_v20 = vpop.f32.mrf.mxu0  ;;  %v859_v21 = vpop.f32.mrf.mxu1 }
 0x1ab   :  { %v1224_v22 = vadd.f32 %v1821_v14, %v1184_v19  ;;  %v1113_v24 = vmax.f32 %v751_v20, %v859_v21 }
 0x1ad   :  { %v1260_v23 = vmax.f32 %v1224_v22, 0.0 }
 0x1ae   :  { %v967_v25 = vpop.f32.mrf.mxu2  ;;  %v1075_v26 = vpop.f32.mrf.mxu3 }
 0x1af   :  { %1297 = vst.msk [vmem:[%s2310_s3 + $0x110] sm:$0xff] %vm1262_vm2, %v1260_v23  ;;  %v1149_v27 = vmax.f32 %v967_v25, %v1075_v26 }
 0x1b1   :  { %v1185_v28 = vmax.f32 %v1113_v24, %v1149_v27 }
 0x1b3   :  { %v1225_v29 = vadd.f32 %v1821_v14, %v1185_v28 }
 0x1b5   :  { %v1261_v30 = vmax.f32 %v1225_v29, 0.0 }
 0x1b7   :  { %1298 = vst.msk [vmem:[%s2310_s3 + $0x118] sm:$0xff] %vm1262_vm2, %v1261_v30 }
 0x1b8   :  { %1303 = vsyncpa [#allocation3], 1 }
 0x1b9   :  { %1304 = vsyncpa [#allocation5], 1 }

// kernel: leaf_cnn1_forward.4
= control target key start
LH: loop header
LB: loop body
LE: loop exit
PB: predicated region body
PF: predicated region fallthrough
CT: control target
= control target key end

     0   :  { %vm226_vm0 = vcmask 261120   ;;  %vm754_vm1 = vcmask 523264   ;;  %s1725_s1 = inlined_call_operand.vmem [shape: f32[800,64], index: 1, kind: input, shape index: {}]   ;;  %s1726_s0 = inlined_call_operand.vmem [shape: f32[1,128,800], index: 0, kind: input, shape index: {}]   ;;  %s1727_s2 = inlined_call_operand.vmem [shape: f32[1,64], index: 2, kind: input, shape index: {}]   ;;  %s1728_s3 = inlined_call_operand.vmem [shape: f32[32,64], index: 3, kind: output, shape index: {}]  }
   0x1   :  { %v141_v0 = vld [vmem:[%s1725_s1 + $0x78] sm:$0xff]  ;;  %v140_v1 = vld [vmem:[%s1725_s1 + $0x70] sm:$0xff]  ;;  %v139_v4 = vld [vmem:[%s1725_s1 + $0x68] sm:$0xff] }
   0x2   :  { %v857_v2 = vld [vmem:[%s1725_s1 + $0x178] sm:$0xff]  ;;  %275 = vmatpush.msra.mxu0 %v141_v0  ;;  %779 = vmatpush.msra.mxu3 %v141_v0  ;;  %v862_v3 = vld [vmem:[%s1725_s1 + $0x170] sm:$0xff]  ;;  %v876_v6 = vld [vmem:[%s1725_s1 + $0x168] sm:$0xff] }
   0x3   :  { %811 = vmatpush.msra.mxu2 %v857_v2  ;;  %v871_v5 = vld [vmem:[%s1725_s1 + $0xf8] sm:$0xff]  ;;  %v881_v7 = vld [vmem:[%s1725_s1 + $0xf0] sm:$0xff]  ;;  %v138_v8 = vld [vmem:[%s1725_s1 + $0x60] sm:$0xff] }
   0x4   :  { %276 = vmatpush.msra.mxu0 %v140_v1  ;;  %780 = vmatpush.msra.mxu3 %v140_v1  ;;  %v891_v9 = vld [vmem:[%s1725_s1 + $0x160] sm:$0xff]  ;;  %v896_v10 = vld [vmem:[%s1725_s1 + $0xe8] sm:$0xff]  ;;  %v137_v11 = vld [vmem:[%s1725_s1 + $0x58] sm:$0xff] }
   0x5   :  { %812 = vmatpush.msra.mxu2 %v862_v3  ;;  %795 = vmatpush.msra.mxu1 %v871_v5  ;;  %v906_v12 = vld [vmem:[%s1725_s1 + $0x158] sm:$0xff]  ;;  %v911_v13 = vld [vmem:[%s1725_s1 + $0xe0] sm:$0xff]  ;;  %v136_v14 = vld [vmem:[%s1725_s1 + $0x50] sm:$0xff] }
   0x6   :  { %277 = vmatpush.msra.mxu0 %v139_v4  ;;  %781 = vmatpush.msra.mxu3 %v139_v4  ;;  %v921_v15 = vld [vmem:[%s1725_s1 + $0x150] sm:$0xff]  ;;  %v926_v16 = vld [vmem:[%s1725_s1 + $0xd8] sm:$0xff]  ;;  %v135_v17 = vld [vmem:[%s1725_s1 + $0x48] sm:$0xff] }
   0x7   :  { %813 = vmatpush.msra.mxu2 %v876_v6  ;;  %796 = vmatpush.msra.mxu1 %v881_v7  ;;  %v936_v18 = vld [vmem:[%s1725_s1 + $0x148] sm:$0xff]  ;;  %v941_v19 = vld [vmem:[%s1725_s1 + $0xd0] sm:$0xff]  ;;  %v134_v20 = vld [vmem:[%s1725_s1 + $0x40] sm:$0xff] }
   0x8   :  { %278 = vmatpush.msra.mxu0 %v138_v8  ;;  %782 = vmatpush.msra.mxu3 %v138_v8  ;;  %v951_v21 = vld [vmem:[%s1725_s1 + $0x140] sm:$0xff]  ;;  %v956_v22 = vld [vmem:[%s1725_s1 + $0xc8] sm:$0xff]  ;;  %v133_v23 = vld [vmem:[%s1725_s1 + $0x38] sm:$0xff] }
   0x9   :  { %814 = vmatpush.msra.mxu2 %v891_v9  ;;  %797 = vmatpush.msra.mxu1 %v896_v10  ;;  %v966_v24 = vld [vmem:[%s1725_s1 + $0x138] sm:$0xff]  ;;  %v971_v25 = vld [vmem:[%s1725_s1 + $0xc0] sm:$0xff]  ;;  %v132_v26 = vld [vmem:[%s1725_s1 + $0x30] sm:$0xff] }
   0xa   :  { %279 = vmatpush.msra.mxu0 %v137_v11  ;;  %783 = vmatpush.msra.mxu3 %v137_v11  ;;  %v981_v27 = vld [vmem:[%s1725_s1 + $0x130] sm:$0xff]  ;;  %v986_v28 = vld [vmem:[%s1725_s1 + $0xb8] sm:$0xff]  ;;  %v131_v29 = vld [vmem:[%s1725_s1 + $0x28] sm:$0xff] }
   0xb   :  { %815 = vmatpush.msra.mxu2 %v906_v12  ;;  %798 = vmatpush.msra.mxu1 %v911_v13  ;;  %v996_v30 = vld [vmem:[%s1725_s1 + $0x128] sm:$0xff]  ;;  %v1001_v31 = vld [vmem:[%s1725_s1 + $0xb0] sm:$0xff]  ;;  %v130_v32 = vld [vmem:[%s1725_s1 + $0x20] sm:$0xff] }
   0xc   :  { %280 = vmatpush.msra.mxu0 %v136_v14  ;;  %784 = vmatpush.msra.mxu3 %v136_v14  ;;  %v1011_v33 = vld [vmem:[%s1725_s1 + $0x120] sm:$0xff]  ;;  %v1016_v34 = vld [vmem:[%s1725_s1 + $0xa8] sm:$0xff]  ;;  %v129_v35 = vld [vmem:[%s1725_s1 + $0x18] sm:$0xff] }
   0xd   :  { %816 = vmatpush.msra.mxu2 %v921_v15  ;;  %799 = vmatpush.msra.mxu1 %v926_v16  ;;  %v1026_v36 = vld [vmem:[%s1725_s1 + $0x118] sm:$0xff]  ;;  %v1031_v37 = vld [vmem:[%s1725_s1 + $0xa0] sm:$0xff]  ;;  %v128_v38 = vld [vmem:[%s1725_s1 + $0x10] sm:$0xff] }
   0xe   :  { %281 = vmatpush.msra.mxu0 %v135_v17  ;;  %785 = vmatpush.msra.mxu3 %v135_v17  ;;  %v1041_v39 = vld [vmem:[%s1725_s1 + $0x110] sm:$0xff]  ;;  %v1046_v40 = vld [vmem:[%s1725_s1 + $0x98] sm:$0xff]  ;;  %v127_v41 = vld [vmem:[%s1725_s1 + $0x8] sm:$0xff] }
   0xf   :  { %817 = vmatpush.msra.mxu2 %v936_v18  ;;  %800 = vmatpush.msra.mxu1 %v941_v19  ;;  %v1056_v42 = vld [vmem:[%s1725_s1 + $0x108] sm:$0xff]  ;;  %v1061_v43 = vld [vmem:[%s1725_s1 + $0x90] sm:$0xff]  ;;  %v126_v44 = vld [vmem:[%s1725_s1] sm:$0xff] }
  0x10   :  { %282 = vmatpush.msra.mxu0 %v134_v20  ;;  %786 = vmatpush.msra.mxu3 %v134_v20  ;;  %v14_v45 = vld [vmem:[%s1726_s0] sm:$0xff]  ;;  %v189_v47 = vld [vmem:[%s1725_s1 + $0x1f8] sm:$0xff]  ;;  %v1087_v49 = vld [vmem:[%s1725_s1 + $0x88] sm:$0xff] }
  0x11   :  { %818 = vmatpush.msra.mxu2 %v951_v21  ;;  %801 = vmatpush.msra.mxu1 %v956_v22  ;;  %v42_v46 = vld [vmem:[%s1726_s0 + $0xe0] sm:$0xff]  ;;  %v44_v50 = vld [vmem:[%s1726_s0 + $0xf0] sm:$0xff]  ;;  %v43_v53 = vld [vmem:[%s1726_s0 + $0xe8] sm:$0xff] }
  0x12   :  { %283 = vmatpush.msra.mxu0 %v133_v23  ;;  %787 = vmatpush.msra.mxu3 %v133_v23  ;;  %v1082_v48 = vld [vmem:[%s1725_s1 + $0x100] sm:$0xff]  ;;  %v188_v52 = vld [vmem:[%s1725_s1 + $0x1f0] sm:$0xff]  ;;  %v225_v54 = vld [vmem:[%s1725_s1 + $0x318] sm:$0xff] }
  0x13   :  { %819 = vmatpush.msra.mxu2 %v966_v24  ;;  %802 = vmatpush.msra.mxu1 %v971_v25  ;;  %v1096_v51 = vld [vmem:[%s1725_s1 + $0x80] sm:$0xff]  ;;  %v221_v55 = vld [vmem:[%s1725_s1 + $0x2f8] sm:$0xff]  ;;  %v187_v56 = vld [vmem:[%s1725_s1 + $0x1e8] sm:$0xff] }
  0x14   :  { %284 = vmatpush.msra.mxu0 %v132_v26  ;;  %788 = vmatpush.msra.mxu3 %v132_v26  ;;  %v21_v57 = vld [vmem:[%s1726_s0 + $0x38] sm:$0xff]  ;;  %v220_v59 = vld [vmem:[%s1725_s1 + $0x2f0] sm:$0xff]  ;;  %v186_v60 = vld [vmem:[%s1725_s1 + $0x1e0] sm:$0xff] }
  0x15   :  { %820 = vmatpush.msra.mxu2 %v981_v27  ;;  %803 = vmatpush.msra.mxu1 %v986_v28  ;;  %v49_v58 = vld [vmem:[%s1726_s0 + $0x118] sm:$0xff]  ;;  %v224_v61 = vld [vmem:[%s1725_s1 + $0x310] sm:$0xff]  ;;  %v51_v62 = vld [vmem:[%s1726_s0 + $0x128] sm:$0xff] }
  0x16   :  { %285 = vmatpush.msra.mxu0 %v131_v29  ;;  %789 = vmatpush.msra.mxu3 %v131_v29  ;;  %v219_v63 = vld [vmem:[%s1725_s1 + $0x2e8] sm:$0xff]  ;;  %v185_v0 = vld [vmem:[%s1725_s1 + $0x1d8] sm:$0xff]  ;;  %v50_v1 = vld [vmem:[%s1726_s0 + $0x120] sm:$0xff] }
  0x17   :  { %821 = vmatpush.msra.mxu2 %v996_v30  ;;  %804 = vmatpush.msra.mxu1 %v1001_v31  ;;  %v218_v4 = vld [vmem:[%s1725_s1 + $0x2e0] sm:$0xff]  ;;  %v56_v8 = vld [vmem:[%s1726_s0 + $0x150] sm:$0xff]  ;;  %v183_v11 = vld [vmem:[%s1725_s1 + $0x1c8] sm:$0xff] }
  0x18   :  { %286 = vmatpush.msra.mxu0 %v130_v32  ;;  %790 = vmatpush.msra.mxu3 %v130_v32  ;;  %v216_v14 = vld [vmem:[%s1725_s1 + $0x2d0] sm:$0xff]  ;;  %v57_v17 = vld [vmem:[%s1726_s0 + $0x158] sm:$0xff]  ;;  %v63_v23 = vld [vmem:[%s1726_s0 + $0x188] sm:$0xff] }
  0x19   :  { %822 = vmatpush.msra.mxu2 %v1011_v33  ;;  %805 = vmatpush.msra.mxu1 %v1016_v34  ;;  %v181_v20 = vld [vmem:[%s1725_s1 + $0x1b8] sm:$0xff]  ;;  %v214_v26 = vld [vmem:[%s1725_s1 + $0x2c0] sm:$0xff] }
  0x1a   :  { %287 = vmatpush.msra.mxu0 %v129_v35  ;;  %791 = vmatpush.msra.mxu3 %v129_v35  ;;  %v65_v29 = vld [vmem:[%s1726_s0 + $0x198] sm:$0xff]  ;;  %v70_v35 = vld [vmem:[%s1726_s0 + $0x1c0] sm:$0xff] }
  0x1b   :  { %823 = vmatpush.msra.mxu2 %v1026_v36  ;;  %806 = vmatpush.msra.mxu1 %v1031_v37  ;;  %v213_v32 = vld [vmem:[%s1725_s1 + $0x2b8] sm:$0xff] }
  0x1c   :  { %288 = vmatpush.msra.mxu0 %v128_v38  ;;  %792 = vmatpush.msra.mxu3 %v128_v38  ;;  %v72_v38 = vld [vmem:[%s1726_s0 + $0x1d0] sm:$0xff] }
  0x1d   :  { %824 = vmatpush.msra.mxu2 %v1041_v39  ;;  %807 = vmatpush.msra.mxu1 %v1046_v40 }
  0x1e   :  { %289 = vmatpush.msra.mxu0 %v127_v41  ;;  %793 = vmatpush.msra.mxu3 %v127_v41  ;;  %v71_v41 = vld [vmem:[%s1726_s0 + $0x1c8] sm:$0xff] }
  0x1f   :  { %825 = vmatpush.msra.mxu2 %v1056_v42  ;;  %808 = vmatpush.msra.mxu1 %v1061_v43 }
  0x20   :  { %290 = vmatpush.msra.mxu0 %v126_v44  ;;  %794 = vmatpush.msra.mxu3 %v126_v44  ;;  %v22_v44 = vld [vmem:[%s1726_s0 + $0x40] sm:$0xff] }
  0x21   :  { %291 = vmatmul.f32.vlgmr.msra.gmra.mxu0 %v14_v45  ;;  %303 = vmatmul.f32.vlgmr.msra.gmra.mxu3 %v42_v46  ;;  %v177_v45 = vld [vmem:[%s1725_s1 + $0x198] sm:$0xff]  ;;  %v78_v46 = vld [vmem:[%s1726_s0 + $0x200] sm:$0xff] }
  0x22   :  { %470 = vmatpush.msrb.mxu3 %v189_v47  ;;  %340 = vmatpush.msrb.mxu0 %v871_v5  ;;  %v184_v5 = vld [vmem:[%s1725_s1 + $0x1d0] sm:$0xff] }
  0x23   :  { %826 = vmatpush.msra.mxu2 %v1082_v48  ;;  %809 = vmatpush.msra.mxu1 %v1087_v49  ;;  %v84_v47 = vld [vmem:[%s1726_s0 + $0x230] sm:$0xff] }
  0x24   :  { %433 = vmatmul.f32.vlgmr.msra.gmra.mxu2 %v44_v50  ;;  %341 = vmatpush.msrb.mxu0 %v881_v7  ;;  %v28_v7 = vld [vmem:[%s1726_s0 + $0x70] sm:$0xff]  ;;  %v85_v50 = vld [vmem:[%s1726_s0 + $0x238] sm:$0xff] }
  0x25   :  { %810 = vmatpush.msra.mxu1 %v1096_v51  ;;  %471 = vmatpush.msrb.mxu3 %v188_v52  ;;  %v93_v52 = vld [vmem:[%s1726_s0 + $0x278] sm:$0xff] }
  0x26   :  { %342 = vmatpush.msrb.mxu0 %v896_v10  ;;  %368 = vmatmul.f32.vlgmr.msra.gmra.mxu1 %v43_v53  ;;  %v217_v10 = vld [vmem:[%s1725_s1 + $0x2d8] sm:$0xff]  ;;  %v92_v53 = vld [vmem:[%s1726_s0 + $0x270] sm:$0xff] }
  0x27   :  { %677 = vmatpush.msrb.mxu2 %v225_v54  ;;  %600 = vmatpush.msrb.mxu1 %v221_v55  ;;  %v16_v54 = vld [vmem:[%s1726_s0 + $0x10] sm:$0xff]  ;;  %v205_v55 = vld [vmem:[%s1725_s1 + $0x278] sm:$0xff] }
  0x28   :  { %343 = vmatpush.msrb.mxu0 %v911_v13  ;;  %472 = vmatpush.msrb.mxu3 %v187_v56  ;;  %v58_v13 = vld [vmem:[%s1726_s0 + $0x160] sm:$0xff]  ;;  %v204_v56 = vld [vmem:[%s1725_s1 + $0x270] sm:$0xff] }
  0x29   :  { %294 = vmatmul.f32.gmra.mxu0 %v21_v57  ;;  %306 = vmatmul.f32.gmra.mxu3 %v49_v58  ;;  %v206_v57 = vld [vmem:[%s1725_s1 + $0x280] sm:$0xff]  ;;  %v99_v58 = vld [vmem:[%s1726_s0 + $0x2a8] sm:$0xff] }
  0x2a   :  { %344 = vmatpush.msrb.mxu0 %v926_v16  ;;  %601 = vmatpush.msrb.mxu1 %v220_v59  ;;  %v182_v16 = vld [vmem:[%s1725_s1 + $0x1c0] sm:$0xff] }
  0x2b   :  { %473 = vmatpush.msrb.mxu3 %v186_v60  ;;  %678 = vmatpush.msrb.mxu2 %v224_v61  ;;  %v202_v59 = vld [vmem:[%s1725_s1 + $0x260] sm:$0xff]  ;;  %v105_v60 = vld [vmem:[%s1726_s0 + $0x2d8] sm:$0xff]  ;;  %v23_v61 = vld [vmem:[%s1726_s0 + $0x48] sm:$0xff] }
  0x2c   :  { %436 = vmatmul.f32.gmra.mxu2 %v51_v62  ;;  %345 = vmatpush.msrb.mxu0 %v941_v19  ;;  %v215_v19 = vld [vmem:[%s1725_s1 + $0x2c8] sm:$0xff]  ;;  %v201_v62 = vld [vmem:[%s1725_s1 + $0x258] sm:$0xff] }
  0x2d   :  { %602 = vmatpush.msrb.mxu1 %v219_v63  ;;  %474 = vmatpush.msrb.mxu3 %v185_v0  ;;  %v107_v63 = vld [vmem:[%s1726_s0 + $0x2e8] sm:$0xff]  ;;  %v200_v0 = vld [vmem:[%s1725_s1 + $0x250] sm:$0xff] }
  0x2e   :  { %346 = vmatpush.msrb.mxu0 %v956_v22  ;;  %371 = vmatmul.f32.gmra.mxu1 %v50_v1  ;;  %v35_v22 = vld [vmem:[%s1726_s0 + $0xa8] sm:$0xff]  ;;  %v106_v1 = vld [vmem:[%s1726_s0 + $0x2e0] sm:$0xff] }
  0x2f   :  { %603 = vmatpush.msrb.mxu1 %v218_v4  ;;  %475 = vmatpush.msrb.mxu3 %v184_v5  ;;  %v199_v4 = vld [vmem:[%s1725_s1 + $0x248] sm:$0xff]  ;;  %v198_v5 = vld [vmem:[%s1725_s1 + $0x240] sm:$0xff] }
  0x30   :  { %347 = vmatpush.msrb.mxu0 %v971_v25  ;;  %v223_v25 = vld [vmem:[%s1725_s1 + $0x308] sm:$0xff] }
  0x31   :  { %297 = vmatmul.f32.gmra.mxu0 %v28_v7  ;;  %309 = vmatmul.f32.gmra.mxu3 %v56_v8  ;;  %v112_v7 = vld [vmem:[%s1726_s0 + $0x310] sm:$0xff]  ;;  %v30_v8 = vld [vmem:[%s1726_s0 + $0x80] sm:$0xff] }
  0x32   :  { %348 = vmatpush.msrb.mxu0 %v986_v28  ;;  %604 = vmatpush.msrb.mxu1 %v217_v10  ;;  %v180_v28 = vld [vmem:[%s1725_s1 + $0x1b0] sm:$0xff]  ;;  %v197_v10 = vld [vmem:[%s1725_s1 + $0x238] sm:$0xff] }
  0x33   :  { %476 = vmatpush.msrb.mxu3 %v183_v11  ;;  %679 = vmatpush.msrb.mxu2 %v223_v25  ;;  %v114_v11 = vld [vmem:[%s1726_s0 + $0x320] sm:$0xff]  ;;  %v192_v25 = vld [vmem:[%s1725_s1 + $0x210] sm:$0xff] }
  0x34   :  { %439 = vmatmul.f32.gmra.mxu2 %v58_v13  ;;  %349 = vmatpush.msrb.mxu0 %v1001_v31  ;;  %v64_v31 = vld [vmem:[%s1726_s0 + $0x190] sm:$0xff] }
  0x35   :  { %605 = vmatpush.msrb.mxu1 %v216_v14  ;;  %477 = vmatpush.msrb.mxu3 %v182_v16  ;;  %v196_v13 = vld [vmem:[%s1725_s1 + $0x230] sm:$0xff]  ;;  %v113_v14 = vld [vmem:[%s1726_s0 + $0x318] sm:$0xff]  ;;  %v195_v16 = vld [vmem:[%s1725_s1 + $0x228] sm:$0xff] }
  0x36   :  { %350 = vmatpush.msrb.mxu0 %v1016_v34  ;;  %374 = vmatmul.f32.gmra.mxu1 %v57_v17  ;;  %v179_v34 = vld [vmem:[%s1725_s1 + $0x1a8] sm:$0xff]  ;;  %v194_v17 = vld [vmem:[%s1725_s1 + $0x220] sm:$0xff] }
  0x37   :  { %606 = vmatpush.msrb.mxu1 %v215_v19  ;;  %478 = vmatpush.msrb.mxu3 %v181_v20  ;;  %v119_v19 = vld [vmem:[%s1726_s0 + $0x348] sm:$0xff]  ;;  %v37_v20 = vld [vmem:[%s1726_s0 + $0xb8] sm:$0xff] }
  0x38   :  { %351 = vmatpush.msrb.mxu0 %v1031_v37  ;;  %v15_v37 = vld [vmem:[%s1726_s0 + $0x8] sm:$0xff] }
  0x39   :  { %300 = vmatmul.f32.gmra.mxu0 %v35_v22  ;;  %312 = vmatmul.f32.gmra.mxu3 %v63_v23  ;;  %v193_v22 = vld [vmem:[%s1725_s1 + $0x218] sm:$0xff] }
  0x3a   :  { %352 = vmatpush.msrb.mxu0 %v1046_v40  ;;  %607 = vmatpush.msrb.mxu1 %v214_v26  ;;  %v212_v40 = vld [vmem:[%s1725_s1 + $0x2b0] sm:$0xff]  ;;  %v121_v23 = vld [vmem:[%s1726_s0 + $0x358] sm:$0xff] }
  0x3b   :  { %479 = vmatpush.msrb.mxu3 %v180_v28  ;;  %v120_v26 = vld [vmem:[%s1726_s0 + $0x350] sm:$0xff]  ;;  %v191_v28 = vld [vmem:[%s1725_s1 + $0x208] sm:$0xff] }
  0x3c   :  { %442 = vmatmul.f32.gmra.mxu2 %v65_v29  ;;  %353 = vmatpush.msrb.mxu0 %v1061_v43  ;;  %v178_v43 = vld [vmem:[%s1725_s1 + $0x1a0] sm:$0xff] }
  0x3d   :  { %608 = vmatpush.msrb.mxu1 %v213_v32  ;;  %480 = vmatpush.msrb.mxu3 %v179_v34  ;;  %v190_v29 = vld [vmem:[%s1725_s1 + $0x200] sm:$0xff]  ;;  %v20_v34 = vld [vmem:[%s1726_s0 + $0x30] sm:$0xff] }
  0x3e   :  { %354 = vmatpush.msrb.mxu0 %v1087_v49  ;;  %377 = vmatmul.f32.gmra.mxu1 %v64_v31  ;;  %v222_v49 = vld [vmem:[%s1725_s1 + $0x300] sm:$0xff]  ;;  %v17_v31 = vld [vmem:[%s1726_s0 + $0x18] sm:$0xff] }
  0x3f   :  { %609 = vmatpush.msrb.mxu1 %v212_v40  ;;  %481 = vmatpush.msrb.mxu3 %v178_v43  ;;  %v18_v32 = vld [vmem:[%s1726_s0 + $0x20] sm:$0xff]  ;;  %v27_v40 = vld [vmem:[%s1726_s0 + $0x68] sm:$0xff] }
  0x40   :  { %355 = vmatpush.msrb.mxu0 %v1096_v51  ;;  %680 = vmatpush.msrb.mxu2 %v222_v49  ;;  %v209_v51 = vld [vmem:[%s1725_s1 + $0x298] sm:$0xff]  ;;  %v31_v43 = vld [vmem:[%s1726_s0 + $0x88] sm:$0xff]  ;;  %v48_v49 = vld [vmem:[%s1726_s0 + $0x110] sm:$0xff] }
  0x41   :  { %315 = vmatmul.f32.gmra.mxu3 %v70_v35  ;;  %356 = vmatmul.f32.vlgmr.msrb.gmra.mxu0 %v15_v37  ;;  %v19_v35 = vld [vmem:[%s1726_s0 + $0x28] sm:$0xff]  ;;  %v24_v37 = vld [vmem:[%s1726_s0 + $0x50] sm:$0xff] }
  0x42   :  { %405 = vmatpush.msra.mxu0 %v857_v2  ;;  %v77_v2 = vld [vmem:[%s1726_s0 + $0x1f8] sm:$0xff]  ;;  %482 = vmatpush.msrb.mxu3 %v177_v45  ;;  %v39_v45 = vld [vmem:[%s1726_s0 + $0xc8] sm:$0xff] }
  0x44   :  { %445 = vmatmul.f32.gmra.mxu2 %v72_v38  ;;  %406 = vmatpush.msra.mxu0 %v862_v3  ;;  %v211_v3 = vld [vmem:[%s1725_s1 + $0x2a8] sm:$0xff]  ;;  %v25_v38 = vld [vmem:[%s1726_s0 + $0x58] sm:$0xff] }
  0x45   :  { %610 = vmatpush.msrb.mxu1 %v211_v3  ;;  %v33_v3 = vld [vmem:[%s1726_s0 + $0x98] sm:$0xff] }
  0x46   :  { %407 = vmatpush.msra.mxu0 %v876_v6  ;;  %380 = vmatmul.f32.gmra.mxu1 %v71_v41  ;;  %v79_v6 = vld [vmem:[%s1726_s0 + $0x208] sm:$0xff]  ;;  %v26_v41 = vld [vmem:[%s1726_s0 + $0x60] sm:$0xff] }
  0x48   :  { %408 = vmatpush.msra.mxu0 %v891_v9  ;;  %v210_v9 = vld [vmem:[%s1725_s1 + $0x2a0] sm:$0xff] }
  0x49   :  { %318 = vmatmul.f32.gmra.mxu3 %v77_v2  ;;  %359 = vmatmul.f32.gmra.mxu0 %v22_v44  ;;  %v32_v2 = vld [vmem:[%s1726_s0 + $0x90] sm:$0xff]  ;;  %v34_v44 = vld [vmem:[%s1726_s0 + $0xa0] sm:$0xff] }
  0x4a   :  { %409 = vmatpush.msra.mxu0 %v906_v12  ;;  %611 = vmatpush.msrb.mxu1 %v210_v9  ;;  %v29_v12 = vld [vmem:[%s1726_s0 + $0x78] sm:$0xff]  ;;  %v40_v9 = vld [vmem:[%s1726_s0 + $0xd0] sm:$0xff] }
  0x4c   :  { %448 = vmatmul.f32.gmra.mxu2 %v79_v6  ;;  %410 = vmatpush.msra.mxu0 %v921_v15  ;;  %v176_v15 = vld [vmem:[%s1725_s1 + $0x190] sm:$0xff]  ;;  %v38_v6 = vld [vmem:[%s1726_s0 + $0xc0] sm:$0xff] }
  0x4d   :  { %483 = vmatpush.msrb.mxu3 %v176_v15  ;;  %612 = vmatpush.msrb.mxu1 %v209_v51  ;;  %v46_v15 = vld [vmem:[%s1726_s0 + $0x100] sm:$0xff] }
  0x4e   :  { %411 = vmatpush.msra.mxu0 %v936_v18  ;;  %383 = vmatmul.f32.gmra.mxu1 %v78_v46  ;;  %v86_v18 = vld [vmem:[%s1726_s0 + $0x240] sm:$0xff]  ;;  %v41_v46 = vld [vmem:[%s1726_s0 + $0xd8] sm:$0xff] }
  0x50   :  { %412 = vmatpush.msra.mxu0 %v951_v21  ;;  %v175_v21 = vld [vmem:[%s1725_s1 + $0x188] sm:$0xff] }
  0x51   :  { %321 = vmatmul.f32.gmra.mxu3 %v84_v47  ;;  %362 = vmatmul.f32.gmra.mxu0 %v29_v12  ;;  %v45_v12 = vld [vmem:[%s1726_s0 + $0xf8] sm:$0xff] }
  0x52   :  { %413 = vmatpush.msra.mxu0 %v966_v24  ;;  %484 = vmatpush.msrb.mxu3 %v175_v21  ;;  %v91_v24 = vld [vmem:[%s1726_s0 + $0x268] sm:$0xff] }
  0x54   :  { %451 = vmatmul.f32.gmra.mxu2 %v86_v18  ;;  %414 = vmatpush.msra.mxu0 %v981_v27  ;;  %v36_v27 = vld [vmem:[%s1726_s0 + $0xb0] sm:$0xff] }
  0x56   :  { %415 = vmatpush.msra.mxu0 %v996_v30  ;;  %386 = vmatmul.f32.gmra.mxu1 %v85_v50  ;;  %v208_v30 = vld [vmem:[%s1725_s1 + $0x290] sm:$0xff]  ;;  %v47_v50 = vld [vmem:[%s1726_s0 + $0x108] sm:$0xff] }
  0x57   :  { %613 = vmatpush.msrb.mxu1 %v208_v30 }
  0x58   :  { %416 = vmatpush.msra.mxu0 %v1011_v33  ;;  %v174_v33 = vld [vmem:[%s1725_s1 + $0x180] sm:$0xff] }
  0x59   :  { %324 = vmatmul.f32.gmra.mxu3 %v91_v24  ;;  %365 = vmatmul.f32.gmra.mxu0 %v36_v27  ;;  %v52_v27 = vld [vmem:[%s1726_s0 + $0x130] sm:$0xff] }
  0x5a   :  { %417 = vmatpush.msra.mxu0 %v1026_v36  ;;  %485 = vmatpush.msrb.mxu3 %v174_v33  ;;  %v98_v36 = vld [vmem:[%s1726_s0 + $0x2a0] sm:$0xff]  ;;  %v55_v33 = vld [vmem:[%s1726_s0 + $0x148] sm:$0xff] }
  0x5c   :  { %454 = vmatmul.f32.gmra.mxu2 %v93_v52  ;;  %418 = vmatpush.msra.mxu0 %v1041_v39  ;;  %v207_v39 = vld [vmem:[%s1725_s1 + $0x288] sm:$0xff]  ;;  %v53_v52 = vld [vmem:[%s1726_s0 + $0x138] sm:$0xff] }
  0x5d   :  { %614 = vmatpush.msrb.mxu1 %v207_v39 }
  0x5e   :  { %419 = vmatpush.msra.mxu0 %v1056_v42  ;;  %389 = vmatmul.f32.gmra.mxu1 %v92_v53  ;;  %v100_v42 = vld [vmem:[%s1726_s0 + $0x2b0] sm:$0xff] }
  0x5f   :  { %615 = vmatpush.msrb.mxu1 %v206_v57  ;;  %v60_v57 = vld [vmem:[%s1726_s0 + $0x170] sm:$0xff] }
  0x60   :  { %420 = vmatpush.msra.mxu0 %v1082_v48  ;;  %v203_v48 = vld [vmem:[%s1725_s1 + $0x268] sm:$0xff] }
  0x61   :  { %327 = vmatmul.f32.gmra.mxu3 %v98_v36  ;;  %421 = vmatmul.f32.vlgmr.msra.gmra.mxu0 %v16_v54  ;;  %v54_v54 = vld [vmem:[%s1726_s0 + $0x140] sm:$0xff] }
  0x62   :  { %535 = vmatpush.msrb.mxu0 %v205_v55 }
  0x64   :  { %457 = vmatmul.f32.gmra.mxu2 %v100_v42  ;;  %536 = vmatpush.msrb.mxu0 %v204_v56  ;;  %v59_v56 = vld [vmem:[%s1726_s0 + $0x168] sm:$0xff] }
  0x66   :  { %392 = vmatmul.f32.gmra.mxu1 %v99_v58  ;;  %537 = vmatpush.msrb.mxu0 %v203_v48 }
  0x68   :  { %538 = vmatpush.msrb.mxu0 %v202_v59  ;;  %v62_v59 = vld [vmem:[%s1726_s0 + $0x180] sm:$0xff] }
  0x69   :  { %330 = vmatmul.f32.gmra.mxu3 %v105_v60  ;;  %424 = vmatmul.f32.gmra.mxu0 %v23_v61  ;;  %v61_v61 = vld [vmem:[%s1726_s0 + $0x178] sm:$0xff] }
  0x6a   :  { %539 = vmatpush.msrb.mxu0 %v201_v62 }
  0x6c   :  { %460 = vmatmul.f32.gmra.mxu2 %v107_v63  ;;  %540 = vmatpush.msrb.mxu0 %v200_v0 }
  0x6e   :  { %395 = vmatmul.f32.gmra.mxu1 %v106_v1  ;;  %541 = vmatpush.msrb.mxu0 %v199_v4  ;;  %v66_v1 = vld [vmem:[%s1726_s0 + $0x1a0] sm:$0xff]  ;;  %v67_v4 = vld [vmem:[%s1726_s0 + $0x1a8] sm:$0xff] }
  0x70   :  { %542 = vmatpush.msrb.mxu0 %v198_v5 }
  0x71   :  { %333 = vmatmul.f32.gmra.mxu3 %v112_v7  ;;  %427 = vmatmul.f32.gmra.mxu0 %v30_v8  ;;  %v69_v8 = vld [vmem:[%s1726_s0 + $0x1b8] sm:$0xff] }
  0x72   :  { %543 = vmatpush.msrb.mxu0 %v197_v10 }
  0x74   :  { %463 = vmatmul.f32.gmra.mxu2 %v114_v11  ;;  %544 = vmatpush.msrb.mxu0 %v196_v13  ;;  %v68_v11 = vld [vmem:[%s1726_s0 + $0x1b0] sm:$0xff] }
  0x76   :  { %398 = vmatmul.f32.gmra.mxu1 %v113_v14  ;;  %545 = vmatpush.msrb.mxu0 %v195_v16 }
  0x78   :  { %546 = vmatpush.msrb.mxu0 %v194_v17  ;;  %v73_v17 = vld [vmem:[%s1726_s0 + $0x1d8] sm:$0xff] }
  0x79   :  { %336 = vmatmul.f32.gmra.mxu3 %v119_v19  ;;  %430 = vmatmul.f32.gmra.mxu0 %v37_v20  ;;  %v74_v19 = vld [vmem:[%s1726_s0 + $0x1e0] sm:$0xff] }
  0x7a   :  { %547 = vmatpush.msrb.mxu0 %v193_v22 }
  0x7c   :  { %466 = vmatmul.f32.gmra.mxu2 %v121_v23  ;;  %548 = vmatpush.msrb.mxu0 %v192_v25  ;;  %v76_v25 = vld [vmem:[%s1726_s0 + $0x1f0] sm:$0xff] }
  0x7e   :  { %401 = vmatmul.f32.gmra.mxu1 %v120_v26  ;;  %549 = vmatpush.msrb.mxu0 %v191_v28  ;;  %v75_v28 = vld [vmem:[%s1726_s0 + $0x1e8] sm:$0xff] }
  0x80   :  { %550 = vmatpush.msrb.mxu0 %v190_v29 }
  0x81   :  { %486 = vmatmul.f32.vlgmr.msrb.gmra.mxu3 %v17_v31  ;;  %551 = vmatmul.f32.vlgmr.msrb.gmra.mxu0 %v18_v32 }
  0x84   :  { %763 = vmatmul.msk.f32.vlgmr.msrb.gmra.mxu2 %vm226_vm0, %v20_v34  ;;  %v80_v34 = vld [vmem:[%s1726_s0 + $0x210] sm:$0xff] }
  0x86   :  { %616 = vmatmul.f32.vlgmr.msrb.gmra.mxu1 %v19_v35  ;;  %v81_v35 = vld [vmem:[%s1726_s0 + $0x218] sm:$0xff] }
  0x89   :  { %489 = vmatmul.f32.gmra.mxu3 %v24_v37  ;;  %554 = vmatmul.f32.gmra.mxu0 %v25_v38 }
  0x8c   :  { %764 = vmatmul.msk.f32.gmra.mxu2 %vm226_vm0, %v27_v40 }
  0x8e   :  { %619 = vmatmul.f32.gmra.mxu1 %v26_v41  ;;  %v83_v41 = vld [vmem:[%s1726_s0 + $0x228] sm:$0xff] }
  0x91   :  { %492 = vmatmul.f32.gmra.mxu3 %v31_v43  ;;  %557 = vmatmul.f32.gmra.mxu0 %v32_v2  ;;  %v82_v2 = vld [vmem:[%s1726_s0 + $0x220] sm:$0xff] }
  0x94   :  { %765 = vmatmul.msk.f32.gmra.mxu2 %vm226_vm0, %v34_v44 }
  0x96   :  { %622 = vmatmul.f32.gmra.mxu1 %v33_v3 }
  0x99   :  { %495 = vmatmul.f32.gmra.mxu3 %v38_v6  ;;  %560 = vmatmul.f32.gmra.mxu0 %v39_v45  ;;  %v87_v45 = vld [vmem:[%s1726_s0 + $0x248] sm:$0xff] }
  0x9c   :  { %766 = vmatmul.msk.f32.gmra.mxu2 %vm226_vm0, %v41_v46  ;;  %v88_v46 = vld [vmem:[%s1726_s0 + $0x250] sm:$0xff] }
  0x9e   :  { %v292_v47 = vpop.f32.mrf.mxu0  ;;  %625 = vmatmul.f32.gmra.mxu1 %v40_v9 }
  0xa1   :  { %498 = vmatmul.f32.gmra.mxu3 %v45_v12  ;;  %563 = vmatmul.f32.gmra.mxu0 %v46_v15  ;;  %v90_v15 = vld [vmem:[%s1726_s0 + $0x260] sm:$0xff] }
  0xa3   :  { %v369_v18 = vpop.f32.mrf.mxu1 }
  0xa4   :  { %v304_v51 = vpop.f32.mrf.mxu3  ;;  %767 = vmatmul.msk.f32.gmra.mxu2 %vm226_vm0, %v48_v49 }
  0xa5   :  { %v370_v21 = vadd.f32 %v369_v18, %v304_v51  ;;  %v89_v18 = vld [vmem:[%s1726_s0 + $0x258] sm:$0xff] }
  0xa6   :  { %v295_v24 = vpop.f32.mrf.mxu0  ;;  %628 = vmatmul.f32.gmra.mxu1 %v47_v50 }
  0xa7   :  { %v434_v30 = vpop.f32.mrf.mxu2 }
  0xa8   :  { %v1491_v53 = vadd.f32 %v434_v30, %v370_v21 }
  0xa9   :  { %501 = vmatmul.f32.gmra.mxu3 %v52_v27  ;;  %566 = vmatmul.f32.gmra.mxu0 %v53_v52  ;;  %v95_v27 = vld [vmem:[%s1726_s0 + $0x288] sm:$0xff] }
  0xab   :  { %v372_v36 = vpop.f32.mrf.mxu1 }
  0xac   :  { %v307_v39 = vpop.f32.mrf.mxu3  ;;  %768 = vmatmul.msk.f32.gmra.mxu2 %vm226_vm0, %v55_v33 }
  0xad   :  { %v373_v55 = vadd.f32 %v372_v36, %v307_v39  ;;  %v97_v36 = vld [vmem:[%s1726_s0 + $0x298] sm:$0xff]  ;;  %v96_v39 = vld [vmem:[%s1726_s0 + $0x290] sm:$0xff] }
  0xae   :  { %v298_v42 = vpop.f32.mrf.mxu0  ;;  %631 = vmatmul.f32.gmra.mxu1 %v54_v54 }
  0xaf   :  { %v437_v58 = vpop.f32.mrf.mxu2 }
  0xb0   :  { %v1506_v48 = vadd.f32 %v437_v58, %v373_v55  ;;  %v102_v58 = vld [vmem:[%s1726_s0 + $0x2c0] sm:$0xff] }
  0xb1   :  { %504 = vmatmul.f32.gmra.mxu3 %v59_v56  ;;  %569 = vmatmul.f32.gmra.mxu0 %v60_v57  ;;  %v101_v57 = vld [vmem:[%s1726_s0 + $0x2b8] sm:$0xff] }
  0xb3   :  { %v375_v60 = vpop.f32.mrf.mxu1 }
  0xb4   :  { %v310_v62 = vpop.f32.mrf.mxu3  ;;  %769 = vmatmul.msk.f32.gmra.mxu2 %vm226_vm0, %v62_v59 }
  0xb5   :  { %v376_v63 = vadd.f32 %v375_v60, %v310_v62  ;;  %v104_v62 = vld [vmem:[%s1726_s0 + $0x2d0] sm:$0xff] }
  0xb6   :  { %v1515_v0 = vpop.f32.mrf.mxu0  ;;  %634 = vmatmul.f32.gmra.mxu1 %v61_v61 }
  0xb7   :  { %v440_v5 = vpop.f32.mrf.mxu2 }
  0xb8   :  { %v1523_v7 = vadd.f32 %v440_v5, %v376_v63 }
  0xb9   :  { %507 = vmatmul.f32.gmra.mxu3 %v66_v1  ;;  %572 = vmatmul.f32.gmra.mxu0 %v67_v4 }
  0xbb   :  { %v378_v10 = vpop.f32.mrf.mxu1 }
  0xbc   :  { %v313_v13 = vpop.f32.mrf.mxu3  ;;  %770 = vmatmul.msk.f32.gmra.mxu2 %vm226_vm0, %v69_v8  ;;  %v108_v8 = vld [vmem:[%s1726_s0 + $0x2f0] sm:$0xff] }
  0xbd   :  { %v379_v14 = vadd.f32 %v378_v10, %v313_v13  ;;  %v109_v10 = vld [vmem:[%s1726_s0 + $0x2f8] sm:$0xff] }
  0xbe   :  { %v357_v16 = vpop.f32.mrf.mxu0  ;;  %637 = vmatmul.f32.gmra.mxu1 %v68_v11 }
  0xbf   :  { %v358_v20 = vadd.f32 %v357_v16, %v292_v47  ;;  %v443_v22 = vpop.f32.mrf.mxu2  ;;  %v111_v16 = vld [vmem:[%s1726_s0 + $0x308] sm:$0xff] }
  0xc0   :  { %v1538_v23 = vadd.f32 %v443_v22, %v379_v14 }
  0xc1   :  { %510 = vmatmul.f32.gmra.mxu3 %v73_v17  ;;  %575 = vmatmul.f32.gmra.mxu0 %v74_v19  ;;  %v110_v19 = vld [vmem:[%s1726_s0 + $0x300] sm:$0xff] }
  0xc3   :  { %v381_v26 = vpop.f32.mrf.mxu1 }
  0xc4   :  { %v316_v29 = vpop.f32.mrf.mxu3  ;;  %771 = vmatmul.msk.f32.gmra.mxu2 %vm226_vm0, %v76_v25 }
  0xc5   :  { %v382_v31 = vadd.f32 %v381_v26, %v316_v29  ;;  %v115_v26 = vld [vmem:[%s1726_s0 + $0x328] sm:$0xff] }
  0xc6   :  { %v360_v32 = vpop.f32.mrf.mxu0  ;;  %640 = vmatmul.f32.gmra.mxu1 %v75_v28  ;;  %v116_v28 = vld [vmem:[%s1726_s0 + $0x330] sm:$0xff] }
  0xc7   :  { %v361_v37 = vadd.f32 %v360_v32, %v295_v24  ;;  %v446_v38 = vpop.f32.mrf.mxu2  ;;  %v94_v24 = vld [vmem:[%s1726_s0 + $0x280] sm:$0xff] }
  0xc8   :  { %v1553_v40 = vadd.f32 %v446_v38, %v382_v31 }
  0xc9   :  { %513 = vmatmul.f32.gmra.mxu3 %v80_v34  ;;  %578 = vmatmul.f32.gmra.mxu0 %v81_v35  ;;  %v118_v34 = vld [vmem:[%s1726_s0 + $0x340] sm:$0xff] }
  0xcb   :  { %v384_v43 = vpop.f32.mrf.mxu1 }
  0xcc   :  { %v319_v44 = vpop.f32.mrf.mxu3  ;;  %772 = vmatmul.msk.f32.gmra.mxu2 %vm226_vm0, %v83_v41 }
  0xcd   :  { %v385_v3 = vadd.f32 %v384_v43, %v319_v44  ;;  %v123_v44 = vld [vmem:[%s1726_s0 + $0x368] sm:$0xff] }
  0xce   :  { %v363_v6 = vpop.f32.mrf.mxu0  ;;  %643 = vmatmul.f32.gmra.mxu1 %v82_v2  ;;  %v122_v2 = vld [vmem:[%s1726_s0 + $0x360] sm:$0xff] }
  0xcf   :  { %v364_v9 = vadd.f32 %v363_v6, %v298_v42  ;;  %v449_v47 = vpop.f32.mrf.mxu2 }
  0xd0   :  { %v1568_v12 = vadd.f32 %v449_v47, %v385_v3  ;;  %v124_v47 = vld [vmem:[%s1726_s0 + $0x370] sm:$0xff] }
  0xd1   :  { %516 = vmatmul.f32.gmra.mxu3 %v87_v45  ;;  %581 = vmatmul.f32.gmra.mxu0 %v88_v46  ;;  %v125_v46 = vld [vmem:[%s1726_s0 + $0x378] sm:$0xff] }
  0xd3   :  { %v387_v49 = vpop.f32.mrf.mxu1 }
  0xd4   :  { %v322_v50 = vpop.f32.mrf.mxu3  ;;  %773 = vmatmul.msk.f32.gmra.mxu2 %vm226_vm0, %v90_v15 }
  0xd5   :  { %v388_v51 = vadd.f32 %v387_v49, %v322_v50 }
  0xd6   :  { %v366_v21 = vpop.f32.mrf.mxu0  ;;  %646 = vmatmul.f32.gmra.mxu1 %v89_v18 }
  0xd7   :  { %v367_v52 = vadd.f32 %v366_v21, %v1515_v0  ;;  %v452_v30 = vpop.f32.mrf.mxu2  ;;  %v103_v0 = vld [vmem:[%s1726_s0 + $0x2c8] sm:$0xff] }
  0xd8   :  { %v1584_v33 = vadd.f32 %v452_v30, %v388_v51 }
  0xd9   :  { %519 = vmatmul.f32.gmra.mxu3 %v94_v24  ;;  %584 = vmatmul.f32.gmra.mxu0 %v95_v27 }
  0xdb   :  { %v390_v54 = vpop.f32.mrf.mxu1 }
  0xdc   :  { %v325_v55 = vpop.f32.mrf.mxu3  ;;  %774 = vmatmul.msk.f32.gmra.mxu2 %vm226_vm0, %v97_v36 }
  0xdd   :  { %v391_v42 = vadd.f32 %v390_v54, %v325_v55 }
  0xde   :  { %v422_v56 = vpop.f32.mrf.mxu0  ;;  %649 = vmatmul.f32.gmra.mxu1 %v96_v39 }
  0xdf   :  { %v1599_v59 = vadd.f32 %v422_v56, %v358_v20  ;;  %v455_v60 = vpop.f32.mrf.mxu2 }
  0xe0   :  { %v1601_v61 = vadd.f32 %v455_v60, %v391_v42 }
  0xe1   :  { %522 = vmatmul.f32.gmra.mxu3 %v101_v57  ;;  %587 = vmatmul.f32.gmra.mxu0 %v102_v58 }
  0xe3   :  { %v393_v63 = vpop.f32.mrf.mxu1 }
  0xe4   :  { %v328_v1 = vpop.f32.mrf.mxu3  ;;  %775 = vmatmul.msk.f32.gmra.mxu2 %vm226_vm0, %v104_v62 }
  0xe5   :  { %v394_v4 = vadd.f32 %v393_v63, %v328_v1 }
  0xe6   :  { %v425_v5 = vpop.f32.mrf.mxu0  ;;  %652 = vmatmul.f32.gmra.mxu1 %v103_v0 }
  0xe7   :  { %v426_v11 = vadd.f32 %v425_v5, %v361_v37  ;;  %v458_v13 = vpop.f32.mrf.mxu2  ;;  %v117_v37 = vld [vmem:[%s1726_s0 + $0x338] sm:$0xff] }
  0xe8   :  { %v1616_v14 = vadd.f32 %v458_v13, %v394_v4 }
  0xe9   :  { %525 = vmatmul.f32.gmra.mxu3 %v108_v8  ;;  %590 = vmatmul.f32.gmra.mxu0 %v109_v10 }
  0xeb   :  { %v396_v17 = vpop.f32.mrf.mxu1 }
  0xec   :  { %v331_v20 = vpop.f32.mrf.mxu3  ;;  %776 = vmatmul.msk.f32.gmra.mxu2 %vm226_vm0, %v111_v16 }
  0xed   :  { %v397_v22 = vadd.f32 %v396_v17, %v331_v20 }
  0xee   :  { %v428_v25 = vpop.f32.mrf.mxu0  ;;  %655 = vmatmul.f32.gmra.mxu1 %v110_v19 }
  0xef   :  { %v429_v29 = vadd.f32 %v428_v25, %v364_v9  ;;  %v461_v31 = vpop.f32.mrf.mxu2 }
  0xf0   :  { %v1631_v32 = vadd.f32 %v461_v31, %v397_v22 }
  0xf1   :  { %528 = vmatmul.f32.gmra.mxu3 %v115_v26  ;;  %593 = vmatmul.f32.gmra.mxu0 %v116_v28 }
  0xf3   :  { %v399_v35 = vpop.f32.mrf.mxu1 }
  0xf4   :  { %v334_v38 = vpop.f32.mrf.mxu3  ;;  %777 = vmatmul.msk.f32.gmra.mxu2 %vm226_vm0, %v118_v34 }
  0xf5   :  { %v400_v41 = vadd.f32 %v399_v35, %v334_v38 }
  0xf6   :  { %v431_v43 = vpop.f32.mrf.mxu0  ;;  %658 = vmatmul.f32.gmra.mxu1 %v117_v37 }
  0xf7   :  { %v432_v3 = vadd.f32 %v431_v43, %v367_v52  ;;  %v464_v6 = vpop.f32.mrf.mxu2 }
  0xf8   :  { %v1646_v45 = vadd.f32 %v464_v6, %v400_v41 }
  0xf9   :  { %531 = vmatmul.f32.gmra.mxu3 %v122_v2  ;;  %596 = vmatmul.f32.gmra.mxu0 %v123_v44 }
  0xfb   :  { %v402_v9 = vpop.f32.mrf.mxu1 }
  0xfc   :  { %v337_v15 = vpop.f32.mrf.mxu3  ;;  %778 = vmatmul.msk.f32.gmra.mxu2 %vm226_vm0, %v125_v46 }
  0xfd   :  { %v403_v49 = vadd.f32 %v402_v9, %v337_v15 }
  0xfe   :  { %661 = vmatmul.f32.gmra.mxu1 %v124_v47  ;;  %v552_v18 = vpop.f32.mrf.mxu0 }
  0xff   :  { %v467_v50 = vpop.f32.mrf.mxu2 }
 0x100   :  { %v1655_v51 = vadd.f32 %v467_v50, %v403_v49 }
 0x103   :  { %v617_v21 = vpop.f32.mrf.mxu1 }
 0x104   :  { %v487_v24 = vpop.f32.mrf.mxu3 }
 0x105   :  { %v488_v27 = vadd.f32 %v487_v24, %v1599_v59 }
 0x106   :  { %v555_v52 = vpop.f32.mrf.mxu0 }
 0x107   :  { %v553_v30 = vadd.f32 %v552_v18, %v488_v27  ;;  %v682_v36 = vpop.f32.mrf.mxu2 }
 0x109   :  { %v618_v54 = vadd.f32 %v617_v21, %v553_v30 }
 0x10b   :  { %v1658_v39 = vadd.f32 %v682_v36, %v618_v54  ;;  %v620_v55 = vpop.f32.mrf.mxu1 }
 0x10c   :  { %v490_v42 = vpop.f32.mrf.mxu3 }
 0x10d   :  { %v491_v56 = vadd.f32 %v490_v42, %v426_v11 }
 0x10e   :  { %v558_v57 = vpop.f32.mrf.mxu0 }
 0x10f   :  { %v556_v58 = vadd.f32 %v555_v52, %v491_v56  ;;  %v685_v60 = vpop.f32.mrf.mxu2 }
 0x111   :  { %v621_v62 = vadd.f32 %v620_v55, %v556_v58 }
 0x113   :  { %v1660_v63 = vadd.f32 %v685_v60, %v621_v62  ;;  %v623_v0 = vpop.f32.mrf.mxu1 }
 0x114   :  { %v493_v1 = vpop.f32.mrf.mxu3 }
 0x115   :  { %v494_v4 = vadd.f32 %v493_v1, %v429_v29 }
 0x116   :  { %v561_v5 = vpop.f32.mrf.mxu0 }
 0x117   :  { %v559_v59 = vadd.f32 %v558_v57, %v494_v4  ;;  %v688_v8 = vpop.f32.mrf.mxu2 }
 0x119   :  { %v624_v10 = vadd.f32 %v623_v0, %v559_v59 }
 0x11b   :  { %v1662_v13 = vadd.f32 %v688_v8, %v624_v10  ;;  %v626_v16 = vpop.f32.mrf.mxu1 }
 0x11c   :  { %v496_v17 = vpop.f32.mrf.mxu3 }
 0x11d   :  { %v497_v19 = vadd.f32 %v496_v17, %v432_v3 }
 0x11e   :  { %v564_v20 = vpop.f32.mrf.mxu0 }
 0x11f   :  { %v562_v11 = vadd.f32 %v561_v5, %v497_v19  ;;  %v691_v22 = vpop.f32.mrf.mxu2 }
 0x121   :  { %v627_v25 = vadd.f32 %v626_v16, %v562_v11 }
 0x123   :  { %v1664_v26 = vadd.f32 %v691_v22, %v627_v25  ;;  %v629_v28 = vpop.f32.mrf.mxu1 }
 0x124   :  { %v499_v31 = vpop.f32.mrf.mxu3 }
 0x125   :  { %v500_v34 = vadd.f32 %v499_v31, %v1491_v53 }
 0x126   :  { %v567_v29 = vpop.f32.mrf.mxu0 }
 0x127   :  { %v565_v35 = vadd.f32 %v564_v20, %v500_v34  ;;  %v694_v37 = vpop.f32.mrf.mxu2 }
 0x129   :  { %v630_v38 = vadd.f32 %v629_v28, %v565_v35 }
 0x12b   :  { %v1667_v41 = vadd.f32 %v694_v37, %v630_v38  ;;  %v632_v43 = vpop.f32.mrf.mxu1 }
 0x12c   :  { %v502_v2 = vpop.f32.mrf.mxu3 }
 0x12d   :  { %v730_v44 = vmax.f32 %v1658_v39, %v1667_v41  ;;  %v503_v3 = vadd.f32 %v502_v2, %v1506_v48 }
 0x12e   :  { %v570_v6 = vpop.f32.mrf.mxu0 }
 0x12f   :  { %v568_v46 = vadd.f32 %v567_v29, %v503_v3  ;;  %v697_v9 = vpop.f32.mrf.mxu2 }
 0x131   :  { %v633_v47 = vadd.f32 %v632_v43, %v568_v46 }
 0x133   :  { %v1672_v15 = vadd.f32 %v697_v9, %v633_v47  ;;  %v635_v53 = vpop.f32.mrf.mxu1 }
 0x134   :  { %v505_v49 = vpop.f32.mrf.mxu3 }
 0x135   :  { %v731_v18 = vmax.f32 %v1660_v63, %v1672_v15  ;;  %v506_v50 = vadd.f32 %v505_v49, %v1523_v7 }
 0x136   :  { %v573_v21 = vpop.f32.mrf.mxu0 }
 0x137   :  { %v571_v24 = vadd.f32 %v570_v6, %v506_v50  ;;  %v700_v27 = vpop.f32.mrf.mxu2 }
 0x139   :  { %v636_v52 = vadd.f32 %v635_v53, %v571_v24 }
 0x13b   :  { %v1677_v30 = vadd.f32 %v700_v27, %v636_v52  ;;  %v638_v48 = vpop.f32.mrf.mxu1 }
 0x13c   :  { %v508_v36 = vpop.f32.mrf.mxu3 }
 0x13d   :  { %v732_v54 = vmax.f32 %v1662_v13, %v1677_v30  ;;  %v509_v55 = vadd.f32 %v508_v36, %v1538_v23 }
 0x13e   :  { %v576_v42 = vpop.f32.mrf.mxu0 }
 0x13f   :  { %v574_v56 = vadd.f32 %v573_v21, %v509_v55  ;;  %v703_v57 = vpop.f32.mrf.mxu2 }
 0x141   :  { %v639_v58 = vadd.f32 %v638_v48, %v574_v56 }
 0x143   :  { %v1682_v60 = vadd.f32 %v703_v57, %v639_v58  ;;  %v641_v7 = vpop.f32.mrf.mxu1 }
 0x144   :  { %v511_v62 = vpop.f32.mrf.mxu3 }
 0x145   :  { %v733_v0 = vmax.f32 %v1664_v26, %v1682_v60  ;;  %v512_v25 = vadd.f32 %v511_v62, %v1553_v40  ;;  %v827_v40 = vld [vmem:[%s1727_s2] ss:$0 sm:$0xff] }
 0x146   :  { %v579_v1 = vpop.f32.mrf.mxu0 }
 0x147   :  { %v706_v4 = vpop.f32.mrf.mxu2  ;;  %v577_v31 = vadd.f32 %v576_v42, %v512_v25 }
 0x149   :  { %v642_v37 = vadd.f32 %v641_v7, %v577_v31 }
 0x14b   :  { %v644_v5 = vpop.f32.mrf.mxu1  ;;  %v707_v46 = vadd.f32 %v706_v4, %v642_v37 }
 0x14c   :  { %v514_v59 = vpop.f32.mrf.mxu3 }
 0x14d   :  { %v515_v38 = vadd.f32 %v514_v59, %v1568_v12 }
 0x14e   :  { %v582_v8 = vpop.f32.mrf.mxu0 }
 0x14f   :  { %v709_v10 = vpop.f32.mrf.mxu2  ;;  %v580_v9 = vadd.f32 %v579_v1, %v515_v38 }
 0x153   :  { %v647_v16 = vpop.f32.mrf.mxu1 }
 0x154   :  { %v517_v17 = vpop.f32.mrf.mxu3 }
 0x155   :  { %v518_v24 = vadd.f32 %v517_v17, %v1584_v33 }
 0x156   :  { %v585_v23 = vpop.f32.mrf.mxu0 }
 0x157   :  { %v712_v19 = vpop.f32.mrf.mxu2  ;;  %v583_v56 = vadd.f32 %v582_v8, %v518_v24 }
 0x159   :  { %v648_v39 = vadd.f32 %v647_v16, %v583_v56 }
 0x15b   :  { %v650_v20 = vpop.f32.mrf.mxu1  ;;  %v713_v8 = vadd.f32 %v712_v19, %v648_v39 }
 0x15c   :  { %v520_v11 = vpop.f32.mrf.mxu3 }
 0x15d   :  { %v521_v41 = vadd.f32 %v520_v11, %v1601_v61 }
 0x15e   :  { %v588_v22 = vpop.f32.mrf.mxu0 }
 0x15f   :  { %v715_v28 = vpop.f32.mrf.mxu2 }
 0x163   :  { %v653_v34 = vpop.f32.mrf.mxu1 }
 0x164   :  { %v523_v29 = vpop.f32.mrf.mxu3 }
 0x165   :  { %v524_v35 = vadd.f32 %v523_v29, %v1616_v14  ;;  %v645_v14 = vadd.f32 %v644_v5, %v580_v9 }
 0x166   :  { %v591_v3 = vpop.f32.mrf.mxu0 }
 0x167   :  { %v589_v43 = vadd.f32 %v588_v22, %v524_v35  ;;  %v718_v2 = vpop.f32.mrf.mxu2  ;;  %v710_v42 = vadd.f32 %v709_v10, %v645_v14  ;;  %v586_v10 = vadd.f32 %v585_v23, %v521_v41 }
 0x169   :  { %v654_v6 = vadd.f32 %v653_v34, %v589_v43  ;;  %v651_v15 = vadd.f32 %v650_v20, %v586_v10 }
 0x16b   :  { %v719_v47 = vadd.f32 %v718_v2, %v654_v6  ;;  %v656_v53 = vpop.f32.mrf.mxu1  ;;  %v716_v34 = vadd.f32 %v715_v28, %v651_v15 }
 0x16c   :  { %v526_v49 = vpop.f32.mrf.mxu3 }
 0x16d   :  { %v734_v50 = vmax.f32 %v707_v46, %v719_v47  ;;  %v527_v21 = vadd.f32 %v526_v49, %v1631_v32 }
 0x16e   :  { %v594_v55 = vpop.f32.mrf.mxu0 }
 0x16f   :  { %v738_v12 = vmax.f32 %v730_v44, %v734_v50  ;;  %v592_v27 = vadd.f32 %v591_v3, %v527_v21  ;;  %v721_v52 = vpop.f32.mrf.mxu2 }
 0x171   :  { %v746_v48 = vadd.f32 %v827_v40, %v738_v12  ;;  %v657_v36 = vadd.f32 %v656_v53, %v592_v27 }
 0x173   :  { %v750_v57 = vmax.f32 %v746_v48, 0.0  ;;  %v722_v58 = vadd.f32 %v721_v52, %v657_v36  ;;  %v659_v62 = vpop.f32.mrf.mxu1 }
 0x174   :  { %v529_v7 = vpop.f32.mrf.mxu3 }
 0x175   :  { %755 = vst.msk [vmem:[%s1728_s3] sm:$0xff] %vm754_vm1, %v750_v57  ;;  %v735_v33 = vmax.f32 %v710_v42, %v722_v58  ;;  %v530_v32 = vadd.f32 %v529_v7, %v1646_v45 }
 0x176   :  { %v597_v31 = vpop.f32.mrf.mxu0 }
 0x177   :  { %v739_v44 = vmax.f32 %v731_v18, %v735_v33  ;;  %v595_v1 = vadd.f32 %v594_v55, %v530_v32  ;;  %v724_v4 = vpop.f32.mrf.mxu2 }
 0x179   :  { %v747_v5 = vadd.f32 %v827_v40, %v739_v44  ;;  %v660_v59 = vadd.f32 %v659_v62, %v595_v1 }
 0x17b   :  { %v751_v17 = vmax.f32 %v747_v5, 0.0  ;;  %v725_v22 = vadd.f32 %v724_v4, %v660_v59  ;;  %v662_v63 = vpop.f32.mrf.mxu1 }
 0x17c   :  { %v532_v25 = vpop.f32.mrf.mxu3 }
 0x17d   :  { %756 = vst.msk [vmem:[%s1728_s3 + $0x8] sm:$0xff] %vm754_vm1, %v751_v17  ;;  %v736_v61 = vmax.f32 %v713_v8, %v725_v22  ;;  %v533_v45 = vadd.f32 %v532_v25, %v1655_v51 }
 0x17f   :  { %v740_v18 = vmax.f32 %v732_v54, %v736_v61  ;;  %v598_v16 = vadd.f32 %v597_v31, %v533_v45  ;;  %v727_v23 = vpop.f32.mrf.mxu2 }
 0x181   :  { %v748_v19 = vadd.f32 %v827_v40, %v740_v18  ;;  %v663_v11 = vadd.f32 %v662_v63, %v598_v16 }
 0x183   :  { %v752_v29 = vmax.f32 %v748_v19, 0.0  ;;  %v728_v35 = vadd.f32 %v727_v23, %v663_v11 }
 0x185   :  { %757 = vst.msk [vmem:[%s1728_s3 + $0x10] sm:$0xff] %vm754_vm1, %v752_v29  ;;  %v737_v37 = vmax.f32 %v716_v34, %v728_v35 }
 0x187   :  { %v741_v51 = vmax.f32 %v733_v0, %v737_v37 }
 0x189   :  { %v749_v20 = vadd.f32 %v827_v40, %v741_v51 }
 0x18b   :  { %v753_v13 = vmax.f32 %v749_v20, 0.0 }
 0x18d   :  { %758 = vst.msk [vmem:[%s1728_s3 + $0x18] sm:$0xff] %vm754_vm1, %v753_v13 }

// kernel: leaf_cnn1_forward.5
= control target key start
LH: loop header
LB: loop body
LE: loop exit
PB: predicated region body
PF: predicated region fallthrough
CT: control target
= control target key end

     0   :  { %10 = vsyncpa [#allocation4], 0  ;;  %s9008_s18 = smov 0   ;;  %s9010_s19 = smov 0   ;;  %s11386_s0 = inlined_call_operand.vmem [shape: bf16[2,1024], index: 0, kind: input, shape index: {}]   ;;  %s11387_s1 = inlined_call_operand.vmem [shape: bf16[1024,2048], index: 1, kind: input, shape index: {}]   ;;  %s11388_s2 = inlined_call_operand.vmem [shape: f32[1,2048], index: 2, kind: input, shape index: {}]   ;;  %s11389_s3 = inlined_call_operand.vmem [shape: bf16[2048,128], index: 3, kind: input, shape index: {}]   ;;  %s11390_s4 = inlined_call_operand.vmem [shape: f32[1,128], index: 4, kind: input, shape index: {}]   ;;  %s11391_s5 = inlined_call_operand.hbm [shape: f32[2,128], index: 5, kind: output, shape index: {}]  }
   0x1   :  { %s9012_s20 = smov 0  }
   0x2 LB: > { %s9024_s21 = sadd.s32 4294967295, %s8974_s20   ;;  %s9027_s22 = sadd.s32 1, %s8974_s20   ;;  %s8974_s20 = sphi %s9012_s20, %s11394_s20   ;;  %s8970_s19 = sphi %s9010_s19, %s11393_s19   ;;  %s8966_s18 = sphi %s9008_s18, %s11392_s18  }
   0x3   : > { %s41_s23 = ssub.s32 %s8974_s20, %s9027_s22  ;;  %s44_s24 = sadd.s32 1, %s8970_s19 }
   0x4   : > { %p42_p0 = scmp.eq.s32.totalorder %s41_s23, 0  ;;  %p51_p1 = scmp.ne.s32.totalorder %s8970_s19, %s8966_s18 }
   0x5   : > { %p52_p2 = scmp.eq.s32.totalorder %s8974_s20, 0  ;;  %p5964_p4 = scmp.ge.s32.totalorder %s8974_s20, 2 }
   0x6   : > { %s9036_s25 = scalar_select %p42_p0, %s8970_s19, %s44_s24  }
   0x7   : > { %p53_p3 = por %p52_p2, %p51_p1  ;;  %177 = sbr.rel (%p5964_p4) target bundleno = 528 (0x210), region = 24 }
   0xc   : > { %180 = sbr.rel (!%p53_p3) target bundleno = 528 (0x210), region = 28  ;;  %s182_s26 = sand.u32 (%p53_p3), 1, %s8970_s19  }
   0xd   : > { %s8283_s27 = sshll.u32 (%p53_p3), %s8974_s20, 5  ;;  %s5965_s28 = sshll.u32 (%p53_p3), %s182_s26, 12 }
   0xe   : > { %s9044_s6 = scalar_lea.vmem (%p53_p3), %s11387_s1, %s8283_s27  ;;  %s9049_s7 = scalar_lea.vmem (%p53_p3), [#allocation2], %s5965_s28 }
   0xf   : > { %v200_v0 = vld [vmem:[%s9044_s6] sm:$0xff] (%p53_p3)  ;;  %v202_v1 = vld [vmem:[%s9044_s6 + $0x8] sm:$0xff] (%p53_p3)  ;;  %v204_v2 = vld [vmem:[%s9044_s6 + $0x10] sm:$0xff] (%p53_p3) }
  0x10   : > { %201 = vst [vmem:[%s9049_s7] sm:$0xff] (%p53_p3), %v200_v0  ;;  %v206_v3 = vld [vmem:[%s9044_s6 + $0x18] sm:$0xff] (%p53_p3)  ;;  %v208_v4 = vld [vmem:[%s9044_s6 + $0x40] sm:$0xff] (%p53_p3)  ;;  %v210_v5 = vld [vmem:[%s9044_s6 + $0x48] sm:$0xff] (%p53_p3) }
  0x11   : > { %203 = vst [vmem:[%s9049_s7 + $0x8] sm:$0xff] %v202_v1  ;;  %v212_v6 = vld [vmem:[%s9044_s6 + $0x50] sm:$0xff]  ;;  %v214_v7 = vld [vmem:[%s9044_s6 + $0x58] sm:$0xff]  ;;  %v216_v8 = vld [vmem:[%s9044_s6 + $0x80] sm:$0xff] }
  0x12   : > { %205 = vst [vmem:[%s9049_s7 + $0x10] sm:$0xff] %v204_v2  ;;  %v218_v9 = vld [vmem:[%s9044_s6 + $0x88] sm:$0xff]  ;;  %v220_v10 = vld [vmem:[%s9044_s6 + $0x90] sm:$0xff]  ;;  %v222_v11 = vld [vmem:[%s9044_s6 + $0x98] sm:$0xff] }
  0x13   : > { %207 = vst [vmem:[%s9049_s7 + $0x18] sm:$0xff] %v206_v3  ;;  %v224_v12 = vld [vmem:[%s9044_s6 + $0xc0] sm:$0xff]  ;;  %v226_v13 = vld [vmem:[%s9044_s6 + $0xc8] sm:$0xff]  ;;  %v228_v14 = vld [vmem:[%s9044_s6 + $0xd0] sm:$0xff] }
  0x14   : > { %209 = vst [vmem:[%s9049_s7 + $0x20] sm:$0xff] %v208_v4  ;;  %v230_v15 = vld [vmem:[%s9044_s6 + $0xd8] sm:$0xff]  ;;  %v232_v16 = vld [vmem:[%s9044_s6 + $0x100] sm:$0xff]  ;;  %v234_v17 = vld [vmem:[%s9044_s6 + $0x108] sm:$0xff] }
  0x15   : > { %211 = vst [vmem:[%s9049_s7 + $0x28] sm:$0xff] %v210_v5  ;;  %v236_v18 = vld [vmem:[%s9044_s6 + $0x110] sm:$0xff]  ;;  %v238_v19 = vld [vmem:[%s9044_s6 + $0x118] sm:$0xff]  ;;  %v240_v20 = vld [vmem:[%s9044_s6 + $0x140] sm:$0xff] }
  0x16   : > { %213 = vst [vmem:[%s9049_s7 + $0x30] sm:$0xff] %v212_v6  ;;  %v242_v21 = vld [vmem:[%s9044_s6 + $0x148] sm:$0xff]  ;;  %v244_v22 = vld [vmem:[%s9044_s6 + $0x150] sm:$0xff]  ;;  %v246_v23 = vld [vmem:[%s9044_s6 + $0x158] sm:$0xff] }
  0x17   : > { %215 = vst [vmem:[%s9049_s7 + $0x38] sm:$0xff] %v214_v7  ;;  %v248_v24 = vld [vmem:[%s9044_s6 + $0x180] sm:$0xff]  ;;  %v250_v25 = vld [vmem:[%s9044_s6 + $0x188] sm:$0xff]  ;;  %v252_v26 = vld [vmem:[%s9044_s6 + $0x190] sm:$0xff] }
  0x18   : > { %217 = vst [vmem:[%s9049_s7 + $0x40] sm:$0xff] %v216_v8  ;;  %v254_v27 = vld [vmem:[%s9044_s6 + $0x198] sm:$0xff]  ;;  %v256_v28 = vld [vmem:[%s9044_s6 + $0x1c0] sm:$0xff]  ;;  %v258_v29 = vld [vmem:[%s9044_s6 + $0x1c8] sm:$0xff] }
  0x19   : > { %219 = vst [vmem:[%s9049_s7 + $0x48] sm:$0xff] %v218_v9  ;;  %v260_v30 = vld [vmem:[%s9044_s6 + $0x1d0] sm:$0xff]  ;;  %v262_v31 = vld [vmem:[%s9044_s6 + $0x1d8] sm:$0xff]  ;;  %v264_v32 = vld [vmem:[%s9044_s6 + $0x200] sm:$0xff] }
  0x1a   : > { %221 = vst [vmem:[%s9049_s7 + $0x50] sm:$0xff] %v220_v10  ;;  %v266_v33 = vld [vmem:[%s9044_s6 + $0x208] sm:$0xff]  ;;  %v268_v34 = vld [vmem:[%s9044_s6 + $0x210] sm:$0xff]  ;;  %v270_v35 = vld [vmem:[%s9044_s6 + $0x218] sm:$0xff] }
  0x1b   : > { %223 = vst [vmem:[%s9049_s7 + $0x58] sm:$0xff] %v222_v11  ;;  %v272_v36 = vld [vmem:[%s9044_s6 + $0x240] sm:$0xff]  ;;  %v274_v37 = vld [vmem:[%s9044_s6 + $0x248] sm:$0xff]  ;;  %v276_v38 = vld [vmem:[%s9044_s6 + $0x250] sm:$0xff] }
  0x1c   : > { %225 = vst [vmem:[%s9049_s7 + $0x60] sm:$0xff] %v224_v12  ;;  %v278_v39 = vld [vmem:[%s9044_s6 + $0x258] sm:$0xff]  ;;  %v280_v40 = vld [vmem:[%s9044_s6 + $0x280] sm:$0xff]  ;;  %v282_v41 = vld [vmem:[%s9044_s6 + $0x288] sm:$0xff] }
  0x1d   : > { %227 = vst [vmem:[%s9049_s7 + $0x68] sm:$0xff] %v226_v13  ;;  %v284_v42 = vld [vmem:[%s9044_s6 + $0x290] sm:$0xff]  ;;  %v286_v43 = vld [vmem:[%s9044_s6 + $0x298] sm:$0xff]  ;;  %v288_v44 = vld [vmem:[%s9044_s6 + $0x2c0] sm:$0xff] }
  0x1e   : > { %229 = vst [vmem:[%s9049_s7 + $0x70] sm:$0xff] %v228_v14  ;;  %v290_v45 = vld [vmem:[%s9044_s6 + $0x2c8] sm:$0xff]  ;;  %v292_v46 = vld [vmem:[%s9044_s6 + $0x2d0] sm:$0xff]  ;;  %v294_v47 = vld [vmem:[%s9044_s6 + $0x2d8] sm:$0xff] }
  0x1f   : > { %231 = vst [vmem:[%s9049_s7 + $0x78] sm:$0xff] %v230_v15  ;;  %v296_v48 = vld [vmem:[%s9044_s6 + $0x300] sm:$0xff]  ;;  %v298_v49 = vld [vmem:[%s9044_s6 + $0x308] sm:$0xff]  ;;  %v300_v50 = vld [vmem:[%s9044_s6 + $0x310] sm:$0xff] }
  0x20   : > { %233 = vst [vmem:[%s9049_s7 + $0x80] sm:$0xff] %v232_v16  ;;  %v302_v51 = vld [vmem:[%s9044_s6 + $0x318] sm:$0xff]  ;;  %v304_v52 = vld [vmem:[%s9044_s6 + $0x340] sm:$0xff]  ;;  %v306_v53 = vld [vmem:[%s9044_s6 + $0x348] sm:$0xff] }
  0x21   : > { %235 = vst [vmem:[%s9049_s7 + $0x88] sm:$0xff] %v234_v17  ;;  %v308_v54 = vld [vmem:[%s9044_s6 + $0x350] sm:$0xff]  ;;  %v310_v55 = vld [vmem:[%s9044_s6 + $0x358] sm:$0xff]  ;;  %v312_v56 = vld [vmem:[%s9044_s6 + $0x380] sm:$0xff] }
  0x22   : > { %237 = vst [vmem:[%s9049_s7 + $0x90] sm:$0xff] %v236_v18  ;;  %v314_v57 = vld [vmem:[%s9044_s6 + $0x388] sm:$0xff]  ;;  %v316_v58 = vld [vmem:[%s9044_s6 + $0x390] sm:$0xff]  ;;  %v318_v59 = vld [vmem:[%s9044_s6 + $0x398] sm:$0xff] }
  0x23   : > { %239 = vst [vmem:[%s9049_s7 + $0x98] sm:$0xff] %v238_v19  ;;  %v320_v60 = vld [vmem:[%s9044_s6 + $0x3c0] sm:$0xff]  ;;  %v322_v61 = vld [vmem:[%s9044_s6 + $0x3c8] sm:$0xff]  ;;  %v324_v62 = vld [vmem:[%s9044_s6 + $0x3d0] sm:$0xff] }
  0x24   : > { %241 = vst [vmem:[%s9049_s7 + $0xa0] sm:$0xff] %v240_v20  ;;  %v326_v63 = vld [vmem:[%s9044_s6 + $0x3d8] sm:$0xff]  ;;  %v328_v0 = vld [vmem:[%s9044_s6 + $0x400] sm:$0xff]  ;;  %v330_v1 = vld [vmem:[%s9044_s6 + $0x408] sm:$0xff] }
  0x25   : > { %243 = vst [vmem:[%s9049_s7 + $0xa8] sm:$0xff] %v242_v21  ;;  %v332_v2 = vld [vmem:[%s9044_s6 + $0x410] sm:$0xff]  ;;  %v334_v3 = vld [vmem:[%s9044_s6 + $0x418] sm:$0xff]  ;;  %v336_v4 = vld [vmem:[%s9044_s6 + $0x440] sm:$0xff] }
  0x26   : > { %245 = vst [vmem:[%s9049_s7 + $0xb0] sm:$0xff] %v244_v22  ;;  %v338_v5 = vld [vmem:[%s9044_s6 + $0x448] sm:$0xff]  ;;  %v340_v6 = vld [vmem:[%s9044_s6 + $0x450] sm:$0xff]  ;;  %v342_v7 = vld [vmem:[%s9044_s6 + $0x458] sm:$0xff] }
  0x27   : > { %247 = vst [vmem:[%s9049_s7 + $0xb8] sm:$0xff] %v246_v23  ;;  %v344_v8 = vld [vmem:[%s9044_s6 + $0x480] sm:$0xff]  ;;  %v346_v9 = vld [vmem:[%s9044_s6 + $0x488] sm:$0xff]  ;;  %v348_v10 = vld [vmem:[%s9044_s6 + $0x490] sm:$0xff] }
  0x28   : > { %249 = vst [vmem:[%s9049_s7 + $0xc0] sm:$0xff] %v248_v24  ;;  %v350_v11 = vld [vmem:[%s9044_s6 + $0x498] sm:$0xff]  ;;  %v352_v12 = vld [vmem:[%s9044_s6 + $0x4c0] sm:$0xff]  ;;  %v354_v13 = vld [vmem:[%s9044_s6 + $0x4c8] sm:$0xff] }
  0x29   : > { %251 = vst [vmem:[%s9049_s7 + $0xc8] sm:$0xff] %v250_v25  ;;  %v356_v14 = vld [vmem:[%s9044_s6 + $0x4d0] sm:$0xff]  ;;  %v358_v15 = vld [vmem:[%s9044_s6 + $0x4d8] sm:$0xff]  ;;  %v360_v16 = vld [vmem:[%s9044_s6 + $0x500] sm:$0xff] }
  0x2a   : > { %253 = vst [vmem:[%s9049_s7 + $0xd0] sm:$0xff] %v252_v26  ;;  %v362_v17 = vld [vmem:[%s9044_s6 + $0x508] sm:$0xff]  ;;  %v364_v18 = vld [vmem:[%s9044_s6 + $0x510] sm:$0xff]  ;;  %v366_v19 = vld [vmem:[%s9044_s6 + $0x518] sm:$0xff] }
  0x2b   : > { %255 = vst [vmem:[%s9049_s7 + $0xd8] sm:$0xff] %v254_v27  ;;  %v368_v20 = vld [vmem:[%s9044_s6 + $0x540] sm:$0xff]  ;;  %v370_v21 = vld [vmem:[%s9044_s6 + $0x548] sm:$0xff]  ;;  %v372_v22 = vld [vmem:[%s9044_s6 + $0x550] sm:$0xff] }
  0x2c   : > { %257 = vst [vmem:[%s9049_s7 + $0xe0] sm:$0xff] %v256_v28  ;;  %v374_v23 = vld [vmem:[%s9044_s6 + $0x558] sm:$0xff]  ;;  %v376_v24 = vld [vmem:[%s9044_s6 + $0x580] sm:$0xff]  ;;  %v378_v25 = vld [vmem:[%s9044_s6 + $0x588] sm:$0xff] }
  0x2d   : > { %259 = vst [vmem:[%s9049_s7 + $0xe8] sm:$0xff] %v258_v29  ;;  %v380_v26 = vld [vmem:[%s9044_s6 + $0x590] sm:$0xff]  ;;  %v382_v27 = vld [vmem:[%s9044_s6 + $0x598] sm:$0xff]  ;;  %v384_v28 = vld [vmem:[%s9044_s6 + $0x5c0] sm:$0xff] }
  0x2e   : > { %261 = vst [vmem:[%s9049_s7 + $0xf0] sm:$0xff] %v260_v30  ;;  %v386_v29 = vld [vmem:[%s9044_s6 + $0x5c8] sm:$0xff]  ;;  %v388_v30 = vld [vmem:[%s9044_s6 + $0x5d0] sm:$0xff] }
  0x2f   : > { %263 = vst [vmem:[%s9049_s7 + $0xf8] sm:$0xff] %v262_v31  ;;  %v390_v31 = vld [vmem:[%s9044_s6 + $0x5d8] sm:$0xff] }
  0x30   : > { %265 = vst [vmem:[%s9049_s7 + $0x100] sm:$0xff] %v264_v32  ;;  %v392_v32 = vld [vmem:[%s9044_s6 + $0x600] sm:$0xff] }
  0x31   : > { %267 = vst [vmem:[%s9049_s7 + $0x108] sm:$0xff] %v266_v33  ;;  %v394_v33 = vld [vmem:[%s9044_s6 + $0x608] sm:$0xff] }
  0x32   : > { %269 = vst [vmem:[%s9049_s7 + $0x110] sm:$0xff] %v268_v34  ;;  %v396_v34 = vld [vmem:[%s9044_s6 + $0x610] sm:$0xff] }
  0x33   : > { %271 = vst [vmem:[%s9049_s7 + $0x118] sm:$0xff] %v270_v35  ;;  %v398_v35 = vld [vmem:[%s9044_s6 + $0x618] sm:$0xff] }
  0x34   : > { %273 = vst [vmem:[%s9049_s7 + $0x120] sm:$0xff] %v272_v36  ;;  %v400_v36 = vld [vmem:[%s9044_s6 + $0x640] sm:$0xff] }
  0x35   : > { %275 = vst [vmem:[%s9049_s7 + $0x128] sm:$0xff] %v274_v37  ;;  %v402_v37 = vld [vmem:[%s9044_s6 + $0x648] sm:$0xff] }
  0x36   : > { %277 = vst [vmem:[%s9049_s7 + $0x130] sm:$0xff] %v276_v38  ;;  %v404_v38 = vld [vmem:[%s9044_s6 + $0x650] sm:$0xff] }
  0x37   : > { %279 = vst [vmem:[%s9049_s7 + $0x138] sm:$0xff] %v278_v39  ;;  %v406_v39 = vld [vmem:[%s9044_s6 + $0x658] sm:$0xff] }
  0x38   : > { %281 = vst [vmem:[%s9049_s7 + $0x140] sm:$0xff] %v280_v40  ;;  %v408_v40 = vld [vmem:[%s9044_s6 + $0x680] sm:$0xff] }
  0x39   : > { %283 = vst [vmem:[%s9049_s7 + $0x148] sm:$0xff] %v282_v41  ;;  %v410_v41 = vld [vmem:[%s9044_s6 + $0x688] sm:$0xff] }
  0x3a   : > { %285 = vst [vmem:[%s9049_s7 + $0x150] sm:$0xff] %v284_v42  ;;  %v412_v42 = vld [vmem:[%s9044_s6 + $0x690] sm:$0xff] }
  0x3b   : > { %287 = vst [vmem:[%s9049_s7 + $0x158] sm:$0xff] %v286_v43  ;;  %v414_v43 = vld [vmem:[%s9044_s6 + $0x698] sm:$0xff] }
  0x3c   : > { %289 = vst [vmem:[%s9049_s7 + $0x160] sm:$0xff] %v288_v44  ;;  %v416_v44 = vld [vmem:[%s9044_s6 + $0x6c0] sm:$0xff] }
  0x3d   : > { %291 = vst [vmem:[%s9049_s7 + $0x168] sm:$0xff] %v290_v45  ;;  %v418_v45 = vld [vmem:[%s9044_s6 + $0x6c8] sm:$0xff] }
  0x3e   : > { %293 = vst [vmem:[%s9049_s7 + $0x170] sm:$0xff] %v292_v46  ;;  %v420_v46 = vld [vmem:[%s9044_s6 + $0x6d0] sm:$0xff] }
  0x3f   : > { %295 = vst [vmem:[%s9049_s7 + $0x178] sm:$0xff] %v294_v47  ;;  %v422_v47 = vld [vmem:[%s9044_s6 + $0x6d8] sm:$0xff] }
  0x40   : > { %297 = vst [vmem:[%s9049_s7 + $0x180] sm:$0xff] %v296_v48  ;;  %v424_v48 = vld [vmem:[%s9044_s6 + $0x700] sm:$0xff] }
  0x41   : > { %299 = vst [vmem:[%s9049_s7 + $0x188] sm:$0xff] %v298_v49  ;;  %v426_v49 = vld [vmem:[%s9044_s6 + $0x708] sm:$0xff] }
  0x42   : > { %301 = vst [vmem:[%s9049_s7 + $0x190] sm:$0xff] %v300_v50  ;;  %v428_v50 = vld [vmem:[%s9044_s6 + $0x710] sm:$0xff] }
  0x43   : > { %303 = vst [vmem:[%s9049_s7 + $0x198] sm:$0xff] %v302_v51  ;;  %v430_v51 = vld [vmem:[%s9044_s6 + $0x718] sm:$0xff] }
  0x44   : > { %305 = vst [vmem:[%s9049_s7 + $0x1a0] sm:$0xff] %v304_v52  ;;  %v432_v52 = vld [vmem:[%s9044_s6 + $0x740] sm:$0xff] }
  0x45   : > { %307 = vst [vmem:[%s9049_s7 + $0x1a8] sm:$0xff] %v306_v53  ;;  %v434_v53 = vld [vmem:[%s9044_s6 + $0x748] sm:$0xff] }
  0x46   : > { %309 = vst [vmem:[%s9049_s7 + $0x1b0] sm:$0xff] %v308_v54  ;;  %v436_v54 = vld [vmem:[%s9044_s6 + $0x750] sm:$0xff] }
  0x47   : > { %311 = vst [vmem:[%s9049_s7 + $0x1b8] sm:$0xff] %v310_v55  ;;  %v438_v55 = vld [vmem:[%s9044_s6 + $0x758] sm:$0xff] }
  0x48   : > { %313 = vst [vmem:[%s9049_s7 + $0x1c0] sm:$0xff] %v312_v56  ;;  %v440_v56 = vld [vmem:[%s9044_s6 + $0x780] sm:$0xff] }
  0x49   : > { %315 = vst [vmem:[%s9049_s7 + $0x1c8] sm:$0xff] %v314_v57  ;;  %v442_v57 = vld [vmem:[%s9044_s6 + $0x788] sm:$0xff] }
  0x4a   : > { %317 = vst [vmem:[%s9049_s7 + $0x1d0] sm:$0xff] %v316_v58  ;;  %v444_v58 = vld [vmem:[%s9044_s6 + $0x790] sm:$0xff] }
  0x4b   : > { %319 = vst [vmem:[%s9049_s7 + $0x1d8] sm:$0xff] %v318_v59  ;;  %v446_v59 = vld [vmem:[%s9044_s6 + $0x798] sm:$0xff] }
  0x4c   : > { %321 = vst [vmem:[%s9049_s7 + $0x1e0] sm:$0xff] %v320_v60  ;;  %v448_v60 = vld [vmem:[%s9044_s6 + $0x7c0] sm:$0xff] }
  0x4d   : > { %323 = vst [vmem:[%s9049_s7 + $0x1e8] sm:$0xff] %v322_v61  ;;  %v450_v61 = vld [vmem:[%s9044_s6 + $0x7c8] sm:$0xff] }
  0x4e   : > { %325 = vst [vmem:[%s9049_s7 + $0x1f0] sm:$0xff] %v324_v62  ;;  %v452_v62 = vld [vmem:[%s9044_s6 + $0x7d0] sm:$0xff] }
  0x4f   : > { %327 = vst [vmem:[%s9049_s7 + $0x1f8] sm:$0xff] %v326_v63  ;;  %v454_v63 = vld [vmem:[%s9044_s6 + $0x7d8] sm:$0xff] }
  0x50   : > { %329 = vst [vmem:[%s9049_s7 + $0x200] sm:$0xff] %v328_v0  ;;  %v456_v0 = vld [vmem:[%s9044_s6 + $0x800] sm:$0xff] }
  0x51   : > { %331 = vst [vmem:[%s9049_s7 + $0x208] sm:$0xff] %v330_v1  ;;  %v458_v1 = vld [vmem:[%s9044_s6 + $0x808] sm:$0xff] }
  0x52   : > { %333 = vst [vmem:[%s9049_s7 + $0x210] sm:$0xff] %v332_v2  ;;  %v460_v2 = vld [vmem:[%s9044_s6 + $0x810] sm:$0xff] }
  0x53   : > { %335 = vst [vmem:[%s9049_s7 + $0x218] sm:$0xff] %v334_v3  ;;  %v462_v3 = vld [vmem:[%s9044_s6 + $0x818] sm:$0xff] }
  0x54   : > { %337 = vst [vmem:[%s9049_s7 + $0x220] sm:$0xff] %v336_v4  ;;  %v464_v4 = vld [vmem:[%s9044_s6 + $0x840] sm:$0xff] }
  0x55   : > { %339 = vst [vmem:[%s9049_s7 + $0x228] sm:$0xff] %v338_v5  ;;  %v466_v5 = vld [vmem:[%s9044_s6 + $0x848] sm:$0xff] }
  0x56   : > { %341 = vst [vmem:[%s9049_s7 + $0x230] sm:$0xff] %v340_v6  ;;  %v468_v6 = vld [vmem:[%s9044_s6 + $0x850] sm:$0xff] }
  0x57   : > { %343 = vst [vmem:[%s9049_s7 + $0x238] sm:$0xff] %v342_v7  ;;  %v470_v7 = vld [vmem:[%s9044_s6 + $0x858] sm:$0xff] }
  0x58   : > { %345 = vst [vmem:[%s9049_s7 + $0x240] sm:$0xff] %v344_v8  ;;  %v472_v8 = vld [vmem:[%s9044_s6 + $0x880] sm:$0xff] }
  0x59   : > { %347 = vst [vmem:[%s9049_s7 + $0x248] sm:$0xff] %v346_v9  ;;  %v474_v9 = vld [vmem:[%s9044_s6 + $0x888] sm:$0xff] }
  0x5a   : > { %349 = vst [vmem:[%s9049_s7 + $0x250] sm:$0xff] %v348_v10  ;;  %v476_v10 = vld [vmem:[%s9044_s6 + $0x890] sm:$0xff] }
  0x5b   : > { %351 = vst [vmem:[%s9049_s7 + $0x258] sm:$0xff] %v350_v11  ;;  %v478_v11 = vld [vmem:[%s9044_s6 + $0x898] sm:$0xff] }
  0x5c   : > { %353 = vst [vmem:[%s9049_s7 + $0x260] sm:$0xff] %v352_v12  ;;  %v480_v12 = vld [vmem:[%s9044_s6 + $0x8c0] sm:$0xff] }
  0x5d   : > { %355 = vst [vmem:[%s9049_s7 + $0x268] sm:$0xff] %v354_v13  ;;  %v482_v13 = vld [vmem:[%s9044_s6 + $0x8c8] sm:$0xff] }
  0x5e   : > { %357 = vst [vmem:[%s9049_s7 + $0x270] sm:$0xff] %v356_v14  ;;  %v484_v14 = vld [vmem:[%s9044_s6 + $0x8d0] sm:$0xff] }
  0x5f   : > { %359 = vst [vmem:[%s9049_s7 + $0x278] sm:$0xff] %v358_v15  ;;  %v486_v15 = vld [vmem:[%s9044_s6 + $0x8d8] sm:$0xff] }
  0x60   : > { %361 = vst [vmem:[%s9049_s7 + $0x280] sm:$0xff] %v360_v16  ;;  %v488_v16 = vld [vmem:[%s9044_s6 + $0x900] sm:$0xff] }
  0x61   : > { %363 = vst [vmem:[%s9049_s7 + $0x288] sm:$0xff] %v362_v17  ;;  %v490_v17 = vld [vmem:[%s9044_s6 + $0x908] sm:$0xff] }
  0x62   : > { %365 = vst [vmem:[%s9049_s7 + $0x290] sm:$0xff] %v364_v18  ;;  %v492_v18 = vld [vmem:[%s9044_s6 + $0x910] sm:$0xff] }
  0x63   : > { %367 = vst [vmem:[%s9049_s7 + $0x298] sm:$0xff] %v366_v19  ;;  %v494_v19 = vld [vmem:[%s9044_s6 + $0x918] sm:$0xff] }
  0x64   : > { %369 = vst [vmem:[%s9049_s7 + $0x2a0] sm:$0xff] %v368_v20  ;;  %v496_v20 = vld [vmem:[%s9044_s6 + $0x940] sm:$0xff] }
  0x65   : > { %371 = vst [vmem:[%s9049_s7 + $0x2a8] sm:$0xff] %v370_v21  ;;  %v498_v21 = vld [vmem:[%s9044_s6 + $0x948] sm:$0xff] }
  0x66   : > { %373 = vst [vmem:[%s9049_s7 + $0x2b0] sm:$0xff] %v372_v22  ;;  %v500_v22 = vld [vmem:[%s9044_s6 + $0x950] sm:$0xff] }
  0x67   : > { %375 = vst [vmem:[%s9049_s7 + $0x2b8] sm:$0xff] %v374_v23  ;;  %v502_v23 = vld [vmem:[%s9044_s6 + $0x958] sm:$0xff] }
  0x68   : > { %377 = vst [vmem:[%s9049_s7 + $0x2c0] sm:$0xff] %v376_v24  ;;  %v504_v24 = vld [vmem:[%s9044_s6 + $0x980] sm:$0xff] }
  0x69   : > { %379 = vst [vmem:[%s9049_s7 + $0x2c8] sm:$0xff] %v378_v25  ;;  %v506_v25 = vld [vmem:[%s9044_s6 + $0x988] sm:$0xff] }
  0x6a   : > { %381 = vst [vmem:[%s9049_s7 + $0x2d0] sm:$0xff] %v380_v26  ;;  %v508_v26 = vld [vmem:[%s9044_s6 + $0x990] sm:$0xff] }
  0x6b   : > { %383 = vst [vmem:[%s9049_s7 + $0x2d8] sm:$0xff] %v382_v27  ;;  %v510_v27 = vld [vmem:[%s9044_s6 + $0x998] sm:$0xff] }
  0x6c   : > { %385 = vst [vmem:[%s9049_s7 + $0x2e0] sm:$0xff] %v384_v28  ;;  %v512_v28 = vld [vmem:[%s9044_s6 + $0x9c0] sm:$0xff] }
  0x6d   : > { %387 = vst [vmem:[%s9049_s7 + $0x2e8] sm:$0xff] %v386_v29  ;;  %v514_v29 = vld [vmem:[%s9044_s6 + $0x9c8] sm:$0xff] }
  0x6e   : > { %389 = vst [vmem:[%s9049_s7 + $0x2f0] sm:$0xff] %v388_v30  ;;  %v516_v30 = vld [vmem:[%s9044_s6 + $0x9d0] sm:$0xff] }
  0x6f   : > { %391 = vst [vmem:[%s9049_s7 + $0x2f8] sm:$0xff] %v390_v31  ;;  %v518_v31 = vld [vmem:[%s9044_s6 + $0x9d8] sm:$0xff] }
  0x70   : > { %393 = vst [vmem:[%s9049_s7 + $0x300] sm:$0xff] %v392_v32  ;;  %v520_v32 = vld [vmem:[%s9044_s6 + $0xa00] sm:$0xff] }
  0x71   : > { %395 = vst [vmem:[%s9049_s7 + $0x308] sm:$0xff] %v394_v33  ;;  %v522_v33 = vld [vmem:[%s9044_s6 + $0xa08] sm:$0xff] }
  0x72   : > { %397 = vst [vmem:[%s9049_s7 + $0x310] sm:$0xff] %v396_v34  ;;  %v524_v34 = vld [vmem:[%s9044_s6 + $0xa10] sm:$0xff] }
  0x73   : > { %399 = vst [vmem:[%s9049_s7 + $0x318] sm:$0xff] %v398_v35  ;;  %v526_v35 = vld [vmem:[%s9044_s6 + $0xa18] sm:$0xff] }
  0x74   : > { %401 = vst [vmem:[%s9049_s7 + $0x320] sm:$0xff] %v400_v36  ;;  %v528_v36 = vld [vmem:[%s9044_s6 + $0xa40] sm:$0xff] }
  0x75   : > { %403 = vst [vmem:[%s9049_s7 + $0x328] sm:$0xff] %v402_v37  ;;  %v530_v37 = vld [vmem:[%s9044_s6 + $0xa48] sm:$0xff] }
  0x76   : > { %405 = vst [vmem:[%s9049_s7 + $0x330] sm:$0xff] %v404_v38  ;;  %v532_v38 = vld [vmem:[%s9044_s6 + $0xa50] sm:$0xff] }
  0x77   : > { %407 = vst [vmem:[%s9049_s7 + $0x338] sm:$0xff] %v406_v39  ;;  %v534_v39 = vld [vmem:[%s9044_s6 + $0xa58] sm:$0xff] }
  0x78   : > { %409 = vst [vmem:[%s9049_s7 + $0x340] sm:$0xff] %v408_v40  ;;  %v536_v40 = vld [vmem:[%s9044_s6 + $0xa80] sm:$0xff] }
  0x79   : > { %411 = vst [vmem:[%s9049_s7 + $0x348] sm:$0xff] %v410_v41  ;;  %v538_v41 = vld [vmem:[%s9044_s6 + $0xa88] sm:$0xff] }
  0x7a   : > { %413 = vst [vmem:[%s9049_s7 + $0x350] sm:$0xff] %v412_v42  ;;  %v540_v42 = vld [vmem:[%s9044_s6 + $0xa90] sm:$0xff] }
  0x7b   : > { %415 = vst [vmem:[%s9049_s7 + $0x358] sm:$0xff] %v414_v43  ;;  %v542_v43 = vld [vmem:[%s9044_s6 + $0xa98] sm:$0xff] }
  0x7c   : > { %417 = vst [vmem:[%s9049_s7 + $0x360] sm:$0xff] %v416_v44  ;;  %v544_v44 = vld [vmem:[%s9044_s6 + $0xac0] sm:$0xff] }
  0x7d   : > { %419 = vst [vmem:[%s9049_s7 + $0x368] sm:$0xff] %v418_v45  ;;  %v546_v45 = vld [vmem:[%s9044_s6 + $0xac8] sm:$0xff] }
  0x7e   : > { %421 = vst [vmem:[%s9049_s7 + $0x370] sm:$0xff] %v420_v46  ;;  %v548_v46 = vld [vmem:[%s9044_s6 + $0xad0] sm:$0xff] }
  0x7f   : > { %423 = vst [vmem:[%s9049_s7 + $0x378] sm:$0xff] %v422_v47  ;;  %v550_v47 = vld [vmem:[%s9044_s6 + $0xad8] sm:$0xff] }
  0x80   : > { %425 = vst [vmem:[%s9049_s7 + $0x380] sm:$0xff] %v424_v48  ;;  %v552_v48 = vld [vmem:[%s9044_s6 + $0xb00] sm:$0xff] }
  0x81   : > { %427 = vst [vmem:[%s9049_s7 + $0x388] sm:$0xff] %v426_v49  ;;  %v554_v49 = vld [vmem:[%s9044_s6 + $0xb08] sm:$0xff] }
  0x82   : > { %429 = vst [vmem:[%s9049_s7 + $0x390] sm:$0xff] %v428_v50  ;;  %v556_v50 = vld [vmem:[%s9044_s6 + $0xb10] sm:$0xff] }
  0x83   : > { %431 = vst [vmem:[%s9049_s7 + $0x398] sm:$0xff] %v430_v51  ;;  %v558_v51 = vld [vmem:[%s9044_s6 + $0xb18] sm:$0xff] }
  0x84   : > { %433 = vst [vmem:[%s9049_s7 + $0x3a0] sm:$0xff] %v432_v52  ;;  %v560_v52 = vld [vmem:[%s9044_s6 + $0xb40] sm:$0xff] }
  0x85   : > { %435 = vst [vmem:[%s9049_s7 + $0x3a8] sm:$0xff] %v434_v53  ;;  %v562_v53 = vld [vmem:[%s9044_s6 + $0xb48] sm:$0xff] }
  0x86   : > { %437 = vst [vmem:[%s9049_s7 + $0x3b0] sm:$0xff] %v436_v54  ;;  %v564_v54 = vld [vmem:[%s9044_s6 + $0xb50] sm:$0xff] }
  0x87   : > { %439 = vst [vmem:[%s9049_s7 + $0x3b8] sm:$0xff] %v438_v55  ;;  %v566_v55 = vld [vmem:[%s9044_s6 + $0xb58] sm:$0xff] }
  0x88   : > { %441 = vst [vmem:[%s9049_s7 + $0x3c0] sm:$0xff] %v440_v56  ;;  %v568_v56 = vld [vmem:[%s9044_s6 + $0xb80] sm:$0xff] }
  0x89   : > { %443 = vst [vmem:[%s9049_s7 + $0x3c8] sm:$0xff] %v442_v57  ;;  %v570_v57 = vld [vmem:[%s9044_s6 + $0xb88] sm:$0xff] }
  0x8a   : > { %445 = vst [vmem:[%s9049_s7 + $0x3d0] sm:$0xff] %v444_v58  ;;  %v572_v58 = vld [vmem:[%s9044_s6 + $0xb90] sm:$0xff] }
  0x8b   : > { %447 = vst [vmem:[%s9049_s7 + $0x3d8] sm:$0xff] %v446_v59  ;;  %v574_v59 = vld [vmem:[%s9044_s6 + $0xb98] sm:$0xff] }
  0x8c   : > { %449 = vst [vmem:[%s9049_s7 + $0x3e0] sm:$0xff] %v448_v60  ;;  %v576_v60 = vld [vmem:[%s9044_s6 + $0xbc0] sm:$0xff] }
  0x8d   : > { %451 = vst [vmem:[%s9049_s7 + $0x3e8] sm:$0xff] %v450_v61  ;;  %v578_v61 = vld [vmem:[%s9044_s6 + $0xbc8] sm:$0xff] }
  0x8e   : > { %453 = vst [vmem:[%s9049_s7 + $0x3f0] sm:$0xff] %v452_v62  ;;  %v580_v62 = vld [vmem:[%s9044_s6 + $0xbd0] sm:$0xff] }
  0x8f   : > { %455 = vst [vmem:[%s9049_s7 + $0x3f8] sm:$0xff] %v454_v63  ;;  %v582_v63 = vld [vmem:[%s9044_s6 + $0xbd8] sm:$0xff] }
  0x90   : > { %457 = vst [vmem:[%s9049_s7 + $0x400] sm:$0xff] %v456_v0  ;;  %v584_v0 = vld [vmem:[%s9044_s6 + $0xc00] sm:$0xff] }
  0x91   : > { %459 = vst [vmem:[%s9049_s7 + $0x408] sm:$0xff] %v458_v1  ;;  %v586_v1 = vld [vmem:[%s9044_s6 + $0xc08] sm:$0xff] }
  0x92   : > { %461 = vst [vmem:[%s9049_s7 + $0x410] sm:$0xff] %v460_v2  ;;  %v588_v2 = vld [vmem:[%s9044_s6 + $0xc10] sm:$0xff] }
  0x93   : > { %463 = vst [vmem:[%s9049_s7 + $0x418] sm:$0xff] %v462_v3  ;;  %v590_v3 = vld [vmem:[%s9044_s6 + $0xc18] sm:$0xff] }
  0x94   : > { %465 = vst [vmem:[%s9049_s7 + $0x420] sm:$0xff] %v464_v4  ;;  %v592_v4 = vld [vmem:[%s9044_s6 + $0xc40] sm:$0xff] }
  0x95   : > { %467 = vst [vmem:[%s9049_s7 + $0x428] sm:$0xff] %v466_v5  ;;  %v594_v5 = vld [vmem:[%s9044_s6 + $0xc48] sm:$0xff] }
  0x96   : > { %469 = vst [vmem:[%s9049_s7 + $0x430] sm:$0xff] %v468_v6  ;;  %v596_v6 = vld [vmem:[%s9044_s6 + $0xc50] sm:$0xff] }
  0x97   : > { %471 = vst [vmem:[%s9049_s7 + $0x438] sm:$0xff] %v470_v7  ;;  %v598_v7 = vld [vmem:[%s9044_s6 + $0xc58] sm:$0xff] }
  0x98   : > { %473 = vst [vmem:[%s9049_s7 + $0x440] sm:$0xff] %v472_v8  ;;  %v600_v8 = vld [vmem:[%s9044_s6 + $0xc80] sm:$0xff] }
  0x99   : > { %475 = vst [vmem:[%s9049_s7 + $0x448] sm:$0xff] %v474_v9  ;;  %v602_v9 = vld [vmem:[%s9044_s6 + $0xc88] sm:$0xff] }
  0x9a   : > { %477 = vst [vmem:[%s9049_s7 + $0x450] sm:$0xff] %v476_v10  ;;  %v604_v10 = vld [vmem:[%s9044_s6 + $0xc90] sm:$0xff] }
  0x9b   : > { %479 = vst [vmem:[%s9049_s7 + $0x458] sm:$0xff] %v478_v11  ;;  %v606_v11 = vld [vmem:[%s9044_s6 + $0xc98] sm:$0xff] }
  0x9c   : > { %481 = vst [vmem:[%s9049_s7 + $0x460] sm:$0xff] %v480_v12  ;;  %v608_v12 = vld [vmem:[%s9044_s6 + $0xcc0] sm:$0xff] }
  0x9d   : > { %483 = vst [vmem:[%s9049_s7 + $0x468] sm:$0xff] %v482_v13  ;;  %v610_v13 = vld [vmem:[%s9044_s6 + $0xcc8] sm:$0xff] }
  0x9e   : > { %485 = vst [vmem:[%s9049_s7 + $0x470] sm:$0xff] %v484_v14  ;;  %v612_v14 = vld [vmem:[%s9044_s6 + $0xcd0] sm:$0xff] }
  0x9f   : > { %487 = vst [vmem:[%s9049_s7 + $0x478] sm:$0xff] %v486_v15  ;;  %v614_v15 = vld [vmem:[%s9044_s6 + $0xcd8] sm:$0xff] }
  0xa0   : > { %489 = vst [vmem:[%s9049_s7 + $0x480] sm:$0xff] %v488_v16  ;;  %v616_v16 = vld [vmem:[%s9044_s6 + $0xd00] sm:$0xff] }
  0xa1   : > { %491 = vst [vmem:[%s9049_s7 + $0x488] sm:$0xff] %v490_v17  ;;  %v618_v17 = vld [vmem:[%s9044_s6 + $0xd08] sm:$0xff] }
  0xa2   : > { %493 = vst [vmem:[%s9049_s7 + $0x490] sm:$0xff] %v492_v18  ;;  %v620_v18 = vld [vmem:[%s9044_s6 + $0xd10] sm:$0xff] }
  0xa3   : > { %495 = vst [vmem:[%s9049_s7 + $0x498] sm:$0xff] %v494_v19  ;;  %v622_v19 = vld [vmem:[%s9044_s6 + $0xd18] sm:$0xff] }
  0xa4   : > { %497 = vst [vmem:[%s9049_s7 + $0x4a0] sm:$0xff] %v496_v20  ;;  %v624_v20 = vld [vmem:[%s9044_s6 + $0xd40] sm:$0xff] }
  0xa5   : > { %499 = vst [vmem:[%s9049_s7 + $0x4a8] sm:$0xff] %v498_v21  ;;  %v626_v21 = vld [vmem:[%s9044_s6 + $0xd48] sm:$0xff] }
  0xa6   : > { %501 = vst [vmem:[%s9049_s7 + $0x4b0] sm:$0xff] %v500_v22  ;;  %v628_v22 = vld [vmem:[%s9044_s6 + $0xd50] sm:$0xff] }
  0xa7   : > { %503 = vst [vmem:[%s9049_s7 + $0x4b8] sm:$0xff] %v502_v23  ;;  %v630_v23 = vld [vmem:[%s9044_s6 + $0xd58] sm:$0xff] }
  0xa8   : > { %505 = vst [vmem:[%s9049_s7 + $0x4c0] sm:$0xff] %v504_v24  ;;  %v632_v24 = vld [vmem:[%s9044_s6 + $0xd80] sm:$0xff] }
  0xa9   : > { %507 = vst [vmem:[%s9049_s7 + $0x4c8] sm:$0xff] %v506_v25  ;;  %v634_v25 = vld [vmem:[%s9044_s6 + $0xd88] sm:$0xff] }
  0xaa   : > { %509 = vst [vmem:[%s9049_s7 + $0x4d0] sm:$0xff] %v508_v26  ;;  %v636_v26 = vld [vmem:[%s9044_s6 + $0xd90] sm:$0xff] }
  0xab   : > { %511 = vst [vmem:[%s9049_s7 + $0x4d8] sm:$0xff] %v510_v27  ;;  %v638_v27 = vld [vmem:[%s9044_s6 + $0xd98] sm:$0xff] }
  0xac   : > { %513 = vst [vmem:[%s9049_s7 + $0x4e0] sm:$0xff] %v512_v28  ;;  %v640_v28 = vld [vmem:[%s9044_s6 + $0xdc0] sm:$0xff] }
  0xad   : > { %515 = vst [vmem:[%s9049_s7 + $0x4e8] sm:$0xff] %v514_v29  ;;  %v642_v29 = vld [vmem:[%s9044_s6 + $0xdc8] sm:$0xff] }
  0xae   : > { %517 = vst [vmem:[%s9049_s7 + $0x4f0] sm:$0xff] %v516_v30  ;;  %v644_v30 = vld [vmem:[%s9044_s6 + $0xdd0] sm:$0xff] }
  0xaf   : > { %519 = vst [vmem:[%s9049_s7 + $0x4f8] sm:$0xff] %v518_v31  ;;  %v646_v31 = vld [vmem:[%s9044_s6 + $0xdd8] sm:$0xff] }
  0xb0   : > { %521 = vst [vmem:[%s9049_s7 + $0x500] sm:$0xff] %v520_v32  ;;  %v648_v32 = vld [vmem:[%s9044_s6 + $0xe00] sm:$0xff] }
  0xb1   : > { %523 = vst [vmem:[%s9049_s7 + $0x508] sm:$0xff] %v522_v33  ;;  %v650_v33 = vld [vmem:[%s9044_s6 + $0xe08] sm:$0xff] }
  0xb2   : > { %525 = vst [vmem:[%s9049_s7 + $0x510] sm:$0xff] %v524_v34  ;;  %v652_v34 = vld [vmem:[%s9044_s6 + $0xe10] sm:$0xff] }
  0xb3   : > { %527 = vst [vmem:[%s9049_s7 + $0x518] sm:$0xff] %v526_v35  ;;  %v654_v35 = vld [vmem:[%s9044_s6 + $0xe18] sm:$0xff] }
  0xb4   : > { %529 = vst [vmem:[%s9049_s7 + $0x520] sm:$0xff] %v528_v36  ;;  %v656_v36 = vld [vmem:[%s9044_s6 + $0xe40] sm:$0xff] }
  0xb5   : > { %531 = vst [vmem:[%s9049_s7 + $0x528] sm:$0xff] %v530_v37  ;;  %v658_v37 = vld [vmem:[%s9044_s6 + $0xe48] sm:$0xff] }
  0xb6   : > { %533 = vst [vmem:[%s9049_s7 + $0x530] sm:$0xff] %v532_v38  ;;  %v660_v38 = vld [vmem:[%s9044_s6 + $0xe50] sm:$0xff] }
  0xb7   : > { %535 = vst [vmem:[%s9049_s7 + $0x538] sm:$0xff] %v534_v39  ;;  %v662_v39 = vld [vmem:[%s9044_s6 + $0xe58] sm:$0xff] }
  0xb8   : > { %537 = vst [vmem:[%s9049_s7 + $0x540] sm:$0xff] %v536_v40  ;;  %v664_v40 = vld [vmem:[%s9044_s6 + $0xe80] sm:$0xff] }
  0xb9   : > { %539 = vst [vmem:[%s9049_s7 + $0x548] sm:$0xff] %v538_v41  ;;  %v666_v41 = vld [vmem:[%s9044_s6 + $0xe88] sm:$0xff] }
  0xba   : > { %541 = vst [vmem:[%s9049_s7 + $0x550] sm:$0xff] %v540_v42  ;;  %v668_v42 = vld [vmem:[%s9044_s6 + $0xe90] sm:$0xff] }
  0xbb   : > { %543 = vst [vmem:[%s9049_s7 + $0x558] sm:$0xff] %v542_v43  ;;  %v670_v43 = vld [vmem:[%s9044_s6 + $0xe98] sm:$0xff] }
  0xbc   : > { %545 = vst [vmem:[%s9049_s7 + $0x560] sm:$0xff] %v544_v44  ;;  %v672_v44 = vld [vmem:[%s9044_s6 + $0xec0] sm:$0xff] }
  0xbd   : > { %547 = vst [vmem:[%s9049_s7 + $0x568] sm:$0xff] %v546_v45  ;;  %v674_v45 = vld [vmem:[%s9044_s6 + $0xec8] sm:$0xff] }
  0xbe   : > { %549 = vst [vmem:[%s9049_s7 + $0x570] sm:$0xff] %v548_v46  ;;  %v676_v46 = vld [vmem:[%s9044_s6 + $0xed0] sm:$0xff] }
  0xbf   : > { %551 = vst [vmem:[%s9049_s7 + $0x578] sm:$0xff] %v550_v47  ;;  %v678_v47 = vld [vmem:[%s9044_s6 + $0xed8] sm:$0xff] }
  0xc0   : > { %553 = vst [vmem:[%s9049_s7 + $0x580] sm:$0xff] %v552_v48  ;;  %v680_v48 = vld [vmem:[%s9044_s6 + $0xf00] sm:$0xff] }
  0xc1   : > { %555 = vst [vmem:[%s9049_s7 + $0x588] sm:$0xff] %v554_v49  ;;  %v682_v49 = vld [vmem:[%s9044_s6 + $0xf08] sm:$0xff] }
  0xc2   : > { %557 = vst [vmem:[%s9049_s7 + $0x590] sm:$0xff] %v556_v50  ;;  %v684_v50 = vld [vmem:[%s9044_s6 + $0xf10] sm:$0xff] }
  0xc3   : > { %559 = vst [vmem:[%s9049_s7 + $0x598] sm:$0xff] %v558_v51  ;;  %v686_v51 = vld [vmem:[%s9044_s6 + $0xf18] sm:$0xff] }
  0xc4   : > { %561 = vst [vmem:[%s9049_s7 + $0x5a0] sm:$0xff] %v560_v52  ;;  %v688_v52 = vld [vmem:[%s9044_s6 + $0xf40] sm:$0xff] }
  0xc5   : > { %563 = vst [vmem:[%s9049_s7 + $0x5a8] sm:$0xff] %v562_v53  ;;  %v690_v53 = vld [vmem:[%s9044_s6 + $0xf48] sm:$0xff] }
  0xc6   : > { %565 = vst [vmem:[%s9049_s7 + $0x5b0] sm:$0xff] %v564_v54  ;;  %v692_v54 = vld [vmem:[%s9044_s6 + $0xf50] sm:$0xff] }
  0xc7   : > { %567 = vst [vmem:[%s9049_s7 + $0x5b8] sm:$0xff] %v566_v55  ;;  %v694_v55 = vld [vmem:[%s9044_s6 + $0xf58] sm:$0xff] }
  0xc8   : > { %569 = vst [vmem:[%s9049_s7 + $0x5c0] sm:$0xff] %v568_v56  ;;  %v696_v56 = vld [vmem:[%s9044_s6 + $0xf80] sm:$0xff] }
  0xc9   : > { %571 = vst [vmem:[%s9049_s7 + $0x5c8] sm:$0xff] %v570_v57  ;;  %v698_v57 = vld [vmem:[%s9044_s6 + $0xf88] sm:$0xff] }
  0xca   : > { %573 = vst [vmem:[%s9049_s7 + $0x5d0] sm:$0xff] %v572_v58  ;;  %v700_v58 = vld [vmem:[%s9044_s6 + $0xf90] sm:$0xff] }
  0xcb   : > { %575 = vst [vmem:[%s9049_s7 + $0x5d8] sm:$0xff] %v574_v59  ;;  %v702_v59 = vld [vmem:[%s9044_s6 + $0xf98] sm:$0xff] }
  0xcc   : > { %577 = vst [vmem:[%s9049_s7 + $0x5e0] sm:$0xff] %v576_v60  ;;  %v704_v60 = vld [vmem:[%s9044_s6 + $0xfc0] sm:$0xff] }
  0xcd   : > { %579 = vst [vmem:[%s9049_s7 + $0x5e8] sm:$0xff] %v578_v61  ;;  %v706_v61 = vld [vmem:[%s9044_s6 + $0xfc8] sm:$0xff] }
  0xce   : > { %581 = vst [vmem:[%s9049_s7 + $0x5f0] sm:$0xff] %v580_v62  ;;  %v708_v62 = vld [vmem:[%s9044_s6 + $0xfd0] sm:$0xff] }
  0xcf   : > { %583 = vst [vmem:[%s9049_s7 + $0x5f8] sm:$0xff] %v582_v63  ;;  %v710_v63 = vld [vmem:[%s9044_s6 + $0xfd8] sm:$0xff] }
  0xd0   : > { %585 = vst [vmem:[%s9049_s7 + $0x600] sm:$0xff] %v584_v0  ;;  %v712_v0 = vld [vmem:[%s9044_s6 + $0x1000] sm:$0xff] }
  0xd1   : > { %587 = vst [vmem:[%s9049_s7 + $0x608] sm:$0xff] %v586_v1  ;;  %v714_v1 = vld [vmem:[%s9044_s6 + $0x1008] sm:$0xff] }
  0xd2   : > { %589 = vst [vmem:[%s9049_s7 + $0x610] sm:$0xff] %v588_v2  ;;  %v716_v2 = vld [vmem:[%s9044_s6 + $0x1010] sm:$0xff] }
  0xd3   : > { %591 = vst [vmem:[%s9049_s7 + $0x618] sm:$0xff] %v590_v3  ;;  %v718_v3 = vld [vmem:[%s9044_s6 + $0x1018] sm:$0xff] }
  0xd4   : > { %593 = vst [vmem:[%s9049_s7 + $0x620] sm:$0xff] %v592_v4  ;;  %v720_v4 = vld [vmem:[%s9044_s6 + $0x1040] sm:$0xff] }
  0xd5   : > { %595 = vst [vmem:[%s9049_s7 + $0x628] sm:$0xff] %v594_v5  ;;  %v722_v5 = vld [vmem:[%s9044_s6 + $0x1048] sm:$0xff] }
  0xd6   : > { %597 = vst [vmem:[%s9049_s7 + $0x630] sm:$0xff] %v596_v6  ;;  %v724_v6 = vld [vmem:[%s9044_s6 + $0x1050] sm:$0xff] }
  0xd7   : > { %599 = vst [vmem:[%s9049_s7 + $0x638] sm:$0xff] %v598_v7  ;;  %v726_v7 = vld [vmem:[%s9044_s6 + $0x1058] sm:$0xff] }
  0xd8   : > { %601 = vst [vmem:[%s9049_s7 + $0x640] sm:$0xff] %v600_v8  ;;  %v728_v8 = vld [vmem:[%s9044_s6 + $0x1080] sm:$0xff] }
  0xd9   : > { %603 = vst [vmem:[%s9049_s7 + $0x648] sm:$0xff] %v602_v9  ;;  %v730_v9 = vld [vmem:[%s9044_s6 + $0x1088] sm:$0xff] }
  0xda   : > { %605 = vst [vmem:[%s9049_s7 + $0x650] sm:$0xff] %v604_v10  ;;  %v732_v10 = vld [vmem:[%s9044_s6 + $0x1090] sm:$0xff] }
  0xdb   : > { %607 = vst [vmem:[%s9049_s7 + $0x658] sm:$0xff] %v606_v11  ;;  %v734_v11 = vld [vmem:[%s9044_s6 + $0x1098] sm:$0xff] }
  0xdc   : > { %609 = vst [vmem:[%s9049_s7 + $0x660] sm:$0xff] %v608_v12  ;;  %v736_v12 = vld [vmem:[%s9044_s6 + $0x10c0] sm:$0xff] }
  0xdd   : > { %611 = vst [vmem:[%s9049_s7 + $0x668] sm:$0xff] %v610_v13  ;;  %v738_v13 = vld [vmem:[%s9044_s6 + $0x10c8] sm:$0xff] }
  0xde   : > { %613 = vst [vmem:[%s9049_s7 + $0x670] sm:$0xff] %v612_v14  ;;  %v740_v14 = vld [vmem:[%s9044_s6 + $0x10d0] sm:$0xff] }
  0xdf   : > { %615 = vst [vmem:[%s9049_s7 + $0x678] sm:$0xff] %v614_v15  ;;  %v742_v15 = vld [vmem:[%s9044_s6 + $0x10d8] sm:$0xff] }
  0xe0   : > { %617 = vst [vmem:[%s9049_s7 + $0x680] sm:$0xff] %v616_v16  ;;  %v744_v16 = vld [vmem:[%s9044_s6 + $0x1100] sm:$0xff] }
  0xe1   : > { %619 = vst [vmem:[%s9049_s7 + $0x688] sm:$0xff] %v618_v17  ;;  %v746_v17 = vld [vmem:[%s9044_s6 + $0x1108] sm:$0xff] }
  0xe2   : > { %621 = vst [vmem:[%s9049_s7 + $0x690] sm:$0xff] %v620_v18  ;;  %v748_v18 = vld [vmem:[%s9044_s6 + $0x1110] sm:$0xff] }
  0xe3   : > { %623 = vst [vmem:[%s9049_s7 + $0x698] sm:$0xff] %v622_v19  ;;  %v750_v19 = vld [vmem:[%s9044_s6 + $0x1118] sm:$0xff] }
  0xe4   : > { %625 = vst [vmem:[%s9049_s7 + $0x6a0] sm:$0xff] %v624_v20  ;;  %v752_v20 = vld [vmem:[%s9044_s6 + $0x1140] sm:$0xff] }
  0xe5   : > { %627 = vst [vmem:[%s9049_s7 + $0x6a8] sm:$0xff] %v626_v21  ;;  %v754_v21 = vld [vmem:[%s9044_s6 + $0x1148] sm:$0xff] }
  0xe6   : > { %629 = vst [vmem:[%s9049_s7 + $0x6b0] sm:$0xff] %v628_v22  ;;  %v756_v22 = vld [vmem:[%s9044_s6 + $0x1150] sm:$0xff] }
  0xe7   : > { %631 = vst [vmem:[%s9049_s7 + $0x6b8] sm:$0xff] %v630_v23  ;;  %v758_v23 = vld [vmem:[%s9044_s6 + $0x1158] sm:$0xff] }
  0xe8   : > { %633 = vst [vmem:[%s9049_s7 + $0x6c0] sm:$0xff] %v632_v24  ;;  %v760_v24 = vld [vmem:[%s9044_s6 + $0x1180] sm:$0xff] }
  0xe9   : > { %635 = vst [vmem:[%s9049_s7 + $0x6c8] sm:$0xff] %v634_v25  ;;  %v762_v25 = vld [vmem:[%s9044_s6 + $0x1188] sm:$0xff] }
  0xea   : > { %637 = vst [vmem:[%s9049_s7 + $0x6d0] sm:$0xff] %v636_v26  ;;  %v764_v26 = vld [vmem:[%s9044_s6 + $0x1190] sm:$0xff] }
  0xeb   : > { %639 = vst [vmem:[%s9049_s7 + $0x6d8] sm:$0xff] %v638_v27  ;;  %v766_v27 = vld [vmem:[%s9044_s6 + $0x1198] sm:$0xff] }
  0xec   : > { %641 = vst [vmem:[%s9049_s7 + $0x6e0] sm:$0xff] %v640_v28  ;;  %v768_v28 = vld [vmem:[%s9044_s6 + $0x11c0] sm:$0xff] }
  0xed   : > { %643 = vst [vmem:[%s9049_s7 + $0x6e8] sm:$0xff] %v642_v29  ;;  %v770_v29 = vld [vmem:[%s9044_s6 + $0x11c8] sm:$0xff] }
  0xee   : > { %645 = vst [vmem:[%s9049_s7 + $0x6f0] sm:$0xff] %v644_v30  ;;  %v772_v30 = vld [vmem:[%s9044_s6 + $0x11d0] sm:$0xff] }
  0xef   : > { %647 = vst [vmem:[%s9049_s7 + $0x6f8] sm:$0xff] %v646_v31  ;;  %v774_v31 = vld [vmem:[%s9044_s6 + $0x11d8] sm:$0xff] }
  0xf0   : > { %649 = vst [vmem:[%s9049_s7 + $0x700] sm:$0xff] %v648_v32  ;;  %v776_v32 = vld [vmem:[%s9044_s6 + $0x1200] sm:$0xff] }
  0xf1   : > { %651 = vst [vmem:[%s9049_s7 + $0x708] sm:$0xff] %v650_v33  ;;  %v778_v33 = vld [vmem:[%s9044_s6 + $0x1208] sm:$0xff] }
  0xf2   : > { %653 = vst [vmem:[%s9049_s7 + $0x710] sm:$0xff] %v652_v34  ;;  %v780_v34 = vld [vmem:[%s9044_s6 + $0x1210] sm:$0xff] }
  0xf3   : > { %655 = vst [vmem:[%s9049_s7 + $0x718] sm:$0xff] %v654_v35  ;;  %v782_v35 = vld [vmem:[%s9044_s6 + $0x1218] sm:$0xff] }
  0xf4   : > { %657 = vst [vmem:[%s9049_s7 + $0x720] sm:$0xff] %v656_v36  ;;  %v784_v36 = vld [vmem:[%s9044_s6 + $0x1240] sm:$0xff] }
  0xf5   : > { %659 = vst [vmem:[%s9049_s7 + $0x728] sm:$0xff] %v658_v37  ;;  %v786_v37 = vld [vmem:[%s9044_s6 + $0x1248] sm:$0xff] }
  0xf6   : > { %661 = vst [vmem:[%s9049_s7 + $0x730] sm:$0xff] %v660_v38  ;;  %v788_v38 = vld [vmem:[%s9044_s6 + $0x1250] sm:$0xff] }
  0xf7   : > { %663 = vst [vmem:[%s9049_s7 + $0x738] sm:$0xff] %v662_v39  ;;  %v790_v39 = vld [vmem:[%s9044_s6 + $0x1258] sm:$0xff] }
  0xf8   : > { %665 = vst [vmem:[%s9049_s7 + $0x740] sm:$0xff] %v664_v40  ;;  %v792_v40 = vld [vmem:[%s9044_s6 + $0x1280] sm:$0xff] }
  0xf9   : > { %667 = vst [vmem:[%s9049_s7 + $0x748] sm:$0xff] %v666_v41  ;;  %v794_v41 = vld [vmem:[%s9044_s6 + $0x1288] sm:$0xff] }
  0xfa   : > { %669 = vst [vmem:[%s9049_s7 + $0x750] sm:$0xff] %v668_v42  ;;  %v796_v42 = vld [vmem:[%s9044_s6 + $0x1290] sm:$0xff] }
  0xfb   : > { %671 = vst [vmem:[%s9049_s7 + $0x758] sm:$0xff] %v670_v43  ;;  %v798_v43 = vld [vmem:[%s9044_s6 + $0x1298] sm:$0xff] }
  0xfc   : > { %673 = vst [vmem:[%s9049_s7 + $0x760] sm:$0xff] %v672_v44  ;;  %v800_v44 = vld [vmem:[%s9044_s6 + $0x12c0] sm:$0xff] }
  0xfd   : > { %675 = vst [vmem:[%s9049_s7 + $0x768] sm:$0xff] %v674_v45  ;;  %v802_v45 = vld [vmem:[%s9044_s6 + $0x12c8] sm:$0xff] }
  0xfe   : > { %677 = vst [vmem:[%s9049_s7 + $0x770] sm:$0xff] %v676_v46  ;;  %v804_v46 = vld [vmem:[%s9044_s6 + $0x12d0] sm:$0xff] }
  0xff   : > { %679 = vst [vmem:[%s9049_s7 + $0x778] sm:$0xff] %v678_v47  ;;  %v806_v47 = vld [vmem:[%s9044_s6 + $0x12d8] sm:$0xff] }
 0x100   : > { %681 = vst [vmem:[%s9049_s7 + $0x780] sm:$0xff] %v680_v48  ;;  %v808_v48 = vld [vmem:[%s9044_s6 + $0x1300] sm:$0xff] }
 0x101   : > { %683 = vst [vmem:[%s9049_s7 + $0x788] sm:$0xff] %v682_v49  ;;  %v810_v49 = vld [vmem:[%s9044_s6 + $0x1308] sm:$0xff] }
 0x102   : > { %685 = vst [vmem:[%s9049_s7 + $0x790] sm:$0xff] %v684_v50  ;;  %v812_v50 = vld [vmem:[%s9044_s6 + $0x1310] sm:$0xff] }
 0x103   : > { %687 = vst [vmem:[%s9049_s7 + $0x798] sm:$0xff] %v686_v51  ;;  %v814_v51 = vld [vmem:[%s9044_s6 + $0x1318] sm:$0xff] }
 0x104   : > { %689 = vst [vmem:[%s9049_s7 + $0x7a0] sm:$0xff] %v688_v52  ;;  %v816_v52 = vld [vmem:[%s9044_s6 + $0x1340] sm:$0xff] }
 0x105   : > { %691 = vst [vmem:[%s9049_s7 + $0x7a8] sm:$0xff] %v690_v53  ;;  %v818_v53 = vld [vmem:[%s9044_s6 + $0x1348] sm:$0xff] }
 0x106   : > { %693 = vst [vmem:[%s9049_s7 + $0x7b0] sm:$0xff] %v692_v54  ;;  %v820_v54 = vld [vmem:[%s9044_s6 + $0x1350] sm:$0xff] }
 0x107   : > { %695 = vst [vmem:[%s9049_s7 + $0x7b8] sm:$0xff] %v694_v55  ;;  %v822_v55 = vld [vmem:[%s9044_s6 + $0x1358] sm:$0xff] }
 0x108   : > { %697 = vst [vmem:[%s9049_s7 + $0x7c0] sm:$0xff] %v696_v56  ;;  %v824_v56 = vld [vmem:[%s9044_s6 + $0x1380] sm:$0xff] }
 0x109   : > { %699 = vst [vmem:[%s9049_s7 + $0x7c8] sm:$0xff] %v698_v57  ;;  %v826_v57 = vld [vmem:[%s9044_s6 + $0x1388] sm:$0xff] }
 0x10a   : > { %701 = vst [vmem:[%s9049_s7 + $0x7d0] sm:$0xff] %v700_v58  ;;  %v828_v58 = vld [vmem:[%s9044_s6 + $0x1390] sm:$0xff] }
 0x10b   : > { %703 = vst [vmem:[%s9049_s7 + $0x7d8] sm:$0xff] %v702_v59  ;;  %v830_v59 = vld [vmem:[%s9044_s6 + $0x1398] sm:$0xff] }
 0x10c   : > { %705 = vst [vmem:[%s9049_s7 + $0x7e0] sm:$0xff] %v704_v60  ;;  %v832_v60 = vld [vmem:[%s9044_s6 + $0x13c0] sm:$0xff] }
 0x10d   : > { %707 = vst [vmem:[%s9049_s7 + $0x7e8] sm:$0xff] %v706_v61  ;;  %v834_v61 = vld [vmem:[%s9044_s6 + $0x13c8] sm:$0xff] }
 0x10e   : > { %709 = vst [vmem:[%s9049_s7 + $0x7f0] sm:$0xff] %v708_v62  ;;  %v836_v62 = vld [vmem:[%s9044_s6 + $0x13d0] sm:$0xff] }
 0x10f   : > { %711 = vst [vmem:[%s9049_s7 + $0x7f8] sm:$0xff] %v710_v63  ;;  %v838_v63 = vld [vmem:[%s9044_s6 + $0x13d8] sm:$0xff] }
 0x110   : > { %713 = vst [vmem:[%s9049_s7 + $0x800] sm:$0xff] %v712_v0  ;;  %v840_v0 = vld [vmem:[%s9044_s6 + $0x1400] sm:$0xff] }
 0x111   : > { %715 = vst [vmem:[%s9049_s7 + $0x808] sm:$0xff] %v714_v1  ;;  %v842_v1 = vld [vmem:[%s9044_s6 + $0x1408] sm:$0xff] }
 0x112   : > { %717 = vst [vmem:[%s9049_s7 + $0x810] sm:$0xff] %v716_v2  ;;  %v844_v2 = vld [vmem:[%s9044_s6 + $0x1410] sm:$0xff] }
 0x113   : > { %719 = vst [vmem:[%s9049_s7 + $0x818] sm:$0xff] %v718_v3  ;;  %v846_v3 = vld [vmem:[%s9044_s6 + $0x1418] sm:$0xff] }
 0x114   : > { %721 = vst [vmem:[%s9049_s7 + $0x820] sm:$0xff] %v720_v4  ;;  %v848_v4 = vld [vmem:[%s9044_s6 + $0x1440] sm:$0xff] }
 0x115   : > { %723 = vst [vmem:[%s9049_s7 + $0x828] sm:$0xff] %v722_v5  ;;  %v850_v5 = vld [vmem:[%s9044_s6 + $0x1448] sm:$0xff] }
 0x116   : > { %725 = vst [vmem:[%s9049_s7 + $0x830] sm:$0xff] %v724_v6  ;;  %v852_v6 = vld [vmem:[%s9044_s6 + $0x1450] sm:$0xff] }
 0x117   : > { %727 = vst [vmem:[%s9049_s7 + $0x838] sm:$0xff] %v726_v7  ;;  %v854_v7 = vld [vmem:[%s9044_s6 + $0x1458] sm:$0xff] }
 0x118   : > { %729 = vst [vmem:[%s9049_s7 + $0x840] sm:$0xff] %v728_v8  ;;  %v856_v8 = vld [vmem:[%s9044_s6 + $0x1480] sm:$0xff] }
 0x119   : > { %731 = vst [vmem:[%s9049_s7 + $0x848] sm:$0xff] %v730_v9  ;;  %v858_v9 = vld [vmem:[%s9044_s6 + $0x1488] sm:$0xff] }
 0x11a   : > { %733 = vst [vmem:[%s9049_s7 + $0x850] sm:$0xff] %v732_v10  ;;  %v860_v10 = vld [vmem:[%s9044_s6 + $0x1490] sm:$0xff] }
 0x11b   : > { %735 = vst [vmem:[%s9049_s7 + $0x858] sm:$0xff] %v734_v11  ;;  %v862_v11 = vld [vmem:[%s9044_s6 + $0x1498] sm:$0xff] }
 0x11c   : > { %737 = vst [vmem:[%s9049_s7 + $0x860] sm:$0xff] %v736_v12  ;;  %v864_v12 = vld [vmem:[%s9044_s6 + $0x14c0] sm:$0xff] }
 0x11d   : > { %739 = vst [vmem:[%s9049_s7 + $0x868] sm:$0xff] %v738_v13  ;;  %v866_v13 = vld [vmem:[%s9044_s6 + $0x14c8] sm:$0xff] }
 0x11e   : > { %741 = vst [vmem:[%s9049_s7 + $0x870] sm:$0xff] %v740_v14  ;;  %v868_v14 = vld [vmem:[%s9044_s6 + $0x14d0] sm:$0xff] }
 0x11f   : > { %743 = vst [vmem:[%s9049_s7 + $0x878] sm:$0xff] %v742_v15  ;;  %v870_v15 = vld [vmem:[%s9044_s6 + $0x14d8] sm:$0xff] }
 0x120   : > { %745 = vst [vmem:[%s9049_s7 + $0x880] sm:$0xff] %v744_v16  ;;  %v872_v16 = vld [vmem:[%s9044_s6 + $0x1500] sm:$0xff] }
 0x121   : > { %747 = vst [vmem:[%s9049_s7 + $0x888] sm:$0xff] %v746_v17  ;;  %v874_v17 = vld [vmem:[%s9044_s6 + $0x1508] sm:$0xff] }
 0x122   : > { %749 = vst [vmem:[%s9049_s7 + $0x890] sm:$0xff] %v748_v18  ;;  %v876_v18 = vld [vmem:[%s9044_s6 + $0x1510] sm:$0xff] }
 0x123   : > { %751 = vst [vmem:[%s9049_s7 + $0x898] sm:$0xff] %v750_v19  ;;  %v878_v19 = vld [vmem:[%s9044_s6 + $0x1518] sm:$0xff] }
 0x124   : > { %753 = vst [vmem:[%s9049_s7 + $0x8a0] sm:$0xff] %v752_v20  ;;  %v880_v20 = vld [vmem:[%s9044_s6 + $0x1540] sm:$0xff] }
 0x125   : > { %755 = vst [vmem:[%s9049_s7 + $0x8a8] sm:$0xff] %v754_v21  ;;  %v882_v21 = vld [vmem:[%s9044_s6 + $0x1548] sm:$0xff] }
 0x126   : > { %757 = vst [vmem:[%s9049_s7 + $0x8b0] sm:$0xff] %v756_v22  ;;  %v884_v22 = vld [vmem:[%s9044_s6 + $0x1550] sm:$0xff] }
 0x127   : > { %759 = vst [vmem:[%s9049_s7 + $0x8b8] sm:$0xff] %v758_v23  ;;  %v886_v23 = vld [vmem:[%s9044_s6 + $0x1558] sm:$0xff] }
 0x128   : > { %761 = vst [vmem:[%s9049_s7 + $0x8c0] sm:$0xff] %v760_v24  ;;  %v888_v24 = vld [vmem:[%s9044_s6 + $0x1580] sm:$0xff] }
 0x129   : > { %763 = vst [vmem:[%s9049_s7 + $0x8c8] sm:$0xff] %v762_v25  ;;  %v890_v25 = vld [vmem:[%s9044_s6 + $0x1588] sm:$0xff] }
 0x12a   : > { %765 = vst [vmem:[%s9049_s7 + $0x8d0] sm:$0xff] %v764_v26  ;;  %v892_v26 = vld [vmem:[%s9044_s6 + $0x1590] sm:$0xff] }
 0x12b   : > { %767 = vst [vmem:[%s9049_s7 + $0x8d8] sm:$0xff] %v766_v27  ;;  %v894_v27 = vld [vmem:[%s9044_s6 + $0x1598] sm:$0xff] }
 0x12c   : > { %769 = vst [vmem:[%s9049_s7 + $0x8e0] sm:$0xff] %v768_v28  ;;  %v896_v28 = vld [vmem:[%s9044_s6 + $0x15c0] sm:$0xff] }
 0x12d   : > { %771 = vst [vmem:[%s9049_s7 + $0x8e8] sm:$0xff] %v770_v29  ;;  %v898_v29 = vld [vmem:[%s9044_s6 + $0x15c8] sm:$0xff] }
 0x12e   : > { %773 = vst [vmem:[%s9049_s7 + $0x8f0] sm:$0xff] %v772_v30  ;;  %v900_v30 = vld [vmem:[%s9044_s6 + $0x15d0] sm:$0xff] }
 0x12f   : > { %775 = vst [vmem:[%s9049_s7 + $0x8f8] sm:$0xff] %v774_v31  ;;  %v902_v31 = vld [vmem:[%s9044_s6 + $0x15d8] sm:$0xff] }
 0x130   : > { %777 = vst [vmem:[%s9049_s7 + $0x900] sm:$0xff] %v776_v32  ;;  %v904_v32 = vld [vmem:[%s9044_s6 + $0x1600] sm:$0xff] }
 0x131   : > { %779 = vst [vmem:[%s9049_s7 + $0x908] sm:$0xff] %v778_v33  ;;  %v906_v33 = vld [vmem:[%s9044_s6 + $0x1608] sm:$0xff] }
 0x132   : > { %781 = vst [vmem:[%s9049_s7 + $0x910] sm:$0xff] %v780_v34  ;;  %v908_v34 = vld [vmem:[%s9044_s6 + $0x1610] sm:$0xff] }
 0x133   : > { %783 = vst [vmem:[%s9049_s7 + $0x918] sm:$0xff] %v782_v35  ;;  %v910_v35 = vld [vmem:[%s9044_s6 + $0x1618] sm:$0xff] }
 0x134   : > { %785 = vst [vmem:[%s9049_s7 + $0x920] sm:$0xff] %v784_v36  ;;  %v912_v36 = vld [vmem:[%s9044_s6 + $0x1640] sm:$0xff] }
 0x135   : > { %787 = vst [vmem:[%s9049_s7 + $0x928] sm:$0xff] %v786_v37  ;;  %v914_v37 = vld [vmem:[%s9044_s6 + $0x1648] sm:$0xff] }
 0x136   : > { %789 = vst [vmem:[%s9049_s7 + $0x930] sm:$0xff] %v788_v38  ;;  %v916_v38 = vld [vmem:[%s9044_s6 + $0x1650] sm:$0xff] }
 0x137   : > { %791 = vst [vmem:[%s9049_s7 + $0x938] sm:$0xff] %v790_v39  ;;  %v918_v39 = vld [vmem:[%s9044_s6 + $0x1658] sm:$0xff] }
 0x138   : > { %793 = vst [vmem:[%s9049_s7 + $0x940] sm:$0xff] %v792_v40  ;;  %v920_v40 = vld [vmem:[%s9044_s6 + $0x1680] sm:$0xff] }
 0x139   : > { %795 = vst [vmem:[%s9049_s7 + $0x948] sm:$0xff] %v794_v41  ;;  %v922_v41 = vld [vmem:[%s9044_s6 + $0x1688] sm:$0xff] }
 0x13a   : > { %797 = vst [vmem:[%s9049_s7 + $0x950] sm:$0xff] %v796_v42  ;;  %v924_v42 = vld [vmem:[%s9044_s6 + $0x1690] sm:$0xff] }
 0x13b   : > { %799 = vst [vmem:[%s9049_s7 + $0x958] sm:$0xff] %v798_v43  ;;  %v926_v43 = vld [vmem:[%s9044_s6 + $0x1698] sm:$0xff] }
 0x13c   : > { %801 = vst [vmem:[%s9049_s7 + $0x960] sm:$0xff] %v800_v44  ;;  %v928_v44 = vld [vmem:[%s9044_s6 + $0x16c0] sm:$0xff] }
 0x13d   : > { %803 = vst [vmem:[%s9049_s7 + $0x968] sm:$0xff] %v802_v45  ;;  %v930_v45 = vld [vmem:[%s9044_s6 + $0x16c8] sm:$0xff] }
 0x13e   : > { %805 = vst [vmem:[%s9049_s7 + $0x970] sm:$0xff] %v804_v46  ;;  %v932_v46 = vld [vmem:[%s9044_s6 + $0x16d0] sm:$0xff] }
 0x13f   : > { %807 = vst [vmem:[%s9049_s7 + $0x978] sm:$0xff] %v806_v47  ;;  %v934_v47 = vld [vmem:[%s9044_s6 + $0x16d8] sm:$0xff] }
 0x140   : > { %809 = vst [vmem:[%s9049_s7 + $0x980] sm:$0xff] %v808_v48  ;;  %v936_v48 = vld [vmem:[%s9044_s6 + $0x1700] sm:$0xff] }
 0x141   : > { %811 = vst [vmem:[%s9049_s7 + $0x988] sm:$0xff] %v810_v49  ;;  %v938_v49 = vld [vmem:[%s9044_s6 + $0x1708] sm:$0xff] }
 0x142   : > { %813 = vst [vmem:[%s9049_s7 + $0x990] sm:$0xff] %v812_v50  ;;  %v940_v50 = vld [vmem:[%s9044_s6 + $0x1710] sm:$0xff] }
 0x143   : > { %815 = vst [vmem:[%s9049_s7 + $0x998] sm:$0xff] %v814_v51  ;;  %v942_v51 = vld [vmem:[%s9044_s6 + $0x1718] sm:$0xff] }
 0x144   : > { %817 = vst [vmem:[%s9049_s7 + $0x9a0] sm:$0xff] %v816_v52  ;;  %v944_v52 = vld [vmem:[%s9044_s6 + $0x1740] sm:$0xff] }
 0x145   : > { %819 = vst [vmem:[%s9049_s7 + $0x9a8] sm:$0xff] %v818_v53  ;;  %v946_v53 = vld [vmem:[%s9044_s6 + $0x1748] sm:$0xff] }
 0x146   : > { %821 = vst [vmem:[%s9049_s7 + $0x9b0] sm:$0xff] %v820_v54  ;;  %v948_v54 = vld [vmem:[%s9044_s6 + $0x1750] sm:$0xff] }
 0x147   : > { %823 = vst [vmem:[%s9049_s7 + $0x9b8] sm:$0xff] %v822_v55  ;;  %v950_v55 = vld [vmem:[%s9044_s6 + $0x1758] sm:$0xff] }
 0x148   : > { %825 = vst [vmem:[%s9049_s7 + $0x9c0] sm:$0xff] %v824_v56  ;;  %v952_v56 = vld [vmem:[%s9044_s6 + $0x1780] sm:$0xff] }
 0x149   : > { %827 = vst [vmem:[%s9049_s7 + $0x9c8] sm:$0xff] %v826_v57  ;;  %v954_v57 = vld [vmem:[%s9044_s6 + $0x1788] sm:$0xff] }
 0x14a   : > { %829 = vst [vmem:[%s9049_s7 + $0x9d0] sm:$0xff] %v828_v58  ;;  %v956_v58 = vld [vmem:[%s9044_s6 + $0x1790] sm:$0xff] }
 0x14b   : > { %831 = vst [vmem:[%s9049_s7 + $0x9d8] sm:$0xff] %v830_v59  ;;  %v958_v59 = vld [vmem:[%s9044_s6 + $0x1798] sm:$0xff] }
 0x14c   : > { %833 = vst [vmem:[%s9049_s7 + $0x9e0] sm:$0xff] %v832_v60  ;;  %v960_v60 = vld [vmem:[%s9044_s6 + $0x17c0] sm:$0xff] }
 0x14d   : > { %835 = vst [vmem:[%s9049_s7 + $0x9e8] sm:$0xff] %v834_v61  ;;  %v962_v61 = vld [vmem:[%s9044_s6 + $0x17c8] sm:$0xff] }
 0x14e   : > { %837 = vst [vmem:[%s9049_s7 + $0x9f0] sm:$0xff] %v836_v62  ;;  %v964_v62 = vld [vmem:[%s9044_s6 + $0x17d0] sm:$0xff] }
 0x14f   : > { %839 = vst [vmem:[%s9049_s7 + $0x9f8] sm:$0xff] %v838_v63  ;;  %v966_v63 = vld [vmem:[%s9044_s6 + $0x17d8] sm:$0xff] }
 0x150   : > { %841 = vst [vmem:[%s9049_s7 + $0xa00] sm:$0xff] %v840_v0  ;;  %v968_v0 = vld [vmem:[%s9044_s6 + $0x1800] sm:$0xff] }
 0x151   : > { %843 = vst [vmem:[%s9049_s7 + $0xa08] sm:$0xff] %v842_v1  ;;  %v970_v1 = vld [vmem:[%s9044_s6 + $0x1808] sm:$0xff] }
 0x152   : > { %845 = vst [vmem:[%s9049_s7 + $0xa10] sm:$0xff] %v844_v2  ;;  %v972_v2 = vld [vmem:[%s9044_s6 + $0x1810] sm:$0xff] }
 0x153   : > { %847 = vst [vmem:[%s9049_s7 + $0xa18] sm:$0xff] %v846_v3  ;;  %v974_v3 = vld [vmem:[%s9044_s6 + $0x1818] sm:$0xff] }
 0x154   : > { %849 = vst [vmem:[%s9049_s7 + $0xa20] sm:$0xff] %v848_v4  ;;  %v976_v4 = vld [vmem:[%s9044_s6 + $0x1840] sm:$0xff] }
 0x155   : > { %851 = vst [vmem:[%s9049_s7 + $0xa28] sm:$0xff] %v850_v5  ;;  %v978_v5 = vld [vmem:[%s9044_s6 + $0x1848] sm:$0xff] }
 0x156   : > { %853 = vst [vmem:[%s9049_s7 + $0xa30] sm:$0xff] %v852_v6  ;;  %v980_v6 = vld [vmem:[%s9044_s6 + $0x1850] sm:$0xff] }
 0x157   : > { %855 = vst [vmem:[%s9049_s7 + $0xa38] sm:$0xff] %v854_v7  ;;  %v982_v7 = vld [vmem:[%s9044_s6 + $0x1858] sm:$0xff] }
 0x158   : > { %857 = vst [vmem:[%s9049_s7 + $0xa40] sm:$0xff] %v856_v8  ;;  %v984_v8 = vld [vmem:[%s9044_s6 + $0x1880] sm:$0xff] }
 0x159   : > { %859 = vst [vmem:[%s9049_s7 + $0xa48] sm:$0xff] %v858_v9  ;;  %v986_v9 = vld [vmem:[%s9044_s6 + $0x1888] sm:$0xff] }
 0x15a   : > { %861 = vst [vmem:[%s9049_s7 + $0xa50] sm:$0xff] %v860_v10  ;;  %v988_v10 = vld [vmem:[%s9044_s6 + $0x1890] sm:$0xff] }
 0x15b   : > { %863 = vst [vmem:[%s9049_s7 + $0xa58] sm:$0xff] %v862_v11  ;;  %v990_v11 = vld [vmem:[%s9044_s6 + $0x1898] sm:$0xff] }
 0x15c   : > { %865 = vst [vmem:[%s9049_s7 + $0xa60] sm:$0xff] %v864_v12  ;;  %v992_v12 = vld [vmem:[%s9044_s6 + $0x18c0] sm:$0xff] }
 0x15d   : > { %867 = vst [vmem:[%s9049_s7 + $0xa68] sm:$0xff] %v866_v13  ;;  %v994_v13 = vld [vmem:[%s9044_s6 + $0x18c8] sm:$0xff] }
 0x15e   : > { %869 = vst [vmem:[%s9049_s7 + $0xa70] sm:$0xff] %v868_v14  ;;  %v996_v14 = vld [vmem:[%s9044_s6 + $0x18d0] sm:$0xff] }
 0x15f   : > { %871 = vst [vmem:[%s9049_s7 + $0xa78] sm:$0xff] %v870_v15  ;;  %v998_v15 = vld [vmem:[%s9044_s6 + $0x18d8] sm:$0xff] }
 0x160   : > { %873 = vst [vmem:[%s9049_s7 + $0xa80] sm:$0xff] %v872_v16  ;;  %v1000_v16 = vld [vmem:[%s9044_s6 + $0x1900] sm:$0xff] }
 0x161   : > { %875 = vst [vmem:[%s9049_s7 + $0xa88] sm:$0xff] %v874_v17  ;;  %v1002_v17 = vld [vmem:[%s9044_s6 + $0x1908] sm:$0xff] }
 0x162   : > { %877 = vst [vmem:[%s9049_s7 + $0xa90] sm:$0xff] %v876_v18  ;;  %v1004_v18 = vld [vmem:[%s9044_s6 + $0x1910] sm:$0xff] }
 0x163   : > { %879 = vst [vmem:[%s9049_s7 + $0xa98] sm:$0xff] %v878_v19  ;;  %v1006_v19 = vld [vmem:[%s9044_s6 + $0x1918] sm:$0xff] }
 0x164   : > { %881 = vst [vmem:[%s9049_s7 + $0xaa0] sm:$0xff] %v880_v20  ;;  %v1008_v20 = vld [vmem:[%s9044_s6 + $0x1940] sm:$0xff] }
 0x165   : > { %883 = vst [vmem:[%s9049_s7 + $0xaa8] sm:$0xff] %v882_v21  ;;  %v1010_v21 = vld [vmem:[%s9044_s6 + $0x1948] sm:$0xff] }
 0x166   : > { %885 = vst [vmem:[%s9049_s7 + $0xab0] sm:$0xff] %v884_v22  ;;  %v1012_v22 = vld [vmem:[%s9044_s6 + $0x1950] sm:$0xff] }
 0x167   : > { %887 = vst [vmem:[%s9049_s7 + $0xab8] sm:$0xff] %v886_v23  ;;  %v1014_v23 = vld [vmem:[%s9044_s6 + $0x1958] sm:$0xff] }
 0x168   : > { %889 = vst [vmem:[%s9049_s7 + $0xac0] sm:$0xff] %v888_v24  ;;  %v1016_v24 = vld [vmem:[%s9044_s6 + $0x1980] sm:$0xff] }
 0x169   : > { %891 = vst [vmem:[%s9049_s7 + $0xac8] sm:$0xff] %v890_v25  ;;  %v1018_v25 = vld [vmem:[%s9044_s6 + $0x1988] sm:$0xff] }
 0x16a   : > { %893 = vst [vmem:[%s9049_s7 + $0xad0] sm:$0xff] %v892_v26  ;;  %v1020_v26 = vld [vmem:[%s9044_s6 + $0x1990] sm:$0xff] }
 0x16b   : > { %895 = vst [vmem:[%s9049_s7 + $0xad8] sm:$0xff] %v894_v27  ;;  %v1022_v27 = vld [vmem:[%s9044_s6 + $0x1998] sm:$0xff] }
 0x16c   : > { %897 = vst [vmem:[%s9049_s7 + $0xae0] sm:$0xff] %v896_v28  ;;  %v1024_v28 = vld [vmem:[%s9044_s6 + $0x19c0] sm:$0xff] }
 0x16d   : > { %899 = vst [vmem:[%s9049_s7 + $0xae8] sm:$0xff] %v898_v29  ;;  %v1026_v29 = vld [vmem:[%s9044_s6 + $0x19c8] sm:$0xff] }
 0x16e   : > { %901 = vst [vmem:[%s9049_s7 + $0xaf0] sm:$0xff] %v900_v30  ;;  %v1028_v30 = vld [vmem:[%s9044_s6 + $0x19d0] sm:$0xff] }
 0x16f   : > { %903 = vst [vmem:[%s9049_s7 + $0xaf8] sm:$0xff] %v902_v31  ;;  %v1030_v31 = vld [vmem:[%s9044_s6 + $0x19d8] sm:$0xff] }
 0x170   : > { %905 = vst [vmem:[%s9049_s7 + $0xb00] sm:$0xff] %v904_v32  ;;  %v1032_v32 = vld [vmem:[%s9044_s6 + $0x1a00] sm:$0xff] }
 0x171   : > { %907 = vst [vmem:[%s9049_s7 + $0xb08] sm:$0xff] %v906_v33  ;;  %v1034_v33 = vld [vmem:[%s9044_s6 + $0x1a08] sm:$0xff] }
 0x172   : > { %909 = vst [vmem:[%s9049_s7 + $0xb10] sm:$0xff] %v908_v34  ;;  %v1036_v34 = vld [vmem:[%s9044_s6 + $0x1a10] sm:$0xff] }
 0x173   : > { %911 = vst [vmem:[%s9049_s7 + $0xb18] sm:$0xff] %v910_v35  ;;  %v1038_v35 = vld [vmem:[%s9044_s6 + $0x1a18] sm:$0xff] }
 0x174   : > { %913 = vst [vmem:[%s9049_s7 + $0xb20] sm:$0xff] %v912_v36  ;;  %v1040_v36 = vld [vmem:[%s9044_s6 + $0x1a40] sm:$0xff] }
 0x175   : > { %915 = vst [vmem:[%s9049_s7 + $0xb28] sm:$0xff] %v914_v37  ;;  %v1042_v37 = vld [vmem:[%s9044_s6 + $0x1a48] sm:$0xff] }
 0x176   : > { %917 = vst [vmem:[%s9049_s7 + $0xb30] sm:$0xff] %v916_v38  ;;  %v1044_v38 = vld [vmem:[%s9044_s6 + $0x1a50] sm:$0xff] }
 0x177   : > { %919 = vst [vmem:[%s9049_s7 + $0xb38] sm:$0xff] %v918_v39  ;;  %v1046_v39 = vld [vmem:[%s9044_s6 + $0x1a58] sm:$0xff] }
 0x178   : > { %921 = vst [vmem:[%s9049_s7 + $0xb40] sm:$0xff] %v920_v40  ;;  %v1048_v40 = vld [vmem:[%s9044_s6 + $0x1a80] sm:$0xff] }
 0x179   : > { %923 = vst [vmem:[%s9049_s7 + $0xb48] sm:$0xff] %v922_v41  ;;  %v1050_v41 = vld [vmem:[%s9044_s6 + $0x1a88] sm:$0xff] }
 0x17a   : > { %925 = vst [vmem:[%s9049_s7 + $0xb50] sm:$0xff] %v924_v42  ;;  %v1052_v42 = vld [vmem:[%s9044_s6 + $0x1a90] sm:$0xff] }
 0x17b   : > { %927 = vst [vmem:[%s9049_s7 + $0xb58] sm:$0xff] %v926_v43  ;;  %v1054_v43 = vld [vmem:[%s9044_s6 + $0x1a98] sm:$0xff] }
 0x17c   : > { %929 = vst [vmem:[%s9049_s7 + $0xb60] sm:$0xff] %v928_v44  ;;  %v1056_v44 = vld [vmem:[%s9044_s6 + $0x1ac0] sm:$0xff] }
 0x17d   : > { %931 = vst [vmem:[%s9049_s7 + $0xb68] sm:$0xff] %v930_v45  ;;  %v1058_v45 = vld [vmem:[%s9044_s6 + $0x1ac8] sm:$0xff] }
 0x17e   : > { %933 = vst [vmem:[%s9049_s7 + $0xb70] sm:$0xff] %v932_v46  ;;  %v1060_v46 = vld [vmem:[%s9044_s6 + $0x1ad0] sm:$0xff] }
 0x17f   : > { %935 = vst [vmem:[%s9049_s7 + $0xb78] sm:$0xff] %v934_v47  ;;  %v1062_v47 = vld [vmem:[%s9044_s6 + $0x1ad8] sm:$0xff] }
 0x180   : > { %937 = vst [vmem:[%s9049_s7 + $0xb80] sm:$0xff] %v936_v48  ;;  %v1064_v48 = vld [vmem:[%s9044_s6 + $0x1b00] sm:$0xff] }
 0x181   : > { %939 = vst [vmem:[%s9049_s7 + $0xb88] sm:$0xff] %v938_v49  ;;  %v1066_v49 = vld [vmem:[%s9044_s6 + $0x1b08] sm:$0xff] }
 0x182   : > { %941 = vst [vmem:[%s9049_s7 + $0xb90] sm:$0xff] %v940_v50  ;;  %v1068_v50 = vld [vmem:[%s9044_s6 + $0x1b10] sm:$0xff] }
 0x183   : > { %943 = vst [vmem:[%s9049_s7 + $0xb98] sm:$0xff] %v942_v51  ;;  %v1070_v51 = vld [vmem:[%s9044_s6 + $0x1b18] sm:$0xff] }
 0x184   : > { %945 = vst [vmem:[%s9049_s7 + $0xba0] sm:$0xff] %v944_v52  ;;  %v1072_v52 = vld [vmem:[%s9044_s6 + $0x1b40] sm:$0xff] }
 0x185   : > { %947 = vst [vmem:[%s9049_s7 + $0xba8] sm:$0xff] %v946_v53  ;;  %v1074_v53 = vld [vmem:[%s9044_s6 + $0x1b48] sm:$0xff] }
 0x186   : > { %949 = vst [vmem:[%s9049_s7 + $0xbb0] sm:$0xff] %v948_v54  ;;  %v1076_v54 = vld [vmem:[%s9044_s6 + $0x1b50] sm:$0xff] }
 0x187   : > { %951 = vst [vmem:[%s9049_s7 + $0xbb8] sm:$0xff] %v950_v55  ;;  %v1078_v55 = vld [vmem:[%s9044_s6 + $0x1b58] sm:$0xff] }
 0x188   : > { %953 = vst [vmem:[%s9049_s7 + $0xbc0] sm:$0xff] %v952_v56  ;;  %v1080_v56 = vld [vmem:[%s9044_s6 + $0x1b80] sm:$0xff] }
 0x189   : > { %955 = vst [vmem:[%s9049_s7 + $0xbc8] sm:$0xff] %v954_v57  ;;  %v1082_v57 = vld [vmem:[%s9044_s6 + $0x1b88] sm:$0xff] }
 0x18a   : > { %957 = vst [vmem:[%s9049_s7 + $0xbd0] sm:$0xff] %v956_v58  ;;  %v1084_v58 = vld [vmem:[%s9044_s6 + $0x1b90] sm:$0xff] }
 0x18b   : > { %959 = vst [vmem:[%s9049_s7 + $0xbd8] sm:$0xff] %v958_v59  ;;  %v1086_v59 = vld [vmem:[%s9044_s6 + $0x1b98] sm:$0xff] }
 0x18c   : > { %961 = vst [vmem:[%s9049_s7 + $0xbe0] sm:$0xff] %v960_v60  ;;  %v1088_v60 = vld [vmem:[%s9044_s6 + $0x1bc0] sm:$0xff] }
 0x18d   : > { %963 = vst [vmem:[%s9049_s7 + $0xbe8] sm:$0xff] %v962_v61  ;;  %v1090_v61 = vld [vmem:[%s9044_s6 + $0x1bc8] sm:$0xff] }
 0x18e   : > { %965 = vst [vmem:[%s9049_s7 + $0xbf0] sm:$0xff] %v964_v62  ;;  %v1092_v62 = vld [vmem:[%s9044_s6 + $0x1bd0] sm:$0xff] }
 0x18f   : > { %967 = vst [vmem:[%s9049_s7 + $0xbf8] sm:$0xff] %v966_v63  ;;  %v1094_v63 = vld [vmem:[%s9044_s6 + $0x1bd8] sm:$0xff] }
 0x190   : > { %969 = vst [vmem:[%s9049_s7 + $0xc00] sm:$0xff] %v968_v0  ;;  %v1096_v0 = vld [vmem:[%s9044_s6 + $0x1c00] sm:$0xff] }
 0x191   : > { %971 = vst [vmem:[%s9049_s7 + $0xc08] sm:$0xff] %v970_v1  ;;  %v1098_v1 = vld [vmem:[%s9044_s6 + $0x1c08] sm:$0xff] }
 0x192   : > { %973 = vst [vmem:[%s9049_s7 + $0xc10] sm:$0xff] %v972_v2  ;;  %v1100_v2 = vld [vmem:[%s9044_s6 + $0x1c10] sm:$0xff] }
 0x193   : > { %975 = vst [vmem:[%s9049_s7 + $0xc18] sm:$0xff] %v974_v3  ;;  %v1102_v3 = vld [vmem:[%s9044_s6 + $0x1c18] sm:$0xff] }
 0x194   : > { %977 = vst [vmem:[%s9049_s7 + $0xc20] sm:$0xff] %v976_v4  ;;  %v1104_v4 = vld [vmem:[%s9044_s6 + $0x1c40] sm:$0xff] }
 0x195   : > { %979 = vst [vmem:[%s9049_s7 + $0xc28] sm:$0xff] %v978_v5  ;;  %v1106_v5 = vld [vmem:[%s9044_s6 + $0x1c48] sm:$0xff] }
 0x196   : > { %981 = vst [vmem:[%s9049_s7 + $0xc30] sm:$0xff] %v980_v6  ;;  %v1108_v6 = vld [vmem:[%s9044_s6 + $0x1c50] sm:$0xff] }
 0x197   : > { %983 = vst [vmem:[%s9049_s7 + $0xc38] sm:$0xff] %v982_v7  ;;  %v1110_v7 = vld [vmem:[%s9044_s6 + $0x1c58] sm:$0xff] }
 0x198   : > { %985 = vst [vmem:[%s9049_s7 + $0xc40] sm:$0xff] %v984_v8  ;;  %v1112_v8 = vld [vmem:[%s9044_s6 + $0x1c80] sm:$0xff] }
 0x199   : > { %987 = vst [vmem:[%s9049_s7 + $0xc48] sm:$0xff] %v986_v9  ;;  %v1114_v9 = vld [vmem:[%s9044_s6 + $0x1c88] sm:$0xff] }
 0x19a   : > { %989 = vst [vmem:[%s9049_s7 + $0xc50] sm:$0xff] %v988_v10  ;;  %v1116_v10 = vld [vmem:[%s9044_s6 + $0x1c90] sm:$0xff] }
 0x19b   : > { %991 = vst [vmem:[%s9049_s7 + $0xc58] sm:$0xff] %v990_v11  ;;  %v1118_v11 = vld [vmem:[%s9044_s6 + $0x1c98] sm:$0xff] }
 0x19c   : > { %993 = vst [vmem:[%s9049_s7 + $0xc60] sm:$0xff] %v992_v12  ;;  %v1120_v12 = vld [vmem:[%s9044_s6 + $0x1cc0] sm:$0xff] }
 0x19d   : > { %995 = vst [vmem:[%s9049_s7 + $0xc68] sm:$0xff] %v994_v13  ;;  %v1122_v13 = vld [vmem:[%s9044_s6 + $0x1cc8] sm:$0xff] }
 0x19e   : > { %997 = vst [vmem:[%s9049_s7 + $0xc70] sm:$0xff] %v996_v14  ;;  %v1124_v14 = vld [vmem:[%s9044_s6 + $0x1cd0] sm:$0xff] }
 0x19f   : > { %999 = vst [vmem:[%s9049_s7 + $0xc78] sm:$0xff] %v998_v15  ;;  %v1126_v15 = vld [vmem:[%s9044_s6 + $0x1cd8] sm:$0xff] }
 0x1a0   : > { %1001 = vst [vmem:[%s9049_s7 + $0xc80] sm:$0xff] %v1000_v16  ;;  %v1128_v16 = vld [vmem:[%s9044_s6 + $0x1d00] sm:$0xff] }
 0x1a1   : > { %1003 = vst [vmem:[%s9049_s7 + $0xc88] sm:$0xff] %v1002_v17  ;;  %v1130_v17 = vld [vmem:[%s9044_s6 + $0x1d08] sm:$0xff] }
 0x1a2   : > { %1005 = vst [vmem:[%s9049_s7 + $0xc90] sm:$0xff] %v1004_v18  ;;  %v1132_v18 = vld [vmem:[%s9044_s6 + $0x1d10] sm:$0xff] }
 0x1a3   : > { %1007 = vst [vmem:[%s9049_s7 + $0xc98] sm:$0xff] %v1006_v19  ;;  %v1134_v19 = vld [vmem:[%s9044_s6 + $0x1d18] sm:$0xff] }
 0x1a4   : > { %1009 = vst [vmem:[%s9049_s7 + $0xca0] sm:$0xff] %v1008_v20  ;;  %v1136_v20 = vld [vmem:[%s9044_s6 + $0x1d40] sm:$0xff] }
 0x1a5   : > { %1011 = vst [vmem:[%s9049_s7 + $0xca8] sm:$0xff] %v1010_v21  ;;  %v1138_v21 = vld [vmem:[%s9044_s6 + $0x1d48] sm:$0xff] }
 0x1a6   : > { %1013 = vst [vmem:[%s9049_s7 + $0xcb0] sm:$0xff] %v1012_v22  ;;  %v1140_v22 = vld [vmem:[%s9044_s6 + $0x1d50] sm:$0xff] }
 0x1a7   : > { %1015 = vst [vmem:[%s9049_s7 + $0xcb8] sm:$0xff] %v1014_v23  ;;  %v1142_v23 = vld [vmem:[%s9044_s6 + $0x1d58] sm:$0xff] }
 0x1a8   : > { %1017 = vst [vmem:[%s9049_s7 + $0xcc0] sm:$0xff] %v1016_v24  ;;  %v1144_v24 = vld [vmem:[%s9044_s6 + $0x1d80] sm:$0xff] }
 0x1a9   : > { %1019 = vst [vmem:[%s9049_s7 + $0xcc8] sm:$0xff] %v1018_v25  ;;  %v1146_v25 = vld [vmem:[%s9044_s6 + $0x1d88] sm:$0xff] }
 0x1aa   : > { %1021 = vst [vmem:[%s9049_s7 + $0xcd0] sm:$0xff] %v1020_v26  ;;  %v1148_v26 = vld [vmem:[%s9044_s6 + $0x1d90] sm:$0xff] }
 0x1ab   : > { %1023 = vst [vmem:[%s9049_s7 + $0xcd8] sm:$0xff] %v1022_v27  ;;  %v1150_v27 = vld [vmem:[%s9044_s6 + $0x1d98] sm:$0xff] }
 0x1ac   : > { %1025 = vst [vmem:[%s9049_s7 + $0xce0] sm:$0xff] %v1024_v28  ;;  %v1152_v28 = vld [vmem:[%s9044_s6 + $0x1dc0] sm:$0xff] }
 0x1ad   : > { %1027 = vst [vmem:[%s9049_s7 + $0xce8] sm:$0xff] %v1026_v29  ;;  %v1154_v29 = vld [vmem:[%s9044_s6 + $0x1dc8] sm:$0xff] }
 0x1ae   : > { %1029 = vst [vmem:[%s9049_s7 + $0xcf0] sm:$0xff] %v1028_v30  ;;  %v1156_v30 = vld [vmem:[%s9044_s6 + $0x1dd0] sm:$0xff] }
 0x1af   : > { %1031 = vst [vmem:[%s9049_s7 + $0xcf8] sm:$0xff] %v1030_v31  ;;  %v1158_v31 = vld [vmem:[%s9044_s6 + $0x1dd8] sm:$0xff] }
 0x1b0   : > { %1033 = vst [vmem:[%s9049_s7 + $0xd00] sm:$0xff] %v1032_v32  ;;  %v1160_v32 = vld [vmem:[%s9044_s6 + $0x1e00] sm:$0xff] }
 0x1b1   : > { %1035 = vst [vmem:[%s9049_s7 + $0xd08] sm:$0xff] %v1034_v33  ;;  %v1162_v33 = vld [vmem:[%s9044_s6 + $0x1e08] sm:$0xff] }
 0x1b2   : > { %1037 = vst [vmem:[%s9049_s7 + $0xd10] sm:$0xff] %v1036_v34  ;;  %v1164_v34 = vld [vmem:[%s9044_s6 + $0x1e10] sm:$0xff] }
 0x1b3   : > { %1039 = vst [vmem:[%s9049_s7 + $0xd18] sm:$0xff] %v1038_v35  ;;  %v1166_v35 = vld [vmem:[%s9044_s6 + $0x1e18] sm:$0xff] }
 0x1b4   : > { %1041 = vst [vmem:[%s9049_s7 + $0xd20] sm:$0xff] %v1040_v36  ;;  %v1168_v36 = vld [vmem:[%s9044_s6 + $0x1e40] sm:$0xff] }
 0x1b5   : > { %1043 = vst [vmem:[%s9049_s7 + $0xd28] sm:$0xff] %v1042_v37  ;;  %v1170_v37 = vld [vmem:[%s9044_s6 + $0x1e48] sm:$0xff] }
 0x1b6   : > { %1045 = vst [vmem:[%s9049_s7 + $0xd30] sm:$0xff] %v1044_v38  ;;  %v1172_v38 = vld [vmem:[%s9044_s6 + $0x1e50] sm:$0xff] }
 0x1b7   : > { %1047 = vst [vmem:[%s9049_s7 + $0xd38] sm:$0xff] %v1046_v39  ;;  %v1174_v39 = vld [vmem:[%s9044_s6 + $0x1e58] sm:$0xff] }
 0x1b8   : > { %1049 = vst [vmem:[%s9049_s7 + $0xd40] sm:$0xff] %v1048_v40  ;;  %v1176_v40 = vld [vmem:[%s9044_s6 + $0x1e80] sm:$0xff] }
 0x1b9   : > { %1051 = vst [vmem:[%s9049_s7 + $0xd48] sm:$0xff] %v1050_v41  ;;  %v1178_v41 = vld [vmem:[%s9044_s6 + $0x1e88] sm:$0xff] }
 0x1ba   : > { %1053 = vst [vmem:[%s9049_s7 + $0xd50] sm:$0xff] %v1052_v42  ;;  %v1180_v42 = vld [vmem:[%s9044_s6 + $0x1e90] sm:$0xff] }
 0x1bb   : > { %1055 = vst [vmem:[%s9049_s7 + $0xd58] sm:$0xff] %v1054_v43  ;;  %v1182_v43 = vld [vmem:[%s9044_s6 + $0x1e98] sm:$0xff] }
 0x1bc   : > { %1057 = vst [vmem:[%s9049_s7 + $0xd60] sm:$0xff] %v1056_v44  ;;  %v1184_v44 = vld [vmem:[%s9044_s6 + $0x1ec0] sm:$0xff] }
 0x1bd   : > { %1059 = vst [vmem:[%s9049_s7 + $0xd68] sm:$0xff] %v1058_v45  ;;  %v1186_v45 = vld [vmem:[%s9044_s6 + $0x1ec8] sm:$0xff] }
 0x1be   : > { %1061 = vst [vmem:[%s9049_s7 + $0xd70] sm:$0xff] %v1060_v46  ;;  %v1188_v46 = vld [vmem:[%s9044_s6 + $0x1ed0] sm:$0xff] }
 0x1bf   : > { %1063 = vst [vmem:[%s9049_s7 + $0xd78] sm:$0xff] %v1062_v47  ;;  %v1190_v47 = vld [vmem:[%s9044_s6 + $0x1ed8] sm:$0xff] }
 0x1c0   : > { %1065 = vst [vmem:[%s9049_s7 + $0xd80] sm:$0xff] %v1064_v48  ;;  %v1192_v48 = vld [vmem:[%s9044_s6 + $0x1f00] sm:$0xff] }
 0x1c1   : > { %1067 = vst [vmem:[%s9049_s7 + $0xd88] sm:$0xff] %v1066_v49  ;;  %v1194_v49 = vld [vmem:[%s9044_s6 + $0x1f08] sm:$0xff] }
 0x1c2   : > { %1069 = vst [vmem:[%s9049_s7 + $0xd90] sm:$0xff] %v1068_v50  ;;  %v1196_v50 = vld [vmem:[%s9044_s6 + $0x1f10] sm:$0xff] }
 0x1c3   : > { %1071 = vst [vmem:[%s9049_s7 + $0xd98] sm:$0xff] %v1070_v51  ;;  %v1198_v51 = vld [vmem:[%s9044_s6 + $0x1f18] sm:$0xff] }
 0x1c4   : > { %1073 = vst [vmem:[%s9049_s7 + $0xda0] sm:$0xff] %v1072_v52  ;;  %v1200_v52 = vld [vmem:[%s9044_s6 + $0x1f40] sm:$0xff] }
 0x1c5   : > { %1075 = vst [vmem:[%s9049_s7 + $0xda8] sm:$0xff] %v1074_v53  ;;  %v1202_v53 = vld [vmem:[%s9044_s6 + $0x1f48] sm:$0xff] }
 0x1c6   : > { %1077 = vst [vmem:[%s9049_s7 + $0xdb0] sm:$0xff] %v1076_v54  ;;  %v1204_v54 = vld [vmem:[%s9044_s6 + $0x1f50] sm:$0xff] }
 0x1c7   : > { %1079 = vst [vmem:[%s9049_s7 + $0xdb8] sm:$0xff] %v1078_v55  ;;  %v1206_v55 = vld [vmem:[%s9044_s6 + $0x1f58] sm:$0xff] }
 0x1c8   : > { %1081 = vst [vmem:[%s9049_s7 + $0xdc0] sm:$0xff] %v1080_v56  ;;  %v1208_v56 = vld [vmem:[%s9044_s6 + $0x1f80] sm:$0xff] }
 0x1c9   : > { %1083 = vst [vmem:[%s9049_s7 + $0xdc8] sm:$0xff] %v1082_v57  ;;  %v1210_v57 = vld [vmem:[%s9044_s6 + $0x1f88] sm:$0xff] }
 0x1ca   : > { %1085 = vst [vmem:[%s9049_s7 + $0xdd0] sm:$0xff] %v1084_v58  ;;  %v1212_v58 = vld [vmem:[%s9044_s6 + $0x1f90] sm:$0xff] }
 0x1cb   : > { %1087 = vst [vmem:[%s9049_s7 + $0xdd8] sm:$0xff] %v1086_v59  ;;  %v1214_v59 = vld [vmem:[%s9044_s6 + $0x1f98] sm:$0xff] }
 0x1cc   : > { %1089 = vst [vmem:[%s9049_s7 + $0xde0] sm:$0xff] %v1088_v60  ;;  %v1216_v60 = vld [vmem:[%s9044_s6 + $0x1fc0] sm:$0xff] }
 0x1cd   : > { %1091 = vst [vmem:[%s9049_s7 + $0xde8] sm:$0xff] %v1090_v61  ;;  %v1218_v61 = vld [vmem:[%s9044_s6 + $0x1fc8] sm:$0xff] }
 0x1ce   : > { %1093 = vst [vmem:[%s9049_s7 + $0xdf0] sm:$0xff] %v1092_v62  ;;  %v1220_v62 = vld [vmem:[%s9044_s6 + $0x1fd0] sm:$0xff] }
 0x1cf   : > { %1095 = vst [vmem:[%s9049_s7 + $0xdf8] sm:$0xff] %v1094_v63  ;;  %v1222_v63 = vld [vmem:[%s9044_s6 + $0x1fd8] sm:$0xff] }
 0x1d0   : > { %1097 = vst [vmem:[%s9049_s7 + $0xe00] sm:$0xff] %v1096_v0 }
 0x1d1   : > { %1099 = vst [vmem:[%s9049_s7 + $0xe08] sm:$0xff] %v1098_v1 }
 0x1d2   : > { %1101 = vst [vmem:[%s9049_s7 + $0xe10] sm:$0xff] %v1100_v2 }
 0x1d3   : > { %1103 = vst [vmem:[%s9049_s7 + $0xe18] sm:$0xff] %v1102_v3 }
 0x1d4   : > { %1105 = vst [vmem:[%s9049_s7 + $0xe20] sm:$0xff] %v1104_v4 }
 0x1d5   : > { %1107 = vst [vmem:[%s9049_s7 + $0xe28] sm:$0xff] %v1106_v5 }
 0x1d6   : > { %1109 = vst [vmem:[%s9049_s7 + $0xe30] sm:$0xff] %v1108_v6 }
 0x1d7   : > { %1111 = vst [vmem:[%s9049_s7 + $0xe38] sm:$0xff] %v1110_v7 }
 0x1d8   : > { %1113 = vst [vmem:[%s9049_s7 + $0xe40] sm:$0xff] %v1112_v8 }
 0x1d9   : > { %1115 = vst [vmem:[%s9049_s7 + $0xe48] sm:$0xff] %v1114_v9 }
 0x1da   : > { %1117 = vst [vmem:[%s9049_s7 + $0xe50] sm:$0xff] %v1116_v10 }
 0x1db   : > { %1119 = vst [vmem:[%s9049_s7 + $0xe58] sm:$0xff] %v1118_v11 }
 0x1dc   : > { %1121 = vst [vmem:[%s9049_s7 + $0xe60] sm:$0xff] %v1120_v12 }
 0x1dd   : > { %1123 = vst [vmem:[%s9049_s7 + $0xe68] sm:$0xff] %v1122_v13 }
 0x1de   : > { %1125 = vst [vmem:[%s9049_s7 + $0xe70] sm:$0xff] %v1124_v14 }
 0x1df   : > { %1127 = vst [vmem:[%s9049_s7 + $0xe78] sm:$0xff] %v1126_v15 }
 0x1e0   : > { %1129 = vst [vmem:[%s9049_s7 + $0xe80] sm:$0xff] %v1128_v16 }
 0x1e1   : > { %1131 = vst [vmem:[%s9049_s7 + $0xe88] sm:$0xff] %v1130_v17 }
 0x1e2   : > { %1133 = vst [vmem:[%s9049_s7 + $0xe90] sm:$0xff] %v1132_v18 }
 0x1e3   : > { %1135 = vst [vmem:[%s9049_s7 + $0xe98] sm:$0xff] %v1134_v19 }
 0x1e4   : > { %1137 = vst [vmem:[%s9049_s7 + $0xea0] sm:$0xff] %v1136_v20 }
 0x1e5   : > { %1139 = vst [vmem:[%s9049_s7 + $0xea8] sm:$0xff] %v1138_v21 }
 0x1e6   : > { %1141 = vst [vmem:[%s9049_s7 + $0xeb0] sm:$0xff] %v1140_v22 }
 0x1e7   : > { %1143 = vst [vmem:[%s9049_s7 + $0xeb8] sm:$0xff] %v1142_v23 }
 0x1e8   : > { %1145 = vst [vmem:[%s9049_s7 + $0xec0] sm:$0xff] %v1144_v24 }
 0x1e9   : > { %1147 = vst [vmem:[%s9049_s7 + $0xec8] sm:$0xff] %v1146_v25 }
 0x1ea   : > { %1149 = vst [vmem:[%s9049_s7 + $0xed0] sm:$0xff] %v1148_v26 }
 0x1eb   : > { %1151 = vst [vmem:[%s9049_s7 + $0xed8] sm:$0xff] %v1150_v27 }
 0x1ec   : > { %1153 = vst [vmem:[%s9049_s7 + $0xee0] sm:$0xff] %v1152_v28 }
 0x1ed   : > { %1155 = vst [vmem:[%s9049_s7 + $0xee8] sm:$0xff] %v1154_v29 }
 0x1ee   : > { %1157 = vst [vmem:[%s9049_s7 + $0xef0] sm:$0xff] %v1156_v30 }
 0x1ef   : > { %1159 = vst [vmem:[%s9049_s7 + $0xef8] sm:$0xff] %v1158_v31 }
 0x1f0   : > { %1161 = vst [vmem:[%s9049_s7 + $0xf00] sm:$0xff] %v1160_v32 }
 0x1f1   : > { %1163 = vst [vmem:[%s9049_s7 + $0xf08] sm:$0xff] %v1162_v33 }
 0x1f2   : > { %1165 = vst [vmem:[%s9049_s7 + $0xf10] sm:$0xff] %v1164_v34 }
 0x1f3   : > { %1167 = vst [vmem:[%s9049_s7 + $0xf18] sm:$0xff] %v1166_v35 }
 0x1f4   : > { %1169 = vst [vmem:[%s9049_s7 + $0xf20] sm:$0xff] %v1168_v36 }
 0x1f5   : > { %1171 = vst [vmem:[%s9049_s7 + $0xf28] sm:$0xff] %v1170_v37 }
 0x1f6   : > { %1173 = vst [vmem:[%s9049_s7 + $0xf30] sm:$0xff] %v1172_v38 }
 0x1f7   : > { %1175 = vst [vmem:[%s9049_s7 + $0xf38] sm:$0xff] %v1174_v39 }
 0x1f8   : > { %1177 = vst [vmem:[%s9049_s7 + $0xf40] sm:$0xff] %v1176_v40 }
 0x1f9   : > { %1179 = vst [vmem:[%s9049_s7 + $0xf48] sm:$0xff] %v1178_v41 }
 0x1fa   : > { %1181 = vst [vmem:[%s9049_s7 + $0xf50] sm:$0xff] %v1180_v42 }
 0x1fb   : > { %1183 = vst [vmem:[%s9049_s7 + $0xf58] sm:$0xff] %v1182_v43 }
 0x1fc   : > { %1185 = vst [vmem:[%s9049_s7 + $0xf60] sm:$0xff] %v1184_v44 }
 0x1fd   : > { %1187 = vst [vmem:[%s9049_s7 + $0xf68] sm:$0xff] %v1186_v45 }
 0x1fe   : > { %1189 = vst [vmem:[%s9049_s7 + $0xf70] sm:$0xff] %v1188_v46 }
 0x1ff   : > { %1191 = vst [vmem:[%s9049_s7 + $0xf78] sm:$0xff] %v1190_v47 }
 0x200   : > { %1193 = vst [vmem:[%s9049_s7 + $0xf80] sm:$0xff] %v1192_v48 }
 0x201   : > { %1195 = vst [vmem:[%s9049_s7 + $0xf88] sm:$0xff] %v1194_v49 }
 0x202   : > { %1197 = vst [vmem:[%s9049_s7 + $0xf90] sm:$0xff] %v1196_v50 }
 0x203   : > { %1199 = vst [vmem:[%s9049_s7 + $0xf98] sm:$0xff] %v1198_v51 }
 0x204   : > { %1201 = vst [vmem:[%s9049_s7 + $0xfa0] sm:$0xff] %v1200_v52 }
 0x205   : > { %1203 = vst [vmem:[%s9049_s7 + $0xfa8] sm:$0xff] %v1202_v53 }
 0x206   : > { %1205 = vst [vmem:[%s9049_s7 + $0xfb0] sm:$0xff] %v1204_v54 }
 0x207   : > { %1207 = vst [vmem:[%s9049_s7 + $0xfb8] sm:$0xff] %v1206_v55 }
 0x208   : > { %1209 = vst [vmem:[%s9049_s7 + $0xfc0] sm:$0xff] %v1208_v56 }
 0x209   : > { %1211 = vst [vmem:[%s9049_s7 + $0xfc8] sm:$0xff] %v1210_v57 }
 0x20a   : > { %1213 = vst [vmem:[%s9049_s7 + $0xfd0] sm:$0xff] %v1212_v58 }
 0x20b   : > { %1215 = vst [vmem:[%s9049_s7 + $0xfd8] sm:$0xff] %v1214_v59 }
 0x20c   : > { %1217 = vst [vmem:[%s9049_s7 + $0xfe0] sm:$0xff] %v1216_v60 }
 0x20d   : > { %1219 = vst [vmem:[%s9049_s7 + $0xfe8] sm:$0xff] %v1218_v61 }
 0x20e   : > { %1221 = vst [vmem:[%s9049_s7 + $0xff0] sm:$0xff] %v1220_v62 }
 0x20f   : > { %1223 = vst [vmem:[%s9049_s7 + $0xff8] sm:$0xff] %v1222_v63 }
 0x210 PF: > { %p5968_p5 = scmp.ge.s32.totalorder %s8974_s20, 1  ;;  %p1245_p6 = scmp.lt.s32.totalorder %s8974_s20, 3 }
 0x212   : > { %p1246_p7 = pnand %p5968_p5, %p1245_p6 }
 0x213   : > { %s1252_s8 = sand.u32 (!%p1246_p7), 1, %s8966_s18   ;;  %s5970_s9 = sshll.u32 (!%p1246_p7), %s9024_s21, 3 }
 0x214   : > { %1249 = sbr.rel (%p1246_p7) target bundleno = 1610 (0x64a), region = 59  ;;  %s5969_s10 = sshll.u32 (!%p1246_p7), %s1252_s8, 12 }
 0x215   : > { %p1285_p8 = scmp.lt.s32.totalorder (!%p1246_p7), %s5970_s9, 15  ;;  %s5971_s11 = sshll.u32 (!%p1246_p7), %s9024_s21, 7 }
 0x216   : > { %p1290_p9 = scmp.lt.s32.totalorder (!%p1246_p7), %s5971_s11, 255  ;;  %s10087_s23 = scalar_lea.vmem (!%p1246_p7), [#allocation2], %s5969_s10 }
 0x217   : > { %p5973_p10 = scmp.ne.s32.totalorder (!%p1246_p7), %s9024_s21, 0 }
 0x219   : > { %s11396_s9 = smov (!%p1285_p8, %s5970_s9), 15  ;;  %s11398_s11 = smov (!%p1290_p9, %s5971_s11), 255 }
 0x21a   : > { %s10080_s14 = scalar_lea.vmem %s11388_s2, %s11396_s9  ;;  %s5972_s15 = sshll.u32 %s11398_s11, 2 }
 0x21b   : > { %s10085_s20 = scalar_lea.vmem %s11389_s3, %s5972_s15  ;;  %1298 = sbr.rel (%p5973_p10) target bundleno = 546 (0x222), region = 67 }
 0x220   : > { %v8976_v0 = vmov 0.0  }
 0x221   : > { %1299 = vst [vmem:[#allocation3] sm:$0x3] %v8976_v0 }
 0x222 PF: > { %v6200_v1 = vld [vmem:[%s10087_s23 + $0x1c0] sm:$0xf]  ;;  %p8278_p11 = scmp.ne.s32.totalorder %s9024_s21, 1 }
 0x223   : > { %v8344_v2 = vld [vmem:[%s10087_s23 + $0x1dc] sm:$0xf0] }
 0x224   : > { %v6456_v3 = vld [vmem:[%s10087_s23 + $0x3c0] sm:$0xf]  ;;  %v6201_v4 = vor.u32 %v8344_v2, %v6200_v1 }
 0x225   : > { %v8408_v5 = vld [vmem:[%s10087_s23 + $0x3dc] sm:$0xf0] }
 0x226   : > { %v6712_v6 = vld [vmem:[%s10087_s23 + $0x5c0] sm:$0xf]  ;;  %v6457_v8 = vor.u32 %v8408_v5, %v6456_v3  ;;  %4409 = vmatpush.bf16.msra.mxu0 %v6201_v4 }
 0x227   : > { %v8472_v7 = vld [vmem:[%s10087_s23 + $0x5dc] sm:$0xf0] }
 0x228   : > { %v6713_v9 = vor.u32 %v8472_v7, %v6712_v6  ;;  %v6968_v10 = vld [vmem:[%s10087_s23 + $0x7c0] sm:$0xf]  ;;  %4422 = vmatpush.bf16.msra.mxu1 %v6457_v8 }
 0x229   : > { %v8536_v11 = vld [vmem:[%s10087_s23 + $0x7dc] sm:$0xf0] }
 0x22a   : > { %v6168_v12 = vld [vmem:[%s10087_s23 + $0x180] sm:$0xf]  ;;  %v6969_v13 = vor.u32 %v8536_v11, %v6968_v10  ;;  %4435 = vmatpush.bf16.msra.mxu2 %v6713_v9 }
 0x22b   : > { %v8336_v14 = vld [vmem:[%s10087_s23 + $0x19c] sm:$0xf0] }
 0x22c   : > { %v6424_v15 = vld [vmem:[%s10087_s23 + $0x380] sm:$0xf]  ;;  %v6169_v17 = vor.u32 %v8336_v14, %v6168_v12  ;;  %4448 = vmatpush.bf16.msra.mxu3 %v6969_v13 }
 0x22d   : > { %v8400_v16 = vld [vmem:[%s10087_s23 + $0x39c] sm:$0xf0] }
 0x22e   : > { %v6425_v18 = vor.u32 %v8400_v16, %v6424_v15  ;;  %v6680_v19 = vld [vmem:[%s10087_s23 + $0x580] sm:$0xf]  ;;  %4410 = vmatpush.bf16.msra.mxu0 %v6169_v17 }
 0x22f   : > { %v8464_v20 = vld [vmem:[%s10087_s23 + $0x59c] sm:$0xf0] }
 0x230   : > { %v6936_v21 = vld [vmem:[%s10087_s23 + $0x780] sm:$0xf]  ;;  %v6681_v22 = vor.u32 %v8464_v20, %v6680_v19  ;;  %4423 = vmatpush.bf16.msra.mxu1 %v6425_v18 }
 0x231   : > { %v8528_v23 = vld [vmem:[%s10087_s23 + $0x79c] sm:$0xf0] }
 0x232   : > { %v6136_v24 = vld [vmem:[%s10087_s23 + $0x140] sm:$0xf]  ;;  %v6937_v26 = vor.u32 %v8528_v23, %v6936_v21  ;;  %4436 = vmatpush.bf16.msra.mxu2 %v6681_v22 }
 0x233   : > { %v8328_v25 = vld [vmem:[%s10087_s23 + $0x15c] sm:$0xf0] }
 0x234   : > { %v6392_v27 = vld [vmem:[%s10087_s23 + $0x340] sm:$0xf]  ;;  %v6137_v30 = vor.u32 %v8328_v25, %v6136_v24  ;;  %4449 = vmatpush.bf16.msra.mxu3 %v6937_v26 }
 0x235   : > { %v8392_v28 = vld [vmem:[%s10087_s23 + $0x35c] sm:$0xf0] }
 0x236   : > { %v6648_v29 = vld [vmem:[%s10087_s23 + $0x540] sm:$0xf]  ;;  %v6393_v34 = vor.u32 %v8392_v28, %v6392_v27  ;;  %4411 = vmatpush.bf16.msra.mxu0 %v6137_v30 }
 0x237   : > { %v8456_v31 = vld [vmem:[%s10087_s23 + $0x55c] sm:$0xf0] }
 0x238   : > { %v6904_v32 = vld [vmem:[%s10087_s23 + $0x740] sm:$0xf]  ;;  %v6649_v35 = vor.u32 %v8456_v31, %v6648_v29  ;;  %4424 = vmatpush.bf16.msra.mxu1 %v6393_v34 }
 0x239   : > { %v8520_v33 = vld [vmem:[%s10087_s23 + $0x75c] sm:$0xf0] }
 0x23a   : > { %v6104_v36 = vld [vmem:[%s10087_s23 + $0x100] sm:$0xf]  ;;  %v6905_v39 = vor.u32 %v8520_v33, %v6904_v32  ;;  %4437 = vmatpush.bf16.msra.mxu2 %v6649_v35 }
 0x23b   : > { %v8320_v37 = vld [vmem:[%s10087_s23 + $0x11c] sm:$0xf0] }
 0x23c   : > { %v6360_v38 = vld [vmem:[%s10087_s23 + $0x300] sm:$0xf]  ;;  %v6105_v45 = vor.u32 %v8320_v37, %v6104_v36  ;;  %4450 = vmatpush.bf16.msra.mxu3 %v6905_v39 }
 0x23d   : > { %v8384_v40 = vld [vmem:[%s10087_s23 + $0x31c] sm:$0xf0] }
 0x23e   : > { %v6616_v41 = vld [vmem:[%s10087_s23 + $0x500] sm:$0xf]  ;;  %v6361_v46 = vor.u32 %v8384_v40, %v6360_v38  ;;  %4412 = vmatpush.bf16.msra.mxu0 %v6105_v45 }
 0x23f   : > { %v8448_v42 = vld [vmem:[%s10087_s23 + $0x51c] sm:$0xf0] }
 0x240   : > { %v6872_v43 = vld [vmem:[%s10087_s23 + $0x700] sm:$0xf]  ;;  %v6617_v47 = vor.u32 %v8448_v42, %v6616_v41  ;;  %4425 = vmatpush.bf16.msra.mxu1 %v6361_v46 }
 0x241   : > { %v8512_v44 = vld [vmem:[%s10087_s23 + $0x71c] sm:$0xf0] }
 0x242   : > { %v6072_v48 = vld [vmem:[%s10087_s23 + $0xc0] sm:$0xf]  ;;  %v6873_v51 = vor.u32 %v8512_v44, %v6872_v43  ;;  %4438 = vmatpush.bf16.msra.mxu2 %v6617_v47 }
 0x243   : > { %v8312_v49 = vld [vmem:[%s10087_s23 + $0xdc] sm:$0xf0] }
 0x244   : > { %v6328_v50 = vld [vmem:[%s10087_s23 + $0x2c0] sm:$0xf]  ;;  %v6073_v57 = vor.u32 %v8312_v49, %v6072_v48  ;;  %4451 = vmatpush.bf16.msra.mxu3 %v6873_v51 }
 0x245   : > { %v8376_v52 = vld [vmem:[%s10087_s23 + $0x2dc] sm:$0xf0] }
 0x246   : > { %v6584_v53 = vld [vmem:[%s10087_s23 + $0x4c0] sm:$0xf]  ;;  %v6329_v58 = vor.u32 %v8376_v52, %v6328_v50  ;;  %4413 = vmatpush.bf16.msra.mxu0 %v6073_v57 }
 0x247   : > { %v8440_v54 = vld [vmem:[%s10087_s23 + $0x4dc] sm:$0xf0] }
 0x248   : > { %v6840_v55 = vld [vmem:[%s10087_s23 + $0x6c0] sm:$0xf]  ;;  %v6585_v59 = vor.u32 %v8440_v54, %v6584_v53  ;;  %4426 = vmatpush.bf16.msra.mxu1 %v6329_v58 }
 0x249   : > { %v8504_v56 = vld [vmem:[%s10087_s23 + $0x6dc] sm:$0xf0] }
 0x24a   : > { %v6040_v60 = vld [vmem:[%s10087_s23 + $0x80] sm:$0xf]  ;;  %v6841_v63 = vor.u32 %v8504_v56, %v6840_v55  ;;  %4439 = vmatpush.bf16.msra.mxu2 %v6585_v59 }
 0x24b   : > { %v8304_v61 = vld [vmem:[%s10087_s23 + $0x9c] sm:$0xf0] }
 0x24c   : > { %v6296_v62 = vld [vmem:[%s10087_s23 + $0x280] sm:$0xf]  ;;  %v6041_v5 = vor.u32 %v8304_v61, %v6040_v60  ;;  %4452 = vmatpush.bf16.msra.mxu3 %v6841_v63 }
 0x24d   : > { %v8368_v0 = vld [vmem:[%s10087_s23 + $0x29c] sm:$0xf0] }
 0x24e   : > { %v6552_v1 = vld [vmem:[%s10087_s23 + $0x480] sm:$0xf]  ;;  %v6297_v6 = vor.u32 %v8368_v0, %v6296_v62  ;;  %4414 = vmatpush.bf16.msra.mxu0 %v6041_v5 }
 0x24f   : > { %v8432_v2 = vld [vmem:[%s10087_s23 + $0x49c] sm:$0xf0] }
 0x250   : > { %v6808_v3 = vld [vmem:[%s10087_s23 + $0x680] sm:$0xf]  ;;  %v6553_v7 = vor.u32 %v8432_v2, %v6552_v1  ;;  %4427 = vmatpush.bf16.msra.mxu1 %v6297_v6 }
 0x251   : > { %v8496_v4 = vld [vmem:[%s10087_s23 + $0x69c] sm:$0xf0] }
 0x252   : > { %v6008_v8 = vld [vmem:[%s10087_s23 + $0x40] sm:$0xf]  ;;  %v6809_v11 = vor.u32 %v8496_v4, %v6808_v3  ;;  %4440 = vmatpush.bf16.msra.mxu2 %v6553_v7  ;;  %v1300_v3 = vld [vmem:[%s11386_s0] sm:$0xff] }
 0x253   : > { %v8296_v9 = vld [vmem:[%s10087_s23 + $0x5c] sm:$0xf0]  ;;  %1832 = vst [vmem:[#allocation1] ss:$9 sm:$0xff] %v1300_v3  ;;  %v6202_v3 = vld [vmem:[%s10087_s23 + $0x1e0] sm:$0xf0] }
 0x254   : > { %v6264_v10 = vld [vmem:[%s10087_s23 + $0x240] sm:$0xf]  ;;  %v6009_v17 = vor.u32 %v8296_v9, %v6008_v8  ;;  %4453 = vmatpush.bf16.msra.mxu3 %v6809_v11 }
 0x255   : > { %v8360_v12 = vld [vmem:[%s10087_s23 + $0x25c] sm:$0xf0] }
 0x256   : > { %v6520_v13 = vld [vmem:[%s10087_s23 + $0x440] sm:$0xf]  ;;  %v6265_v20 = vor.u32 %v8360_v12, %v6264_v10  ;;  %4415 = vmatpush.bf16.msra.mxu0 %v6009_v17 }
 0x257   : > { %v8424_v14 = vld [vmem:[%s10087_s23 + $0x45c] sm:$0xf0] }
 0x258   : > { %v6776_v15 = vld [vmem:[%s10087_s23 + $0x640] sm:$0xf]  ;;  %v6521_v21 = vor.u32 %v8424_v14, %v6520_v13  ;;  %4428 = vmatpush.bf16.msra.mxu1 %v6265_v20 }
 0x259   : > { %v8488_v16 = vld [vmem:[%s10087_s23 + $0x65c] sm:$0xf0] }
 0x25a   : > { %v5976_v18 = vld [vmem:[%s10087_s23] sm:$0xf]  ;;  %v6777_v25 = vor.u32 %v8488_v16, %v6776_v15  ;;  %4441 = vmatpush.bf16.msra.mxu2 %v6521_v21 }
 0x25b   : > { %v8288_v19 = vld [vmem:[%s10087_s23 + $0x1c] sm:$0xf0] }
 0x25c   : > { %v6232_v22 = vld [vmem:[%s10087_s23 + $0x200] sm:$0xf]  ;;  %v5977_v32 = vor.u32 %v8288_v19, %v5976_v18  ;;  %4454 = vmatpush.bf16.msra.mxu3 %v6777_v25 }
 0x25d   : > { %v8352_v23 = vld [vmem:[%s10087_s23 + $0x21c] sm:$0xf0] }
 0x25e   : > { %v6488_v24 = vld [vmem:[%s10087_s23 + $0x400] sm:$0xf]  ;;  %v6233_v36 = vor.u32 %v8352_v23, %v6232_v22  ;;  %4416 = vmatpush.bf16.msra.mxu0 %v5977_v32 }
 0x25f   : > { %v8416_v26 = vld [vmem:[%s10087_s23 + $0x41c] sm:$0xf0] }
 0x260   : > { %v6744_v27 = vld [vmem:[%s10087_s23 + $0x600] sm:$0xf]  ;;  %v6489_v37 = vor.u32 %v8416_v26, %v6488_v24  ;;  %4429 = vmatpush.bf16.msra.mxu1 %v6233_v36 }
 0x261   : > { %v8480_v28 = vld [vmem:[%s10087_s23 + $0x61c] sm:$0xf0] }
 0x262   : > { %v7224_v29 = vld [vmem:[%s10087_s23 + $0x9c0] sm:$0xf]  ;;  %v6745_v40 = vor.u32 %v8480_v28, %v6744_v27  ;;  %4442 = vmatpush.bf16.msra.mxu2 %v6489_v37  ;;  %v10198_v28 = vld [vmem:[#allocation1 + $0x12] sm:$0xff] }
 0x263   : > { %v8600_v30 = vld [vmem:[%s10087_s23 + $0x9dc] sm:$0xf0] }
 0x264   : > { %v7480_v31 = vld [vmem:[%s10087_s23 + $0xbc0] sm:$0xf]  ;;  %v7225_v41 = vor.u32 %v8600_v30, %v7224_v29  ;;  %4455 = vmatpush.bf16.msra.mxu3 %v6745_v40  ;;  %v10200_v29 = vld [vmem:[#allocation1] sm:$0xff] }
 0x265   : > { %v8664_v33 = vld [vmem:[%s10087_s23 + $0xbdc] sm:$0xf0]  ;;  %v10202_v30 = vld [vmem:[#allocation1 + $0x1b] sm:$0xff]  ;;  %4443 = vmatmul.bf16.vlgmr.msra.gmra.mxu2 %v10198_v28  ;;  %4417 = vmatmul.bf16.vlgmr.msra.gmra.mxu0 %v10200_v29 }
 0x266   : > { %v7736_v34 = vld [vmem:[%s10087_s23 + $0xdc0] sm:$0xf]  ;;  %v7481_v42 = vor.u32 %v8664_v33, %v7480_v31  ;;  %4461 = vmatpush.bf16.msrb.mxu0 %v7225_v41 }
 0x267   : > { %v8728_v35 = vld [vmem:[%s10087_s23 + $0xddc] sm:$0xf0]  ;;  %4456 = vmatmul.bf16.vlgmr.msra.gmra.mxu3 %v10202_v30 }
 0x268   : > { %v7992_v38 = vld [vmem:[%s10087_s23 + $0xfc0] sm:$0xf]  ;;  %v7737_v43 = vor.u32 %v8728_v35, %v7736_v34  ;;  %4474 = vmatpush.bf16.msrb.mxu1 %v7481_v42 }
 0x269   : > { %v8792_v39 = vld [vmem:[%s10087_s23 + $0xfdc] sm:$0xf0] }
 0x26a   : > { %v7192_v44 = vld [vmem:[%s10087_s23 + $0x980] sm:$0xf]  ;;  %v7993_v47 = vor.u32 %v8792_v39, %v7992_v38  ;;  %4487 = vmatpush.bf16.msrb.mxu2 %v7737_v43 }
 0x26b   : > { %v8592_v45 = vld [vmem:[%s10087_s23 + $0x99c] sm:$0xf0] }
 0x26c   : > { %v7448_v46 = vld [vmem:[%s10087_s23 + $0xb80] sm:$0xf]  ;;  %v7193_v53 = vor.u32 %v8592_v45, %v7192_v44  ;;  %4500 = vmatpush.bf16.msrb.mxu3 %v7993_v47 }
 0x26d   : > { %v8656_v48 = vld [vmem:[%s10087_s23 + $0xb9c] sm:$0xf0] }
 0x26e   : > { %v7704_v49 = vld [vmem:[%s10087_s23 + $0xd80] sm:$0xf]  ;;  %v7449_v54 = vor.u32 %v8656_v48, %v7448_v46  ;;  %4462 = vmatpush.bf16.msrb.mxu0 %v7193_v53 }
 0x26f   : > { %v8720_v50 = vld [vmem:[%s10087_s23 + $0xd9c] sm:$0xf0] }
 0x270   : > { %v7960_v51 = vld [vmem:[%s10087_s23 + $0xf80] sm:$0xf]  ;;  %v7705_v55 = vor.u32 %v8720_v50, %v7704_v49  ;;  %4475 = vmatpush.bf16.msrb.mxu1 %v7449_v54 }
 0x271   : > { %v8784_v52 = vld [vmem:[%s10087_s23 + $0xf9c] sm:$0xf0] }
 0x272   : > { %v7160_v56 = vld [vmem:[%s10087_s23 + $0x940] sm:$0xf]  ;;  %v7961_v59 = vor.u32 %v8784_v52, %v7960_v51  ;;  %4488 = vmatpush.bf16.msrb.mxu2 %v7705_v55 }
 0x273   : > { %v8584_v57 = vld [vmem:[%s10087_s23 + $0x95c] sm:$0xf0] }
 0x274   : > { %v7416_v58 = vld [vmem:[%s10087_s23 + $0xb40] sm:$0xf]  ;;  %v7161_v1 = vor.u32 %v8584_v57, %v7160_v56  ;;  %4501 = vmatpush.bf16.msrb.mxu3 %v7961_v59 }
 0x275   : > { %v8648_v60 = vld [vmem:[%s10087_s23 + $0xb5c] sm:$0xf0] }
 0x276   : > { %v7672_v61 = vld [vmem:[%s10087_s23 + $0xd40] sm:$0xf]  ;;  %v7417_v4 = vor.u32 %v8648_v60, %v7416_v58  ;;  %4463 = vmatpush.bf16.msrb.mxu0 %v7161_v1 }
 0x277   : > { %v8712_v62 = vld [vmem:[%s10087_s23 + $0xd5c] sm:$0xf0] }
 0x278   : > { %v7928_v63 = vld [vmem:[%s10087_s23 + $0xf40] sm:$0xf]  ;;  %v7673_v5 = vor.u32 %v8712_v62, %v7672_v61  ;;  %4476 = vmatpush.bf16.msrb.mxu1 %v7417_v4  ;;  %v8404_v4 = vld [vmem:[%s10087_s23 + $0x3c4] sm:$0xf] }
 0x279   : > { %v8776_v0 = vld [vmem:[%s10087_s23 + $0xf5c] sm:$0xf0] }
 0x27a   : > { %v7128_v2 = vld [vmem:[%s10087_s23 + $0x900] sm:$0xf]  ;;  %v7929_v8 = vor.u32 %v8776_v0, %v7928_v63  ;;  %4489 = vmatpush.bf16.msrb.mxu2 %v7673_v5 }
 0x27b   : > { %v8576_v6 = vld [vmem:[%s10087_s23 + $0x91c] sm:$0xf0] }
 0x27c   : > { %v7384_v7 = vld [vmem:[%s10087_s23 + $0xb00] sm:$0xf]  ;;  %v7129_v14 = vor.u32 %v8576_v6, %v7128_v2  ;;  %4502 = vmatpush.bf16.msrb.mxu3 %v7929_v8  ;;  %v8340_v2 = vld [vmem:[%s10087_s23 + $0x1c4] sm:$0xf] }
 0x27d   : > { %v8640_v9 = vld [vmem:[%s10087_s23 + $0xb1c] sm:$0xf0]  ;;  %v6458_v6 = vld [vmem:[%s10087_s23 + $0x3e0] sm:$0xf0] }
 0x27e   : > { %v7640_v10 = vld [vmem:[%s10087_s23 + $0xd00] sm:$0xf]  ;;  %v7385_v15 = vor.u32 %v8640_v9, %v7384_v7  ;;  %4464 = vmatpush.bf16.msrb.mxu0 %v7129_v14  ;;  %v8468_v7 = vld [vmem:[%s10087_s23 + $0x5c4] sm:$0xf]  ;;  %v6205_v14 = vor.u32 %v8340_v2, %v6202_v3 }
 0x27f   : > { %v8704_v11 = vld [vmem:[%s10087_s23 + $0xd1c] sm:$0xf0]  ;;  %v6714_v8 = vld [vmem:[%s10087_s23 + $0x5e0] sm:$0xf0] }
 0x280   : > { %v7896_v12 = vld [vmem:[%s10087_s23 + $0xf00] sm:$0xf]  ;;  %v7641_v16 = vor.u32 %v8704_v11, %v7640_v10  ;;  %4477 = vmatpush.bf16.msrb.mxu1 %v7385_v15  ;;  %v8532_v11 = vld [vmem:[%s10087_s23 + $0x7c4] sm:$0xf]  ;;  %v6461_v15 = vor.u32 %v8404_v4, %v6458_v6 }
 0x281   : > { %v8768_v13 = vld [vmem:[%s10087_s23 + $0xf1c] sm:$0xf0]  ;;  %v8436_v2 = vld [vmem:[%s10087_s23 + $0x4c4] sm:$0xf] }
 0x282   : > { %v7096_v17 = vld [vmem:[%s10087_s23 + $0x8c0] sm:$0xf]  ;;  %v7897_v20 = vor.u32 %v8768_v13, %v7896_v12  ;;  %4490 = vmatpush.bf16.msrb.mxu2 %v7641_v16  ;;  %v6970_v12 = vld [vmem:[%s10087_s23 + $0x7e0] sm:$0xf0]  ;;  %v6717_v16 = vor.u32 %v8468_v7, %v6714_v8 }
 0x283   : > { %v8568_v18 = vld [vmem:[%s10087_s23 + $0x8dc] sm:$0xf0]  ;;  %v6586_v3 = vld [vmem:[%s10087_s23 + $0x4e0] sm:$0xf0] }
 0x284   : > { %v7352_v19 = vld [vmem:[%s10087_s23 + $0xac0] sm:$0xf]  ;;  %v7097_v27 = vor.u32 %v8568_v18, %v7096_v17  ;;  %4503 = vmatpush.bf16.msrb.mxu3 %v7897_v20  ;;  %v8332_v17 = vld [vmem:[%s10087_s23 + $0x184] sm:$0xf]  ;;  %v6973_v20 = vor.u32 %v8532_v11, %v6970_v12  ;;  %v6589_v8 = vor.u32 %v8436_v2, %v6586_v3 }
 0x285   : > { %v8632_v21 = vld [vmem:[%s10087_s23 + $0xadc] sm:$0xf0]  ;;  %v6170_v18 = vld [vmem:[%s10087_s23 + $0x1a0] sm:$0xf0] }
 0x286   : > { %v7608_v22 = vld [vmem:[%s10087_s23 + $0xcc0] sm:$0xf]  ;;  %v7353_v31 = vor.u32 %v8632_v21, %v7352_v19  ;;  %4465 = vmatpush.bf16.msrb.mxu0 %v7097_v27  ;;  %v8396_v19 = vld [vmem:[%s10087_s23 + $0x384] sm:$0xf]  ;;  %v6173_v27 = vor.u32 %v8332_v17, %v6170_v18 }
 0x287   : > { %v8696_v23 = vld [vmem:[%s10087_s23 + $0xcdc] sm:$0xf0]  ;;  %v6426_v21 = vld [vmem:[%s10087_s23 + $0x3a0] sm:$0xf0] }
 0x288   : > { %v7864_v24 = vld [vmem:[%s10087_s23 + $0xec0] sm:$0xf]  ;;  %v7609_v32 = vor.u32 %v8696_v23, %v7608_v22  ;;  %4478 = vmatpush.bf16.msrb.mxu1 %v7353_v31  ;;  %v8460_v22 = vld [vmem:[%s10087_s23 + $0x584] sm:$0xf] }
 0x289   : > { %v8760_v25 = vld [vmem:[%s10087_s23 + $0xedc] sm:$0xf0]  ;;  %v6682_v23 = vld [vmem:[%s10087_s23 + $0x5a0] sm:$0xf0] }
 0x28a   : > { %v7064_v26 = vld [vmem:[%s10087_s23 + $0x880] sm:$0xf]  ;;  %v7865_v36 = vor.u32 %v8760_v25, %v7864_v24  ;;  %4491 = vmatpush.bf16.msrb.mxu2 %v7609_v32  ;;  %v8524_v24 = vld [vmem:[%s10087_s23 + $0x784] sm:$0xf] }
 0x28b   : > { %v8560_v33 = vld [vmem:[%s10087_s23 + $0x89c] sm:$0xf0]  ;;  %v6938_v25 = vld [vmem:[%s10087_s23 + $0x7a0] sm:$0xf0] }
 0x28c   : > { %v7320_v34 = vld [vmem:[%s10087_s23 + $0xa80] sm:$0xf]  ;;  %v7065_v42 = vor.u32 %v8560_v33, %v7064_v26  ;;  %4504 = vmatpush.bf16.msrb.mxu3 %v7865_v36  ;;  %v10249_v26 = vld [vmem:[#allocation1 + $0x36] sm:$0xff]  ;;  %v8324_v31 = vld [vmem:[%s10087_s23 + $0x144] sm:$0xf]  ;;  %v6685_v36 = vor.u32 %v8460_v22, %v6682_v23 }
 0x28d   : > { %v10206_v35 = vld [vmem:[#allocation1 + $0x9] sm:$0xff]  ;;  %v10254_v33 = vld [vmem:[#allocation1 + $0x3f] sm:$0xff] }
 0x28e   : > { %v8624_v37 = vld [vmem:[%s10087_s23 + $0xa9c] sm:$0xf0]  ;;  %4430 = vmatmul.bf16.vlgmr.msra.gmra.mxu1 %v10206_v35  ;;  %4466 = vmatpush.bf16.msrb.mxu0 %v7065_v42  ;;  %v8452_v42 = vld [vmem:[%s10087_s23 + $0x544] sm:$0xf] }
 0x28f   : > { %v7576_v38 = vld [vmem:[%s10087_s23 + $0xc80] sm:$0xf]  ;;  %v7321_v43 = vor.u32 %v8624_v37, %v7320_v34  ;;  %v6429_v34 = vor.u32 %v8396_v19, %v6426_v21  ;;  %v6138_v37 = vld [vmem:[%s10087_s23 + $0x160] sm:$0xf0] }
 0x290   : > { %v8688_v39 = vld [vmem:[%s10087_s23 + $0xc9c] sm:$0xf0]  ;;  %v8500_v4 = vld [vmem:[%s10087_s23 + $0x6c4] sm:$0xf] }
 0x291   : > { %v7832_v40 = vld [vmem:[%s10087_s23 + $0xe80] sm:$0xf]  ;;  %v7577_v44 = vor.u32 %v8688_v39, %v7576_v38  ;;  %4479 = vmatpush.bf16.msrb.mxu1 %v7321_v43  ;;  %v8388_v38 = vld [vmem:[%s10087_s23 + $0x344] sm:$0xf] }
 0x292   : > { %v8752_v41 = vld [vmem:[%s10087_s23 + $0xe9c] sm:$0xf0]  ;;  %v10258_v39 = vld [vmem:[#allocation1 + $0x2d] sm:$0xff] }
 0x293   : > { %v7032_v45 = vld [vmem:[%s10087_s23 + $0x840] sm:$0xf]  ;;  %v7833_v48 = vor.u32 %v8752_v41, %v7832_v40  ;;  %4492 = vmatpush.bf16.msrb.mxu2 %v7577_v44  ;;  %v6941_v40 = vor.u32 %v8524_v24, %v6938_v25  ;;  %v6394_v41 = vld [vmem:[%s10087_s23 + $0x360] sm:$0xf0] }
 0x294   : > { %v8552_v46 = vld [vmem:[%s10087_s23 + $0x85c] sm:$0xf0]  ;;  %v6650_v43 = vld [vmem:[%s10087_s23 + $0x560] sm:$0xf0] }
 0x295   : > { %v7288_v47 = vld [vmem:[%s10087_s23 + $0xa40] sm:$0xf]  ;;  %v7033_v54 = vor.u32 %v8552_v46, %v7032_v45  ;;  %4505 = vmatpush.bf16.msrb.mxu3 %v7833_v48  ;;  %v8516_v44 = vld [vmem:[%s10087_s23 + $0x744] sm:$0xf]  ;;  %v6141_v46 = vor.u32 %v8324_v31, %v6138_v37  ;;  %v6653_v48 = vor.u32 %v8452_v42, %v6650_v43 }
 0x296   : > { %v8616_v49 = vld [vmem:[%s10087_s23 + $0xa5c] sm:$0xf0]  ;;  %v6906_v45 = vld [vmem:[%s10087_s23 + $0x760] sm:$0xf0] }
 0x297   : > { %v7544_v50 = vld [vmem:[%s10087_s23 + $0xc40] sm:$0xf]  ;;  %v7289_v57 = vor.u32 %v8616_v49, %v7288_v47  ;;  %4467 = vmatpush.bf16.msrb.mxu0 %v7033_v54  ;;  %v6397_v47 = vor.u32 %v8388_v38, %v6394_v41  ;;  %v8316_v49 = vld [vmem:[%s10087_s23 + $0x104] sm:$0xf] }
 0x298   : > { %v8680_v51 = vld [vmem:[%s10087_s23 + $0xc5c] sm:$0xf0]  ;;  %v8444_v54 = vld [vmem:[%s10087_s23 + $0x504] sm:$0xf] }
 0x299   : > { %v7800_v52 = vld [vmem:[%s10087_s23 + $0xe40] sm:$0xf]  ;;  %v7545_v58 = vor.u32 %v8680_v51, %v7544_v50  ;;  %4480 = vmatpush.bf16.msrb.mxu1 %v7289_v57  ;;  %v6106_v50 = vld [vmem:[%s10087_s23 + $0x120] sm:$0xf0] }
 0x29a   : > { %v8744_v53 = vld [vmem:[%s10087_s23 + $0xe5c] sm:$0xf0]  ;;  %v8380_v51 = vld [vmem:[%s10087_s23 + $0x304] sm:$0xf] }
 0x29b   : > { %v7000_v55 = vld [vmem:[%s10087_s23 + $0x800] sm:$0xf]  ;;  %v7801_v62 = vor.u32 %v8744_v53, %v7800_v52  ;;  %4493 = vmatpush.bf16.msrb.mxu2 %v7545_v58  ;;  %v6909_v52 = vor.u32 %v8516_v44, %v6906_v45  ;;  %v6362_v53 = vld [vmem:[%s10087_s23 + $0x320] sm:$0xf0]  ;;  %v6109_v58 = vor.u32 %v8316_v49, %v6106_v50 }
 0x29c   : > { %v8544_v56 = vld [vmem:[%s10087_s23 + $0x81c] sm:$0xf0]  ;;  %v6874_v57 = vld [vmem:[%s10087_s23 + $0x720] sm:$0xf0] }
 0x29d   : > { %v7256_v59 = vld [vmem:[%s10087_s23 + $0xa00] sm:$0xf]  ;;  %v7001_v5 = vor.u32 %v8544_v56, %v7000_v55  ;;  %4506 = vmatpush.bf16.msrb.mxu3 %v7801_v62  ;;  %v6618_v55 = vld [vmem:[%s10087_s23 + $0x520] sm:$0xf0] }
 0x29e   : > { %v8608_v60 = vld [vmem:[%s10087_s23 + $0xa1c] sm:$0xf0]  ;;  %v8508_v56 = vld [vmem:[%s10087_s23 + $0x704] sm:$0xf] }
 0x29f   : > { %v7512_v61 = vld [vmem:[%s10087_s23 + $0xc00] sm:$0xf]  ;;  %v7257_v9 = vor.u32 %v8608_v60, %v7256_v59  ;;  %4468 = vmatpush.bf16.msrb.mxu0 %v7001_v5  ;;  %v6365_v59 = vor.u32 %v8380_v51, %v6362_v53  ;;  %v6621_v60 = vor.u32 %v8444_v54, %v6618_v55  ;;  %v6074_v62 = vld [vmem:[%s10087_s23 + $0xe0] sm:$0xf0] }
 0x2a0   : > { %v8672_v63 = vld [vmem:[%s10087_s23 + $0xc1c] sm:$0xf0]  ;;  %v6842_v5 = vld [vmem:[%s10087_s23 + $0x6e0] sm:$0xf0] }
 0x2a1   : > { %v7768_v0 = vld [vmem:[%s10087_s23 + $0xe00] sm:$0xf]  ;;  %v7513_v10 = vor.u32 %v8672_v63, %v7512_v61  ;;  %4481 = vmatpush.bf16.msrb.mxu1 %v7257_v9  ;;  %v8308_v61 = vld [vmem:[%s10087_s23 + $0xc4] sm:$0xf]  ;;  %v6845_v12 = vor.u32 %v8500_v4, %v6842_v5 }
 0x2a2   : > { %v8736_v1 = vld [vmem:[%s10087_s23 + $0xe1c] sm:$0xf0]  ;;  %v8372_v63 = vld [vmem:[%s10087_s23 + $0x2c4] sm:$0xf]  ;;  %v6077_v6 = vor.u32 %v8308_v61, %v6074_v62 }
 0x2a3   : > { %v7769_v13 = vor.u32 %v8736_v1, %v7768_v0  ;;  %4494 = vmatpush.bf16.msrb.mxu2 %v7513_v10  ;;  %4513 = vmatpush.bf16.msra.mxu0 %v6205_v14  ;;  %v10252_v32 = vld [vmem:[#allocation1 + $0x24] sm:$0xff]  ;;  %v6877_v0 = vor.u32 %v8508_v56, %v6874_v57  ;;  %v6330_v1 = vld [vmem:[%s10087_s23 + $0x2e0] sm:$0xf0] }
 0x2a4   : > { %4469 = vmatmul.bf16.vlgmr.msrb.gmra.mxu0 %v10252_v32  ;;  %4482 = vmatmul.bf16.vlgmr.msrb.gmra.mxu1 %v10258_v39  ;;  %v6333_v7 = vor.u32 %v8372_v63, %v6330_v1  ;;  %v8300_v9 = vld [vmem:[%s10087_s23 + $0x84] sm:$0xf] }
 0x2a5   : > { %4507 = vmatpush.bf16.msrb.mxu3 %v7769_v13  ;;  %4526 = vmatpush.bf16.msra.mxu1 %v6461_v15  ;;  %v6042_v10 = vld [vmem:[%s10087_s23 + $0xa0] sm:$0xf0] }
 0x2a6   : > { %4495 = vmatmul.bf16.vlgmr.msrb.gmra.mxu2 %v10249_v26  ;;  %v8364_v11 = vld [vmem:[%s10087_s23 + $0x284] sm:$0xf]  ;;  %v6045_v18 = vor.u32 %v8300_v9, %v6042_v10 }
 0x2a7   : > { %4539 = vmatpush.bf16.msra.mxu2 %v6717_v16  ;;  %4514 = vmatpush.bf16.msra.mxu0 %v6173_v27  ;;  %v6298_v13 = vld [vmem:[%s10087_s23 + $0x2a0] sm:$0xf0] }
 0x2a8   : > { %4508 = vmatmul.bf16.vlgmr.msrb.gmra.mxu3 %v10254_v33  ;;  %v8428_v14 = vld [vmem:[%s10087_s23 + $0x484] sm:$0xf]  ;;  %v6301_v19 = vor.u32 %v8364_v11, %v6298_v13 }
 0x2a9   : > { %4552 = vmatpush.bf16.msra.mxu3 %v6973_v20  ;;  %4527 = vmatpush.bf16.msra.mxu1 %v6429_v34  ;;  %v6554_v15 = vld [vmem:[%s10087_s23 + $0x4a0] sm:$0xf0] }
 0x2aa   : > { %v8492_v16 = vld [vmem:[%s10087_s23 + $0x684] sm:$0xf]  ;;  %v6557_v20 = vor.u32 %v8428_v14, %v6554_v15 }
 0x2ab   : > { %4540 = vmatpush.bf16.msra.mxu2 %v6685_v36  ;;  %4515 = vmatpush.bf16.msra.mxu0 %v6141_v46  ;;  %v6810_v17 = vld [vmem:[%s10087_s23 + $0x6a0] sm:$0xf0] }
 0x2ac   : > { %v8292_v21 = vld [vmem:[%s10087_s23 + $0x44] sm:$0xf]  ;;  %v6813_v24 = vor.u32 %v8492_v16, %v6810_v17 }
 0x2ad   : > { %4553 = vmatpush.bf16.msra.mxu3 %v6941_v40  ;;  %4528 = vmatpush.bf16.msra.mxu1 %v6397_v47  ;;  %v6010_v22 = vld [vmem:[%s10087_s23 + $0x60] sm:$0xf0] }
 0x2ae   : > { %v8356_v23 = vld [vmem:[%s10087_s23 + $0x244] sm:$0xf]  ;;  %v6013_v37 = vor.u32 %v8292_v21, %v6010_v22 }
 0x2af   : > { %4541 = vmatpush.bf16.msra.mxu2 %v6653_v48  ;;  %4516 = vmatpush.bf16.msra.mxu0 %v6109_v58  ;;  %v6266_v25 = vld [vmem:[%s10087_s23 + $0x260] sm:$0xf0] }
 0x2b0   : > { %v8420_v27 = vld [vmem:[%s10087_s23 + $0x444] sm:$0xf]  ;;  %v6269_v41 = vor.u32 %v8356_v23, %v6266_v25 }
 0x2b1   : > { %4554 = vmatpush.bf16.msra.mxu3 %v6909_v52  ;;  %4529 = vmatpush.bf16.msra.mxu1 %v6365_v59  ;;  %v6522_v31 = vld [vmem:[%s10087_s23 + $0x460] sm:$0xf0] }
 0x2b2   : > { %v8484_v34 = vld [vmem:[%s10087_s23 + $0x644] sm:$0xf]  ;;  %v6525_v42 = vor.u32 %v8420_v27, %v6522_v31 }
 0x2b3   : > { %4542 = vmatpush.bf16.msra.mxu2 %v6621_v60  ;;  %4517 = vmatpush.bf16.msra.mxu0 %v6077_v6  ;;  %v6778_v36 = vld [vmem:[%s10087_s23 + $0x660] sm:$0xf0] }
 0x2b4   : > { %v8284_v38 = vld [vmem:[%s10087_s23 + $0x4] sm:$0xf]  ;;  %v6781_v46 = vor.u32 %v8484_v34, %v6778_v36 }
 0x2b5   : > { %4555 = vmatpush.bf16.msra.mxu3 %v6877_v0  ;;  %4530 = vmatpush.bf16.msra.mxu1 %v6333_v7  ;;  %v5978_v40 = vld [vmem:[%s10087_s23 + $0x20] sm:$0xf0] }
 0x2b6   : > { %v8348_v43 = vld [vmem:[%s10087_s23 + $0x204] sm:$0xf]  ;;  %v5981_v53 = vor.u32 %v8284_v38, %v5978_v40 }
 0x2b7   : > { %4543 = vmatpush.bf16.msra.mxu2 %v6589_v8  ;;  %4518 = vmatpush.bf16.msra.mxu0 %v6045_v18  ;;  %v6234_v44 = vld [vmem:[%s10087_s23 + $0x220] sm:$0xf0] }
 0x2b8   : > { %v8412_v45 = vld [vmem:[%s10087_s23 + $0x404] sm:$0xf]  ;;  %v6237_v57 = vor.u32 %v8348_v43, %v6234_v44 }
 0x2b9   : > { %4556 = vmatpush.bf16.msra.mxu3 %v6845_v12  ;;  %4531 = vmatpush.bf16.msra.mxu1 %v6301_v19  ;;  %v6490_v47 = vld [vmem:[%s10087_s23 + $0x420] sm:$0xf0] }
 0x2ba   : > { %v8476_v48 = vld [vmem:[%s10087_s23 + $0x604] sm:$0xf]  ;;  %v6493_v58 = vor.u32 %v8412_v45, %v6490_v47 }
 0x2bb   : > { %4544 = vmatpush.bf16.msra.mxu2 %v6557_v20  ;;  %v6746_v49 = vld [vmem:[%s10087_s23 + $0x620] sm:$0xf0]  ;;  %4519 = vmatpush.bf16.msra.mxu0 %v6013_v37 }
 0x2bc   : > { %v8596_v50 = vld [vmem:[%s10087_s23 + $0x9c4] sm:$0xf]  ;;  %v6749_v61 = vor.u32 %v8476_v48, %v6746_v49 }
 0x2bd   : > { %4557 = vmatpush.bf16.msra.mxu3 %v6813_v24  ;;  %v7226_v51 = vld [vmem:[%s10087_s23 + $0x9e0] sm:$0xf0]  ;;  %4532 = vmatpush.bf16.msra.mxu1 %v6269_v41 }
 0x2be   : > { %v8660_v52 = vld [vmem:[%s10087_s23 + $0xbc4] sm:$0xf]  ;;  %v7229_v62 = vor.u32 %v8596_v50, %v7226_v51 }
 0x2bf   : > { %v7482_v54 = vld [vmem:[%s10087_s23 + $0xbe0] sm:$0xf0]  ;;  %4545 = vmatpush.bf16.msra.mxu2 %v6525_v42  ;;  %4520 = vmatpush.bf16.msra.mxu0 %v5981_v53 }
 0x2c0   : > { %v8724_v55 = vld [vmem:[%s10087_s23 + $0xdc4] sm:$0xf]  ;;  %v7485_v63 = vor.u32 %v8660_v52, %v7482_v54 }
 0x2c1   : > { %v7738_v56 = vld [vmem:[%s10087_s23 + $0xde0] sm:$0xf0]  ;;  %4558 = vmatpush.bf16.msra.mxu3 %v6781_v46  ;;  %4533 = vmatpush.bf16.msra.mxu1 %v6237_v57 }
 0x2c2   : > { %v8788_v59 = vld [vmem:[%s10087_s23 + $0xfc4] sm:$0xf]  ;;  %v7741_v0 = vor.u32 %v8724_v55, %v7738_v56  ;;  %4521 = vmatmul.bf16.vlgmr.msra.gmra.mxu0 %v10200_v29 }
 0x2c3   : > { %v7994_v60 = vld [vmem:[%s10087_s23 + $0xfe0] sm:$0xf0]  ;;  %4546 = vmatpush.bf16.msra.mxu2 %v6493_v58  ;;  %4565 = vmatpush.bf16.msrb.mxu0 %v7229_v62 }
 0x2c4   : > { %v8588_v1 = vld [vmem:[%s10087_s23 + $0x984] sm:$0xf]  ;;  %v7997_v4 = vor.u32 %v8788_v59, %v7994_v60  ;;  %4534 = vmatmul.bf16.vlgmr.msra.gmra.mxu1 %v10206_v35 }
 0x2c5   : > { %v7194_v2 = vld [vmem:[%s10087_s23 + $0x9a0] sm:$0xf0]  ;;  %4559 = vmatpush.bf16.msra.mxu3 %v6749_v61  ;;  %4578 = vmatpush.bf16.msrb.mxu1 %v7485_v63 }
 0x2c6   : > { %v8652_v3 = vld [vmem:[%s10087_s23 + $0xb84] sm:$0xf]  ;;  %v7197_v10 = vor.u32 %v8588_v1, %v7194_v2  ;;  %4547 = vmatmul.bf16.vlgmr.msra.gmra.mxu2 %v10198_v28 }
 0x2c7   : > { %v7450_v5 = vld [vmem:[%s10087_s23 + $0xba0] sm:$0xf0]  ;;  %4591 = vmatpush.bf16.msrb.mxu2 %v7741_v0 }
 0x2c8   : > { %v8716_v6 = vld [vmem:[%s10087_s23 + $0xd84] sm:$0xf]  ;;  %v7453_v11 = vor.u32 %v8652_v3, %v7450_v5  ;;  %4560 = vmatmul.bf16.vlgmr.msra.gmra.mxu3 %v10202_v30  ;;  %4566 = vmatpush.bf16.msrb.mxu0 %v7197_v10 }
 0x2c9   : > { %v7706_v7 = vld [vmem:[%s10087_s23 + $0xda0] sm:$0xf0]  ;;  %4604 = vmatpush.bf16.msrb.mxu3 %v7997_v4 }
 0x2ca   : > { %v8780_v8 = vld [vmem:[%s10087_s23 + $0xf84] sm:$0xf]  ;;  %v7709_v12 = vor.u32 %v8716_v6, %v7706_v7  ;;  %4579 = vmatpush.bf16.msrb.mxu1 %v7453_v11 }
 0x2cb   : > { %v7962_v9 = vld [vmem:[%s10087_s23 + $0xfa0] sm:$0xf0] }
 0x2cc   : > { %v8580_v13 = vld [vmem:[%s10087_s23 + $0x944] sm:$0xf]  ;;  %v7965_v16 = vor.u32 %v8780_v8, %v7962_v9  ;;  %4592 = vmatpush.bf16.msrb.mxu2 %v7709_v12 }
 0x2cd   : > { %v7162_v14 = vld [vmem:[%s10087_s23 + $0x960] sm:$0xf0] }
 0x2ce   : > { %v8644_v15 = vld [vmem:[%s10087_s23 + $0xb44] sm:$0xf]  ;;  %v7165_v22 = vor.u32 %v8580_v13, %v7162_v14  ;;  %4605 = vmatpush.bf16.msrb.mxu3 %v7965_v16 }
 0x2cf   : > { %v7418_v17 = vld [vmem:[%s10087_s23 + $0xb60] sm:$0xf0] }
 0x2d0   : > { %v8708_v18 = vld [vmem:[%s10087_s23 + $0xd44] sm:$0xf]  ;;  %v7421_v23 = vor.u32 %v8644_v15, %v7418_v17  ;;  %4567 = vmatpush.bf16.msrb.mxu0 %v7165_v22 }
 0x2d1   : > { %v7674_v19 = vld [vmem:[%s10087_s23 + $0xd60] sm:$0xf0] }
 0x2d2   : > { %v8772_v20 = vld [vmem:[%s10087_s23 + $0xf44] sm:$0xf]  ;;  %v7677_v24 = vor.u32 %v8708_v18, %v7674_v19  ;;  %4580 = vmatpush.bf16.msrb.mxu1 %v7421_v23 }
 0x2d3   : > { %v7930_v21 = vld [vmem:[%s10087_s23 + $0xf60] sm:$0xf0] }
 0x2d4   : > { %v8572_v25 = vld [vmem:[%s10087_s23 + $0x904] sm:$0xf]  ;;  %v7933_v34 = vor.u32 %v8772_v20, %v7930_v21  ;;  %4593 = vmatpush.bf16.msrb.mxu2 %v7677_v24 }
 0x2d5   : > { %v7130_v27 = vld [vmem:[%s10087_s23 + $0x920] sm:$0xf0] }
 0x2d6   : > { %v8636_v31 = vld [vmem:[%s10087_s23 + $0xb04] sm:$0xf]  ;;  %v7133_v42 = vor.u32 %v8572_v25, %v7130_v27  ;;  %4606 = vmatpush.bf16.msrb.mxu3 %v7933_v34  ;;  %v6208_v27 = vld [vmem:[%s10087_s23 + $0x1c8] sm:$0xf] }
 0x2d7   : > { %v7386_v36 = vld [vmem:[%s10087_s23 + $0xb20] sm:$0xf0]  ;;  %v6464_v34 = vld [vmem:[%s10087_s23 + $0x3c8] sm:$0xf] }
 0x2d8   : > { %v8700_v37 = vld [vmem:[%s10087_s23 + $0xd04] sm:$0xf]  ;;  %v7389_v43 = vor.u32 %v8636_v31, %v7386_v36  ;;  %4568 = vmatpush.bf16.msrb.mxu0 %v7133_v42  ;;  %v8345_v31 = vld [vmem:[%s10087_s23 + $0x1e4] sm:$0xf0] }
 0x2d9   : > { %v7642_v38 = vld [vmem:[%s10087_s23 + $0xd20] sm:$0xf0] }
 0x2da   : > { %v8764_v40 = vld [vmem:[%s10087_s23 + $0xf04] sm:$0xf]  ;;  %v7645_v44 = vor.u32 %v8700_v37, %v7642_v38  ;;  %4581 = vmatpush.bf16.msrb.mxu1 %v7389_v43  ;;  %v8409_v37 = vld [vmem:[%s10087_s23 + $0x3e4] sm:$0xf0] }
 0x2db   : > { %v7898_v41 = vld [vmem:[%s10087_s23 + $0xf20] sm:$0xf0]  ;;  %v6720_v38 = vld [vmem:[%s10087_s23 + $0x5c8] sm:$0xf] }
 0x2dc   : > { %v8564_v45 = vld [vmem:[%s10087_s23 + $0x8c4] sm:$0xf]  ;;  %v7901_v48 = vor.u32 %v8764_v40, %v7898_v41  ;;  %4594 = vmatpush.bf16.msrb.mxu2 %v7645_v44  ;;  %v8473_v40 = vld [vmem:[%s10087_s23 + $0x5e4] sm:$0xf0] }
 0x2dd   : > { %v7098_v46 = vld [vmem:[%s10087_s23 + $0x8e0] sm:$0xf0]  ;;  %v6976_v43 = vld [vmem:[%s10087_s23 + $0x7c8] sm:$0xf] }
 0x2de   : > { %v8628_v47 = vld [vmem:[%s10087_s23 + $0xac4] sm:$0xf]  ;;  %v7101_v54 = vor.u32 %v8564_v45, %v7098_v46  ;;  %4607 = vmatpush.bf16.msrb.mxu3 %v7901_v48  ;;  %v8537_v44 = vld [vmem:[%s10087_s23 + $0x7e4] sm:$0xf0]  ;;  %v6209_v46 = vor.u32 %v8345_v31, %v6208_v27  ;;  %v6721_v48 = vor.u32 %v8473_v40, %v6720_v38 }
 0x2df   : > { %v7354_v49 = vld [vmem:[%s10087_s23 + $0xae0] sm:$0xf0]  ;;  %v6304_v38 = vld [vmem:[%s10087_s23 + $0x288] sm:$0xf] }
 0x2e0   : > { %v8692_v50 = vld [vmem:[%s10087_s23 + $0xcc4] sm:$0xf]  ;;  %v7357_v55 = vor.u32 %v8628_v47, %v7354_v49  ;;  %4569 = vmatpush.bf16.msrb.mxu0 %v7101_v54  ;;  %v6465_v47 = vor.u32 %v8409_v37, %v6464_v34  ;;  %v6176_v49 = vld [vmem:[%s10087_s23 + $0x188] sm:$0xf] }
 0x2e1   : > { %v7610_v51 = vld [vmem:[%s10087_s23 + $0xce0] sm:$0xf0]  ;;  %v6688_v54 = vld [vmem:[%s10087_s23 + $0x588] sm:$0xf] }
 0x2e2   : > { %v8756_v52 = vld [vmem:[%s10087_s23 + $0xec4] sm:$0xf]  ;;  %v7613_v56 = vor.u32 %v8692_v50, %v7610_v51  ;;  %4582 = vmatpush.bf16.msrb.mxu1 %v7357_v55  ;;  %v8337_v50 = vld [vmem:[%s10087_s23 + $0x1a4] sm:$0xf0] }
 0x2e3   : > { %v7866_v53 = vld [vmem:[%s10087_s23 + $0xee0] sm:$0xf0]  ;;  %v6432_v51 = vld [vmem:[%s10087_s23 + $0x388] sm:$0xf] }
 0x2e4   : > { %v8556_v57 = vld [vmem:[%s10087_s23 + $0x884] sm:$0xf]  ;;  %v7869_v60 = vor.u32 %v8756_v52, %v7866_v53  ;;  %4595 = vmatpush.bf16.msrb.mxu2 %v7613_v56  ;;  %v6977_v52 = vor.u32 %v8537_v44, %v6976_v43  ;;  %v8401_v53 = vld [vmem:[%s10087_s23 + $0x3a4] sm:$0xf0] }
 0x2e5   : > { %v7066_v58 = vld [vmem:[%s10087_s23 + $0x8a0] sm:$0xf0]  ;;  %v8465_v55 = vld [vmem:[%s10087_s23 + $0x5a4] sm:$0xf0] }
 0x2e6   : > { %v8620_v59 = vld [vmem:[%s10087_s23 + $0xa84] sm:$0xf]  ;;  %v7069_v2 = vor.u32 %v8556_v57, %v7066_v58  ;;  %4608 = vmatpush.bf16.msrb.mxu3 %v7869_v60  ;;  %v6944_v56 = vld [vmem:[%s10087_s23 + $0x788] sm:$0xf]  ;;  %v6177_v58 = vor.u32 %v8337_v50, %v6176_v49  ;;  %v6689_v60 = vor.u32 %v8465_v55, %v6688_v54 }
 0x2e7   : > { %v7322_v61 = vld [vmem:[%s10087_s23 + $0xaa0] sm:$0xf0]  ;;  %v8529_v57 = vld [vmem:[%s10087_s23 + $0x7a4] sm:$0xf0] }
 0x2e8   : > { %v8684_v62 = vld [vmem:[%s10087_s23 + $0xc84] sm:$0xf]  ;;  %v7325_v3 = vor.u32 %v8620_v59, %v7322_v61  ;;  %4570 = vmatpush.bf16.msrb.mxu0 %v7069_v2  ;;  %v6433_v59 = vor.u32 %v8401_v53, %v6432_v51  ;;  %v6144_v61 = vld [vmem:[%s10087_s23 + $0x148] sm:$0xf] }
 0x2e9   : > { %v7578_v63 = vld [vmem:[%s10087_s23 + $0xca0] sm:$0xf0]  ;;  %v6656_v2 = vld [vmem:[%s10087_s23 + $0x548] sm:$0xf] }
 0x2ea   : > { %v8748_v0 = vld [vmem:[%s10087_s23 + $0xe84] sm:$0xf]  ;;  %v7581_v4 = vor.u32 %v8684_v62, %v7578_v63  ;;  %4583 = vmatpush.bf16.msrb.mxu1 %v7325_v3  ;;  %v8329_v62 = vld [vmem:[%s10087_s23 + $0x164] sm:$0xf0] }
 0x2eb   : > { %v7834_v1 = vld [vmem:[%s10087_s23 + $0xea0] sm:$0xf0]  ;;  %v6400_v63 = vld [vmem:[%s10087_s23 + $0x348] sm:$0xf] }
 0x2ec   : > { %v8548_v5 = vld [vmem:[%s10087_s23 + $0x844] sm:$0xf]  ;;  %v7837_v8 = vor.u32 %v8748_v0, %v7834_v1  ;;  %4596 = vmatpush.bf16.msrb.mxu2 %v7581_v4  ;;  %v6945_v0 = vor.u32 %v8529_v57, %v6944_v56  ;;  %v8393_v1 = vld [vmem:[%s10087_s23 + $0x364] sm:$0xf0] }
 0x2ed   : > { %v7034_v6 = vld [vmem:[%s10087_s23 + $0x860] sm:$0xf0]  ;;  %v8457_v3 = vld [vmem:[%s10087_s23 + $0x564] sm:$0xf0] }
 0x2ee   : > { %v8612_v7 = vld [vmem:[%s10087_s23 + $0xa44] sm:$0xf]  ;;  %v7037_v14 = vor.u32 %v8548_v5, %v7034_v6  ;;  %4609 = vmatpush.bf16.msrb.mxu3 %v7837_v8  ;;  %v6912_v4 = vld [vmem:[%s10087_s23 + $0x748] sm:$0xf]  ;;  %v6145_v6 = vor.u32 %v8329_v62, %v6144_v61 }
 0x2ef   : > { %v7290_v9 = vld [vmem:[%s10087_s23 + $0xa60] sm:$0xf0]  ;;  %v8521_v5 = vld [vmem:[%s10087_s23 + $0x764] sm:$0xf0] }
 0x2f0   : > { %v8676_v10 = vld [vmem:[%s10087_s23 + $0xc44] sm:$0xf]  ;;  %v7293_v17 = vor.u32 %v8612_v7, %v7290_v9  ;;  %4571 = vmatpush.bf16.msrb.mxu0 %v7037_v14  ;;  %v6657_v7 = vor.u32 %v8457_v3, %v6656_v2  ;;  %v6112_v8 = vld [vmem:[%s10087_s23 + $0x108] sm:$0xf] }
 0x2f1   : > { %v7546_v11 = vld [vmem:[%s10087_s23 + $0xc60] sm:$0xf0]  ;;  %v8321_v9 = vld [vmem:[%s10087_s23 + $0x124] sm:$0xf0] }
 0x2f2   : > { %v8740_v12 = vld [vmem:[%s10087_s23 + $0xe44] sm:$0xf]  ;;  %v7549_v18 = vor.u32 %v8676_v10, %v7546_v11  ;;  %4584 = vmatpush.bf16.msrb.mxu1 %v7293_v17  ;;  %v6368_v10 = vld [vmem:[%s10087_s23 + $0x308] sm:$0xf]  ;;  %v6113_v14 = vor.u32 %v8321_v9, %v6112_v8 }
 0x2f3   : > { %v7802_v13 = vld [vmem:[%s10087_s23 + $0xe60] sm:$0xf0]  ;;  %v8385_v11 = vld [vmem:[%s10087_s23 + $0x324] sm:$0xf0] }
 0x2f4   : > { %v8540_v15 = vld [vmem:[%s10087_s23 + $0x804] sm:$0xf]  ;;  %v7805_v22 = vor.u32 %v8740_v12, %v7802_v13  ;;  %4597 = vmatpush.bf16.msrb.mxu2 %v7549_v18  ;;  %v8449_v12 = vld [vmem:[%s10087_s23 + $0x524] sm:$0xf0] }
 0x2f5   : > { %v7002_v16 = vld [vmem:[%s10087_s23 + $0x820] sm:$0xf0]  ;;  %v6880_v13 = vld [vmem:[%s10087_s23 + $0x708] sm:$0xf] }
 0x2f6   : > { %v8604_v19 = vld [vmem:[%s10087_s23 + $0xa04] sm:$0xf]  ;;  %v7005_v36 = vor.u32 %v8540_v15, %v7002_v16  ;;  %4610 = vmatpush.bf16.msrb.mxu3 %v7805_v22  ;;  %v6369_v15 = vor.u32 %v8385_v11, %v6368_v10  ;;  %v6080_v17 = vld [vmem:[%s10087_s23 + $0xc8] sm:$0xf] }
 0x2f7   : > { %v7258_v20 = vld [vmem:[%s10087_s23 + $0xa20] sm:$0xf0]  ;;  %v8313_v18 = vld [vmem:[%s10087_s23 + $0xe4] sm:$0xf0] }
 0x2f8   : > { %v8668_v21 = vld [vmem:[%s10087_s23 + $0xc04] sm:$0xf]  ;;  %v7261_v41 = vor.u32 %v8604_v19, %v7258_v20  ;;  %4572 = vmatpush.bf16.msrb.mxu0 %v7005_v36  ;;  %v6336_v19 = vld [vmem:[%s10087_s23 + $0x2c8] sm:$0xf]  ;;  %v6081_v27 = vor.u32 %v8313_v18, %v6080_v17 }
 0x2f9   : > { %v7514_v23 = vld [vmem:[%s10087_s23 + $0xc20] sm:$0xf0]  ;;  %v6592_v22 = vld [vmem:[%s10087_s23 + $0x4c8] sm:$0xf] }
 0x2fa   : > { %v8732_v24 = vld [vmem:[%s10087_s23 + $0xe04] sm:$0xf]  ;;  %v7517_v42 = vor.u32 %v8668_v21, %v7514_v23  ;;  %4585 = vmatpush.bf16.msrb.mxu1 %v7261_v41  ;;  %v8377_v21 = vld [vmem:[%s10087_s23 + $0x2e4] sm:$0xf0] }
 0x2fb   : > { %v7770_v25 = vld [vmem:[%s10087_s23 + $0xe20] sm:$0xf0]  ;;  %4573 = vmatmul.bf16.vlgmr.msrb.gmra.mxu0 %v10252_v32  ;;  %v6913_v32 = vor.u32 %v8521_v5, %v6912_v4  ;;  %v8441_v23 = vld [vmem:[%s10087_s23 + $0x4e4] sm:$0xf0]  ;;  %v6337_v31 = vor.u32 %v8377_v21, %v6336_v19 }
 0x2fc   : > { %v7773_v45 = vor.u32 %v8732_v24, %v7770_v25  ;;  %4598 = vmatpush.bf16.msrb.mxu2 %v7517_v42  ;;  %4617 = vmatpush.bf16.msra.mxu0 %v6209_v46  ;;  %v6848_v24 = vld [vmem:[%s10087_s23 + $0x6c8] sm:$0xf]  ;;  %v6593_v34 = vor.u32 %v8441_v23, %v6592_v22 }
 0x2fd   : > { %4586 = vmatmul.bf16.vlgmr.msrb.gmra.mxu1 %v10258_v39  ;;  %v8513_v39 = vld [vmem:[%s10087_s23 + $0x724] sm:$0xf0] }
 0x2fe   : > { %4611 = vmatpush.bf16.msrb.mxu3 %v7773_v45  ;;  %4630 = vmatpush.bf16.msra.mxu1 %v6465_v47  ;;  %v6881_v20 = vor.u32 %v8513_v39, %v6880_v13  ;;  %v8505_v25 = vld [vmem:[%s10087_s23 + $0x6e4] sm:$0xf0] }
 0x2ff   : > { %4599 = vmatmul.bf16.vlgmr.msrb.gmra.mxu2 %v10249_v26  ;;  %v6401_v26 = vor.u32 %v8393_v1, %v6400_v63  ;;  %v6048_v36 = vld [vmem:[%s10087_s23 + $0x88] sm:$0xf]  ;;  %v6849_v40 = vor.u32 %v8505_v25, %v6848_v24 }
 0x300   : > { %4643 = vmatpush.bf16.msra.mxu2 %v6721_v48  ;;  %4618 = vmatpush.bf16.msra.mxu0 %v6177_v58  ;;  %v8305_v37 = vld [vmem:[%s10087_s23 + $0xa4] sm:$0xf0] }
 0x301   : > { %4612 = vmatmul.bf16.vlgmr.msrb.gmra.mxu3 %v10254_v33  ;;  %v6624_v33 = vld [vmem:[%s10087_s23 + $0x508] sm:$0xf]  ;;  %v6049_v46 = vor.u32 %v8305_v37, %v6048_v36 }
 0x302   : > { %4656 = vmatpush.bf16.msra.mxu3 %v6977_v52  ;;  %4631 = vmatpush.bf16.msra.mxu1 %v6433_v59  ;;  %v6625_v16 = vor.u32 %v8449_v12, %v6624_v33  ;;  %v8369_v41 = vld [vmem:[%s10087_s23 + $0x2a4] sm:$0xf0] }
 0x303   : > { %v6560_v42 = vld [vmem:[%s10087_s23 + $0x488] sm:$0xf]  ;;  %v6305_v47 = vor.u32 %v8369_v41, %v6304_v38 }
 0x304   : > { %4644 = vmatpush.bf16.msra.mxu2 %v6689_v60  ;;  %4619 = vmatpush.bf16.msra.mxu0 %v6145_v6  ;;  %v8433_v43 = vld [vmem:[%s10087_s23 + $0x4a4] sm:$0xf0] }
 0x305   : > { %v6816_v44 = vld [vmem:[%s10087_s23 + $0x688] sm:$0xf]  ;;  %v6561_v48 = vor.u32 %v8433_v43, %v6560_v42 }
 0x306   : > { %4657 = vmatpush.bf16.msra.mxu3 %v6945_v0  ;;  %4632 = vmatpush.bf16.msra.mxu1 %v6401_v26  ;;  %v8497_v45 = vld [vmem:[%s10087_s23 + $0x6a4] sm:$0xf0] }
 0x307   : > { %v6016_v49 = vld [vmem:[%s10087_s23 + $0x48] sm:$0xf]  ;;  %v6817_v52 = vor.u32 %v8497_v45, %v6816_v44 }
 0x308   : > { %4645 = vmatpush.bf16.msra.mxu2 %v6657_v7  ;;  %4620 = vmatpush.bf16.msra.mxu0 %v6113_v14  ;;  %v8297_v50 = vld [vmem:[%s10087_s23 + $0x64] sm:$0xf0] }
 0x309   : > { %v6272_v51 = vld [vmem:[%s10087_s23 + $0x248] sm:$0xf]  ;;  %v6017_v58 = vor.u32 %v8297_v50, %v6016_v49 }
 0x30a   : > { %4658 = vmatpush.bf16.msra.mxu3 %v6913_v32  ;;  %4633 = vmatpush.bf16.msra.mxu1 %v6369_v15  ;;  %v8361_v53 = vld [vmem:[%s10087_s23 + $0x264] sm:$0xf0] }
 0x30b   : > { %v6528_v54 = vld [vmem:[%s10087_s23 + $0x448] sm:$0xf]  ;;  %v6273_v61 = vor.u32 %v8361_v53, %v6272_v51 }
 0x30c   : > { %4646 = vmatpush.bf16.msra.mxu2 %v6625_v16  ;;  %4621 = vmatpush.bf16.msra.mxu0 %v6081_v27  ;;  %v8425_v55 = vld [vmem:[%s10087_s23 + $0x464] sm:$0xf0] }
 0x30d   : > { %v6784_v56 = vld [vmem:[%s10087_s23 + $0x648] sm:$0xf]  ;;  %v6529_v62 = vor.u32 %v8425_v55, %v6528_v54 }
 0x30e   : > { %4659 = vmatpush.bf16.msra.mxu3 %v6881_v20  ;;  %4634 = vmatpush.bf16.msra.mxu1 %v6337_v31  ;;  %v8489_v57 = vld [vmem:[%s10087_s23 + $0x664] sm:$0xf0] }
 0x30f   : > { %v5984_v59 = vld [vmem:[%s10087_s23 + $0x8] sm:$0xf]  ;;  %v6785_v2 = vor.u32 %v8489_v57, %v6784_v56 }
 0x310   : > { %4647 = vmatpush.bf16.msra.mxu2 %v6593_v34  ;;  %4622 = vmatpush.bf16.msra.mxu0 %v6049_v46  ;;  %v8289_v60 = vld [vmem:[%s10087_s23 + $0x24] sm:$0xf0] }
 0x311   : > { %v6240_v63 = vld [vmem:[%s10087_s23 + $0x208] sm:$0xf]  ;;  %v5985_v8 = vor.u32 %v8289_v60, %v5984_v59 }
 0x312   : > { %4660 = vmatpush.bf16.msra.mxu3 %v6849_v40  ;;  %4635 = vmatpush.bf16.msra.mxu1 %v6305_v47  ;;  %v8353_v0 = vld [vmem:[%s10087_s23 + $0x224] sm:$0xf0] }
 0x313   : > { %v6496_v1 = vld [vmem:[%s10087_s23 + $0x408] sm:$0xf]  ;;  %v6241_v11 = vor.u32 %v8353_v0, %v6240_v63 }
 0x314   : > { %4648 = vmatpush.bf16.msra.mxu2 %v6561_v48  ;;  %v8417_v3 = vld [vmem:[%s10087_s23 + $0x424] sm:$0xf0]  ;;  %4623 = vmatpush.bf16.msra.mxu0 %v6017_v58 }
 0x315   : > { %v6752_v4 = vld [vmem:[%s10087_s23 + $0x608] sm:$0xf]  ;;  %v6497_v33 = vor.u32 %v8417_v3, %v6496_v1 }
 0x316   : > { %4661 = vmatpush.bf16.msra.mxu3 %v6817_v52  ;;  %v8481_v5 = vld [vmem:[%s10087_s23 + $0x624] sm:$0xf0]  ;;  %4636 = vmatpush.bf16.msra.mxu1 %v6273_v61 }
 0x317   : > { %v7232_v6 = vld [vmem:[%s10087_s23 + $0x9c8] sm:$0xf]  ;;  %v6753_v39 = vor.u32 %v8481_v5, %v6752_v4 }
 0x318   : > { %v8601_v26 = vld [vmem:[%s10087_s23 + $0x9e4] sm:$0xf0]  ;;  %4649 = vmatpush.bf16.msra.mxu2 %v6529_v62  ;;  %4624 = vmatpush.bf16.msra.mxu0 %v5985_v8 }
 0x319   : > { %v7488_v7 = vld [vmem:[%s10087_s23 + $0xbc8] sm:$0xf]  ;;  %v7233_v14 = vor.u32 %v8601_v26, %v7232_v6 }
 0x31a   : > { %v8665_v9 = vld [vmem:[%s10087_s23 + $0xbe4] sm:$0xf0]  ;;  %4662 = vmatpush.bf16.msra.mxu3 %v6785_v2  ;;  %4637 = vmatpush.bf16.msra.mxu1 %v6241_v11 }
 0x31b   : > { %v7744_v10 = vld [vmem:[%s10087_s23 + $0xdc8] sm:$0xf]  ;;  %v7489_v15 = vor.u32 %v8665_v9, %v7488_v7  ;;  %4625 = vmatmul.bf16.vlgmr.msra.gmra.mxu0 %v10200_v29 }
 0x31c   : > { %v8729_v32 = vld [vmem:[%s10087_s23 + $0xde4] sm:$0xf0]  ;;  %4650 = vmatpush.bf16.msra.mxu2 %v6497_v33  ;;  %4669 = vmatpush.bf16.msrb.mxu0 %v7233_v14 }
 0x31d   : > { %v8000_v12 = vld [vmem:[%s10087_s23 + $0xfc8] sm:$0xf]  ;;  %v7745_v16 = vor.u32 %v8729_v32, %v7744_v10  ;;  %4638 = vmatmul.bf16.vlgmr.msra.gmra.mxu1 %v10206_v35  ;;  %v10496_v32 = vld [vmem:[%s10080_s14] sm:$0xff] }
 0x31e   : > { %v8793_v13 = vld [vmem:[%s10087_s23 + $0xfe4] sm:$0xf0]  ;;  %4663 = vmatpush.bf16.msra.mxu3 %v6753_v39  ;;  %4682 = vmatpush.bf16.msrb.mxu1 %v7489_v15 }
 0x31f   : > { %v7200_v17 = vld [vmem:[%s10087_s23 + $0x988] sm:$0xf]  ;;  %v8001_v20 = vor.u32 %v8793_v13, %v8000_v12  ;;  %4651 = vmatmul.bf16.vlgmr.msra.gmra.mxu2 %v10198_v28 }
 0x320   : > { %v8593_v18 = vld [vmem:[%s10087_s23 + $0x9a4] sm:$0xf0]  ;;  %4695 = vmatpush.bf16.msrb.mxu2 %v7745_v16 }
 0x321   : > { %v7456_v19 = vld [vmem:[%s10087_s23 + $0xb88] sm:$0xf]  ;;  %v7201_v27 = vor.u32 %v8593_v18, %v7200_v17  ;;  %4664 = vmatmul.bf16.vlgmr.msra.gmra.mxu3 %v10202_v30  ;;  %v1815_v17 = vperm.slane %v10496_v32, 0 }
 0x322   : > { %v8657_v21 = vld [vmem:[%s10087_s23 + $0xba4] sm:$0xf0]  ;;  %4708 = vmatpush.bf16.msrb.mxu3 %v8001_v20 }
 0x323   : > { %v7712_v22 = vld [vmem:[%s10087_s23 + $0xd88] sm:$0xf]  ;;  %v7457_v31 = vor.u32 %v8657_v21, %v7456_v19  ;;  %4670 = vmatpush.bf16.msrb.mxu0 %v7201_v27 }
 0x324   : > { %v8721_v23 = vld [vmem:[%s10087_s23 + $0xda4] sm:$0xf0] }
 0x325   : > { %v7968_v24 = vld [vmem:[%s10087_s23 + $0xf88] sm:$0xf]  ;;  %v7713_v34 = vor.u32 %v8721_v23, %v7712_v22  ;;  %4683 = vmatpush.bf16.msrb.mxu1 %v7457_v31  ;;  %v4418_v31 = vpop.f32.mrf.mxu0 }
 0x326   : > { %v8785_v25 = vld [vmem:[%s10087_s23 + $0xfa4] sm:$0xf0] }
 0x327   : > { %v7168_v36 = vld [vmem:[%s10087_s23 + $0x948] sm:$0xf]  ;;  %v7969_v40 = vor.u32 %v8785_v25, %v7968_v24  ;;  %4696 = vmatpush.bf16.msrb.mxu2 %v7713_v34 }
 0x328   : > { %v8585_v37 = vld [vmem:[%s10087_s23 + $0x964] sm:$0xf0] }
 0x329   : > { %v7424_v38 = vld [vmem:[%s10087_s23 + $0xb48] sm:$0xf]  ;;  %v7169_v46 = vor.u32 %v8585_v37, %v7168_v36  ;;  %4709 = vmatpush.bf16.msrb.mxu3 %v7969_v40 }
 0x32a   : > { %v8649_v41 = vld [vmem:[%s10087_s23 + $0xb64] sm:$0xf0] }
 0x32b   : > { %v7680_v42 = vld [vmem:[%s10087_s23 + $0xd48] sm:$0xf]  ;;  %v7425_v47 = vor.u32 %v8649_v41, %v7424_v38  ;;  %4671 = vmatpush.bf16.msrb.mxu0 %v7169_v46  ;;  %v4419_v41 = vadd.f32 %v4418_v31, %v1815_v17  ;;  %v6658_v17 = vld [vmem:[%s10087_s23 + $0x568] sm:$0xf0] }
 0x32c   : > { %v8713_v43 = vld [vmem:[%s10087_s23 + $0xd64] sm:$0xf0] }
 0x32d   : > { %v7936_v44 = vld [vmem:[%s10087_s23 + $0xf48] sm:$0xf]  ;;  %v7681_v48 = vor.u32 %v8713_v43, %v7680_v42  ;;  %4684 = vmatpush.bf16.msrb.mxu1 %v7425_v47  ;;  %v4431_v42 = vpop.f32.mrf.mxu1  ;;  %v8341_v47 = vld [vmem:[%s10087_s23 + $0x1cc] sm:$0xf] }
 0x32e   : > { %v8777_v45 = vld [vmem:[%s10087_s23 + $0xf64] sm:$0xf0] }
 0x32f   : > { %v7136_v28 = vld [vmem:[%s10087_s23 + $0x908] sm:$0xf]  ;;  %v7937_v29 = vor.u32 %v8777_v45, %v7936_v44  ;;  %4697 = vmatpush.bf16.msrb.mxu2 %v7681_v48  ;;  %v6210_v48 = vld [vmem:[%s10087_s23 + $0x1e8] sm:$0xf0] }
 0x330   : > { %v8577_v49 = vld [vmem:[%s10087_s23 + $0x924] sm:$0xf0] }
 0x331   : > { %v7392_v50 = vld [vmem:[%s10087_s23 + $0xb08] sm:$0xf]  ;;  %v7137_v54 = vor.u32 %v8577_v49, %v7136_v28  ;;  %4710 = vmatpush.bf16.msrb.mxu3 %v7937_v29  ;;  %v8405_v28 = vld [vmem:[%s10087_s23 + $0x3cc] sm:$0xf]  ;;  %v4432_v49 = vadd.f32 %v4431_v42, %v4419_v41 }
 0x332   : > { %v8641_v51 = vld [vmem:[%s10087_s23 + $0xb24] sm:$0xf0]  ;;  %v6466_v29 = vld [vmem:[%s10087_s23 + $0x3e8] sm:$0xf0] }
 0x333   : > { %v7648_v30 = vld [vmem:[%s10087_s23 + $0xd08] sm:$0xf]  ;;  %v7393_v55 = vor.u32 %v8641_v51, %v7392_v50  ;;  %4672 = vmatpush.bf16.msrb.mxu0 %v7137_v54  ;;  %v8469_v51 = vld [vmem:[%s10087_s23 + $0x5cc] sm:$0xf] }
 0x334   : > { %v8705_v52 = vld [vmem:[%s10087_s23 + $0xd24] sm:$0xf0]  ;;  %v6978_v54 = vld [vmem:[%s10087_s23 + $0x7e8] sm:$0xf0] }
 0x335   : > { %v7904_v53 = vld [vmem:[%s10087_s23 + $0xf08] sm:$0xf]  ;;  %v7649_v56 = vor.u32 %v8705_v52, %v7648_v30  ;;  %4685 = vmatpush.bf16.msrb.mxu1 %v7393_v55  ;;  %v6722_v30 = vld [vmem:[%s10087_s23 + $0x5e8] sm:$0xf0]  ;;  %v4444_v55 = vpop.f32.mrf.mxu2 }
 0x336   : > { %v8769_v35 = vld [vmem:[%s10087_s23 + $0xf24] sm:$0xf0]  ;;  %v8445_v41 = vld [vmem:[%s10087_s23 + $0x50c] sm:$0xf] }
 0x337   : > { %v7104_v57 = vld [vmem:[%s10087_s23 + $0x8c8] sm:$0xf]  ;;  %v7905_v60 = vor.u32 %v8769_v35, %v7904_v53  ;;  %4698 = vmatpush.bf16.msrb.mxu2 %v7649_v56  ;;  %v8533_v35 = vld [vmem:[%s10087_s23 + $0x7cc] sm:$0xf] }
 0x338   : > { %v8569_v58 = vld [vmem:[%s10087_s23 + $0x8e4] sm:$0xf0]  ;;  %v6626_v42 = vld [vmem:[%s10087_s23 + $0x528] sm:$0xf0] }
 0x339   : > { %v7360_v59 = vld [vmem:[%s10087_s23 + $0xac8] sm:$0xf]  ;;  %v7105_v2 = vor.u32 %v8569_v58, %v7104_v57  ;;  %4711 = vmatpush.bf16.msrb.mxu3 %v7905_v60  ;;  %v6213_v57 = vor.u32 %v8341_v47, %v6210_v48  ;;  %v4445_v58 = vadd.f32 %v4444_v55, %v4432_v49  ;;  %v6469_v60 = vor.u32 %v8405_v28, %v6466_v29  ;;  %v8309_v28 = vld [vmem:[%s10087_s23 + $0xcc] sm:$0xf] }
 0x33a   : > { %v8633_v61 = vld [vmem:[%s10087_s23 + $0xae4] sm:$0xf0]  ;;  %v6629_v48 = vor.u32 %v8445_v41, %v6626_v42  ;;  %v6082_v49 = vld [vmem:[%s10087_s23 + $0xe8] sm:$0xf0] }
 0x33b   : > { %v7616_v62 = vld [vmem:[%s10087_s23 + $0xcc8] sm:$0xf]  ;;  %v7361_v4 = vor.u32 %v8633_v61, %v7360_v59  ;;  %4673 = vmatpush.bf16.msrb.mxu0 %v7105_v2  ;;  %v4457_v59 = vpop.f32.mrf.mxu3  ;;  %v6725_v61 = vor.u32 %v8469_v51, %v6722_v30  ;;  %v6434_v2 = vld [vmem:[%s10087_s23 + $0x3a8] sm:$0xf0] }
 0x33c   : > { %v8697_v63 = vld [vmem:[%s10087_s23 + $0xce4] sm:$0xf0]  ;;  %v6850_v55 = vld [vmem:[%s10087_s23 + $0x6e8] sm:$0xf0] }
 0x33d   : > { %v7872_v0 = vld [vmem:[%s10087_s23 + $0xec8] sm:$0xf]  ;;  %v7617_v5 = vor.u32 %v8697_v63, %v7616_v62  ;;  %4686 = vmatpush.bf16.msrb.mxu1 %v7361_v4  ;;  %v8333_v62 = vld [vmem:[%s10087_s23 + $0x18c] sm:$0xf] }
 0x33e   : > { %v8761_v1 = vld [vmem:[%s10087_s23 + $0xee4] sm:$0xf0]  ;;  %v6178_v63 = vld [vmem:[%s10087_s23 + $0x1a8] sm:$0xf0] }
 0x33f   : > { %v7072_v3 = vld [vmem:[%s10087_s23 + $0x888] sm:$0xf]  ;;  %v7873_v8 = vor.u32 %v8761_v1, %v7872_v0  ;;  %4699 = vmatpush.bf16.msrb.mxu2 %v7617_v5  ;;  %v8397_v0 = vld [vmem:[%s10087_s23 + $0x38c] sm:$0xf]  ;;  %v6981_v1 = vor.u32 %v8533_v35, %v6978_v54  ;;  %v4458_v5 = vadd.f32 %v4457_v59, %v4445_v58 }
 0x340   : > { %v8561_v6 = vld [vmem:[%s10087_s23 + $0x8a4] sm:$0xf0]  ;;  %v6690_v4 = vld [vmem:[%s10087_s23 + $0x5a8] sm:$0xf0] }
 0x341   : > { %v7328_v26 = vld [vmem:[%s10087_s23 + $0xa88] sm:$0xf]  ;;  %v7073_v12 = vor.u32 %v8561_v6, %v7072_v3  ;;  %4712 = vmatpush.bf16.msrb.mxu3 %v7873_v8  ;;  %v8461_v3 = vld [vmem:[%s10087_s23 + $0x58c] sm:$0xf]  ;;  %v4420_v6 = vpop.f32.mrf.mxu0  ;;  %v4433_v8 = vpop.f32.mrf.mxu1 }
 0x342   : > { %v8625_v7 = vld [vmem:[%s10087_s23 + $0xaa4] sm:$0xf0]  ;;  %v6594_v35 = vld [vmem:[%s10087_s23 + $0x4e8] sm:$0xf0] }
 0x343   : > { %v7584_v9 = vld [vmem:[%s10087_s23 + $0xc88] sm:$0xf]  ;;  %v7329_v39 = vor.u32 %v8625_v7, %v7328_v26  ;;  %4674 = vmatpush.bf16.msrb.mxu0 %v7073_v12  ;;  %v8525_v26 = vld [vmem:[%s10087_s23 + $0x78c] sm:$0xf] }
 0x344   : > { %v8689_v10 = vld [vmem:[%s10087_s23 + $0xca4] sm:$0xf0]  ;;  %v6946_v7 = vld [vmem:[%s10087_s23 + $0x7a8] sm:$0xf0] }
 0x345   : > { %v7840_v11 = vld [vmem:[%s10087_s23 + $0xe88] sm:$0xf]  ;;  %v7585_v14 = vor.u32 %v8689_v10, %v7584_v9  ;;  %4687 = vmatpush.bf16.msrb.mxu1 %v7329_v39  ;;  %v6181_v9 = vor.u32 %v8333_v62, %v6178_v63  ;;  %v6437_v10 = vor.u32 %v8397_v0, %v6434_v2  ;;  %v6146_v12 = vld [vmem:[%s10087_s23 + $0x168] sm:$0xf0]  ;;  %v6949_v39 = vor.u32 %v8525_v26, %v6946_v7 }
 0x346   : > { %v8753_v33 = vld [vmem:[%s10087_s23 + $0xea4] sm:$0xf0]  ;;  %v8501_v54 = vld [vmem:[%s10087_s23 + $0x6cc] sm:$0xf] }
 0x347   : > { %v7040_v13 = vld [vmem:[%s10087_s23 + $0x848] sm:$0xf]  ;;  %v7841_v18 = vor.u32 %v8753_v33, %v7840_v11  ;;  %4700 = vmatpush.bf16.msrb.mxu2 %v7585_v14  ;;  %v6693_v11 = vor.u32 %v8461_v3, %v6690_v4  ;;  %v8325_v33 = vld [vmem:[%s10087_s23 + $0x14c] sm:$0xf]  ;;  %v6853_v0 = vor.u32 %v8501_v54, %v6850_v55 }
 0x348   : > { %v8553_v15 = vld [vmem:[%s10087_s23 + $0x864] sm:$0xf0]  ;;  %v10536_v14 = vld [vmem:[#allocation1 + $0x36] sm:$0xff] }
 0x349   : > { %v7296_v16 = vld [vmem:[%s10087_s23 + $0xa48] sm:$0xf]  ;;  %v7041_v24 = vor.u32 %v8553_v15, %v7040_v13  ;;  %4713 = vmatpush.bf16.msrb.mxu3 %v7841_v18  ;;  %v8389_v13 = vld [vmem:[%s10087_s23 + $0x34c] sm:$0xf]  ;;  %v4483_v51 = vpop.f32.mrf.mxu1 }
 0x34a   : > { %v8617_v19 = vld [vmem:[%s10087_s23 + $0xa64] sm:$0xf0]  ;;  %v6402_v15 = vld [vmem:[%s10087_s23 + $0x368] sm:$0xf0] }
 0x34b   : > { %v7552_v20 = vld [vmem:[%s10087_s23 + $0xc48] sm:$0xf]  ;;  %v7297_v34 = vor.u32 %v8617_v19, %v7296_v16  ;;  %4675 = vmatpush.bf16.msrb.mxu0 %v7041_v24  ;;  %v8453_v16 = vld [vmem:[%s10087_s23 + $0x54c] sm:$0xf] }
 0x34c   : > { %v8681_v21 = vld [vmem:[%s10087_s23 + $0xc64] sm:$0xf0]  ;;  %v8517_v18 = vld [vmem:[%s10087_s23 + $0x74c] sm:$0xf]  ;;  %v6661_v31 = vor.u32 %v8453_v16, %v6658_v17 }
 0x34d   : > { %v7808_v22 = vld [vmem:[%s10087_s23 + $0xe48] sm:$0xf]  ;;  %v7553_v36 = vor.u32 %v8681_v21, %v7552_v20  ;;  %4688 = vmatpush.bf16.msrb.mxu1 %v7297_v34  ;;  %v6914_v19 = vld [vmem:[%s10087_s23 + $0x768] sm:$0xf0]  ;;  %v10544_v20 = vld [vmem:[#allocation1 + $0x24] sm:$0xff] }
 0x34e   : > { %v8745_v23 = vld [vmem:[%s10087_s23 + $0xe64] sm:$0xf0]  ;;  %v10547_v21 = vld [vmem:[#allocation1 + $0x3f] sm:$0xff]  ;;  %v8317_v34 = vld [vmem:[%s10087_s23 + $0x10c] sm:$0xf] }
 0x34f   : > { %v7008_v25 = vld [vmem:[%s10087_s23 + $0x808] sm:$0xf]  ;;  %v7809_v43 = vor.u32 %v8745_v23, %v7808_v22  ;;  %4701 = vmatpush.bf16.msrb.mxu2 %v7553_v36  ;;  %v4446_v22 = vpop.f32.mrf.mxu2  ;;  %v6149_v23 = vor.u32 %v8325_v33, %v6146_v12  ;;  %v6114_v36 = vld [vmem:[%s10087_s23 + $0x128] sm:$0xf0] }
 0x350   : > { %v8545_v27 = vld [vmem:[%s10087_s23 + $0x824] sm:$0xf0]  ;;  %v8365_v62 = vld [vmem:[%s10087_s23 + $0x28c] sm:$0xf] }
 0x351   : > { %v7264_v37 = vld [vmem:[%s10087_s23 + $0xa08] sm:$0xf]  ;;  %v7009_v50 = vor.u32 %v8545_v27, %v7008_v25  ;;  %4714 = vmatpush.bf16.msrb.mxu3 %v7809_v43  ;;  %v4459_v25 = vpop.f32.mrf.mxu3  ;;  %v6405_v27 = vor.u32 %v8389_v13, %v6402_v15  ;;  %v8509_v43 = vld [vmem:[%s10087_s23 + $0x70c] sm:$0xf] }
 0x352   : > { %v8609_v38 = vld [vmem:[%s10087_s23 + $0xa24] sm:$0xf0]  ;;  %v8429_v2 = vld [vmem:[%s10087_s23 + $0x48c] sm:$0xf] }
 0x353   : > { %v7520_v40 = vld [vmem:[%s10087_s23 + $0xc08] sm:$0xf]  ;;  %v7265_v52 = vor.u32 %v8609_v38, %v7264_v37  ;;  %4676 = vmatpush.bf16.msrb.mxu0 %v7009_v50  ;;  %v8381_v37 = vld [vmem:[%s10087_s23 + $0x30c] sm:$0xf]  ;;  %v6917_v38 = vor.u32 %v8517_v18, %v6914_v19 }
 0x354   : > { %v8673_v44 = vld [vmem:[%s10087_s23 + $0xc24] sm:$0xf0]  ;;  %v8373_v50 = vld [vmem:[%s10087_s23 + $0x2cc] sm:$0xf] }
 0x355   : > { %v7776_v45 = vld [vmem:[%s10087_s23 + $0xe08] sm:$0xf]  ;;  %v7521_v53 = vor.u32 %v8673_v44, %v7520_v40  ;;  %4689 = vmatpush.bf16.msrb.mxu1 %v7265_v52  ;;  %v6370_v40 = vld [vmem:[%s10087_s23 + $0x328] sm:$0xf0] }
 0x356   : > { %v8737_v46 = vld [vmem:[%s10087_s23 + $0xe24] sm:$0xf0]  ;;  %4677 = vmatmul.bf16.vlgmr.msrb.gmra.mxu0 %v10544_v20  ;;  %v6882_v44 = vld [vmem:[%s10087_s23 + $0x728] sm:$0xf0]  ;;  %v6373_v47 = vor.u32 %v8381_v37, %v6370_v40 }
 0x357   : > { %v7777_v56 = vor.u32 %v8737_v46, %v7776_v45  ;;  %4702 = vmatpush.bf16.msrb.mxu2 %v7521_v53  ;;  %4721 = vmatpush.bf16.msra.mxu0 %v6213_v57  ;;  %v10550_v24 = vld [vmem:[#allocation1 + $0x2d] sm:$0xff]  ;;  %v6117_v45 = vor.u32 %v8317_v34, %v6114_v36  ;;  %v4470_v46 = vpop.f32.mrf.mxu0  ;;  %v6885_v30 = vor.u32 %v8509_v43, %v6882_v44  ;;  %v4496_v63 = vpop.f32.mrf.mxu2 }
 0x358   : > { %4690 = vmatmul.bf16.vlgmr.msrb.gmra.mxu1 %v10550_v24  ;;  %v4471_v29 = vadd.f32 %v4470_v46, %v4458_v5  ;;  %v6338_v52 = vld [vmem:[%s10087_s23 + $0x2e8] sm:$0xf0]  ;;  %v6085_v57 = vor.u32 %v8309_v28, %v6082_v49 }
 0x359   : > { %4715 = vmatpush.bf16.msrb.mxu3 %v7777_v56  ;;  %4734 = vmatpush.bf16.msra.mxu1 %v6469_v60  ;;  %v8437_v53 = vld [vmem:[%s10087_s23 + $0x4cc] sm:$0xf]  ;;  %v6341_v58 = vor.u32 %v8373_v50, %v6338_v52  ;;  %v4509_v5 = vpop.f32.mrf.mxu3 }
 0x35a   : > { %4703 = vmatmul.bf16.vlgmr.msrb.gmra.mxu2 %v10536_v14  ;;  %v4484_v56 = vadd.f32 %v4483_v51, %v4471_v29  ;;  %v6597_v59 = vor.u32 %v8437_v53, %v6594_v35  ;;  %v8301_v60 = vld [vmem:[%s10087_s23 + $0x8c] sm:$0xf] }
 0x35b   : > { %4747 = vmatpush.bf16.msra.mxu2 %v6725_v61  ;;  %4722 = vmatpush.bf16.msra.mxu0 %v6181_v9  ;;  %v6050_v61 = vld [vmem:[%s10087_s23 + $0xa8] sm:$0xf0] }
 0x35c   : > { %4716 = vmatmul.bf16.vlgmr.msrb.gmra.mxu3 %v10547_v21  ;;  %v6562_v3 = vld [vmem:[%s10087_s23 + $0x4a8] sm:$0xf0]  ;;  %v4497_v4 = vadd.f32 %v4496_v63, %v4484_v56  ;;  %v6053_v7 = vor.u32 %v8301_v60, %v6050_v61 }
 0x35d   : > { %4760 = vmatpush.bf16.msra.mxu3 %v6981_v1  ;;  %4735 = vmatpush.bf16.msra.mxu1 %v6437_v10  ;;  %v6306_v1 = vld [vmem:[%s10087_s23 + $0x2a8] sm:$0xf0] }
 0x35e   : > { %v8493_v6 = vld [vmem:[%s10087_s23 + $0x68c] sm:$0xf]  ;;  %v10577_v8 = vadd.f32 %v4509_v5, %v4497_v4  ;;  %v6309_v10 = vor.u32 %v8365_v62, %v6306_v1 }
 0x35f   : > { %4748 = vmatpush.bf16.msra.mxu2 %v6693_v11  ;;  %4723 = vmatpush.bf16.msra.mxu0 %v6149_v23  ;;  %v6818_v26 = vld [vmem:[%s10087_s23 + $0x6a8] sm:$0xf0]  ;;  %v4472_v9 = vpop.f32.mrf.mxu0  ;;  %v6565_v11 = vor.u32 %v8429_v2, %v6562_v3  ;;  %v4498_v40 = vpop.f32.mrf.mxu2 }
 0x360   : > { %v8293_v33 = vld [vmem:[%s10087_s23 + $0x4c] sm:$0xf]  ;;  %v6821_v15 = vor.u32 %v8493_v6, %v6818_v26 }
 0x361   : > { %4761 = vmatpush.bf16.msra.mxu3 %v6949_v39  ;;  %4736 = vmatpush.bf16.msra.mxu1 %v6405_v27  ;;  %v6018_v12 = vld [vmem:[%s10087_s23 + $0x68] sm:$0xf0]  ;;  %v4485_v39 = vpop.f32.mrf.mxu1 }
 0x362   : > { %v8357_v13 = vld [vmem:[%s10087_s23 + $0x24c] sm:$0xf]  ;;  %v6021_v23 = vor.u32 %v8293_v33, %v6018_v12  ;;  %v10622_v39 = vld [vmem:[#allocation1] sm:$0xff] }
 0x363   : > { %4749 = vmatpush.bf16.msra.mxu2 %v6661_v31  ;;  %4724 = vmatpush.bf16.msra.mxu0 %v6117_v45  ;;  %v6274_v16 = vld [vmem:[%s10087_s23 + $0x268] sm:$0xf0]  ;;  %v4511_v45 = vpop.f32.mrf.mxu3 }
 0x364   : > { %v8421_v17 = vld [vmem:[%s10087_s23 + $0x44c] sm:$0xf]  ;;  %v6277_v31 = vor.u32 %v8357_v13, %v6274_v16 }
 0x365   : > { %4762 = vmatpush.bf16.msra.mxu3 %v6917_v38  ;;  %4737 = vmatpush.bf16.msra.mxu1 %v6373_v47  ;;  %v6530_v18 = vld [vmem:[%s10087_s23 + $0x468] sm:$0xf0] }
 0x366   : > { %v8485_v19 = vld [vmem:[%s10087_s23 + $0x64c] sm:$0xf]  ;;  %v6533_v34 = vor.u32 %v8421_v17, %v6530_v18  ;;  %v10629_v18 = vld [vmem:[#allocation1 + $0x9] sm:$0xff] }
 0x367   : > { %4750 = vmatpush.bf16.msra.mxu2 %v6629_v48  ;;  %4725 = vmatpush.bf16.msra.mxu0 %v6085_v57  ;;  %v6786_v22 = vld [vmem:[%s10087_s23 + $0x668] sm:$0xf0] }
 0x368   : > { %v8285_v25 = vld [vmem:[%s10087_s23 + $0xc] sm:$0xf]  ;;  %v6789_v41 = vor.u32 %v8485_v19, %v6786_v22 }
 0x369   : > { %4763 = vmatpush.bf16.msra.mxu3 %v6885_v30  ;;  %4738 = vmatpush.bf16.msra.mxu1 %v6341_v58  ;;  %v5986_v27 = vld [vmem:[%s10087_s23 + $0x28] sm:$0xf0] }
 0x36a   : > { %v8349_v36 = vld [vmem:[%s10087_s23 + $0x20c] sm:$0xf]  ;;  %v5989_v28 = vor.u32 %v8285_v25, %v5986_v27  ;;  %v1816_v27 = vperm.slane %v10496_v32, 1 }
 0x36b   : > { %4751 = vmatpush.bf16.msra.mxu2 %v6597_v59  ;;  %4726 = vmatpush.bf16.msra.mxu0 %v6053_v7  ;;  %v6242_v37 = vld [vmem:[%s10087_s23 + $0x228] sm:$0xf0] }
 0x36c   : > { %v8413_v38 = vld [vmem:[%s10087_s23 + $0x40c] sm:$0xf]  ;;  %v6245_v51 = vor.u32 %v8349_v36, %v6242_v37 }
 0x36d   : > { %4764 = vmatpush.bf16.msra.mxu3 %v6853_v0  ;;  %4739 = vmatpush.bf16.msra.mxu1 %v6309_v10  ;;  %v6498_v42 = vld [vmem:[%s10087_s23 + $0x428] sm:$0xf0] }
 0x36e   : > { %v8477_v43 = vld [vmem:[%s10087_s23 + $0x60c] sm:$0xf]  ;;  %v6501_v30 = vor.u32 %v8413_v38, %v6498_v42  ;;  %v4522_v42 = vpop.f32.mrf.mxu0 }
 0x36f   : > { %4752 = vmatpush.bf16.msra.mxu2 %v6565_v11  ;;  %v6754_v44 = vld [vmem:[%s10087_s23 + $0x628] sm:$0xf0]  ;;  %4727 = vmatpush.bf16.msra.mxu0 %v6021_v23 }
 0x370   : > { %v8597_v46 = vld [vmem:[%s10087_s23 + $0x9cc] sm:$0xf]  ;;  %v6757_v35 = vor.u32 %v8477_v43, %v6754_v44 }
 0x371   : > { %4765 = vmatpush.bf16.msra.mxu3 %v6821_v15  ;;  %v7234_v47 = vld [vmem:[%s10087_s23 + $0x9e8] sm:$0xf0]  ;;  %4740 = vmatpush.bf16.msra.mxu1 %v6277_v31  ;;  %v10625_v15 = vld [vmem:[#allocation1 + $0x1b] sm:$0xff] }
 0x372   : > { %v8661_v48 = vld [vmem:[%s10087_s23 + $0xbcc] sm:$0xf]  ;;  %v7237_v54 = vor.u32 %v8597_v46, %v7234_v47  ;;  %v4523_v47 = vadd.f32 %v4522_v42, %v1816_v27 }
 0x373   : > { %v7490_v49 = vld [vmem:[%s10087_s23 + $0xbe8] sm:$0xf0]  ;;  %4753 = vmatpush.bf16.msra.mxu2 %v6533_v34  ;;  %4728 = vmatpush.bf16.msra.mxu0 %v5989_v28 }
 0x374   : > { %v8725_v50 = vld [vmem:[%s10087_s23 + $0xdcc] sm:$0xf]  ;;  %v7493_v55 = vor.u32 %v8661_v48, %v7490_v49  ;;  %v4535_v48 = vpop.f32.mrf.mxu1 }
 0x375   : > { %v7746_v29 = vld [vmem:[%s10087_s23 + $0xde8] sm:$0xf0]  ;;  %4766 = vmatpush.bf16.msra.mxu3 %v6789_v41  ;;  %4741 = vmatpush.bf16.msra.mxu1 %v6245_v51 }
 0x376   : > { %v8789_v52 = vld [vmem:[%s10087_s23 + $0xfcc] sm:$0xf]  ;;  %v7749_v56 = vor.u32 %v8725_v50, %v7746_v29  ;;  %4729 = vmatmul.bf16.vlgmr.msra.gmra.mxu0 %v10622_v39 }
 0x377   : > { %v8002_v53 = vld [vmem:[%s10087_s23 + $0xfe8] sm:$0xf0]  ;;  %4754 = vmatpush.bf16.msra.mxu2 %v6501_v30  ;;  %4773 = vmatpush.bf16.msrb.mxu0 %v7237_v54 }
 0x378   : > { %v8589_v57 = vld [vmem:[%s10087_s23 + $0x98c] sm:$0xf]  ;;  %v8005_v60 = vor.u32 %v8789_v52, %v8002_v53  ;;  %4742 = vmatmul.bf16.vlgmr.msra.gmra.mxu1 %v10629_v18  ;;  %v4536_v52 = vadd.f32 %v4535_v48, %v4523_v47  ;;  %v6472_v47 = vld [vmem:[%s10087_s23 + $0x3d0] sm:$0xf] }
 0x379   : > { %v7202_v58 = vld [vmem:[%s10087_s23 + $0x9a8] sm:$0xf0]  ;;  %4767 = vmatpush.bf16.msra.mxu3 %v6757_v35  ;;  %4786 = vmatpush.bf16.msrb.mxu1 %v7493_v55 }
 0x37a   : > { %v8653_v59 = vld [vmem:[%s10087_s23 + $0xb8c] sm:$0xf]  ;;  %v7205_v2 = vor.u32 %v8589_v57, %v7202_v58  ;;  %v4548_v58 = vpop.f32.mrf.mxu2 }
 0x37b   : > { %v7458_v61 = vld [vmem:[%s10087_s23 + $0xba8] sm:$0xf0]  ;;  %4799 = vmatpush.bf16.msrb.mxu2 %v7749_v56 }
 0x37c   : > { %v8717_v62 = vld [vmem:[%s10087_s23 + $0xd8c] sm:$0xf]  ;;  %v7461_v3 = vor.u32 %v8653_v59, %v7458_v61  ;;  %4768 = vmatmul.bf16.vlgmr.msra.gmra.mxu3 %v10625_v15  ;;  %4774 = vmatpush.bf16.msrb.mxu0 %v7205_v2 }
 0x37d   : > { %v7714_v63 = vld [vmem:[%s10087_s23 + $0xda8] sm:$0xf0]  ;;  %4812 = vmatpush.bf16.msrb.mxu3 %v8005_v60 }
 0x37e   : > { %v8781_v0 = vld [vmem:[%s10087_s23 + $0xf8c] sm:$0xf]  ;;  %v7717_v4 = vor.u32 %v8717_v62, %v7714_v63  ;;  %4787 = vmatpush.bf16.msrb.mxu1 %v7461_v3  ;;  %v4549_v63 = vadd.f32 %v4548_v58, %v4536_v52  ;;  %v8538_v52 = vld [vmem:[%s10087_s23 + $0x7ec] sm:$0xf0] }
 0x37f   : > { %v7970_v1 = vld [vmem:[%s10087_s23 + $0xfa8] sm:$0xf0]  ;;  %v6440_v58 = vld [vmem:[%s10087_s23 + $0x390] sm:$0xf] }
 0x380   : > { %v8581_v5 = vld [vmem:[%s10087_s23 + $0x94c] sm:$0xf]  ;;  %v7973_v7 = vor.u32 %v8781_v0, %v7970_v1  ;;  %4800 = vmatpush.bf16.msrb.mxu2 %v7717_v4  ;;  %v4561_v0 = vpop.f32.mrf.mxu3 }
 0x381   : > { %v7170_v6 = vld [vmem:[%s10087_s23 + $0x968] sm:$0xf0]  ;;  %v10656_v4 = vadd.f32 %v4561_v0, %v4549_v63  ;;  %v6952_v63 = vld [vmem:[%s10087_s23 + $0x790] sm:$0xf] }
 0x382   : > { %v8645_v26 = vld [vmem:[%s10087_s23 + $0xb4c] sm:$0xf]  ;;  %v7173_v16 = vor.u32 %v8581_v5, %v7170_v6  ;;  %4813 = vmatpush.bf16.msrb.mxu3 %v7973_v7  ;;  %v4524_v5 = vpop.f32.mrf.mxu0  ;;  %v8530_v0 = vld [vmem:[%s10087_s23 + $0x7ac] sm:$0xf0] }
 0x383   : > { %v7426_v9 = vld [vmem:[%s10087_s23 + $0xb68] sm:$0xf0]  ;;  %v6152_v5 = vld [vmem:[%s10087_s23 + $0x150] sm:$0xf] }
 0x384   : > { %v8709_v10 = vld [vmem:[%s10087_s23 + $0xd4c] sm:$0xf]  ;;  %v7429_v19 = vor.u32 %v8645_v26, %v7426_v9  ;;  %4775 = vmatpush.bf16.msrb.mxu0 %v7173_v16 }
 0x385   : > { %v7682_v11 = vld [vmem:[%s10087_s23 + $0xd68] sm:$0xf0] }
 0x386   : > { %v10617_v33 = vld [vmem:[#allocation1 + $0x12] sm:$0xff]  ;;  %v7685_v22 = vor.u32 %v8709_v10, %v7682_v11  ;;  %4788 = vmatpush.bf16.msrb.mxu1 %v7429_v19  ;;  %v4537_v11 = vpop.f32.mrf.mxu1 }
 0x387   : > { %4755 = vmatmul.bf16.vlgmr.msra.gmra.mxu2 %v10617_v33  ;;  %v8773_v12 = vld [vmem:[%s10087_s23 + $0xf4c] sm:$0xf]  ;;  %v8458_v11 = vld [vmem:[%s10087_s23 + $0x56c] sm:$0xf0] }
 0x388   : > { %v7938_v13 = vld [vmem:[%s10087_s23 + $0xf68] sm:$0xf0]  ;;  %4801 = vmatpush.bf16.msrb.mxu2 %v7685_v22 }
 0x389   : > { %v8573_v17 = vld [vmem:[%s10087_s23 + $0x90c] sm:$0xf]  ;;  %v7941_v31 = vor.u32 %v8773_v12, %v7938_v13 }
 0x38a   : > { %v7138_v23 = vld [vmem:[%s10087_s23 + $0x928] sm:$0xf0] }
 0x38b   : > { %v8637_v25 = vld [vmem:[%s10087_s23 + $0xb0c] sm:$0xf]  ;;  %v7141_v41 = vor.u32 %v8573_v17, %v7138_v23  ;;  %4814 = vmatpush.bf16.msrb.mxu3 %v7941_v31 }
 0x38c   : > { %v7394_v34 = vld [vmem:[%s10087_s23 + $0xb28] sm:$0xf0] }
 0x38d   : > { %v8701_v36 = vld [vmem:[%s10087_s23 + $0xd0c] sm:$0xf]  ;;  %v7397_v32 = vor.u32 %v8637_v25, %v7394_v34  ;;  %4776 = vmatpush.bf16.msrb.mxu0 %v7141_v41 }
 0x38e   : > { %v7650_v37 = vld [vmem:[%s10087_s23 + $0xd28] sm:$0xf0] }
 0x38f   : > { %v8765_v38 = vld [vmem:[%s10087_s23 + $0xf0c] sm:$0xf]  ;;  %v7653_v43 = vor.u32 %v8701_v36, %v7650_v37  ;;  %4789 = vmatpush.bf16.msrb.mxu1 %v7397_v32 }
 0x390   : > { %v7906_v40 = vld [vmem:[%s10087_s23 + $0xf28] sm:$0xf0] }
 0x391   : > { %v8565_v44 = vld [vmem:[%s10087_s23 + $0x8cc] sm:$0xf]  ;;  %v7909_v28 = vor.u32 %v8765_v38, %v7906_v40  ;;  %4802 = vmatpush.bf16.msrb.mxu2 %v7653_v43  ;;  %v4550_v40 = vpop.f32.mrf.mxu2 }
 0x392   : > { %v7106_v45 = vld [vmem:[%s10087_s23 + $0x8e8] sm:$0xf0]  ;;  %v6088_v40 = vld [vmem:[%s10087_s23 + $0xd0] sm:$0xf] }
 0x393   : > { %v8629_v46 = vld [vmem:[%s10087_s23 + $0xacc] sm:$0xf]  ;;  %v7109_v53 = vor.u32 %v8565_v44, %v7106_v45  ;;  %4815 = vmatpush.bf16.msrb.mxu3 %v7909_v28  ;;  %v4563_v44 = vpop.f32.mrf.mxu3  ;;  %v6216_v45 = vld [vmem:[%s10087_s23 + $0x1d0] sm:$0xf] }
 0x394   : > { %v7362_v49 = vld [vmem:[%s10087_s23 + $0xae8] sm:$0xf0]  ;;  %v8410_v28 = vld [vmem:[%s10087_s23 + $0x3ec] sm:$0xf0] }
 0x395   : > { %v8693_v50 = vld [vmem:[%s10087_s23 + $0xccc] sm:$0xf]  ;;  %v7365_v35 = vor.u32 %v8629_v46, %v7362_v49  ;;  %4777 = vmatpush.bf16.msrb.mxu0 %v7109_v53  ;;  %v8346_v46 = vld [vmem:[%s10087_s23 + $0x1ec] sm:$0xf0] }
 0x396   : > { %v7618_v29 = vld [vmem:[%s10087_s23 + $0xce8] sm:$0xf0]  ;;  %v6728_v49 = vld [vmem:[%s10087_s23 + $0x5d0] sm:$0xf] }
 0x397   : > { %v8757_v51 = vld [vmem:[%s10087_s23 + $0xecc] sm:$0xf]  ;;  %v7621_v54 = vor.u32 %v8693_v50, %v7618_v29  ;;  %4790 = vmatpush.bf16.msrb.mxu1 %v7365_v35  ;;  %v8474_v50 = vld [vmem:[%s10087_s23 + $0x5ec] sm:$0xf0]  ;;  %v6217_v35 = vor.u32 %v8346_v46, %v6216_v45 }
 0x398   : > { %v7874_v30 = vld [vmem:[%s10087_s23 + $0xee8] sm:$0xf0]  ;;  %v8378_v45 = vld [vmem:[%s10087_s23 + $0x2ec] sm:$0xf0] }
 0x399   : > { %v8557_v55 = vld [vmem:[%s10087_s23 + $0x88c] sm:$0xf]  ;;  %v7877_v59 = vor.u32 %v8757_v51, %v7874_v30  ;;  %4803 = vmatpush.bf16.msrb.mxu2 %v7621_v54  ;;  %v6984_v30 = vld [vmem:[%s10087_s23 + $0x7d0] sm:$0xf]  ;;  %v6473_v54 = vor.u32 %v8410_v28, %v6472_v47 }
 0x39a   : > { %v7074_v56 = vld [vmem:[%s10087_s23 + $0x8a8] sm:$0xf0]  ;;  %v6600_v46 = vld [vmem:[%s10087_s23 + $0x4d0] sm:$0xf] }
 0x39b   : > { %v8621_v57 = vld [vmem:[%s10087_s23 + $0xa8c] sm:$0xf]  ;;  %v7077_v3 = vor.u32 %v8557_v55, %v7074_v56  ;;  %4816 = vmatpush.bf16.msrb.mxu3 %v7877_v59  ;;  %v6729_v55 = vor.u32 %v8474_v50, %v6728_v49  ;;  %v6184_v56 = vld [vmem:[%s10087_s23 + $0x190] sm:$0xf]  ;;  %v6985_v59 = vor.u32 %v8538_v52, %v6984_v30 }
 0x39c   : > { %v7330_v60 = vld [vmem:[%s10087_s23 + $0xaa8] sm:$0xf0]  ;;  %v8442_v47 = vld [vmem:[%s10087_s23 + $0x4ec] sm:$0xf0] }
 0x39d   : > { %v8685_v61 = vld [vmem:[%s10087_s23 + $0xc8c] sm:$0xf]  ;;  %v7333_v6 = vor.u32 %v8621_v57, %v7330_v60  ;;  %4778 = vmatpush.bf16.msrb.mxu0 %v7077_v3  ;;  %v8338_v57 = vld [vmem:[%s10087_s23 + $0x1ac] sm:$0xf0] }
 0x39e   : > { %v7586_v62 = vld [vmem:[%s10087_s23 + $0xca8] sm:$0xf0]  ;;  %v8402_v60 = vld [vmem:[%s10087_s23 + $0x3ac] sm:$0xf0] }
 0x39f   : > { %v8749_v1 = vld [vmem:[%s10087_s23 + $0xe8c] sm:$0xf]  ;;  %v7589_v26 = vor.u32 %v8685_v61, %v7586_v62  ;;  %4791 = vmatpush.bf16.msrb.mxu1 %v7333_v6  ;;  %v6696_v61 = vld [vmem:[%s10087_s23 + $0x590] sm:$0xf] }
 0x3a0   : > { %v7842_v2 = vld [vmem:[%s10087_s23 + $0xea8] sm:$0xf0]  ;;  %v8466_v62 = vld [vmem:[%s10087_s23 + $0x5ac] sm:$0xf0] }
 0x3a1   : > { %v8549_v7 = vld [vmem:[%s10087_s23 + $0x84c] sm:$0xf]  ;;  %v7845_v12 = vor.u32 %v8749_v1, %v7842_v2  ;;  %4804 = vmatpush.bf16.msrb.mxu2 %v7589_v26  ;;  %v6185_v1 = vor.u32 %v8338_v57, %v6184_v56  ;;  %v6441_v2 = vor.u32 %v8402_v60, %v6440_v58  ;;  %v6697_v3 = vor.u32 %v8466_v62, %v6696_v61  ;;  %v8330_v6 = vld [vmem:[%s10087_s23 + $0x16c] sm:$0xf0]  ;;  %v4613_v58 = vpop.f32.mrf.mxu3 }
 0x3a2   : > { %v7042_v9 = vld [vmem:[%s10087_s23 + $0x868] sm:$0xf0]  ;;  %v6408_v26 = vld [vmem:[%s10087_s23 + $0x350] sm:$0xf] }
 0x3a3   : > { %v8613_v10 = vld [vmem:[%s10087_s23 + $0xa4c] sm:$0xf]  ;;  %v7045_v23 = vor.u32 %v8549_v7, %v7042_v9  ;;  %4817 = vmatpush.bf16.msrb.mxu3 %v7845_v12  ;;  %v6953_v7 = vor.u32 %v8530_v0, %v6952_v63  ;;  %v8394_v9 = vld [vmem:[%s10087_s23 + $0x36c] sm:$0xf0] }
 0x3a4   : > { %v7298_v13 = vld [vmem:[%s10087_s23 + $0xa68] sm:$0xf0]  ;;  %v6920_v12 = vld [vmem:[%s10087_s23 + $0x750] sm:$0xf] }
 0x3a5   : > { %v8677_v16 = vld [vmem:[%s10087_s23 + $0xc4c] sm:$0xf]  ;;  %v7301_v31 = vor.u32 %v8613_v10, %v7298_v13  ;;  %4779 = vmatpush.bf16.msrb.mxu0 %v7045_v23  ;;  %v6664_v10 = vld [vmem:[%s10087_s23 + $0x550] sm:$0xf] }
 0x3a6   : > { %v7554_v17 = vld [vmem:[%s10087_s23 + $0xc68] sm:$0xf0]  ;;  %v8522_v13 = vld [vmem:[%s10087_s23 + $0x76c] sm:$0xf0] }
 0x3a7   : > { %v8741_v19 = vld [vmem:[%s10087_s23 + $0xe4c] sm:$0xf]  ;;  %v7557_v34 = vor.u32 %v8677_v16, %v7554_v17  ;;  %4792 = vmatpush.bf16.msrb.mxu1 %v7301_v31  ;;  %v6153_v16 = vor.u32 %v8330_v6, %v6152_v5  ;;  %v6665_v17 = vor.u32 %v8458_v11, %v6664_v10  ;;  %v6376_v23 = vld [vmem:[%s10087_s23 + $0x310] sm:$0xf] }
 0x3a8   : > { %v7810_v22 = vld [vmem:[%s10087_s23 + $0xe68] sm:$0xf0]  ;;  %v6888_v31 = vld [vmem:[%s10087_s23 + $0x710] sm:$0xf] }
 0x3a9   : > { %v8541_v25 = vld [vmem:[%s10087_s23 + $0x80c] sm:$0xf]  ;;  %v7813_v41 = vor.u32 %v8741_v19, %v7810_v22  ;;  %4805 = vmatpush.bf16.msrb.mxu2 %v7557_v34  ;;  %v6120_v19 = vld [vmem:[%s10087_s23 + $0x110] sm:$0xf] }
 0x3aa   : > { %v7010_v27 = vld [vmem:[%s10087_s23 + $0x828] sm:$0xf0]  ;;  %v8322_v22 = vld [vmem:[%s10087_s23 + $0x12c] sm:$0xf0] }
 0x3ab   : > { %v8605_v36 = vld [vmem:[%s10087_s23 + $0xa0c] sm:$0xf]  ;;  %v7013_v48 = vor.u32 %v8541_v25, %v7010_v27  ;;  %4818 = vmatpush.bf16.msrb.mxu3 %v7813_v41  ;;  %v8386_v25 = vld [vmem:[%s10087_s23 + $0x32c] sm:$0xf0] }
 0x3ac   : > { %v7266_v37 = vld [vmem:[%s10087_s23 + $0xa28] sm:$0xf0]  ;;  %v8450_v27 = vld [vmem:[%s10087_s23 + $0x52c] sm:$0xf0] }
 0x3ad   : > { %v8669_v38 = vld [vmem:[%s10087_s23 + $0xc0c] sm:$0xf]  ;;  %v7269_v29 = vor.u32 %v8605_v36, %v7266_v37  ;;  %4780 = vmatpush.bf16.msrb.mxu0 %v7013_v48  ;;  %v8514_v34 = vld [vmem:[%s10087_s23 + $0x72c] sm:$0xf0]  ;;  %v4574_v36 = vpop.f32.mrf.mxu0  ;;  %v6377_v37 = vor.u32 %v8386_v25, %v6376_v23 }
 0x3ae   : > { %v7522_v42 = vld [vmem:[%s10087_s23 + $0xc28] sm:$0xf0]  ;;  %v8314_v41 = vld [vmem:[%s10087_s23 + $0xec] sm:$0xf0]  ;;  %v6889_v44 = vor.u32 %v8514_v34, %v6888_v31 }
 0x3af   : > { %v8733_v32 = vld [vmem:[%s10087_s23 + $0xe0c] sm:$0xf]  ;;  %v7525_v51 = vor.u32 %v8669_v38, %v7522_v42  ;;  %4793 = vmatpush.bf16.msrb.mxu1 %v7269_v29  ;;  %v6344_v42 = vld [vmem:[%s10087_s23 + $0x2d0] sm:$0xf]  ;;  %v6089_v50 = vor.u32 %v8314_v41, %v6088_v40  ;;  %v6601_v29 = vor.u32 %v8442_v47, %v6600_v46 }
 0x3b0   : > { %v7778_v43 = vld [vmem:[%s10087_s23 + $0xe28] sm:$0xf0]  ;;  %4781 = vmatmul.bf16.vlgmr.msrb.gmra.mxu0 %v10544_v20  ;;  %v6921_v20 = vor.u32 %v8522_v13, %v6920_v12  ;;  %v6856_v48 = vld [vmem:[%s10087_s23 + $0x6d0] sm:$0xf] }
 0x3b1   : > { %v7781_v53 = vor.u32 %v8733_v32, %v7778_v43  ;;  %4806 = vmatpush.bf16.msrb.mxu2 %v7525_v51  ;;  %4825 = vmatpush.bf16.msra.mxu0 %v6217_v35  ;;  %v4575_v32 = vadd.f32 %v4574_v36, %v10656_v4  ;;  %v4587_v43 = vpop.f32.mrf.mxu1  ;;  %v8506_v28 = vld [vmem:[%s10087_s23 + $0x6ec] sm:$0xf0]  ;;  %v6345_v4 = vor.u32 %v8378_v45, %v6344_v42 }
 0x3b2   : > { %4794 = vmatmul.bf16.vlgmr.msrb.gmra.mxu1 %v10550_v24  ;;  %v6121_v24 = vor.u32 %v8322_v22, %v6120_v19  ;;  %v6056_v51 = vld [vmem:[%s10087_s23 + $0x90] sm:$0xf]  ;;  %v6857_v35 = vor.u32 %v8506_v28, %v6856_v48 }
 0x3b3   : > { %4819 = vmatpush.bf16.msrb.mxu3 %v7781_v53  ;;  %4838 = vmatpush.bf16.msra.mxu1 %v6473_v54  ;;  %v4588_v49 = vadd.f32 %v4587_v43, %v4575_v32  ;;  %v8306_v30 = vld [vmem:[%s10087_s23 + $0xac] sm:$0xf0]  ;;  %v4600_v53 = vpop.f32.mrf.mxu2 }
 0x3b4   : > { %4807 = vmatmul.bf16.vlgmr.msrb.gmra.mxu2 %v10536_v14  ;;  %v6409_v14 = vor.u32 %v8394_v9, %v6408_v26  ;;  %v6312_v52 = vld [vmem:[%s10087_s23 + $0x290] sm:$0xf]  ;;  %v6057_v61 = vor.u32 %v8306_v30, %v6056_v51 }
 0x3b5   : > { %4851 = vmatpush.bf16.msra.mxu2 %v6729_v55  ;;  %4826 = vmatpush.bf16.msra.mxu0 %v6185_v1  ;;  %v8370_v54 = vld [vmem:[%s10087_s23 + $0x2ac] sm:$0xf0]  ;;  %v4601_v57 = vadd.f32 %v4600_v53, %v4588_v49  ;;  %v4576_v63 = vpop.f32.mrf.mxu0 }
 0x3b6   : > { %4820 = vmatmul.bf16.vlgmr.msrb.gmra.mxu3 %v10547_v21  ;;  %v6632_v21 = vld [vmem:[%s10087_s23 + $0x510] sm:$0xf]  ;;  %v6313_v0 = vor.u32 %v8370_v54, %v6312_v52 }
 0x3b7   : > { %4864 = vmatpush.bf16.msra.mxu3 %v6985_v59  ;;  %4839 = vmatpush.bf16.msra.mxu1 %v6441_v2  ;;  %v6633_v38 = vor.u32 %v8450_v27, %v6632_v21  ;;  %v6568_v55 = vld [vmem:[%s10087_s23 + $0x490] sm:$0xf]  ;;  %v10727_v62 = vadd.f32 %v4613_v58, %v4601_v57 }
 0x3b8   : > { %v8434_v56 = vld [vmem:[%s10087_s23 + $0x4ac] sm:$0xf0] }
 0x3b9   : > { %4852 = vmatpush.bf16.msra.mxu2 %v6697_v3  ;;  %4827 = vmatpush.bf16.msra.mxu0 %v6153_v16  ;;  %v6824_v59 = vld [vmem:[%s10087_s23 + $0x690] sm:$0xf]  ;;  %v6569_v1 = vor.u32 %v8434_v56, %v6568_v55  ;;  %v4589_v6 = vpop.f32.mrf.mxu1 }
 0x3ba   : > { %v8498_v60 = vld [vmem:[%s10087_s23 + $0x6ac] sm:$0xf0] }
 0x3bb   : > { %4865 = vmatpush.bf16.msra.mxu3 %v6953_v7  ;;  %4840 = vmatpush.bf16.msra.mxu1 %v6409_v14  ;;  %v6024_v2 = vld [vmem:[%s10087_s23 + $0x50] sm:$0xf]  ;;  %v6825_v26 = vor.u32 %v8498_v60, %v6824_v59  ;;  %v4602_v25 = vpop.f32.mrf.mxu2 }
 0x3bc   : > { %v8298_v3 = vld [vmem:[%s10087_s23 + $0x6c] sm:$0xf0] }
 0x3bd   : > { %4853 = vmatpush.bf16.msra.mxu2 %v6665_v17  ;;  %4828 = vmatpush.bf16.msra.mxu0 %v6121_v24  ;;  %v6280_v5 = vld [vmem:[%s10087_s23 + $0x250] sm:$0xf]  ;;  %v6025_v13 = vor.u32 %v8298_v3, %v6024_v2  ;;  %v4615_v24 = vpop.f32.mrf.mxu3 }
 0x3be   : > { %v8362_v7 = vld [vmem:[%s10087_s23 + $0x26c] sm:$0xf0] }
 0x3bf   : > { %4866 = vmatpush.bf16.msra.mxu3 %v6921_v20  ;;  %4841 = vmatpush.bf16.msra.mxu1 %v6377_v37  ;;  %v6536_v9 = vld [vmem:[%s10087_s23 + $0x450] sm:$0xf]  ;;  %v6281_v17 = vor.u32 %v8362_v7, %v6280_v5 }
 0x3c0   : > { %v8426_v10 = vld [vmem:[%s10087_s23 + $0x46c] sm:$0xf0] }
 0x3c1   : > { %4854 = vmatpush.bf16.msra.mxu2 %v6633_v38  ;;  %4829 = vmatpush.bf16.msra.mxu0 %v6089_v50  ;;  %v6792_v11 = vld [vmem:[%s10087_s23 + $0x650] sm:$0xf]  ;;  %v6537_v19 = vor.u32 %v8426_v10, %v6536_v9  ;;  %v10777_v10 = vld [vmem:[%s10080_s14] sm:$0xff] }
 0x3c2   : > { %v8490_v12 = vld [vmem:[%s10087_s23 + $0x66c] sm:$0xf0] }
 0x3c3   : > { %4867 = vmatpush.bf16.msra.mxu3 %v6889_v44  ;;  %4842 = vmatpush.bf16.msra.mxu1 %v6345_v4  ;;  %v5992_v16 = vld [vmem:[%s10087_s23 + $0x10] sm:$0xf]  ;;  %v6793_v21 = vor.u32 %v8490_v12, %v6792_v11 }
 0x3c4   : > { %v8290_v14 = vld [vmem:[%s10087_s23 + $0x2c] sm:$0xf0] }
 0x3c5   : > { %4855 = vmatpush.bf16.msra.mxu2 %v6601_v29  ;;  %4830 = vmatpush.bf16.msra.mxu0 %v6057_v61  ;;  %v6248_v22 = vld [vmem:[%s10087_s23 + $0x210] sm:$0xf]  ;;  %v5993_v40 = vor.u32 %v8290_v14, %v5992_v16 }
 0x3c6   : > { %v8354_v23 = vld [vmem:[%s10087_s23 + $0x22c] sm:$0xf0] }
 0x3c7   : > { %4868 = vmatpush.bf16.msra.mxu3 %v6857_v35  ;;  %4843 = vmatpush.bf16.msra.mxu1 %v6313_v0  ;;  %v6504_v20 = vld [vmem:[%s10087_s23 + $0x410] sm:$0xf]  ;;  %v6249_v43 = vor.u32 %v8354_v23, %v6248_v22 }
 0x3c8   : > { %v8418_v27 = vld [vmem:[%s10087_s23 + $0x42c] sm:$0xf0] }
 0x3c9   : > { %4856 = vmatpush.bf16.msra.mxu2 %v6569_v1  ;;  %v6760_v31 = vld [vmem:[%s10087_s23 + $0x610] sm:$0xf]  ;;  %4831 = vmatpush.bf16.msra.mxu0 %v6025_v13  ;;  %v6505_v44 = vor.u32 %v8418_v27, %v6504_v20  ;;  %v4639_v27 = vpop.f32.mrf.mxu1 }
 0x3ca   : > { %v8482_v34 = vld [vmem:[%s10087_s23 + $0x62c] sm:$0xf0] }
 0x3cb   : > { %4869 = vmatpush.bf16.msra.mxu3 %v6825_v26  ;;  %v7240_v36 = vld [vmem:[%s10087_s23 + $0x9d0] sm:$0xf]  ;;  %4844 = vmatpush.bf16.msra.mxu1 %v6281_v17  ;;  %v6761_v47 = vor.u32 %v8482_v34, %v6760_v31  ;;  %v4626_v17 = vpop.f32.mrf.mxu0 }
 0x3cc   : > { %v8602_v37 = vld [vmem:[%s10087_s23 + $0x9ec] sm:$0xf0] }
 0x3cd   : > { %v7496_v38 = vld [vmem:[%s10087_s23 + $0xbd0] sm:$0xf]  ;;  %4857 = vmatpush.bf16.msra.mxu2 %v6537_v19  ;;  %v7241_v48 = vor.u32 %v8602_v37, %v7240_v36  ;;  %4832 = vmatpush.bf16.msra.mxu0 %v5993_v40 }
 0x3ce   : > { %v8666_v41 = vld [vmem:[%s10087_s23 + $0xbec] sm:$0xf0] }
 0x3cf   : > { %v7752_v42 = vld [vmem:[%s10087_s23 + $0xdd0] sm:$0xf]  ;;  %4870 = vmatpush.bf16.msra.mxu3 %v6793_v21  ;;  %v7497_v28 = vor.u32 %v8666_v41, %v7496_v38  ;;  %4845 = vmatpush.bf16.msra.mxu1 %v6249_v43 }
 0x3d0   : > { %v8730_v32 = vld [vmem:[%s10087_s23 + $0xdec] sm:$0xf0]  ;;  %4833 = vmatmul.bf16.vlgmr.msra.gmra.mxu0 %v10622_v39  ;;  %v1817_v39 = vperm.slane %v10777_v10, 2 }
 0x3d1   : > { %v8008_v45 = vld [vmem:[%s10087_s23 + $0xfd0] sm:$0xf]  ;;  %v7753_v49 = vor.u32 %v8730_v32, %v7752_v42  ;;  %4858 = vmatpush.bf16.msra.mxu2 %v6505_v44  ;;  %4877 = vmatpush.bf16.msrb.mxu0 %v7241_v48 }
 0x3d2   : > { %v8794_v46 = vld [vmem:[%s10087_s23 + $0xfec] sm:$0xf0]  ;;  %4846 = vmatmul.bf16.vlgmr.msra.gmra.mxu1 %v10629_v18  ;;  %v4627_v21 = vadd.f32 %v4626_v17, %v1817_v39  ;;  %v8406_v17 = vld [vmem:[%s10087_s23 + $0x3d4] sm:$0xf] }
 0x3d3   : > { %v7208_v50 = vld [vmem:[%s10087_s23 + $0x990] sm:$0xf]  ;;  %v8009_v51 = vor.u32 %v8794_v46, %v8008_v45  ;;  %4871 = vmatpush.bf16.msra.mxu3 %v6761_v47  ;;  %4890 = vmatpush.bf16.msrb.mxu1 %v7497_v28  ;;  %v4652_v46 = vpop.f32.mrf.mxu2 }
 0x3d4   : > { %v8594_v4 = vld [vmem:[%s10087_s23 + $0x9ac] sm:$0xf0]  ;;  %4859 = vmatmul.bf16.vlgmr.msra.gmra.mxu2 %v10617_v33  ;;  %v4640_v40 = vadd.f32 %v4639_v27, %v4627_v21  ;;  %v8534_v27 = vld [vmem:[%s10087_s23 + $0x7d4] sm:$0xf] }
 0x3d5   : > { %v7464_v29 = vld [vmem:[%s10087_s23 + $0xb90] sm:$0xf]  ;;  %v7209_v55 = vor.u32 %v8594_v4, %v7208_v50  ;;  %4903 = vmatpush.bf16.msrb.mxu2 %v7753_v49  ;;  %v4665_v4 = vpop.f32.mrf.mxu3 }
 0x3d6   : > { %v8658_v30 = vld [vmem:[%s10087_s23 + $0xbac] sm:$0xf0]  ;;  %4872 = vmatmul.bf16.vlgmr.msra.gmra.mxu3 %v10625_v15  ;;  %v4653_v50 = vadd.f32 %v4652_v46, %v4640_v40  ;;  %v6186_v40 = vld [vmem:[%s10087_s23 + $0x1b0] sm:$0xf0] }
 0x3d7   : > { %v7720_v52 = vld [vmem:[%s10087_s23 + $0xd90] sm:$0xf]  ;;  %v7465_v56 = vor.u32 %v8658_v30, %v7464_v29  ;;  %4916 = vmatpush.bf16.msrb.mxu3 %v8009_v51  ;;  %4878 = vmatpush.bf16.msrb.mxu0 %v7209_v55  ;;  %v6954_v46 = vld [vmem:[%s10087_s23 + $0x7b0] sm:$0xf0] }
 0x3d8   : > { %v8722_v53 = vld [vmem:[%s10087_s23 + $0xdac] sm:$0xf0] }
 0x3d9   : > { %v7976_v35 = vld [vmem:[%s10087_s23 + $0xf90] sm:$0xf]  ;;  %v7721_v57 = vor.u32 %v8722_v53, %v7720_v52  ;;  %4891 = vmatpush.bf16.msrb.mxu1 %v7465_v56  ;;  %v10801_v52 = vadd.f32 %v4665_v4, %v4653_v50  ;;  %v4628_v53 = vpop.f32.mrf.mxu0  ;;  %v6154_v50 = vld [vmem:[%s10087_s23 + $0x170] sm:$0xf0] }
 0x3da   : > { %v8786_v54 = vld [vmem:[%s10087_s23 + $0xfac] sm:$0xf0]  ;;  %v8390_v4 = vld [vmem:[%s10087_s23 + $0x354] sm:$0xf] }
 0x3db   : > { %v7176_v58 = vld [vmem:[%s10087_s23 + $0x950] sm:$0xf]  ;;  %v7977_v61 = vor.u32 %v8786_v54, %v7976_v35  ;;  %4904 = vmatpush.bf16.msrb.mxu2 %v7721_v57  ;;  %v4654_v39 = vpop.f32.mrf.mxu2  ;;  %v8454_v53 = vld [vmem:[%s10087_s23 + $0x554] sm:$0xf] }
 0x3dc   : > { %v8586_v59 = vld [vmem:[%s10087_s23 + $0x96c] sm:$0xf0] }
 0x3dd   : > { %v7432_v60 = vld [vmem:[%s10087_s23 + $0xb50] sm:$0xf]  ;;  %v7177_v5 = vor.u32 %v8586_v59, %v7176_v58  ;;  %4917 = vmatpush.bf16.msrb.mxu3 %v7977_v61  ;;  %v4641_v58 = vpop.f32.mrf.mxu1 }
 0x3de   : > { %v8650_v63 = vld [vmem:[%s10087_s23 + $0xb6c] sm:$0xf0] }
 0x3df   : > { %v7688_v0 = vld [vmem:[%s10087_s23 + $0xd50] sm:$0xf]  ;;  %v7433_v26 = vor.u32 %v8650_v63, %v7432_v60  ;;  %4879 = vmatpush.bf16.msrb.mxu0 %v7177_v5 }
 0x3e0   : > { %v8714_v1 = vld [vmem:[%s10087_s23 + $0xd6c] sm:$0xf0] }
 0x3e1   : > { %v7944_v2 = vld [vmem:[%s10087_s23 + $0xf50] sm:$0xf]  ;;  %v7689_v33 = vor.u32 %v8714_v1, %v7688_v0  ;;  %4892 = vmatpush.bf16.msrb.mxu1 %v7433_v26 }
 0x3e2   : > { %v8778_v3 = vld [vmem:[%s10087_s23 + $0xf6c] sm:$0xf0] }
 0x3e3   : > { %v7144_v6 = vld [vmem:[%s10087_s23 + $0x910] sm:$0xf]  ;;  %v7945_v15 = vor.u32 %v8778_v3, %v7944_v2  ;;  %4905 = vmatpush.bf16.msrb.mxu2 %v7689_v33 }
 0x3e4   : > { %v8578_v7 = vld [vmem:[%s10087_s23 + $0x92c] sm:$0xf0] }
 0x3e5   : > { %v7400_v9 = vld [vmem:[%s10087_s23 + $0xb10] sm:$0xf]  ;;  %v7145_v14 = vor.u32 %v8578_v7, %v7144_v6  ;;  %4918 = vmatpush.bf16.msrb.mxu3 %v7945_v15 }
 0x3e6   : > { %v8642_v11 = vld [vmem:[%s10087_s23 + $0xb2c] sm:$0xf0] }
 0x3e7   : > { %v7656_v12 = vld [vmem:[%s10087_s23 + $0xd10] sm:$0xf]  ;;  %v7401_v19 = vor.u32 %v8642_v11, %v7400_v9  ;;  %4880 = vmatpush.bf16.msrb.mxu0 %v7145_v14  ;;  %v6218_v14 = vld [vmem:[%s10087_s23 + $0x1f0] sm:$0xf0] }
 0x3e8   : > { %v8706_v13 = vld [vmem:[%s10087_s23 + $0xd2c] sm:$0xf0] }
 0x3e9   : > { %v7912_v16 = vld [vmem:[%s10087_s23 + $0xf10] sm:$0xf]  ;;  %v7657_v22 = vor.u32 %v8706_v13, %v7656_v12  ;;  %4893 = vmatpush.bf16.msrb.mxu1 %v7401_v19 }
 0x3ea   : > { %v8770_v18 = vld [vmem:[%s10087_s23 + $0xf2c] sm:$0xf0] }
 0x3eb   : > { %v7112_v23 = vld [vmem:[%s10087_s23 + $0x8d0] sm:$0xf]  ;;  %v7913_v31 = vor.u32 %v8770_v18, %v7912_v16  ;;  %4906 = vmatpush.bf16.msrb.mxu2 %v7657_v22  ;;  %v4667_v16 = vpop.f32.mrf.mxu3  ;;  %v8342_v18 = vld [vmem:[%s10087_s23 + $0x1d4] sm:$0xf] }
 0x3ec   : > { %v8570_v20 = vld [vmem:[%s10087_s23 + $0x8ec] sm:$0xf0]  ;;  %v6474_v22 = vld [vmem:[%s10087_s23 + $0x3f0] sm:$0xf0] }
 0x3ed   : > { %v7368_v25 = vld [vmem:[%s10087_s23 + $0xad0] sm:$0xf]  ;;  %v7113_v41 = vor.u32 %v8570_v20, %v7112_v23  ;;  %4919 = vmatpush.bf16.msrb.mxu3 %v7913_v31  ;;  %v8470_v23 = vld [vmem:[%s10087_s23 + $0x5d4] sm:$0xf] }
 0x3ee   : > { %v8634_v34 = vld [vmem:[%s10087_s23 + $0xaec] sm:$0xf0]  ;;  %v6730_v20 = vld [vmem:[%s10087_s23 + $0x5f0] sm:$0xf0] }
 0x3ef   : > { %v7624_v24 = vld [vmem:[%s10087_s23 + $0xcd0] sm:$0xf]  ;;  %v7369_v42 = vor.u32 %v8634_v34, %v7368_v25  ;;  %4881 = vmatpush.bf16.msrb.mxu0 %v7113_v41  ;;  %v6986_v31 = vld [vmem:[%s10087_s23 + $0x7f0] sm:$0xf0] }
 0x3f0   : > { %v8698_v36 = vld [vmem:[%s10087_s23 + $0xcec] sm:$0xf0]  ;;  %v8398_v41 = vld [vmem:[%s10087_s23 + $0x394] sm:$0xf] }
 0x3f1   : > { %v7880_v37 = vld [vmem:[%s10087_s23 + $0xed0] sm:$0xf]  ;;  %v7625_v32 = vor.u32 %v8698_v36, %v7624_v24  ;;  %4894 = vmatpush.bf16.msrb.mxu1 %v7369_v42  ;;  %v6221_v24 = vor.u32 %v8342_v18, %v6218_v14  ;;  %v6477_v36 = vor.u32 %v8406_v17, %v6474_v22  ;;  %v6989_v42 = vor.u32 %v8534_v27, %v6986_v31  ;;  %v4691_v18 = vpop.f32.mrf.mxu1  ;;  %v6346_v17 = vld [vmem:[%s10087_s23 + $0x2f0] sm:$0xf0] }
 0x3f2   : > { %v8762_v38 = vld [vmem:[%s10087_s23 + $0xeec] sm:$0xf0]  ;;  %v6602_v22 = vld [vmem:[%s10087_s23 + $0x4f0] sm:$0xf0] }
 0x3f3   : > { %v7080_v43 = vld [vmem:[%s10087_s23 + $0x890] sm:$0xf]  ;;  %v7881_v47 = vor.u32 %v8762_v38, %v7880_v37  ;;  %4907 = vmatpush.bf16.msrb.mxu2 %v7625_v32  ;;  %v6733_v37 = vor.u32 %v8470_v23, %v6730_v20  ;;  %v8334_v38 = vld [vmem:[%s10087_s23 + $0x194] sm:$0xf] }
 0x3f4   : > { %v8562_v44 = vld [vmem:[%s10087_s23 + $0x8ac] sm:$0xf0]  ;;  %v6442_v32 = vld [vmem:[%s10087_s23 + $0x3b0] sm:$0xf0] }
 0x3f5   : > { %v7336_v45 = vld [vmem:[%s10087_s23 + $0xa90] sm:$0xf]  ;;  %v7081_v30 = vor.u32 %v8562_v44, %v7080_v43  ;;  %4920 = vmatpush.bf16.msrb.mxu3 %v7881_v47  ;;  %v8462_v43 = vld [vmem:[%s10087_s23 + $0x594] sm:$0xf]  ;;  %v6189_v47 = vor.u32 %v8334_v38, %v6186_v40 }
 0x3f6   : > { %v8626_v48 = vld [vmem:[%s10087_s23 + $0xaac] sm:$0xf0]  ;;  %v6698_v44 = vld [vmem:[%s10087_s23 + $0x5b0] sm:$0xf0] }
 0x3f7   : > { %v7592_v28 = vld [vmem:[%s10087_s23 + $0xc90] sm:$0xf]  ;;  %v7337_v35 = vor.u32 %v8626_v48, %v7336_v45  ;;  %4882 = vmatpush.bf16.msrb.mxu0 %v7081_v30  ;;  %v8526_v45 = vld [vmem:[%s10087_s23 + $0x794] sm:$0xf]  ;;  %v6445_v48 = vor.u32 %v8398_v41, %v6442_v32  ;;  %v4717_v32 = vpop.f32.mrf.mxu3 }
 0x3f8   : > { %v8690_v49 = vld [vmem:[%s10087_s23 + $0xcac] sm:$0xf0]  ;;  %v6410_v30 = vld [vmem:[%s10087_s23 + $0x370] sm:$0xf0] }
 0x3f9   : > { %v7848_v29 = vld [vmem:[%s10087_s23 + $0xe90] sm:$0xf]  ;;  %v7593_v54 = vor.u32 %v8690_v49, %v7592_v28  ;;  %4895 = vmatpush.bf16.msrb.mxu1 %v7337_v35  ;;  %v6701_v28 = vor.u32 %v8462_v43, %v6698_v44  ;;  %v8326_v49 = vld [vmem:[%s10087_s23 + $0x154] sm:$0xf] }
 0x3fa   : > { %v8754_v51 = vld [vmem:[%s10087_s23 + $0xeac] sm:$0xf0]  ;;  %v6666_v35 = vld [vmem:[%s10087_s23 + $0x570] sm:$0xf0]  ;;  %v6157_v58 = vor.u32 %v8326_v49, %v6154_v50 }
 0x3fb   : > { %v7048_v55 = vld [vmem:[%s10087_s23 + $0x850] sm:$0xf]  ;;  %v7849_v59 = vor.u32 %v8754_v51, %v7848_v29  ;;  %4908 = vmatpush.bf16.msrb.mxu2 %v7593_v54  ;;  %v6957_v29 = vor.u32 %v8526_v45, %v6954_v46  ;;  %v8518_v54 = vld [vmem:[%s10087_s23 + $0x754] sm:$0xf] }
 0x3fc   : > { %v8554_v56 = vld [vmem:[%s10087_s23 + $0x86c] sm:$0xf0]  ;;  %v8502_v23 = vld [vmem:[%s10087_s23 + $0x6d4] sm:$0xf] }
 0x3fd   : > { %v7304_v57 = vld [vmem:[%s10087_s23 + $0xa50] sm:$0xf]  ;;  %v7049_v2 = vor.u32 %v8554_v56, %v7048_v55  ;;  %4921 = vmatpush.bf16.msrb.mxu3 %v7849_v59  ;;  %v6922_v55 = vld [vmem:[%s10087_s23 + $0x770] sm:$0xf0]  ;;  %v10846_v56 = vld [vmem:[#allocation1 + $0x24] sm:$0xff] }
 0x3fe   : > { %v8618_v60 = vld [vmem:[%s10087_s23 + $0xa6c] sm:$0xf0]  ;;  %v10852_v59 = vld [vmem:[#allocation1 + $0x2d] sm:$0xff]  ;;  %v6858_v20 = vld [vmem:[%s10087_s23 + $0x6f0] sm:$0xf0] }
 0x3ff   : > { %v7560_v61 = vld [vmem:[%s10087_s23 + $0xc50] sm:$0xf]  ;;  %v7305_v6 = vor.u32 %v8618_v60, %v7304_v57  ;;  %4883 = vmatpush.bf16.msrb.mxu0 %v7049_v2  ;;  %v10849_v57 = vld [vmem:[#allocation1 + $0x3f] sm:$0xff]  ;;  %v6413_v60 = vor.u32 %v8390_v4, %v6410_v30  ;;  %v6925_v2 = vor.u32 %v8518_v54, %v6922_v55 }
 0x400   : > { %v8682_v63 = vld [vmem:[%s10087_s23 + $0xc6c] sm:$0xf0]  ;;  %v8302_v31 = vld [vmem:[%s10087_s23 + $0x94] sm:$0xf] }
 0x401   : > { %v7816_v0 = vld [vmem:[%s10087_s23 + $0xe50] sm:$0xf]  ;;  %v7561_v26 = vor.u32 %v8682_v63, %v7560_v61  ;;  %4896 = vmatpush.bf16.msrb.mxu1 %v7305_v6  ;;  %v6669_v61 = vor.u32 %v8454_v53, %v6666_v35  ;;  %v8318_v63 = vld [vmem:[%s10087_s23 + $0x114] sm:$0xf] }
 0x402   : > { %v8746_v1 = vld [vmem:[%s10087_s23 + $0xe6c] sm:$0xf0]  ;;  %v6634_v6 = vld [vmem:[%s10087_s23 + $0x530] sm:$0xf0] }
 0x403   : > { %v7016_v3 = vld [vmem:[%s10087_s23 + $0x810] sm:$0xf]  ;;  %v7817_v15 = vor.u32 %v8746_v1, %v7816_v0  ;;  %4909 = vmatpush.bf16.msrb.mxu2 %v7561_v26  ;;  %v6122_v0 = vld [vmem:[%s10087_s23 + $0x130] sm:$0xf0] }
 0x404   : > { %v8546_v5 = vld [vmem:[%s10087_s23 + $0x82c] sm:$0xf0]  ;;  %v8382_v1 = vld [vmem:[%s10087_s23 + $0x314] sm:$0xf] }
 0x405   : > { %v7272_v33 = vld [vmem:[%s10087_s23 + $0xa10] sm:$0xf]  ;;  %v7017_v19 = vor.u32 %v8546_v5, %v7016_v3  ;;  %4922 = vmatpush.bf16.msrb.mxu3 %v7817_v15  ;;  %v6378_v3 = vld [vmem:[%s10087_s23 + $0x330] sm:$0xf0] }
 0x406   : > { %v8610_v7 = vld [vmem:[%s10087_s23 + $0xa2c] sm:$0xf0]  ;;  %v8446_v5 = vld [vmem:[%s10087_s23 + $0x514] sm:$0xf]  ;;  %v6381_v39 = vor.u32 %v8382_v1, %v6378_v3 }
 0x407   : > { %v7528_v9 = vld [vmem:[%s10087_s23 + $0xc10] sm:$0xf]  ;;  %v7273_v25 = vor.u32 %v8610_v7, %v7272_v33  ;;  %4884 = vmatpush.bf16.msrb.mxu0 %v7017_v19  ;;  %v8510_v26 = vld [vmem:[%s10087_s23 + $0x714] sm:$0xf]  ;;  %v6125_v7 = vor.u32 %v8318_v63, %v6122_v0  ;;  %v6637_v15 = vor.u32 %v8446_v5, %v6634_v6 }
 0x408   : > { %v8674_v11 = vld [vmem:[%s10087_s23 + $0xc2c] sm:$0xf0]  ;;  %v6890_v33 = vld [vmem:[%s10087_s23 + $0x730] sm:$0xf0] }
 0x409   : > { %v7784_v12 = vld [vmem:[%s10087_s23 + $0xe10] sm:$0xf]  ;;  %v7529_v21 = vor.u32 %v8674_v11, %v7528_v9  ;;  %4897 = vmatpush.bf16.msrb.mxu1 %v7273_v25  ;;  %v4678_v9 = vpop.f32.mrf.mxu0  ;;  %v8310_v11 = vld [vmem:[%s10087_s23 + $0xd4] sm:$0xf]  ;;  %v6893_v14 = vor.u32 %v8510_v26, %v6890_v33 }
 0x40a   : > { %v8738_v13 = vld [vmem:[%s10087_s23 + $0xe2c] sm:$0xf0]  ;;  %4885 = vmatmul.bf16.vlgmr.msrb.gmra.mxu0 %v10846_v56  ;;  %v4679_v16 = vadd.f32 %v4678_v9, %v10801_v52  ;;  %v8438_v19 = vld [vmem:[%s10087_s23 + $0x4d4] sm:$0xf] }
 0x40b   : > { %v7785_v34 = vor.u32 %v8738_v13, %v7784_v12  ;;  %4910 = vmatpush.bf16.msrb.mxu2 %v7529_v21  ;;  %4929 = vmatpush.bf16.msra.mxu0 %v6221_v24  ;;  %v10838_v51 = vld [vmem:[#allocation1 + $0x36] sm:$0xff]  ;;  %v6605_v27 = vor.u32 %v8438_v19, %v6602_v22 }
 0x40c   : > { %4898 = vmatmul.bf16.vlgmr.msrb.gmra.mxu1 %v10852_v59  ;;  %v6090_v12 = vld [vmem:[%s10087_s23 + $0xf0] sm:$0xf0]  ;;  %v4692_v25 = vadd.f32 %v4691_v18, %v4679_v16 }
 0x40d   : > { %4923 = vmatpush.bf16.msrb.mxu3 %v7785_v34  ;;  %4942 = vmatpush.bf16.msra.mxu1 %v6477_v36  ;;  %v8374_v13 = vld [vmem:[%s10087_s23 + $0x2d4] sm:$0xf]  ;;  %v6093_v21 = vor.u32 %v8310_v11, %v6090_v12  ;;  %v4704_v36 = vpop.f32.mrf.mxu2 }
 0x40e   : > { %4911 = vmatmul.bf16.vlgmr.msrb.gmra.mxu2 %v10838_v51  ;;  %v6349_v52 = vor.u32 %v8374_v13, %v6346_v17  ;;  %v6058_v34 = vld [vmem:[%s10087_s23 + $0xb0] sm:$0xf0] }
 0x40f   : > { %4955 = vmatpush.bf16.msra.mxu2 %v6733_v37  ;;  %4930 = vmatpush.bf16.msra.mxu0 %v6189_v47  ;;  %v8366_v24 = vld [vmem:[%s10087_s23 + $0x294] sm:$0xf]  ;;  %v6861_v37 = vor.u32 %v8502_v23, %v6858_v20  ;;  %v6061_v45 = vor.u32 %v8302_v31, %v6058_v34 }
 0x410   : > { %4924 = vmatmul.bf16.vlgmr.msrb.gmra.mxu3 %v10849_v57  ;;  %v6314_v38 = vld [vmem:[%s10087_s23 + $0x2b0] sm:$0xf0] }
 0x411   : > { %4968 = vmatpush.bf16.msra.mxu3 %v6989_v42  ;;  %4943 = vmatpush.bf16.msra.mxu1 %v6445_v48  ;;  %v8430_v40 = vld [vmem:[%s10087_s23 + $0x494] sm:$0xf]  ;;  %v4705_v42 = vadd.f32 %v4704_v36, %v4692_v25  ;;  %v4680_v47 = vpop.f32.mrf.mxu0  ;;  %v6317_v48 = vor.u32 %v8366_v24, %v6314_v38 }
 0x412   : > { %v6570_v41 = vld [vmem:[%s10087_s23 + $0x4b0] sm:$0xf0] }
 0x413   : > { %4956 = vmatpush.bf16.msra.mxu2 %v6701_v28  ;;  %4931 = vmatpush.bf16.msra.mxu0 %v6157_v58  ;;  %v8494_v43 = vld [vmem:[%s10087_s23 + $0x694] sm:$0xf]  ;;  %v10880_v46 = vadd.f32 %v4717_v32, %v4705_v42  ;;  %v6573_v28 = vor.u32 %v8430_v40, %v6570_v41 }
 0x414   : > { %v6826_v44 = vld [vmem:[%s10087_s23 + $0x6b0] sm:$0xf0] }
 0x415   : > { %4969 = vmatpush.bf16.msra.mxu3 %v6957_v29  ;;  %4944 = vmatpush.bf16.msra.mxu1 %v6413_v60  ;;  %v8294_v49 = vld [vmem:[%s10087_s23 + $0x54] sm:$0xf]  ;;  %v4693_v29 = vpop.f32.mrf.mxu1  ;;  %v6829_v30 = vor.u32 %v8494_v43, %v6826_v44  ;;  %v4706_v6 = vpop.f32.mrf.mxu2 }
 0x416   : > { %v6026_v50 = vld [vmem:[%s10087_s23 + $0x70] sm:$0xf0] }
 0x417   : > { %4957 = vmatpush.bf16.msra.mxu2 %v6669_v61  ;;  %4932 = vmatpush.bf16.msra.mxu0 %v6125_v7  ;;  %v8358_v4 = vld [vmem:[%s10087_s23 + $0x254] sm:$0xf]  ;;  %v6029_v60 = vor.u32 %v8294_v49, %v6026_v50 }
 0x418   : > { %v6282_v53 = vld [vmem:[%s10087_s23 + $0x270] sm:$0xf0] }
 0x419   : > { %4970 = vmatpush.bf16.msra.mxu3 %v6925_v2  ;;  %4945 = vmatpush.bf16.msra.mxu1 %v6381_v39  ;;  %v8422_v35 = vld [vmem:[%s10087_s23 + $0x454] sm:$0xf]  ;;  %v6285_v0 = vor.u32 %v8358_v4, %v6282_v53  ;;  %v4719_v39 = vpop.f32.mrf.mxu3  ;;  %v10920_v4 = vld [vmem:[#allocation1 + $0x12] sm:$0xff]  ;;  %v10925_v53 = vld [vmem:[#allocation1] sm:$0xff] }
 0x41a   : > { %v6538_v54 = vld [vmem:[%s10087_s23 + $0x470] sm:$0xf0] }
 0x41b   : > { %4958 = vmatpush.bf16.msra.mxu2 %v6637_v15  ;;  %4933 = vmatpush.bf16.msra.mxu0 %v6093_v21  ;;  %v8486_v55 = vld [vmem:[%s10087_s23 + $0x654] sm:$0xf]  ;;  %v6541_v1 = vor.u32 %v8422_v35, %v6538_v54 }
 0x41c   : > { %v6794_v58 = vld [vmem:[%s10087_s23 + $0x670] sm:$0xf0] }
 0x41d   : > { %4971 = vmatpush.bf16.msra.mxu3 %v6893_v14  ;;  %4946 = vmatpush.bf16.msra.mxu1 %v6349_v52  ;;  %v8286_v61 = vld [vmem:[%s10087_s23 + $0x14] sm:$0xf]  ;;  %v6797_v26 = vor.u32 %v8486_v55, %v6794_v58  ;;  %v10932_v58 = vld [vmem:[#allocation1 + $0x9] sm:$0xff] }
 0x41e   : > { %v5994_v63 = vld [vmem:[%s10087_s23 + $0x30] sm:$0xf0] }
 0x41f   : > { %4959 = vmatpush.bf16.msra.mxu2 %v6605_v27  ;;  %4934 = vmatpush.bf16.msra.mxu0 %v6061_v45  ;;  %v8350_v2 = vld [vmem:[%s10087_s23 + $0x214] sm:$0xf]  ;;  %v5997_v13 = vor.u32 %v8286_v61, %v5994_v63 }
 0x420   : > { %v6250_v3 = vld [vmem:[%s10087_s23 + $0x230] sm:$0xf0] }
 0x421   : > { %4972 = vmatpush.bf16.msra.mxu3 %v6861_v37  ;;  %4947 = vmatpush.bf16.msra.mxu1 %v6317_v48  ;;  %v8414_v5 = vld [vmem:[%s10087_s23 + $0x414] sm:$0xf]  ;;  %v6253_v17 = vor.u32 %v8350_v2, %v6250_v3 }
 0x422   : > { %v6506_v33 = vld [vmem:[%s10087_s23 + $0x430] sm:$0xf0] }
 0x423   : > { %4960 = vmatpush.bf16.msra.mxu2 %v6573_v28  ;;  %v8478_v7 = vld [vmem:[%s10087_s23 + $0x614] sm:$0xf]  ;;  %4935 = vmatpush.bf16.msra.mxu0 %v6029_v60  ;;  %v6509_v19 = vor.u32 %v8414_v5, %v6506_v33 }
 0x424   : > { %v6762_v9 = vld [vmem:[%s10087_s23 + $0x630] sm:$0xf0] }
 0x425   : > { %4973 = vmatpush.bf16.msra.mxu3 %v6829_v30  ;;  %v8598_v15 = vld [vmem:[%s10087_s23 + $0x9d4] sm:$0xf]  ;;  %4948 = vmatpush.bf16.msra.mxu1 %v6285_v0  ;;  %v6765_v20 = vor.u32 %v8478_v7, %v6762_v9  ;;  %v4730_v9 = vpop.f32.mrf.mxu0 }
 0x426   : > { %v7242_v11 = vld [vmem:[%s10087_s23 + $0x9f0] sm:$0xf0] }
 0x427   : > { %v8662_v12 = vld [vmem:[%s10087_s23 + $0xbd4] sm:$0xf]  ;;  %4961 = vmatpush.bf16.msra.mxu2 %v6541_v1  ;;  %v7245_v25 = vor.u32 %v8598_v15, %v7242_v11  ;;  %4936 = vmatpush.bf16.msra.mxu0 %v5997_v13  ;;  %v1818_v1 = vperm.slane %v10777_v10, 3 }
 0x428   : > { %v7498_v16 = vld [vmem:[%s10087_s23 + $0xbf0] sm:$0xf0] }
 0x429   : > { %v8726_v18 = vld [vmem:[%s10087_s23 + $0xdd4] sm:$0xf]  ;;  %4974 = vmatpush.bf16.msra.mxu3 %v6797_v26  ;;  %v7501_v21 = vor.u32 %v8662_v12, %v7498_v16  ;;  %4949 = vmatpush.bf16.msra.mxu1 %v6253_v17  ;;  %v4731_v13 = vadd.f32 %v4730_v9, %v1818_v1  ;;  %v4743_v16 = vpop.f32.mrf.mxu1 }
 0x42a   : > { %v7754_v14 = vld [vmem:[%s10087_s23 + $0xdf0] sm:$0xf0]  ;;  %4937 = vmatmul.bf16.vlgmr.msra.gmra.mxu0 %v10925_v53 }
 0x42b   : > { %v8790_v22 = vld [vmem:[%s10087_s23 + $0xfd4] sm:$0xf]  ;;  %v7757_v52 = vor.u32 %v8726_v18, %v7754_v14  ;;  %4962 = vmatpush.bf16.msra.mxu2 %v6509_v19  ;;  %4981 = vmatpush.bf16.msrb.mxu0 %v7245_v25 }
 0x42c   : > { %v8010_v23 = vld [vmem:[%s10087_s23 + $0xff0] sm:$0xf0]  ;;  %4950 = vmatmul.bf16.vlgmr.msra.gmra.mxu1 %v10932_v58 }
 0x42d   : > { %v8590_v27 = vld [vmem:[%s10087_s23 + $0x994] sm:$0xf]  ;;  %v8013_v24 = vor.u32 %v8790_v22, %v8010_v23  ;;  %4975 = vmatpush.bf16.msra.mxu3 %v6765_v20  ;;  %4994 = vmatpush.bf16.msrb.mxu1 %v7501_v21  ;;  %v4744_v20 = vadd.f32 %v4743_v16, %v4731_v13  ;;  %v6224_v13 = vld [vmem:[%s10087_s23 + $0x1d8] sm:$0xf] }
 0x42e   : > { %v7210_v31 = vld [vmem:[%s10087_s23 + $0x9b0] sm:$0xf0]  ;;  %4963 = vmatmul.bf16.vlgmr.msra.gmra.mxu2 %v10920_v4  ;;  %v8347_v16 = vld [vmem:[%s10087_s23 + $0x1f4] sm:$0xf0] }
 0x42f   : > { %v8654_v34 = vld [vmem:[%s10087_s23 + $0xb94] sm:$0xf]  ;;  %v7213_v42 = vor.u32 %v8590_v27, %v7210_v31  ;;  %5007 = vmatpush.bf16.msrb.mxu2 %v7757_v52 }
 0x430   : > { %v7466_v36 = vld [vmem:[%s10087_s23 + $0xbb0] sm:$0xf0] }
 0x431   : > { %v8718_v37 = vld [vmem:[%s10087_s23 + $0xd94] sm:$0xf]  ;;  %v7469_v32 = vor.u32 %v8654_v34, %v7466_v36  ;;  %5020 = vmatpush.bf16.msrb.mxu3 %v8013_v24  ;;  %4982 = vmatpush.bf16.msrb.mxu0 %v7213_v42  ;;  %v4756_v24 = vpop.f32.mrf.mxu2  ;;  %v4769_v42 = vpop.f32.mrf.mxu3 }
 0x432   : > { %v7722_v38 = vld [vmem:[%s10087_s23 + $0xdb0] sm:$0xf0] }
 0x433   : > { %v8782_v40 = vld [vmem:[%s10087_s23 + $0xf94] sm:$0xf]  ;;  %v7725_v43 = vor.u32 %v8718_v37, %v7722_v38  ;;  %4995 = vmatpush.bf16.msrb.mxu1 %v7469_v32 }
 0x434   : > { %v7978_v41 = vld [vmem:[%s10087_s23 + $0xfb0] sm:$0xf0] }
 0x435   : > { %v8582_v44 = vld [vmem:[%s10087_s23 + $0x954] sm:$0xf]  ;;  %v7981_v48 = vor.u32 %v8782_v40, %v7978_v41  ;;  %5008 = vmatpush.bf16.msrb.mxu2 %v7725_v43  ;;  %v4757_v41 = vadd.f32 %v4756_v24, %v4744_v20  ;;  %v6192_v24 = vld [vmem:[%s10087_s23 + $0x198] sm:$0xf] }
 0x436   : > { %v7178_v45 = vld [vmem:[%s10087_s23 + $0x970] sm:$0xf0] }
 0x437   : > { %v8646_v47 = vld [vmem:[%s10087_s23 + $0xb54] sm:$0xf]  ;;  %v7181_v54 = vor.u32 %v8582_v44, %v7178_v45  ;;  %5021 = vmatpush.bf16.msrb.mxu3 %v7981_v48  ;;  %v10959_v45 = vadd.f32 %v4769_v42, %v4757_v41  ;;  %v6704_v41 = vld [vmem:[%s10087_s23 + $0x598] sm:$0xf] }
 0x438   : > { %v7434_v28 = vld [vmem:[%s10087_s23 + $0xb70] sm:$0xf0]  ;;  %v8467_v42 = vld [vmem:[%s10087_s23 + $0x5b4] sm:$0xf0] }
 0x439   : > { %v8710_v49 = vld [vmem:[%s10087_s23 + $0xd54] sm:$0xf]  ;;  %v7437_v60 = vor.u32 %v8646_v47, %v7434_v28  ;;  %4983 = vmatpush.bf16.msrb.mxu0 %v7181_v54  ;;  %v4732_v47 = vpop.f32.mrf.mxu0  ;;  %v4758_v9 = vpop.f32.mrf.mxu2 }
 0x43a   : > { %v7690_v50 = vld [vmem:[%s10087_s23 + $0xd70] sm:$0xf0] }
 0x43b   : > { %v8774_v29 = vld [vmem:[%s10087_s23 + $0xf54] sm:$0xf]  ;;  %v7693_v61 = vor.u32 %v8710_v49, %v7690_v50  ;;  %4996 = vmatpush.bf16.msrb.mxu1 %v7437_v60 }
 0x43c   : > { %v7946_v30 = vld [vmem:[%s10087_s23 + $0xf70] sm:$0xf0] }
 0x43d   : > { %v10928_v35 = vld [vmem:[#allocation1 + $0x1b] sm:$0xff]  ;;  %v7949_v2 = vor.u32 %v8774_v29, %v7946_v30  ;;  %5009 = vmatpush.bf16.msrb.mxu2 %v7693_v61  ;;  %v4745_v30 = vpop.f32.mrf.mxu1 }
 0x43e   : > { %4976 = vmatmul.bf16.vlgmr.msra.gmra.mxu3 %v10928_v35  ;;  %v8574_v55 = vld [vmem:[%s10087_s23 + $0x914] sm:$0xf]  ;;  %v8395_v30 = vld [vmem:[%s10087_s23 + $0x374] sm:$0xf0] }
 0x43f   : > { %v7146_v63 = vld [vmem:[%s10087_s23 + $0x930] sm:$0xf0]  ;;  %5022 = vmatpush.bf16.msrb.mxu3 %v7949_v2 }
 0x440   : > { %v8638_v0 = vld [vmem:[%s10087_s23 + $0xb14] sm:$0xf]  ;;  %v7149_v7 = vor.u32 %v8574_v55, %v7146_v63 }
 0x441   : > { %v7402_v3 = vld [vmem:[%s10087_s23 + $0xb30] sm:$0xf0] }
 0x442   : > { %v8702_v5 = vld [vmem:[%s10087_s23 + $0xd14] sm:$0xf]  ;;  %v7405_v10 = vor.u32 %v8638_v0, %v7402_v3  ;;  %4984 = vmatpush.bf16.msrb.mxu0 %v7149_v7 }
 0x443   : > { %v7658_v6 = vld [vmem:[%s10087_s23 + $0xd30] sm:$0xf0] }
 0x444   : > { %v8766_v26 = vld [vmem:[%s10087_s23 + $0xf14] sm:$0xf]  ;;  %v7661_v39 = vor.u32 %v8702_v5, %v7658_v6  ;;  %4997 = vmatpush.bf16.msrb.mxu1 %v7405_v10 }
 0x445   : > { %v7914_v33 = vld [vmem:[%s10087_s23 + $0xf30] sm:$0xf0] }
 0x446   : > { %v8566_v15 = vld [vmem:[%s10087_s23 + $0x8d4] sm:$0xf]  ;;  %v7917_v18 = vor.u32 %v8766_v26, %v7914_v33  ;;  %5010 = vmatpush.bf16.msrb.mxu2 %v7661_v39 }
 0x447   : > { %v7114_v11 = vld [vmem:[%s10087_s23 + $0x8f0] sm:$0xf0] }
 0x448   : > { %v8630_v12 = vld [vmem:[%s10087_s23 + $0xad4] sm:$0xf]  ;;  %v7117_v25 = vor.u32 %v8566_v15, %v7114_v11  ;;  %5023 = vmatpush.bf16.msrb.mxu3 %v7917_v18  ;;  %v6480_v18 = vld [vmem:[%s10087_s23 + $0x3d8] sm:$0xf] }
 0x449   : > { %v7370_v14 = vld [vmem:[%s10087_s23 + $0xaf0] sm:$0xf0] }
 0x44a   : > { %v8694_v17 = vld [vmem:[%s10087_s23 + $0xcd4] sm:$0xf]  ;;  %v7373_v21 = vor.u32 %v8630_v12, %v7370_v14  ;;  %4985 = vmatpush.bf16.msrb.mxu0 %v7117_v25  ;;  %v4771_v12 = vpop.f32.mrf.mxu3  ;;  %v6992_v25 = vld [vmem:[%s10087_s23 + $0x7d8] sm:$0xf] }
 0x44b   : > { %v7626_v19 = vld [vmem:[%s10087_s23 + $0xcf0] sm:$0xf0] }
 0x44c   : > { %v8758_v22 = vld [vmem:[%s10087_s23 + $0xed4] sm:$0xf]  ;;  %v7629_v52 = vor.u32 %v8694_v17, %v7626_v19  ;;  %4998 = vmatpush.bf16.msrb.mxu1 %v7373_v21  ;;  %v8411_v17 = vld [vmem:[%s10087_s23 + $0x3f4] sm:$0xf0] }
 0x44d   : > { %v7882_v23 = vld [vmem:[%s10087_s23 + $0xef0] sm:$0xf0]  ;;  %v6736_v19 = vld [vmem:[%s10087_s23 + $0x5d8] sm:$0xf] }
 0x44e   : > { %v8558_v27 = vld [vmem:[%s10087_s23 + $0x894] sm:$0xf]  ;;  %v7885_v36 = vor.u32 %v8758_v22, %v7882_v23  ;;  %5011 = vmatpush.bf16.msrb.mxu2 %v7629_v52  ;;  %v8475_v22 = vld [vmem:[%s10087_s23 + $0x5f4] sm:$0xf0] }
 0x44f   : > { %v7082_v31 = vld [vmem:[%s10087_s23 + $0x8b0] sm:$0xf0]  ;;  %v8539_v21 = vld [vmem:[%s10087_s23 + $0x7f4] sm:$0xf0] }
 0x450   : > { %v8622_v34 = vld [vmem:[%s10087_s23 + $0xa94] sm:$0xf]  ;;  %v7085_v44 = vor.u32 %v8558_v27, %v7082_v31  ;;  %5024 = vmatpush.bf16.msrb.mxu3 %v7885_v36  ;;  %v6225_v27 = vor.u32 %v8347_v16, %v6224_v13  ;;  %v6481_v31 = vor.u32 %v8411_v17, %v6480_v18  ;;  %v8339_v36 = vld [vmem:[%s10087_s23 + $0x1b4] sm:$0xf0]  ;;  %v4795_v13 = vpop.f32.mrf.mxu1 }
 0x451   : > { %v7338_v37 = vld [vmem:[%s10087_s23 + $0xab0] sm:$0xf0]  ;;  %v8379_v18 = vld [vmem:[%s10087_s23 + $0x2f4] sm:$0xf0] }
 0x452   : > { %v8686_v38 = vld [vmem:[%s10087_s23 + $0xc94] sm:$0xf]  ;;  %v7341_v48 = vor.u32 %v8622_v34, %v7338_v37  ;;  %4986 = vmatpush.bf16.msrb.mxu0 %v7085_v44  ;;  %v6737_v34 = vor.u32 %v8475_v22, %v6736_v19  ;;  %v6448_v37 = vld [vmem:[%s10087_s23 + $0x398] sm:$0xf]  ;;  %v6193_v44 = vor.u32 %v8339_v36, %v6192_v24 }
 0x453   : > { %v7594_v40 = vld [vmem:[%s10087_s23 + $0xcb0] sm:$0xf0]  ;;  %v8443_v17 = vld [vmem:[%s10087_s23 + $0x4f4] sm:$0xf0] }
 0x454   : > { %v8750_v32 = vld [vmem:[%s10087_s23 + $0xe94] sm:$0xf]  ;;  %v7597_v28 = vor.u32 %v8686_v38, %v7594_v40  ;;  %4999 = vmatpush.bf16.msrb.mxu1 %v7341_v48  ;;  %v6993_v38 = vor.u32 %v8539_v21, %v6992_v25  ;;  %v8403_v40 = vld [vmem:[%s10087_s23 + $0x3b4] sm:$0xf0]  ;;  %v6705_v48 = vor.u32 %v8467_v42, %v6704_v41 }
 0x455   : > { %v7850_v43 = vld [vmem:[%s10087_s23 + $0xeb0] sm:$0xf0]  ;;  %v6449_v47 = vor.u32 %v8403_v40, %v6448_v37  ;;  %v6864_v19 = vld [vmem:[%s10087_s23 + $0x6d8] sm:$0xf]  ;;  %v4821_v40 = vpop.f32.mrf.mxu3 }
 0x456   : > { %v8550_v49 = vld [vmem:[%s10087_s23 + $0x854] sm:$0xf]  ;;  %v7853_v54 = vor.u32 %v8750_v32, %v7850_v43  ;;  %5012 = vmatpush.bf16.msrb.mxu2 %v7597_v28  ;;  %v6960_v32 = vld [vmem:[%s10087_s23 + $0x798] sm:$0xf] }
 0x457   : > { %v7050_v50 = vld [vmem:[%s10087_s23 + $0x870] sm:$0xf0]  ;;  %v8531_v43 = vld [vmem:[%s10087_s23 + $0x7b4] sm:$0xf0] }
 0x458   : > { %v8614_v29 = vld [vmem:[%s10087_s23 + $0xa54] sm:$0xf]  ;;  %v7053_v1 = vor.u32 %v8550_v49, %v7050_v50  ;;  %5025 = vmatpush.bf16.msrb.mxu3 %v7853_v54  ;;  %v6160_v28 = vld [vmem:[%s10087_s23 + $0x158] sm:$0xf] }
 0x459   : > { %v7306_v55 = vld [vmem:[%s10087_s23 + $0xa70] sm:$0xf0]  ;;  %v8331_v49 = vld [vmem:[%s10087_s23 + $0x174] sm:$0xf0] }
 0x45a   : > { %v8678_v60 = vld [vmem:[%s10087_s23 + $0xc54] sm:$0xf]  ;;  %v7309_v5 = vor.u32 %v8614_v29, %v7306_v55  ;;  %4987 = vmatpush.bf16.msrb.mxu0 %v7053_v1  ;;  %v6416_v50 = vld [vmem:[%s10087_s23 + $0x358] sm:$0xf]  ;;  %v6961_v29 = vor.u32 %v8531_v43, %v6960_v32 }
 0x45b   : > { %v7562_v61 = vld [vmem:[%s10087_s23 + $0xc70] sm:$0xf0]  ;;  %v6672_v54 = vld [vmem:[%s10087_s23 + $0x558] sm:$0xf] }
 0x45c   : > { %v8742_v63 = vld [vmem:[%s10087_s23 + $0xe54] sm:$0xf]  ;;  %v7565_v6 = vor.u32 %v8678_v60, %v7562_v61  ;;  %5000 = vmatpush.bf16.msrb.mxu1 %v7309_v5  ;;  %v8459_v55 = vld [vmem:[%s10087_s23 + $0x574] sm:$0xf0] }
 0x45d   : > { %v7818_v0 = vld [vmem:[%s10087_s23 + $0xe70] sm:$0xf0]  ;;  %v6928_v60 = vld [vmem:[%s10087_s23 + $0x758] sm:$0xf] }
 0x45e   : > { %v8542_v2 = vld [vmem:[%s10087_s23 + $0x814] sm:$0xf]  ;;  %v7821_v10 = vor.u32 %v8742_v63, %v7818_v0  ;;  %5013 = vmatpush.bf16.msrb.mxu2 %v7565_v6  ;;  %v8523_v61 = vld [vmem:[%s10087_s23 + $0x774] sm:$0xf0]  ;;  %v6161_v63 = vor.u32 %v8331_v49, %v6160_v28  ;;  %v6673_v0 = vor.u32 %v8459_v55, %v6672_v54 }
 0x45f   : > { %v7018_v3 = vld [vmem:[%s10087_s23 + $0x830] sm:$0xf0]  ;;  %v6128_v1 = vld [vmem:[%s10087_s23 + $0x118] sm:$0xf] }
 0x460   : > { %v8606_v26 = vld [vmem:[%s10087_s23 + $0xa14] sm:$0xf]  ;;  %v7021_v14 = vor.u32 %v8542_v2, %v7018_v3  ;;  %5026 = vmatpush.bf16.msrb.mxu3 %v7821_v10  ;;  %v8323_v2 = vld [vmem:[%s10087_s23 + $0x134] sm:$0xf0] }
 0x461   : > { %v7274_v33 = vld [vmem:[%s10087_s23 + $0xa30] sm:$0xf0]  ;;  %v6384_v3 = vld [vmem:[%s10087_s23 + $0x318] sm:$0xf] }
 0x462   : > { %v8670_v7 = vld [vmem:[%s10087_s23 + $0xc14] sm:$0xf]  ;;  %v7277_v23 = vor.u32 %v8606_v26, %v7274_v33  ;;  %4988 = vmatpush.bf16.msrb.mxu0 %v7021_v14  ;;  %v8387_v5 = vld [vmem:[%s10087_s23 + $0x334] sm:$0xf0] }
 0x463   : > { %v7530_v39 = vld [vmem:[%s10087_s23 + $0xc30] sm:$0xf0]  ;;  %v8451_v6 = vld [vmem:[%s10087_s23 + $0x534] sm:$0xf0]  ;;  %v6385_v9 = vor.u32 %v8387_v5, %v6384_v3 }
 0x464   : > { %v8734_v15 = vld [vmem:[%s10087_s23 + $0xe14] sm:$0xf]  ;;  %v7533_v20 = vor.u32 %v8670_v7, %v7530_v39  ;;  %5001 = vmatpush.bf16.msrb.mxu1 %v7277_v23  ;;  %v6896_v26 = vld [vmem:[%s10087_s23 + $0x718] sm:$0xf]  ;;  %v4782_v7 = vpop.f32.mrf.mxu0 }
 0x465   : > { %v7786_v11 = vld [vmem:[%s10087_s23 + $0xe30] sm:$0xf0]  ;;  %4989 = vmatmul.bf16.vlgmr.msrb.gmra.mxu0 %v10846_v56  ;;  %v6929_v56 = vor.u32 %v8523_v61, %v6928_v60  ;;  %v8515_v33 = vld [vmem:[%s10087_s23 + $0x734] sm:$0xf0]  ;;  %v4783_v12 = vadd.f32 %v4782_v7, %v10959_v45 }
 0x466   : > { %v7789_v52 = vor.u32 %v8734_v15, %v7786_v11  ;;  %5014 = vmatpush.bf16.msrb.mxu2 %v7533_v20  ;;  %5033 = vmatpush.bf16.msra.mxu0 %v6225_v27  ;;  %v6096_v39 = vld [vmem:[%s10087_s23 + $0xd8] sm:$0xf]  ;;  %v6897_v16 = vor.u32 %v8515_v33, %v6896_v26 }
 0x467   : > { %5002 = vmatmul.bf16.vlgmr.msrb.gmra.mxu1 %v10852_v59  ;;  %v6129_v59 = vor.u32 %v8323_v2, %v6128_v1  ;;  %v8315_v15 = vld [vmem:[%s10087_s23 + $0xf4] sm:$0xf0]  ;;  %v4796_v23 = vadd.f32 %v4795_v13, %v4783_v12 }
 0x468   : > { %5027 = vmatpush.bf16.msrb.mxu3 %v7789_v52  ;;  %5046 = vmatpush.bf16.msra.mxu1 %v6481_v31  ;;  %v6352_v11 = vld [vmem:[%s10087_s23 + $0x2d8] sm:$0xf]  ;;  %v6097_v20 = vor.u32 %v8315_v15, %v6096_v39  ;;  %v4808_v31 = vpop.f32.mrf.mxu2 }
 0x469   : > { %5015 = vmatmul.bf16.vlgmr.msrb.gmra.mxu2 %v10838_v51  ;;  %v6417_v51 = vor.u32 %v8395_v30, %v6416_v50  ;;  %v6608_v14 = vld [vmem:[%s10087_s23 + $0x4d8] sm:$0xf]  ;;  %v6353_v45 = vor.u32 %v8379_v18, %v6352_v11 }
 0x46a   : > { %5059 = vmatpush.bf16.msra.mxu2 %v6737_v34  ;;  %5034 = vmatpush.bf16.msra.mxu0 %v6193_v44  ;;  %v8507_v22 = vld [vmem:[%s10087_s23 + $0x6f4] sm:$0xf0]  ;;  %v6609_v25 = vor.u32 %v8443_v17, %v6608_v14 }
 0x46b   : > { %5028 = vmatmul.bf16.vlgmr.msrb.gmra.mxu3 %v10849_v57  ;;  %v6640_v57 = vld [vmem:[%s10087_s23 + $0x518] sm:$0xf]  ;;  %v6865_v34 = vor.u32 %v8507_v22, %v6864_v19 }
 0x46c   : > { %5072 = vmatpush.bf16.msra.mxu3 %v6993_v38  ;;  %5047 = vmatpush.bf16.msra.mxu1 %v6449_v47  ;;  %v6641_v10 = vor.u32 %v8451_v6, %v6640_v57  ;;  %v6064_v21 = vld [vmem:[%s10087_s23 + $0x98] sm:$0xf]  ;;  %v4809_v38 = vadd.f32 %v4808_v31, %v4796_v23  ;;  %v4784_v44 = vpop.f32.mrf.mxu0 }
 0x46d   : > { %v8307_v52 = vld [vmem:[%s10087_s23 + $0xb4] sm:$0xf0] }
 0x46e   : > { %5060 = vmatpush.bf16.msra.mxu2 %v6705_v48  ;;  %5035 = vmatpush.bf16.msra.mxu0 %v6161_v63  ;;  %v6320_v27 = vld [vmem:[%s10087_s23 + $0x298] sm:$0xf]  ;;  %v6065_v32 = vor.u32 %v8307_v52, %v6064_v21  ;;  %v11030_v43 = vadd.f32 %v4821_v40, %v4809_v38 }
 0x46f   : > { %v8371_v24 = vld [vmem:[%s10087_s23 + $0x2b4] sm:$0xf0] }
 0x470   : > { %5073 = vmatpush.bf16.msra.mxu3 %v6961_v29  ;;  %5048 = vmatpush.bf16.msra.mxu1 %v6417_v51  ;;  %v6576_v36 = vld [vmem:[%s10087_s23 + $0x498] sm:$0xf]  ;;  %v6321_v47 = vor.u32 %v8371_v24, %v6320_v27  ;;  %v4797_v29 = vpop.f32.mrf.mxu1  ;;  %v4810_v6 = vpop.f32.mrf.mxu2 }
 0x471   : > { %v8435_v37 = vld [vmem:[%s10087_s23 + $0x4b4] sm:$0xf0] }
 0x472   : > { %5061 = vmatpush.bf16.msra.mxu2 %v6673_v0  ;;  %5036 = vmatpush.bf16.msra.mxu0 %v6129_v59  ;;  %v6832_v41 = vld [vmem:[%s10087_s23 + $0x698] sm:$0xf]  ;;  %v6577_v48 = vor.u32 %v8435_v37, %v6576_v36 }
 0x473   : > { %v8499_v42 = vld [vmem:[%s10087_s23 + $0x6b4] sm:$0xf0] }
 0x474   : > { %5074 = vmatpush.bf16.msra.mxu3 %v6929_v56  ;;  %5049 = vmatpush.bf16.msra.mxu1 %v6385_v9  ;;  %v6032_v28 = vld [vmem:[%s10087_s23 + $0x58] sm:$0xf]  ;;  %v6833_v30 = vor.u32 %v8499_v42, %v6832_v41  ;;  %v4823_v9 = vpop.f32.mrf.mxu3 }
 0x475   : > { %v8299_v49 = vld [vmem:[%s10087_s23 + $0x74] sm:$0xf0] }
 0x476   : > { %5062 = vmatpush.bf16.msra.mxu2 %v6641_v10  ;;  %5037 = vmatpush.bf16.msra.mxu0 %v6097_v20  ;;  %v6288_v50 = vld [vmem:[%s10087_s23 + $0x258] sm:$0xf]  ;;  %v6033_v51 = vor.u32 %v8299_v49, %v6032_v28 }
 0x477   : > { %v8363_v54 = vld [vmem:[%s10087_s23 + $0x274] sm:$0xf0] }
 0x478   : > { %5075 = vmatpush.bf16.msra.mxu3 %v6897_v16  ;;  %5050 = vmatpush.bf16.msra.mxu1 %v6353_v45  ;;  %v6544_v55 = vld [vmem:[%s10087_s23 + $0x458] sm:$0xf]  ;;  %v6289_v2 = vor.u32 %v8363_v54, %v6288_v50 }
 0x479   : > { %v8427_v60 = vld [vmem:[%s10087_s23 + $0x474] sm:$0xf0] }
 0x47a   : > { %5063 = vmatpush.bf16.msra.mxu2 %v6609_v25  ;;  %v6800_v61 = vld [vmem:[%s10087_s23 + $0x658] sm:$0xf]  ;;  %5038 = vmatpush.bf16.msra.mxu0 %v6065_v32  ;;  %v6545_v3 = vor.u32 %v8427_v60, %v6544_v55 }
 0x47b   : > { %v8491_v63 = vld [vmem:[%s10087_s23 + $0x674] sm:$0xf0] }
 0x47c   : > { %5076 = vmatpush.bf16.msra.mxu3 %v6865_v34  ;;  %v6000_v0 = vld [vmem:[%s10087_s23 + $0x18] sm:$0xf]  ;;  %5051 = vmatpush.bf16.msra.mxu1 %v6321_v47  ;;  %v6801_v26 = vor.u32 %v8491_v63, %v6800_v61 }
 0x47d   : > { %v8291_v1 = vld [vmem:[%s10087_s23 + $0x34] sm:$0xf0] }
 0x47e   : > { %5064 = vmatpush.bf16.msra.mxu2 %v6577_v48  ;;  %v6256_v56 = vld [vmem:[%s10087_s23 + $0x218] sm:$0xf]  ;;  %5039 = vmatpush.bf16.msra.mxu0 %v6033_v51  ;;  %v6001_v11 = vor.u32 %v8291_v1, %v6000_v0 }
 0x47f   : > { %v8355_v5 = vld [vmem:[%s10087_s23 + $0x234] sm:$0xf0] }
 0x480   : > { %v6512_v57 = vld [vmem:[%s10087_s23 + $0x418] sm:$0xf]  ;;  %5077 = vmatpush.bf16.msra.mxu3 %v6833_v30  ;;  %5052 = vmatpush.bf16.msra.mxu1 %v6289_v2  ;;  %v6257_v18 = vor.u32 %v8355_v5, %v6256_v56  ;;  %v4834_v56 = vpop.f32.mrf.mxu0 }
 0x481   : > { %v8419_v33 = vld [vmem:[%s10087_s23 + $0x434] sm:$0xf0] }
 0x482   : > { %v6768_v59 = vld [vmem:[%s10087_s23 + $0x618] sm:$0xf]  ;;  %5065 = vmatpush.bf16.msra.mxu2 %v6545_v3  ;;  %v6513_v14 = vor.u32 %v8419_v33, %v6512_v57  ;;  %5040 = vmatpush.bf16.msra.mxu0 %v6001_v11 }
 0x483   : > { %v8483_v7 = vld [vmem:[%s10087_s23 + $0x634] sm:$0xf0] }
 0x484   : > { %v7248_v10 = vld [vmem:[%s10087_s23 + $0x9d8] sm:$0xf]  ;;  %5078 = vmatpush.bf16.msra.mxu3 %v6801_v26  ;;  %v6769_v22 = vor.u32 %v8483_v7, %v6768_v59  ;;  %5053 = vmatpush.bf16.msra.mxu1 %v6257_v18  ;;  %v4847_v7 = vpop.f32.mrf.mxu1 }
 0x485   : > { %v8603_v39 = vld [vmem:[%s10087_s23 + $0x9f4] sm:$0xf0]  ;;  %5041 = vmatmul.bf16.vlgmr.msra.gmra.mxu0 %v10925_v53 }
 0x486   : > { %v7504_v15 = vld [vmem:[%s10087_s23 + $0xbd8] sm:$0xf]  ;;  %v7249_v23 = vor.u32 %v8603_v39, %v7248_v10  ;;  %5066 = vmatpush.bf16.msra.mxu2 %v6513_v14 }
 0x487   : > { %v8667_v12 = vld [vmem:[%s10087_s23 + $0xbf4] sm:$0xf0]  ;;  %5054 = vmatmul.bf16.vlgmr.msra.gmra.mxu1 %v10932_v58 }
 0x488   : > { %v7760_v13 = vld [vmem:[%s10087_s23 + $0xdd8] sm:$0xf]  ;;  %v7505_v20 = vor.u32 %v8667_v12, %v7504_v15  ;;  %5079 = vmatpush.bf16.msra.mxu3 %v6769_v22  ;;  %5085 = vmatpush.bf16.msrb.mxu0 %v7249_v23  ;;  %v4860_v23 = vpop.f32.mrf.mxu2 }
 0x489   : > { %v8731_v16 = vld [vmem:[%s10087_s23 + $0xdf4] sm:$0xf0]  ;;  %5067 = vmatmul.bf16.vlgmr.msra.gmra.mxu2 %v10920_v4 }
 0x48a   : > { %v8016_v17 = vld [vmem:[%s10087_s23 + $0xfd8] sm:$0xf]  ;;  %v7761_v45 = vor.u32 %v8731_v16, %v7760_v13  ;;  %5098 = vmatpush.bf16.msrb.mxu1 %v7505_v20 }
 0x48b   : > { %v8795_v19 = vld [vmem:[%s10087_s23 + $0xff4] sm:$0xf0]  ;;  %5080 = vmatmul.bf16.vlgmr.msra.gmra.mxu3 %v10928_v35 }
 0x48c   : > { %v7216_v25 = vld [vmem:[%s10087_s23 + $0x998] sm:$0xf]  ;;  %v8017_v27 = vor.u32 %v8795_v19, %v8016_v17  ;;  %5111 = vmatpush.bf16.msrb.mxu2 %v7761_v45 }
 0x48d   : > { %v8595_v21 = vld [vmem:[%s10087_s23 + $0x9b4] sm:$0xf0] }
 0x48e   : > { %v7472_v52 = vld [vmem:[%s10087_s23 + $0xb98] sm:$0xf]  ;;  %v7217_v38 = vor.u32 %v8595_v21, %v7216_v25  ;;  %5124 = vmatpush.bf16.msrb.mxu3 %v8017_v27  ;;  %v4873_v27 = vpop.f32.mrf.mxu3 }
 0x48f   : > { %v8659_v31 = vld [vmem:[%s10087_s23 + $0xbb4] sm:$0xf0] }
 0x490   : > { %v7728_v34 = vld [vmem:[%s10087_s23 + $0xd98] sm:$0xf]  ;;  %v7473_v40 = vor.u32 %v8659_v31, %v7472_v52  ;;  %5086 = vmatpush.bf16.msrb.mxu0 %v7217_v38 }
 0x491   : > { %v8723_v24 = vld [vmem:[%s10087_s23 + $0xdb4] sm:$0xf0] }
 0x492   : > { %v7984_v36 = vld [vmem:[%s10087_s23 + $0xf98] sm:$0xf]  ;;  %v7729_v41 = vor.u32 %v8723_v24, %v7728_v34  ;;  %5099 = vmatpush.bf16.msrb.mxu1 %v7473_v40 }
 0x493   : > { %v8787_v37 = vld [vmem:[%s10087_s23 + $0xfb4] sm:$0xf0] }
 0x494   : > { %v7184_v42 = vld [vmem:[%s10087_s23 + $0x958] sm:$0xf]  ;;  %v7985_v47 = vor.u32 %v8787_v37, %v7984_v36  ;;  %5112 = vmatpush.bf16.msrb.mxu2 %v7729_v41  ;;  %v4836_v37 = vpop.f32.mrf.mxu0 }
 0x495   : > { %v8587_v32 = vld [vmem:[%s10087_s23 + $0x974] sm:$0xf0] }
 0x496   : > { %v7440_v44 = vld [vmem:[%s10087_s23 + $0xb58] sm:$0xf]  ;;  %v7185_v30 = vor.u32 %v8587_v32, %v7184_v42  ;;  %5125 = vmatpush.bf16.msrb.mxu3 %v7985_v47 }
 0x497   : > { %v8651_v48 = vld [vmem:[%s10087_s23 + $0xb74] sm:$0xf0] }
 0x498   : > { %v7696_v28 = vld [vmem:[%s10087_s23 + $0xd58] sm:$0xf]  ;;  %v7441_v55 = vor.u32 %v8651_v48, %v7440_v44  ;;  %5087 = vmatpush.bf16.msrb.mxu0 %v7185_v30  ;;  %v4849_v44 = vpop.f32.mrf.mxu1 }
 0x499   : > { %v8715_v49 = vld [vmem:[%s10087_s23 + $0xd74] sm:$0xf0]  ;;  %v8519_v44 = vld [vmem:[%s10087_s23 + $0x75c] sm:$0xf] }
 0x49a   : > { %v7952_v50 = vld [vmem:[%s10087_s23 + $0xf58] sm:$0xf]  ;;  %v7697_v4 = vor.u32 %v8715_v49, %v7696_v28  ;;  %5100 = vmatpush.bf16.msrb.mxu1 %v7441_v55 }
 0x49b   : > { %v8779_v29 = vld [vmem:[%s10087_s23 + $0xf74] sm:$0xf0] }
 0x49c   : > { %v7152_v54 = vld [vmem:[%s10087_s23 + $0x918] sm:$0xf]  ;;  %v7953_v35 = vor.u32 %v8779_v29, %v7952_v50  ;;  %5113 = vmatpush.bf16.msrb.mxu2 %v7697_v4 }
 0x49d   : > { %v8579_v60 = vld [vmem:[%s10087_s23 + $0x934] sm:$0xf0] }
 0x49e   : > { %v7408_v61 = vld [vmem:[%s10087_s23 + $0xb18] sm:$0xf]  ;;  %v7153_v3 = vor.u32 %v8579_v60, %v7152_v54  ;;  %5126 = vmatpush.bf16.msrb.mxu3 %v7953_v35 }
 0x49f   : > { %v11080_v63 = vld [vmem:[%s10080_s14] sm:$0xff] }
 0x4a0   : > { %v1819_v53 = vperm.slane %v11080_v63, 4  ;;  %v8643_v51 = vld [vmem:[%s10087_s23 + $0xb34] sm:$0xf0]  ;;  %5088 = vmatpush.bf16.msrb.mxu0 %v7153_v3  ;;  %v4875_v3 = vpop.f32.mrf.mxu3 }
 0x4a1   : > { %v7664_v0 = vld [vmem:[%s10087_s23 + $0xd18] sm:$0xf]  ;;  %v7409_v5 = vor.u32 %v8643_v51, %v7408_v61  ;;  %v4862_v51 = vpop.f32.mrf.mxu2  ;;  %v6098_v3 = vld [vmem:[%s10087_s23 + $0xf8] sm:$0xf0] }
 0x4a2   : > { %v8707_v1 = vld [vmem:[%s10087_s23 + $0xd34] sm:$0xf0]  ;;  %v4835_v59 = vadd.f32 %v4834_v56, %v1819_v53  ;;  %v8343_v56 = vld [vmem:[%s10087_s23 + $0x1dc] sm:$0xf] }
 0x4a3   : > { %v7920_v2 = vld [vmem:[%s10087_s23 + $0xf18] sm:$0xf]  ;;  %v7665_v57 = vor.u32 %v8707_v1, %v7664_v0  ;;  %5101 = vmatpush.bf16.msrb.mxu1 %v7409_v5  ;;  %v6226_v5 = vld [vmem:[%s10087_s23 + $0x1f8] sm:$0xf0] }
 0x4a4   : > { %v8771_v58 = vld [vmem:[%s10087_s23 + $0xf34] sm:$0xf0]  ;;  %v4848_v13 = vadd.f32 %v4847_v7, %v4835_v59  ;;  %v6738_v59 = vld [vmem:[%s10087_s23 + $0x5f8] sm:$0xf0] }
 0x4a5   : > { %v7120_v6 = vld [vmem:[%s10087_s23 + $0x8d8] sm:$0xf]  ;;  %v7921_v9 = vor.u32 %v8771_v58, %v7920_v2  ;;  %5114 = vmatpush.bf16.msrb.mxu2 %v7665_v57  ;;  %v8407_v57 = vld [vmem:[%s10087_s23 + $0x3dc] sm:$0xf] }
 0x4a6   : > { %v8571_v26 = vld [vmem:[%s10087_s23 + $0x8f4] sm:$0xf0]  ;;  %v4861_v52 = vadd.f32 %v4860_v23, %v4848_v13  ;;  %v6706_v23 = vld [vmem:[%s10087_s23 + $0x5b8] sm:$0xf0] }
 0x4a7   : > { %v7376_v33 = vld [vmem:[%s10087_s23 + $0xad8] sm:$0xf]  ;;  %v7121_v16 = vor.u32 %v8571_v26, %v7120_v6  ;;  %5127 = vmatpush.bf16.msrb.mxu3 %v7921_v9  ;;  %v6482_v26 = vld [vmem:[%s10087_s23 + $0x3f8] sm:$0xf0] }
 0x4a8   : > { %v8635_v10 = vld [vmem:[%s10087_s23 + $0xaf4] sm:$0xf0]  ;;  %v11104_v36 = vadd.f32 %v4873_v27, %v4861_v52  ;;  %v8327_v27 = vld [vmem:[%s10087_s23 + $0x15c] sm:$0xf] }
 0x4a9   : > { %v7632_v39 = vld [vmem:[%s10087_s23 + $0xcd8] sm:$0xf]  ;;  %v7377_v18 = vor.u32 %v8635_v10, %v7376_v33  ;;  %5089 = vmatpush.bf16.msrb.mxu0 %v7121_v16  ;;  %v8471_v33 = vld [vmem:[%s10087_s23 + $0x5dc] sm:$0xf] }
 0x4aa   : > { %v8699_v15 = vld [vmem:[%s10087_s23 + $0xcf4] sm:$0xf0]  ;;  %v8535_v10 = vld [vmem:[%s10087_s23 + $0x7dc] sm:$0xf]  ;;  %v6741_v13 = vor.u32 %v8471_v33, %v6738_v59 }
 0x4ab   : > { %v7888_v11 = vld [vmem:[%s10087_s23 + $0xed8] sm:$0xf]  ;;  %v7633_v14 = vor.u32 %v8699_v15, %v7632_v39  ;;  %5102 = vmatpush.bf16.msrb.mxu1 %v7377_v18  ;;  %v6994_v39 = vld [vmem:[%s10087_s23 + $0x7f8] sm:$0xf0] }
 0x4ac   : > { %v8763_v12 = vld [vmem:[%s10087_s23 + $0xef4] sm:$0xf0]  ;;  %v8335_v16 = vld [vmem:[%s10087_s23 + $0x19c] sm:$0xf] }
 0x4ad   : > { %v7088_v17 = vld [vmem:[%s10087_s23 + $0x898] sm:$0xf]  ;;  %v7889_v20 = vor.u32 %v8763_v12, %v7888_v11  ;;  %5115 = vmatpush.bf16.msrb.mxu2 %v7633_v14  ;;  %v6229_v11 = vor.u32 %v8343_v56, %v6226_v5  ;;  %v6485_v12 = vor.u32 %v8407_v57, %v6482_v26  ;;  %v6194_v18 = vld [vmem:[%s10087_s23 + $0x1b8] sm:$0xf0]  ;;  %v4899_v57 = vpop.f32.mrf.mxu1 }
 0x4ae   : > { %v8563_v19 = vld [vmem:[%s10087_s23 + $0x8b4] sm:$0xf0]  ;;  %v8399_v14 = vld [vmem:[%s10087_s23 + $0x39c] sm:$0xf] }
 0x4af   : > { %v7344_v22 = vld [vmem:[%s10087_s23 + $0xa98] sm:$0xf]  ;;  %v7089_v24 = vor.u32 %v8563_v19, %v7088_v17  ;;  %5128 = vmatpush.bf16.msrb.mxu3 %v7889_v20  ;;  %v6997_v17 = vor.u32 %v8535_v10, %v6994_v39  ;;  %v6450_v19 = vld [vmem:[%s10087_s23 + $0x3b8] sm:$0xf0] }
 0x4b0   : > { %v8627_v45 = vld [vmem:[%s10087_s23 + $0xab4] sm:$0xf0]  ;;  %v8527_v20 = vld [vmem:[%s10087_s23 + $0x79c] sm:$0xf] }
 0x4b1   : > { %v7600_v25 = vld [vmem:[%s10087_s23 + $0xc98] sm:$0xf]  ;;  %v7345_v38 = vor.u32 %v8627_v45, %v7344_v22  ;;  %5090 = vmatpush.bf16.msrb.mxu0 %v7089_v24  ;;  %v8463_v22 = vld [vmem:[%s10087_s23 + $0x59c] sm:$0xf]  ;;  %v11141_v24 = vld [vmem:[#allocation1 + $0x36] sm:$0xff] }
 0x4b2   : > { %v8691_v21 = vld [vmem:[%s10087_s23 + $0xcb4] sm:$0xf0]  ;;  %v6962_v45 = vld [vmem:[%s10087_s23 + $0x7b8] sm:$0xf0]  ;;  %v6709_v52 = vor.u32 %v8463_v22, %v6706_v23  ;;  %v4925_v23 = vpop.f32.mrf.mxu3 }
 0x4b3   : > { %v7856_v31 = vld [vmem:[%s10087_s23 + $0xe98] sm:$0xf]  ;;  %v7601_v40 = vor.u32 %v8691_v21, %v7600_v25  ;;  %5103 = vmatpush.bf16.msrb.mxu1 %v7345_v38  ;;  %v6197_v25 = vor.u32 %v8335_v16, %v6194_v18  ;;  %v6453_v21 = vor.u32 %v8399_v14, %v6450_v19  ;;  %v6965_v37 = vor.u32 %v8527_v20, %v6962_v45  ;;  %v6418_v38 = vld [vmem:[%s10087_s23 + $0x378] sm:$0xf0]  ;;  %v4912_v16 = vpop.f32.mrf.mxu2 }
 0x4b4   : > { %v8755_v34 = vld [vmem:[%s10087_s23 + $0xeb4] sm:$0xf0]  ;;  %v8375_v56 = vld [vmem:[%s10087_s23 + $0x2dc] sm:$0xf] }
 0x4b5   : > { %v7056_v41 = vld [vmem:[%s10087_s23 + $0x858] sm:$0xf]  ;;  %v7857_v47 = vor.u32 %v8755_v34, %v7856_v31  ;;  %5116 = vmatpush.bf16.msrb.mxu2 %v7601_v40  ;;  %v6162_v31 = vld [vmem:[%s10087_s23 + $0x178] sm:$0xf0] }
 0x4b6   : > { %v8555_v42 = vld [vmem:[%s10087_s23 + $0x874] sm:$0xf0]  ;;  %v8391_v34 = vld [vmem:[%s10087_s23 + $0x35c] sm:$0xf] }
 0x4b7   : > { %v7312_v32 = vld [vmem:[%s10087_s23 + $0xa58] sm:$0xf]  ;;  %v7057_v30 = vor.u32 %v8555_v42, %v7056_v41  ;;  %5129 = vmatpush.bf16.msrb.mxu3 %v7857_v47  ;;  %v8455_v40 = vld [vmem:[%s10087_s23 + $0x55c] sm:$0xf] }
 0x4b8   : > { %v8619_v48 = vld [vmem:[%s10087_s23 + $0xa74] sm:$0xf0]  ;;  %v6674_v41 = vld [vmem:[%s10087_s23 + $0x578] sm:$0xf0] }
 0x4b9   : > { %v7568_v28 = vld [vmem:[%s10087_s23 + $0xc58] sm:$0xf]  ;;  %v7313_v4 = vor.u32 %v8619_v48, %v7312_v32  ;;  %5091 = vmatpush.bf16.msrb.mxu0 %v7057_v30  ;;  %v11147_v42 = vld [vmem:[#allocation1 + $0x24] sm:$0xff]  ;;  %v11155_v48 = vld [vmem:[#allocation1 + $0x2d] sm:$0xff] }
 0x4ba   : > { %v8683_v49 = vld [vmem:[%s10087_s23 + $0xc74] sm:$0xf0]  ;;  %v6930_v47 = vld [vmem:[%s10087_s23 + $0x778] sm:$0xf0] }
 0x4bb   : > { %v7824_v50 = vld [vmem:[%s10087_s23 + $0xe58] sm:$0xf]  ;;  %v7569_v60 = vor.u32 %v8683_v49, %v7568_v28  ;;  %5104 = vmatpush.bf16.msrb.mxu1 %v7313_v4  ;;  %v6165_v28 = vor.u32 %v8327_v27, %v6162_v31  ;;  %v6421_v49 = vor.u32 %v8391_v34, %v6418_v38  ;;  %v6130_v30 = vld [vmem:[%s10087_s23 + $0x138] sm:$0xf0] }
 0x4bc   : > { %v8747_v29 = vld [vmem:[%s10087_s23 + $0xe74] sm:$0xf0]  ;;  %v6386_v4 = vld [vmem:[%s10087_s23 + $0x338] sm:$0xf0] }
 0x4bd   : > { %v7024_v54 = vld [vmem:[%s10087_s23 + $0x818] sm:$0xf]  ;;  %v7825_v0 = vor.u32 %v8747_v29, %v7824_v50  ;;  %5117 = vmatpush.bf16.msrb.mxu2 %v7569_v60  ;;  %v6677_v50 = vor.u32 %v8455_v40, %v6674_v41  ;;  %v8319_v29 = vld [vmem:[%s10087_s23 + $0x11c] sm:$0xf]  ;;  %v4901_v40 = vpop.f32.mrf.mxu1 }
 0x4be   : > { %v8547_v55 = vld [vmem:[%s10087_s23 + $0x834] sm:$0xf0]  ;;  %v8447_v60 = vld [vmem:[%s10087_s23 + $0x51c] sm:$0xf]  ;;  %v6133_v51 = vor.u32 %v8319_v29, %v6130_v30 }
 0x4bf   : > { %v7280_v61 = vld [vmem:[%s10087_s23 + $0xa18] sm:$0xf]  ;;  %v7025_v6 = vor.u32 %v8547_v55, %v7024_v54  ;;  %5130 = vmatpush.bf16.msrb.mxu3 %v7825_v0  ;;  %v8383_v54 = vld [vmem:[%s10087_s23 + $0x31c] sm:$0xf]  ;;  %v6933_v55 = vor.u32 %v8519_v44, %v6930_v47  ;;  %v4886_v0 = vpop.f32.mrf.mxu0 }
 0x4c0   : > { %v8611_v53 = vld [vmem:[%s10087_s23 + $0xa34] sm:$0xf0]  ;;  %v4887_v5 = vadd.f32 %v4886_v0, %v11104_v36  ;;  %v6354_v26 = vld [vmem:[%s10087_s23 + $0x2f8] sm:$0xf0] }
 0x4c1   : > { %v7536_v35 = vld [vmem:[%s10087_s23 + $0xc18] sm:$0xf]  ;;  %v7281_v7 = vor.u32 %v8611_v53, %v7280_v61  ;;  %5092 = vmatpush.bf16.msrb.mxu0 %v7025_v6  ;;  %v6642_v61 = vld [vmem:[%s10087_s23 + $0x538] sm:$0xf0]  ;;  %v6357_v36 = vor.u32 %v8375_v56, %v6354_v26 }
 0x4c2   : > { %v8675_v1 = vld [vmem:[%s10087_s23 + $0xc34] sm:$0xf0]  ;;  %v8511_v53 = vld [vmem:[%s10087_s23 + $0x71c] sm:$0xf]  ;;  %v4900_v10 = vadd.f32 %v4899_v57, %v4887_v5 }
 0x4c3   : > { %v7792_v2 = vld [vmem:[%s10087_s23 + $0xe18] sm:$0xf]  ;;  %v7537_v9 = vor.u32 %v8675_v1, %v7536_v35  ;;  %5105 = vmatpush.bf16.msrb.mxu1 %v7281_v7  ;;  %v6898_v35 = vld [vmem:[%s10087_s23 + $0x738] sm:$0xf0]  ;;  %v6389_v1 = vor.u32 %v8383_v54, %v6386_v4 }
 0x4c4   : > { %v8739_v58 = vld [vmem:[%s10087_s23 + $0xe34] sm:$0xf0]  ;;  %5093 = vmatmul.bf16.vlgmr.msrb.gmra.mxu0 %v11147_v42  ;;  %v6901_v6 = vor.u32 %v8511_v53, %v6898_v35  ;;  %v8439_v33 = vld [vmem:[%s10087_s23 + $0x4dc] sm:$0xf]  ;;  %v4913_v22 = vadd.f32 %v4912_v16, %v4900_v10  ;;  %v4914_v35 = vpop.f32.mrf.mxu2 }
 0x4c5   : > { %v7793_v15 = vor.u32 %v8739_v58, %v7792_v2  ;;  %5118 = vmatpush.bf16.msrb.mxu2 %v7537_v9  ;;  %5137 = vmatpush.bf16.msra.mxu0 %v6229_v11  ;;  %v11150_v32 = vld [vmem:[#allocation1 + $0x3f] sm:$0xff]  ;;  %v6645_v2 = vor.u32 %v8447_v60, %v6642_v61 }
 0x4c6   : > { %5106 = vmatmul.bf16.vlgmr.msrb.gmra.mxu1 %v11155_v48  ;;  %v8311_v58 = vld [vmem:[%s10087_s23 + $0xdc] sm:$0xf] }
 0x4c7   : > { %5131 = vmatpush.bf16.msrb.mxu3 %v7793_v15  ;;  %5150 = vmatpush.bf16.msra.mxu1 %v6485_v12  ;;  %v6610_v59 = vld [vmem:[%s10087_s23 + $0x4f8] sm:$0xf0]  ;;  %v6101_v39 = vor.u32 %v8311_v58, %v6098_v3  ;;  %v4927_v58 = vpop.f32.mrf.mxu3 }
 0x4c8   : > { %5119 = vmatmul.bf16.vlgmr.msrb.gmra.mxu2 %v11141_v24  ;;  %v8503_v7 = vld [vmem:[%s10087_s23 + $0x6dc] sm:$0xf]  ;;  %v6613_v15 = vor.u32 %v8439_v33, %v6610_v59 }
 0x4c9   : > { %5163 = vmatpush.bf16.msra.mxu2 %v6741_v13  ;;  %5138 = vmatpush.bf16.msra.mxu0 %v6197_v25  ;;  %v6866_v9 = vld [vmem:[%s10087_s23 + $0x6f8] sm:$0xf0] }
 0x4ca   : > { %5132 = vmatmul.bf16.vlgmr.msrb.gmra.mxu3 %v11150_v32  ;;  %v8303_v11 = vld [vmem:[%s10087_s23 + $0x9c] sm:$0xf]  ;;  %v6869_v18 = vor.u32 %v8503_v7, %v6866_v9 }
 0x4cb   : > { %5176 = vmatpush.bf16.msra.mxu3 %v6997_v17  ;;  %5151 = vmatpush.bf16.msra.mxu1 %v6453_v21  ;;  %v6066_v12 = vld [vmem:[%s10087_s23 + $0xb8] sm:$0xf0]  ;;  %v11183_v21 = vadd.f32 %v4925_v23, %v4913_v22 }
 0x4cc   : > { %v8367_v13 = vld [vmem:[%s10087_s23 + $0x29c] sm:$0xf]  ;;  %v6069_v25 = vor.u32 %v8303_v11, %v6066_v12 }
 0x4cd   : > { %5164 = vmatpush.bf16.msra.mxu2 %v6709_v52  ;;  %5139 = vmatpush.bf16.msra.mxu0 %v6165_v28  ;;  %v6322_v14 = vld [vmem:[%s10087_s23 + $0x2b8] sm:$0xf0]  ;;  %v4888_v52 = vpop.f32.mrf.mxu0 }
 0x4ce   : > { %v8431_v17 = vld [vmem:[%s10087_s23 + $0x49c] sm:$0xf]  ;;  %v6325_v27 = vor.u32 %v8367_v13, %v6322_v14 }
 0x4cf   : > { %5177 = vmatpush.bf16.msra.mxu3 %v6965_v37  ;;  %5152 = vmatpush.bf16.msra.mxu1 %v6421_v49  ;;  %v6578_v19 = vld [vmem:[%s10087_s23 + $0x4b8] sm:$0xf0] }
 0x4d0   : > { %v8495_v20 = vld [vmem:[%s10087_s23 + $0x69c] sm:$0xf]  ;;  %v6581_v31 = vor.u32 %v8431_v17, %v6578_v19 }
 0x4d1   : > { %5165 = vmatpush.bf16.msra.mxu2 %v6677_v50  ;;  %5140 = vmatpush.bf16.msra.mxu0 %v6133_v51  ;;  %v6834_v45 = vld [vmem:[%s10087_s23 + $0x6b8] sm:$0xf0] }
 0x4d2   : > { %v8295_v34 = vld [vmem:[%s10087_s23 + $0x5c] sm:$0xf]  ;;  %v6837_v41 = vor.u32 %v8495_v20, %v6834_v45 }
 0x4d3   : > { %5178 = vmatpush.bf16.msra.mxu3 %v6933_v55  ;;  %5153 = vmatpush.bf16.msra.mxu1 %v6389_v1  ;;  %v6034_v37 = vld [vmem:[%s10087_s23 + $0x78] sm:$0xf0] }
 0x4d4   : > { %v8359_v38 = vld [vmem:[%s10087_s23 + $0x25c] sm:$0xf]  ;;  %v6037_v29 = vor.u32 %v8295_v34, %v6034_v37  ;;  %v8914_v37 = vld [vmem:[#allocation1 + $0x12] sm:$0xff] }
 0x4d5   : > { %5166 = vmatpush.bf16.msra.mxu2 %v6645_v2  ;;  %5141 = vmatpush.bf16.msra.mxu0 %v6101_v39  ;;  %v6290_v44 = vld [vmem:[%s10087_s23 + $0x278] sm:$0xf0]  ;;  %v11233_v58 = vpop.f32.mrf.mxu0 }
 0x4d6   : > { %v8423_v47 = vld [vmem:[%s10087_s23 + $0x45c] sm:$0xf]  ;;  %v6293_v55 = vor.u32 %v8359_v38, %v6290_v44 }
 0x4d7   : > { %5179 = vmatpush.bf16.msra.mxu3 %v6901_v6  ;;  %5154 = vmatpush.bf16.msra.mxu1 %v6357_v36  ;;  %v6546_v28 = vld [vmem:[%s10087_s23 + $0x478] sm:$0xf0] }
 0x4d8   : > { %v8487_v49 = vld [vmem:[%s10087_s23 + $0x65c] sm:$0xf]  ;;  %v6549_v4 = vor.u32 %v8423_v47, %v6546_v28 }
 0x4d9   : > { %5167 = vmatpush.bf16.msra.mxu2 %v6613_v15  ;;  %v6802_v50 = vld [vmem:[%s10087_s23 + $0x678] sm:$0xf0]  ;;  %5142 = vmatpush.bf16.msra.mxu0 %v6069_v25 }
 0x4da   : > { %v8287_v30 = vld [vmem:[%s10087_s23 + $0x1c] sm:$0xf]  ;;  %v6805_v51 = vor.u32 %v8487_v49, %v6802_v50  ;;  %v8916_v49 = vld [vmem:[#allocation1 + $0x1b] sm:$0xff] }
 0x4db   : > { %5180 = vmatpush.bf16.msra.mxu3 %v6869_v18  ;;  %v6002_v54 = vld [vmem:[%s10087_s23 + $0x38] sm:$0xf0]  ;;  %5155 = vmatpush.bf16.msra.mxu1 %v6325_v27 }
 0x4dc   : > { %v8351_v60 = vld [vmem:[%s10087_s23 + $0x21c] sm:$0xf]  ;;  %v6005_v57 = vor.u32 %v8287_v30, %v6002_v54 }
 0x4dd   : > { %5168 = vmatpush.bf16.msra.mxu2 %v6581_v31  ;;  %v6258_v61 = vld [vmem:[%s10087_s23 + $0x238] sm:$0xf0]  ;;  %5143 = vmatpush.bf16.msra.mxu0 %v6037_v29  ;;  %v8917_v29 = vld [vmem:[#allocation1 + $0x9] sm:$0xff] }
 0x4de   : > { %v8415_v53 = vld [vmem:[%s10087_s23 + $0x41c] sm:$0xf]  ;;  %v6261_v59 = vor.u32 %v8351_v60, %v6258_v61 }
 0x4df   : > { %5181 = vmatpush.bf16.msra.mxu3 %v6837_v41  ;;  %v6514_v0 = vld [vmem:[%s10087_s23 + $0x438] sm:$0xf0]  ;;  %5156 = vmatpush.bf16.msra.mxu1 %v6293_v55 }
 0x4e0   : > { %v8479_v1 = vld [vmem:[%s10087_s23 + $0x61c] sm:$0xf]  ;;  %v6517_v7 = vor.u32 %v8415_v53, %v6514_v0 }
 0x4e1   : > { %v6770_v2 = vld [vmem:[%s10087_s23 + $0x638] sm:$0xf0]  ;;  %5169 = vmatpush.bf16.msra.mxu2 %v6549_v4  ;;  %5144 = vmatpush.bf16.msra.mxu0 %v6005_v57 }
 0x4e2   : > { %v8599_v3 = vld [vmem:[%s10087_s23 + $0x9dc] sm:$0xf]  ;;  %v6773_v39 = vor.u32 %v8479_v1, %v6770_v2 }
 0x4e3   : > { %v7250_v56 = vld [vmem:[%s10087_s23 + $0x9f8] sm:$0xf0]  ;;  %5182 = vmatpush.bf16.msra.mxu3 %v6805_v51  ;;  %5157 = vmatpush.bf16.msra.mxu1 %v6261_v59 }
 0x4e4   : > { %v8663_v5 = vld [vmem:[%s10087_s23 + $0xbdc] sm:$0xf]  ;;  %v7253_v36 = vor.u32 %v8599_v3, %v7250_v56 }
 0x4e5   : > { %v7506_v6 = vld [vmem:[%s10087_s23 + $0xbf8] sm:$0xf0]  ;;  %5170 = vmatpush.bf16.msra.mxu2 %v6517_v7 }
 0x4e6   : > { %v8727_v26 = vld [vmem:[%s10087_s23 + $0xddc] sm:$0xf]  ;;  %v7509_v15 = vor.u32 %v8663_v5, %v7506_v6  ;;  %5189 = vmatpush.bf16.msrb.mxu0 %v7253_v36  ;;  %5158 = vmatmul.bf16.vlgmr.msra.gmra.mxu1 %v8917_v29 }
 0x4e7   : > { %v7762_v33 = vld [vmem:[%s10087_s23 + $0xdf8] sm:$0xf0]  ;;  %5183 = vmatpush.bf16.msra.mxu3 %v6773_v39 }
 0x4e8   : > { %v8791_v9 = vld [vmem:[%s10087_s23 + $0xfdc] sm:$0xf]  ;;  %v7765_v11 = vor.u32 %v8727_v26, %v7762_v33  ;;  %5202 = vmatpush.bf16.msrb.mxu1 %v7509_v15  ;;  %5171 = vmatmul.bf16.vlgmr.msra.gmra.mxu2 %v8914_v37  ;;  %v11238_v26 = vpop.f32.mrf.mxu1 }
 0x4e9   : > { %v8018_v10 = vld [vmem:[%s10087_s23 + $0xff8] sm:$0xf0] }
 0x4ea   : > { %v8591_v12 = vld [vmem:[%s10087_s23 + $0x99c] sm:$0xf]  ;;  %v8021_v18 = vor.u32 %v8791_v9, %v8018_v10  ;;  %5215 = vmatpush.bf16.msrb.mxu2 %v7765_v11  ;;  %5184 = vmatmul.bf16.vlgmr.msra.gmra.mxu3 %v8916_v49 }
 0x4eb   : > { %v7218_v13 = vld [vmem:[%s10087_s23 + $0x9b8] sm:$0xf0] }
 0x4ec   : > { %v8655_v16 = vld [vmem:[%s10087_s23 + $0xb9c] sm:$0xf]  ;;  %v7221_v20 = vor.u32 %v8591_v12, %v7218_v13  ;;  %5228 = vmatpush.bf16.msrb.mxu3 %v8021_v18  ;;  %v11248_v18 = vpop.f32.mrf.mxu2 }
 0x4ed   : > { %v7474_v14 = vld [vmem:[%s10087_s23 + $0xbb8] sm:$0xf0] }
 0x4ee   : > { %v8719_v17 = vld [vmem:[%s10087_s23 + $0xd9c] sm:$0xf]  ;;  %v7477_v45 = vor.u32 %v8655_v16, %v7474_v14  ;;  %5190 = vmatpush.bf16.msrb.mxu0 %v7221_v20 }
 0x4ef   : > { %v7730_v19 = vld [vmem:[%s10087_s23 + $0xdb8] sm:$0xf0] }
 0x4f0   : > { %v8783_v22 = vld [vmem:[%s10087_s23 + $0xf9c] sm:$0xf]  ;;  %v7733_v25 = vor.u32 %v8719_v17, %v7730_v19  ;;  %5203 = vmatpush.bf16.msrb.mxu1 %v7477_v45 }
 0x4f1   : > { %v7986_v23 = vld [vmem:[%s10087_s23 + $0xfb8] sm:$0xf0] }
 0x4f2   : > { %v8583_v52 = vld [vmem:[%s10087_s23 + $0x95c] sm:$0xf]  ;;  %v7989_v34 = vor.u32 %v8783_v22, %v7986_v23  ;;  %5216 = vmatpush.bf16.msrb.mxu2 %v7733_v25  ;;  %v11253_v23 = vpop.f32.mrf.mxu3 }
 0x4f3   : > { %v7186_v27 = vld [vmem:[%s10087_s23 + $0x978] sm:$0xf0] }
 0x4f4   : > { %v8647_v31 = vld [vmem:[%s10087_s23 + $0xb5c] sm:$0xf]  ;;  %v7189_v50 = vor.u32 %v8583_v52, %v7186_v27  ;;  %5229 = vmatpush.bf16.msrb.mxu3 %v7989_v34  ;;  %v4940_v52 = vpop.f32.mrf.mxu0 }
 0x4f5   : > { %v7442_v38 = vld [vmem:[%s10087_s23 + $0xb78] sm:$0xf0] }
 0x4f6   : > { %v8711_v40 = vld [vmem:[%s10087_s23 + $0xd5c] sm:$0xf]  ;;  %v7445_v30 = vor.u32 %v8647_v31, %v7442_v38  ;;  %5191 = vmatpush.bf16.msrb.mxu0 %v7189_v50 }
 0x4f7   : > { %v7698_v41 = vld [vmem:[%s10087_s23 + $0xd78] sm:$0xf0] }
 0x4f8   : > { %v8775_v44 = vld [vmem:[%s10087_s23 + $0xf5c] sm:$0xf]  ;;  %v7701_v54 = vor.u32 %v8711_v40, %v7698_v41  ;;  %5204 = vmatpush.bf16.msrb.mxu1 %v7445_v30  ;;  %v4953_v40 = vpop.f32.mrf.mxu1 }
 0x4f9   : > { %v7954_v47 = vld [vmem:[%s10087_s23 + $0xf78] sm:$0xf0]  ;;  %v8822_v40 = vld [vmem:[%s10085_s20 + $0xd0] sm:$0xff] }
 0x4fa   : > { %v8915_v28 = vld [vmem:[#allocation1] sm:$0xff]  ;;  %v7957_v61 = vor.u32 %v8775_v44, %v7954_v47  ;;  %5217 = vmatpush.bf16.msrb.mxu2 %v7701_v54 }
 0x4fb   : > { %5145 = vmatmul.bf16.vlgmr.msra.gmra.mxu0 %v8915_v28  ;;  %v8575_v55 = vld [vmem:[%s10087_s23 + $0x91c] sm:$0xf] }
 0x4fc   : > { %v7154_v4 = vld [vmem:[%s10087_s23 + $0x938] sm:$0xf0]  ;;  %5230 = vmatpush.bf16.msrb.mxu3 %v7957_v61  ;;  %v4966_v61 = vpop.f32.mrf.mxu2 }
 0x4fd   : > { %v8639_v60 = vld [vmem:[%s10087_s23 + $0xb1c] sm:$0xf]  ;;  %v7157_v2 = vor.u32 %v8575_v55, %v7154_v4  ;;  %v5243_v61 = vmax.f32 %v10880_v46, 0.0  ;;  %v8834_v46 = vld [vmem:[%s10085_s20 + $0x130] sm:$0xff] }
 0x4fe   : > { %v7410_v53 = vld [vmem:[%s10087_s23 + $0xb38] sm:$0xf0] }
 0x4ff   : > { %v8703_v35 = vld [vmem:[%s10087_s23 + $0xd1c] sm:$0xf]  ;;  %v7413_v3 = vor.u32 %v8639_v60, %v7410_v53  ;;  %5192 = vmatpush.bf16.msrb.mxu0 %v7157_v2 }
 0x500   : > { %v7666_v51 = vld [vmem:[%s10087_s23 + $0xd38] sm:$0xf0] }
 0x501   : > { %v8767_v0 = vld [vmem:[%s10087_s23 + $0xf1c] sm:$0xf]  ;;  %v7669_v56 = vor.u32 %v8703_v35, %v7666_v51  ;;  %5205 = vmatpush.bf16.msrb.mxu1 %v7413_v3 }
 0x502   : > { %v7922_v1 = vld [vmem:[%s10087_s23 + $0xf38] sm:$0xf0] }
 0x503   : > { %v8567_v5 = vld [vmem:[%s10087_s23 + $0x8dc] sm:$0xf]  ;;  %v7925_v33 = vor.u32 %v8767_v0, %v7922_v1  ;;  %5218 = vmatpush.bf16.msrb.mxu2 %v7669_v56  ;;  %v4979_v1 = vpop.f32.mrf.mxu3 }
 0x504   : > { %v7122_v57 = vld [vmem:[%s10087_s23 + $0x8f8] sm:$0xf0]  ;;  %v8851_v1 = vld [vmem:[%s10085_s20 + $0x1b8] sm:$0xff] }
 0x505   : > { %v8631_v6 = vld [vmem:[%s10087_s23 + $0xadc] sm:$0xf]  ;;  %v7125_v36 = vor.u32 %v8567_v5, %v7122_v57  ;;  %5231 = vmatpush.bf16.msrb.mxu3 %v7925_v33  ;;  %v8803_v33 = vld [vmem:[%s10085_s20 + $0x38] sm:$0xff] }
 0x506   : > { %v7378_v59 = vld [vmem:[%s10087_s23 + $0xaf8] sm:$0xf0] }
 0x507   : > { %v8695_v7 = vld [vmem:[%s10087_s23 + $0xcdc] sm:$0xf]  ;;  %v7381_v15 = vor.u32 %v8631_v6, %v7378_v59  ;;  %5193 = vmatpush.bf16.msrb.mxu0 %v7125_v36  ;;  %v8811_v59 = vld [vmem:[%s10085_s20 + $0x78] sm:$0xff]  ;;  %v8818_v36 = vld [vmem:[%s10085_s20 + $0xb0] sm:$0xff] }
 0x508   : > { %v7634_v9 = vld [vmem:[%s10087_s23 + $0xcf8] sm:$0xf0] }
 0x509   : > { %v8759_v10 = vld [vmem:[%s10087_s23 + $0xedc] sm:$0xf]  ;;  %v7637_v11 = vor.u32 %v8695_v7, %v7634_v9  ;;  %5206 = vmatpush.bf16.msrb.mxu1 %v7381_v15  ;;  %v8819_v7 = vld [vmem:[%s10085_s20 + $0xb8] sm:$0xff]  ;;  %v8826_v15 = vld [vmem:[%s10085_s20 + $0xf0] sm:$0xff] }
 0x50a   : > { %v7890_v39 = vld [vmem:[%s10087_s23 + $0xef8] sm:$0xf0]  ;;  %v8827_v9 = vld [vmem:[%s10085_s20 + $0xf8] sm:$0xff] }
 0x50b   : > { %v8559_v12 = vld [vmem:[%s10087_s23 + $0x89c] sm:$0xf]  ;;  %v7893_v14 = vor.u32 %v8759_v10, %v7890_v39  ;;  %5219 = vmatpush.bf16.msrb.mxu2 %v7637_v11  ;;  %v8802_v10 = vld [vmem:[%s10085_s20 + $0x30] sm:$0xff]  ;;  %v8801_v11 = vld [vmem:[%s10085_s20 + $0x28] sm:$0xff]  ;;  %v11303_v52 = vpop.f32.mrf.mxu3 }
 0x50c   : > { %v7090_v13 = vld [vmem:[%s10087_s23 + $0x8b8] sm:$0xf0]  ;;  %v8810_v39 = vld [vmem:[%s10085_s20 + $0x70] sm:$0xff] }
 0x50d   : > { %v8623_v16 = vld [vmem:[%s10087_s23 + $0xa9c] sm:$0xf]  ;;  %v7093_v25 = vor.u32 %v8559_v12, %v7090_v13  ;;  %5232 = vmatpush.bf16.msrb.mxu3 %v7893_v14  ;;  %v8809_v12 = vld [vmem:[%s10085_s20 + $0x68] sm:$0xff]  ;;  %v11294_v14 = vpop.f32.mrf.mxu1 }
 0x50e   : > { %v7346_v17 = vld [vmem:[%s10087_s23 + $0xab8] sm:$0xf0]  ;;  %v8817_v13 = vld [vmem:[%s10085_s20 + $0xa8] sm:$0xff] }
 0x50f   : > { %v8687_v19 = vld [vmem:[%s10087_s23 + $0xc9c] sm:$0xf]  ;;  %v7349_v27 = vor.u32 %v8623_v16, %v7346_v17  ;;  %5194 = vmatpush.bf16.msrb.mxu0 %v7093_v25  ;;  %v11290_v16 = vpop.f32.mrf.mxu0  ;;  %v8823_v25 = vld [vmem:[%s10085_s20 + $0xd8] sm:$0xff] }
 0x510   : > { %v7602_v22 = vld [vmem:[%s10087_s23 + $0xcb8] sm:$0xf0] }
 0x511   : > { %v8751_v20 = vld [vmem:[%s10087_s23 + $0xe9c] sm:$0xf]  ;;  %v7605_v31 = vor.u32 %v8687_v19, %v7602_v22  ;;  %5207 = vmatpush.bf16.msrb.mxu1 %v7349_v27  ;;  %v8799_v19 = vld [vmem:[%s10085_s20 + $0x18] sm:$0xff]  ;;  %v8798_v27 = vld [vmem:[%s10085_s20 + $0x10] sm:$0xff] }
 0x512   : > { %v7858_v45 = vld [vmem:[%s10087_s23 + $0xeb8] sm:$0xf0]  ;;  %v8807_v22 = vld [vmem:[%s10085_s20 + $0x58] sm:$0xff] }
 0x513   : > { %v8551_v34 = vld [vmem:[%s10087_s23 + $0x85c] sm:$0xf]  ;;  %v7861_v41 = vor.u32 %v8751_v20, %v7858_v45  ;;  %5220 = vmatpush.bf16.msrb.mxu2 %v7605_v31  ;;  %v8815_v20 = vld [vmem:[%s10085_s20 + $0x98] sm:$0xff]  ;;  %v11300_v45 = vpop.f32.mrf.mxu2 }
 0x514   : > { %v7058_v37 = vld [vmem:[%s10087_s23 + $0x878] sm:$0xf0] }
 0x515   : > { %v8615_v38 = vld [vmem:[%s10087_s23 + $0xa5c] sm:$0xf]  ;;  %v7061_v29 = vor.u32 %v8551_v34, %v7058_v37  ;;  %5233 = vmatpush.bf16.msrb.mxu3 %v7861_v41  ;;  %v8806_v34 = vld [vmem:[%s10085_s20 + $0x50] sm:$0xff]  ;;  %v1820_v41 = vperm.slane %v11080_v63, 5  ;;  %v5241_v63 = vmax.f32 %v10577_v8, 0.0 }
 0x516   : > { %v7314_v44 = vld [vmem:[%s10087_s23 + $0xa78] sm:$0xf0]  ;;  %v8814_v37 = vld [vmem:[%s10085_s20 + $0x90] sm:$0xff] }
 0x517   : > { %v8679_v47 = vld [vmem:[%s10087_s23 + $0xc5c] sm:$0xf]  ;;  %v7317_v30 = vor.u32 %v8615_v38, %v7314_v44  ;;  %5195 = vmatpush.bf16.msrb.mxu0 %v7061_v29  ;;  %v4992_v31 = vpop.f32.mrf.mxu0  ;;  %v5005_v38 = vpop.f32.mrf.mxu1  ;;  %v8797_v44 = vld [vmem:[%s10085_s20 + $0x8] sm:$0xff]  ;;  %v5250_v8 = vpack.c.bf16 %v5241_v63, %v5241_v63 }
 0x518   : > { %v7570_v28 = vld [vmem:[%s10087_s23 + $0xc78] sm:$0xf0]  ;;  %v5031_v29 = vpop.f32.mrf.mxu3  ;;  %v5245_v38 = vmax.f32 %v11183_v21, 0.0 }
 0x519   : > { %v8743_v49 = vld [vmem:[%s10087_s23 + $0xe5c] sm:$0xf]  ;;  %v7573_v54 = vor.u32 %v8679_v47, %v7570_v28  ;;  %5208 = vmatpush.bf16.msrb.mxu1 %v7317_v30  ;;  %v8805_v47 = vld [vmem:[%s10085_s20 + $0x48] sm:$0xff]  ;;  %v4939_v30 = vadd.f32 %v11233_v58, %v1820_v41  ;;  %v8843_v58 = vld [vmem:[%s10085_s20 + $0x178] sm:$0xff] }
 0x51a   : > { %v7826_v50 = vld [vmem:[%s10087_s23 + $0xe78] sm:$0xf0]  ;;  %v8813_v28 = vld [vmem:[%s10085_s20 + $0x88] sm:$0xff] }
 0x51b   : > { %v8543_v55 = vld [vmem:[%s10087_s23 + $0x81c] sm:$0xf]  ;;  %v7829_v53 = vor.u32 %v8743_v49, %v7826_v50  ;;  %5221 = vmatpush.bf16.msrb.mxu2 %v7573_v54  ;;  %v5018_v49 = vpop.f32.mrf.mxu2  ;;  %v8821_v50 = vld [vmem:[%s10085_s20 + $0xc8] sm:$0xff] }
 0x51c   : > { %v7026_v4 = vld [vmem:[%s10087_s23 + $0x838] sm:$0xf0] }
 0x51d   : > { %v8607_v60 = vld [vmem:[%s10087_s23 + $0xa1c] sm:$0xf]  ;;  %v7029_v56 = vor.u32 %v8543_v55, %v7026_v4  ;;  %5234 = vmatpush.bf16.msrb.mxu3 %v7829_v53 }
 0x51e   : > { %v7282_v35 = vld [vmem:[%s10087_s23 + $0xa38] sm:$0xf0] }
 0x51f   : > { %v8671_v51 = vld [vmem:[%s10087_s23 + $0xc1c] sm:$0xf]  ;;  %v7285_v5 = vor.u32 %v8607_v60, %v7282_v35  ;;  %5196 = vmatpush.bf16.msrb.mxu0 %v7029_v56  ;;  %v5242_v60 = vmax.f32 %v10727_v62, 0.0  ;;  %v8835_v35 = vld [vmem:[%s10085_s20 + $0x138] sm:$0xff]  ;;  %v5252_v62 = vpack.c.bf16 %v5243_v61, %v5243_v61  ;;  %v8850_v56 = vld [vmem:[%s10085_s20 + $0x1b0] sm:$0xff] }
 0x520   : > { %v7538_v0 = vld [vmem:[%s10087_s23 + $0xc38] sm:$0xf0] }
 0x521   : > { %v8735_v2 = vld [vmem:[%s10087_s23 + $0xe1c] sm:$0xf]  ;;  %v7541_v57 = vor.u32 %v8671_v51, %v7538_v0  ;;  %5209 = vmatpush.bf16.msrb.mxu1 %v7285_v5  ;;  %v5244_v51 = vmax.f32 %v11030_v43, 0.0  ;;  %v4952_v0 = vadd.f32 %v11238_v26, %v4939_v30  ;;  %v8842_v43 = vld [vmem:[%s10085_s20 + $0x170] sm:$0xff]  ;;  %v8833_v5 = vld [vmem:[%s10085_s20 + $0x128] sm:$0xff] }
 0x522   : > { %v7794_v3 = vld [vmem:[%s10087_s23 + $0xe38] sm:$0xf0]  ;;  %5197 = vmatmul.bf16.vlgmr.msrb.gmra.mxu0 %v11147_v42  ;;  %v8825_v42 = vld [vmem:[%s10085_s20 + $0xe8] sm:$0xff] }
 0x523   : > { %v7797_v6 = vor.u32 %v8735_v2, %v7794_v3  ;;  %5222 = vmatpush.bf16.msrb.mxu2 %v7541_v57  ;;  %5770 = vmatpush.bf16.msra.mxu0 %v8803_v33  ;;  %v8824_v17 = vld [vmem:[%s10085_s20 + $0xe0] sm:$0xff]  ;;  %v5251_v2 = vpack.c.bf16 %v5242_v60, %v5242_v60  ;;  %v5253_v3 = vpack.c.bf16 %v5244_v51, %v5244_v51  ;;  %v8841_v57 = vld [vmem:[%s10085_s20 + $0x168] sm:$0xff]  ;;  %v8859_v60 = vld [vmem:[%s10085_s20 + $0x1f8] sm:$0xff] }
 0x524   : > { %5210 = vmatmul.bf16.vlgmr.msrb.gmra.mxu1 %v11155_v48  ;;  %v8800_v48 = vld [vmem:[%s10085_s20 + $0x20] sm:$0xff]  ;;  %v4965_v26 = vadd.f32 %v11248_v18, %v4952_v0  ;;  %v8849_v33 = vld [vmem:[%s10085_s20 + $0x1a8] sm:$0xff]  ;;  %v5042_v18 = vpop.f32.mrf.mxu0 }
 0x525   : > { %5235 = vmatpush.bf16.msrb.mxu3 %v7797_v6  ;;  %5783 = vmatpush.bf16.msra.mxu1 %v8811_v59  ;;  %v8796_v54 = vld [vmem:[%s10085_s20] sm:$0xff] }
 0x526   : > { %5223 = vmatmul.bf16.vlgmr.msrb.gmra.mxu2 %v11141_v24  ;;  %v8808_v24 = vld [vmem:[%s10085_s20 + $0x60] sm:$0xff]  ;;  %v4978_v6 = vadd.f32 %v11253_v23, %v4965_v26  ;;  %v8839_v23 = vld [vmem:[%s10085_s20 + $0x158] sm:$0xff] }
 0x527   : > { %5796 = vmatpush.bf16.msra.mxu2 %v8819_v7  ;;  %5771 = vmatpush.bf16.msra.mxu0 %v8802_v10  ;;  %v8804_v55 = vld [vmem:[%s10085_s20 + $0x40] sm:$0xff] }
 0x528   : > { %5236 = vmatmul.bf16.vlgmr.msrb.gmra.mxu3 %v11150_v32  ;;  %v8816_v32 = vld [vmem:[%s10085_s20 + $0xa0] sm:$0xff]  ;;  %v4991_v10 = vadd.f32 %v11290_v16, %v4978_v6  ;;  %v8838_v16 = vld [vmem:[%s10085_s20 + $0x150] sm:$0xff] }
 0x529   : > { %5809 = vmatpush.bf16.msra.mxu3 %v8827_v9  ;;  %5784 = vmatpush.bf16.msra.mxu1 %v8810_v39  ;;  %v8812_v4 = vld [vmem:[%s10085_s20 + $0x80] sm:$0xff]  ;;  %v5055_v9 = vpop.f32.mrf.mxu1 }
 0x52a   : > { %v8820_v53 = vld [vmem:[%s10085_s20 + $0xc0] sm:$0xff] }
 0x52b   : > { %5797 = vmatpush.bf16.msra.mxu2 %v8818_v36  ;;  %5772 = vmatpush.bf16.msra.mxu0 %v8801_v11  ;;  %v8832_v59 = vld [vmem:[%s10085_s20 + $0x120] sm:$0xff]  ;;  %v8831_v36 = vld [vmem:[%s10085_s20 + $0x118] sm:$0xff]  ;;  %v5004_v11 = vadd.f32 %v11294_v14, %v4991_v10  ;;  %v8846_v14 = vld [vmem:[%s10085_s20 + $0x190] sm:$0xff] }
 0x52c   : > { %v8840_v7 = vld [vmem:[%s10085_s20 + $0x160] sm:$0xff] }
 0x52d   : > { %5810 = vmatpush.bf16.msra.mxu3 %v8826_v15  ;;  %5785 = vmatpush.bf16.msra.mxu1 %v8809_v12  ;;  %v8848_v39 = vld [vmem:[%s10085_s20 + $0x1a0] sm:$0xff]  ;;  %v5068_v15 = vpop.f32.mrf.mxu2  ;;  %v5081_v12 = vpop.f32.mrf.mxu3 }
 0x52f   : > { %5798 = vmatpush.bf16.msra.mxu2 %v8817_v13  ;;  %5773 = vmatpush.bf16.msra.mxu0 %v8800_v48  ;;  %v8847_v13 = vld [vmem:[%s10085_s20 + $0x198] sm:$0xff]  ;;  %v5044_v48 = vpop.f32.mrf.mxu0 }
 0x531   : > { %5811 = vmatpush.bf16.msra.mxu3 %v8825_v42  ;;  %5786 = vmatpush.bf16.msra.mxu1 %v8808_v24  ;;  %v8830_v42 = vld [vmem:[%s10085_s20 + $0x110] sm:$0xff]  ;;  %v5057_v24 = vpop.f32.mrf.mxu1 }
 0x533   : > { %5799 = vmatpush.bf16.msra.mxu2 %v8816_v32  ;;  %5774 = vmatpush.bf16.msra.mxu0 %v8799_v19  ;;  %v5017_v32 = vadd.f32 %v11300_v45, %v5004_v11  ;;  %v8845_v45 = vld [vmem:[%s10085_s20 + $0x188] sm:$0xff] }
 0x535   : > { %5812 = vmatpush.bf16.msra.mxu3 %v8824_v17  ;;  %5787 = vmatpush.bf16.msra.mxu1 %v8807_v22  ;;  %v11347_v17 = vld [vmem:[%s10080_s14] sm:$0xff]  ;;  %v8829_v22 = vld [vmem:[%s10085_s20 + $0x108] sm:$0xff]  ;;  %v5083_v31 = vpop.f32.mrf.mxu3 }
 0x536   : > { %v1821_v19 = vperm.slane %v11347_v17, 6 }
 0x537   : > { %5800 = vmatpush.bf16.msra.mxu2 %v8815_v20  ;;  %5775 = vmatpush.bf16.msra.mxu0 %v8798_v27  ;;  %v8837_v20 = vld [vmem:[%s10085_s20 + $0x148] sm:$0xff]  ;;  %v5030_v27 = vadd.f32 %v11303_v52, %v5017_v32 }
 0x539   : > { %5813 = vmatpush.bf16.msra.mxu3 %v8823_v25  ;;  %5788 = vmatpush.bf16.msra.mxu1 %v8806_v34  ;;  %v5070_v25 = vpop.f32.mrf.mxu2  ;;  %v5043_v34 = vadd.f32 %v5042_v18, %v1821_v19  ;;  %v5246_v41 = vmax.f32 %v5030_v27, 0.0  ;;  %v1822_v18 = vperm.slane %v11347_v17, 7 }
 0x53b   : > { %5801 = vmatpush.bf16.msra.mxu2 %v8814_v37  ;;  %5776 = vmatpush.bf16.msra.mxu0 %v8797_v44  ;;  %v8828_v37 = vld [vmem:[%s10085_s20 + $0x100] sm:$0xff]  ;;  %v5056_v44 = vadd.f32 %v5055_v9, %v5043_v34  ;;  %v5255_v49 = vpack.c.bf16 %v5246_v41, %v5246_v41 }
 0x53d   : > { %5814 = vmatpush.bf16.msra.mxu3 %v8822_v40  ;;  %5789 = vmatpush.bf16.msra.mxu1 %v8805_v47  ;;  %v8836_v40 = vld [vmem:[%s10085_s20 + $0x140] sm:$0xff]  ;;  %v5069_v52 = vadd.f32 %v5068_v15, %v5056_v44 }
 0x53e   : > { %v8844_v47 = vld [vmem:[%s10085_s20 + $0x180] sm:$0xff] }
 0x53f   : > { %5802 = vmatpush.bf16.msra.mxu2 %v8813_v28  ;;  %5777 = vmatpush.bf16.msra.mxu0 %v8796_v54  ;;  %v5254_v28 = vpack.c.bf16 %v5245_v38, %v5245_v38 }
 0x541   : > { %5815 = vmatpush.bf16.msra.mxu3 %v8821_v50  ;;  %5790 = vmatpush.bf16.msra.mxu1 %v8804_v55  ;;  %v5082_v50 = vadd.f32 %v5081_v12, %v5069_v52  ;;  %v5094_v29 = vpop.f32.mrf.mxu0 }
 0x542   : > { %5778 = vmatmul.bf16.vlgmr.msra.gmra.mxu0 %v5250_v8  ;;  %v8857_v8 = vld [vmem:[%s10085_s20 + $0x1e8] sm:$0xff] }
 0x543   : > { %5803 = vmatpush.bf16.msra.mxu2 %v8812_v4  ;;  %5822 = vmatpush.bf16.msrb.mxu0 %v8835_v35  ;;  %v5095_v21 = vadd.f32 %v5094_v29, %v5082_v50  ;;  %v5107_v30 = vpop.f32.mrf.mxu1  ;;  %v8858_v35 = vld [vmem:[%s10085_s20 + $0x1f0] sm:$0xff] }
 0x544   : > { %5791 = vmatmul.bf16.vlgmr.msra.gmra.mxu1 %v5251_v2 }
 0x545   : > { %5816 = vmatpush.bf16.msra.mxu3 %v8820_v53  ;;  %5835 = vmatpush.bf16.msrb.mxu1 %v8843_v58  ;;  %v5108_v54 = vadd.f32 %v5107_v30, %v5095_v21 }
 0x546   : > { %5804 = vmatmul.bf16.vlgmr.msra.gmra.mxu2 %v5252_v62  ;;  %v8856_v62 = vld [vmem:[%s10085_s20 + $0x1e0] sm:$0xff] }
 0x547   : > { %5848 = vmatpush.bf16.msrb.mxu2 %v8851_v1  ;;  %5823 = vmatpush.bf16.msrb.mxu0 %v8834_v46  ;;  %v8855_v46 = vld [vmem:[%s10085_s20 + $0x1d8] sm:$0xff] }
 0x548   : > { %5817 = vmatmul.bf16.vlgmr.msra.gmra.mxu3 %v5253_v3 }
 0x549   : > { %5836 = vmatpush.bf16.msrb.mxu1 %v8842_v43  ;;  %v5096_v53 = vpop.f32.mrf.mxu0  ;;  %5861 = vmatpush.bf16.msrb.mxu3 %v8859_v60  ;;  %v8854_v43 = vld [vmem:[%s10085_s20 + $0x1d0] sm:$0xff] }
 0x54b   : > { %5849 = vmatpush.bf16.msrb.mxu2 %v8850_v56  ;;  %5824 = vmatpush.bf16.msrb.mxu0 %v8833_v5  ;;  %v5120_v63 = vpop.f32.mrf.mxu2  ;;  %v5109_v51 = vpop.f32.mrf.mxu1  ;;  %v8853_v5 = vld [vmem:[%s10085_s20 + $0x1c8] sm:$0xff] }
 0x54c   : > { %v5121_v55 = vadd.f32 %v5120_v63, %v5108_v54 }
 0x54d   : > { %5837 = vmatpush.bf16.msrb.mxu1 %v8841_v57  ;;  %v5133_v4 = vpop.f32.mrf.mxu3  ;;  %5862 = vmatpush.bf16.msrb.mxu3 %v8858_v35 }
 0x54e   : > { %v5134_v61 = vadd.f32 %v5133_v4, %v5121_v55  ;;  %v5249_v55 = vld [vmem:[#allocation3] sm:$0x3] }
 0x54f   : > { %5850 = vmatpush.bf16.msrb.mxu2 %v8849_v33  ;;  %5825 = vmatpush.bf16.msrb.mxu0 %v8832_v59  ;;  %v8852_v59 = vld [vmem:[%s10085_s20 + $0x1c0] sm:$0xff] }
 0x550   : > { %v5247_v58 = vmax.f32 %v5134_v61, 0.0 }
 0x551   : > { %5838 = vmatpush.bf16.msrb.mxu1 %v8840_v7  ;;  %5863 = vmatpush.bf16.msrb.mxu3 %v8857_v8 }
 0x552   : > { %v5256_v0 = vpack.c.bf16 %v5247_v58, %v5247_v58 }
 0x553   : > { %5851 = vmatpush.bf16.msrb.mxu2 %v8848_v39  ;;  %5826 = vmatpush.bf16.msrb.mxu0 %v8831_v36  ;;  %v5122_v1 = vpop.f32.mrf.mxu2 }
 0x555   : > { %5839 = vmatpush.bf16.msrb.mxu1 %v8839_v23  ;;  %v5135_v2 = vpop.f32.mrf.mxu3  ;;  %5864 = vmatpush.bf16.msrb.mxu3 %v8856_v62 }
 0x557   : > { %5852 = vmatpush.bf16.msrb.mxu2 %v8847_v13  ;;  %5827 = vmatpush.bf16.msrb.mxu0 %v8830_v42 }
 0x559   : > { %5840 = vmatpush.bf16.msrb.mxu1 %v8838_v16  ;;  %5865 = vmatpush.bf16.msrb.mxu3 %v8855_v46 }
 0x55b   : > { %5853 = vmatpush.bf16.msrb.mxu2 %v8846_v14  ;;  %5828 = vmatpush.bf16.msrb.mxu0 %v8829_v22 }
 0x55d   : > { %5841 = vmatpush.bf16.msrb.mxu1 %v8837_v20  ;;  %5866 = vmatpush.bf16.msrb.mxu3 %v8854_v43 }
 0x55f   : > { %5854 = vmatpush.bf16.msrb.mxu2 %v8845_v45  ;;  %5829 = vmatpush.bf16.msrb.mxu0 %v8828_v37 }
 0x561   : > { %5842 = vmatpush.bf16.msrb.mxu1 %v8836_v40  ;;  %5867 = vmatpush.bf16.msrb.mxu3 %v8853_v5 }
 0x562   : > { %5830 = vmatmul.bf16.vlgmr.msrb.gmra.mxu0 %v5254_v28 }
 0x563   : > { %5855 = vmatpush.bf16.msrb.mxu2 %v8844_v47  ;;  %v5159_v26 = vpop.f32.mrf.mxu1 }
 0x564   : > { %5843 = vmatmul.bf16.vlgmr.msrb.gmra.mxu1 %v5255_v49 }
 0x565   : > { %5868 = vmatpush.bf16.msrb.mxu3 %v8852_v59 }
 0x566   : > { %5856 = vmatmul.bf16.vlgmr.msrb.gmra.mxu2 %v5256_v0 }
 0x56b   : > { %v5172_v56 = vpop.f32.mrf.mxu2  ;;  %v5161_v33 = vpop.f32.mrf.mxu1 }
 0x56d   : > { %v5185_v57 = vpop.f32.mrf.mxu3 }
 0x573   : > { %v5174_v7 = vpop.f32.mrf.mxu2 }
 0x575   : > { %v5187_v9 = vpop.f32.mrf.mxu3 }
 0x578   : > { %v5146_v3 = vpop.f32.mrf.mxu0 }
 0x579   : > { %v5147_v10 = vadd.f32 %v5146_v3, %v1822_v18 }
 0x57b   : > { %v5160_v39 = vadd.f32 %v5159_v26, %v5147_v10 }
 0x57d   : > { %v5173_v36 = vadd.f32 %v5172_v56, %v5160_v39 }
 0x57f   : > { %v5186_v23 = vadd.f32 %v5185_v57, %v5173_v36 }
 0x580   : > { %v5148_v6 = vpop.f32.mrf.mxu0 }
 0x59f   : > { %v5198_v15 = vpop.f32.mrf.mxu0 }
 0x5a0   : > { %v5199_v12 = vadd.f32 %v5198_v15, %v5186_v23 }
 0x5a1   : > { %v5211_v11 = vpop.f32.mrf.mxu1 }
 0x5a2   : > { %v5212_v13 = vadd.f32 %v5211_v11, %v5199_v12 }
 0x5a7   : > { %v5200_v24 = vpop.f32.mrf.mxu0 }
 0x5a9   : > { %v5224_v42 = vpop.f32.mrf.mxu2  ;;  %v5213_v32 = vpop.f32.mrf.mxu1 }
 0x5aa   : > { %v5225_v48 = vadd.f32 %v5224_v42, %v5212_v13 }
 0x5ab   : > { %v5237_v16 = vpop.f32.mrf.mxu3 }
 0x5ac   : > { %v5238_v19 = vadd.f32 %v5237_v16, %v5225_v48 }
 0x5ae   : > { %v5248_v14 = vmax.f32 %v5238_v19, 0.0 }
 0x5b0   : > { %v5257_v22 = vpack.c.bf16 %v5248_v14, %v5248_v14 }
 0x5b1   : > { %v5226_v20 = vpop.f32.mrf.mxu2 }
 0x5b2   : > { %5869 = vmatmul.bf16.vlgmr.msrb.gmra.mxu3 %v5257_v22 }
 0x5b3   : > { %v5239_v17 = vpop.f32.mrf.mxu3 }
 0x5bf   : > { %v5779_v25 = vpop.f32.mrf.mxu0 }
 0x5c1   : > { %v5792_v27 = vpop.f32.mrf.mxu1 }
 0x5c2   : > { %v5793_v31 = vadd.f32 %v5792_v27, %v5779_v25 }
 0x5c7   : > { %v5781_v38 = vpop.f32.mrf.mxu0 }
 0x5c9   : > { %v5805_v34 = vpop.f32.mrf.mxu2  ;;  %v5794_v40 = vpop.f32.mrf.mxu1 }
 0x5ca   : > { %v5806_v45 = vadd.f32 %v5805_v34, %v5793_v31 }
 0x5cb   : > { %v5818_v37 = vpop.f32.mrf.mxu3 }
 0x5cc   : > { %v5819_v41 = vadd.f32 %v5818_v37, %v5806_v45 }
 0x5d1   : > { %v5807_v44 = vpop.f32.mrf.mxu2 }
 0x5d3   : > { %v5820_v47 = vpop.f32.mrf.mxu3 }
 0x5df   : > { %v5831_v28 = vpop.f32.mrf.mxu0 }
 0x5e0   : > { %v5832_v49 = vadd.f32 %v5831_v28, %v5819_v41 }
 0x5e1   : > { %v5844_v52 = vpop.f32.mrf.mxu1 }
 0x5e2   : > { %v5845_v50 = vadd.f32 %v5844_v52, %v5832_v49 }
 0x5e7   : > { %v5833_v29 = vpop.f32.mrf.mxu0 }
 0x5e9   : > { %v5846_v21 = vpop.f32.mrf.mxu1  ;;  %v5857_v30 = vpop.f32.mrf.mxu2 }
 0x5ea   : > { %v5858_v63 = vadd.f32 %v5857_v30, %v5845_v50 }
 0x5f1   : > { %v5859_v54 = vpop.f32.mrf.mxu2 }
 0x635   : > { %v5870_v4 = vpop.f32.mrf.mxu3 }
 0x636   : > { %v5871_v60 = vadd.f32 %v5870_v4, %v5858_v63 }
 0x638   : > { %v5874_v61 = vadd.f32 %v5871_v60, %v5249_v55 }
 0x639   : > { %5879 = sbr.rel (%p8278_p11) target bundleno = 1605 (0x645), region = 71 }
 0x63a   : > { %5875 = vst [vmem:[#allocation3] sm:$0x3] %v5874_v61 }
 0x63d   : > { %v5872_v53 = vpop.f32.mrf.mxu3 }
 0x63e   : > { %v8919_v51 = vld [vmem:[%s11390_s4] ss:$0 sm:$0xff] }
 0x641   : > { %v5880_v35 = vld [vmem:[#allocation3] sm:$0x3] }
 0x642   : > { %v5885_v58 = vadd.f32 %v8919_v51, %v5880_v35 }
 0x644   : > { %5886 = vst [vmem:[#allocation3] sm:$0x3] %v5885_v58 }
 0x645 PF: > { %p8864_p12 = scmp.eq.s32.totalorder %s9024_s21, 1  ;;  %s8977_s28 = smov [#allocation3]  }
 0x646   : > { %s5893_s29 = sshll.u32 %s8977_s28, 4  ;;  %s5895_s7 = sshll.u32 %s11391_s5, 4  ;;  %s5894_s29 = int_to_ptr.vmem [resolvable:$true] %s5893_s29  ;;  %s5896_s7 = int_to_ptr.hbm [resolvable:$true] %s5895_s7 }
 0x647   : > { %8861 = dma.vmem_to_hbm [thread:$0]  (%p8864_p12), %s5894_s29, 32, %s5896_s7, [#allocation4]  }
 0x648   : > { %8961 = dma.done.wait (%p8864_p12), [#allocation4], 32  }
 0x649   : > { %8963 = vsyncadd (%p8864_p12), [#allocation4], 4294967264 }
 0x64a PF: > { %p13_p13 = scmp.ge.s32.totalorder %s9027_s22, 4   ;;  %s11392_s18 = smov %s8970_s19 }
 0x64b   : > { %s11393_s19 = smov %s9036_s25  ;;  %s11394_s20 = smov %s9027_s22 }
 0x64c   :  { %15 = sbr.rel (!%p13_p13) target bundleno = 2 (0x2), region = 109 }
 0x651   :  { %5909 = vsyncpa [#allocation4], 1 }
 0x652   :  { %5911 = vsyncpa [#allocation4 + $0x1], 1 }

</bundles_post_ra>
